<compile_context>
chip_gen: v7x
topology: tpu7x:2x2x1
jax: 0.10.0
libtpu: 0.0.40
codegen_flags: <defaults>
</compile_context>

<pallas_src>
import functools

import jax
import jax.numpy as jnp
from jax.experimental import pallas as pl
from jax.experimental.pallas import tpu as pltpu

EPS = 1e-5           # BatchNorm2d default eps
LRELU_SLOPE = 0.2    # LeakyReLU negative slope
KSIZE = 4            # kernel_size
PAD = 2              # int(ceil((4 - 1) / 2))


def _round_up(x, m):
    return (x + m - 1) // m * m


def _usable_vmem_bytes():
    """~3/4 of the physical per-core VMEM (v7x: ~48 MiB, v5e/v6e: ~96 MiB)."""
    try:
        cap = int(pltpu.get_tpu_info().vmem_capacity_bytes)
    except Exception:                      # conservative fallback (v7x-sized)
        cap = 64 << 20
    return max(cap * 3 // 4, 32 << 20)


# ---------------------------------------------------------------------------
# Pallas kernels
# ---------------------------------------------------------------------------
def _conv_gemm_kernel(x_ref, w_ref, b_ref, o_ref, *, activation):
    """One (TM, K) x (K, Cp) GEMM tile + bias + optional fused activation."""
    acc = jnp.dot(x_ref[...], w_ref[...], preferred_element_type=jnp.float32)
    acc = acc + b_ref[...]
    if activation == "leaky_relu":
        acc = jnp.where(acc >= 0, acc, LRELU_SLOPE * acc)
    elif activation == "sigmoid":
        acc = jax.nn.sigmoid(acc)
    o_ref[...] = acc.astype(o_ref.dtype)


def _conv_gemm_stats_kernel(x_ref, w_ref, b_ref, o_ref, sum_ref, ssq_ref, *,
                            m_valid, tile_m, tiles_per_core):
    """GEMM tile + bias; accumulates per-channel sum / sum-of-squares of the
    conv output across the sequential M grid axis (fused BatchNorm stats).

    Grid is (2, tiles_per_core): leading axis is "parallel" (v7x megacore
    split); each slice owns its own (1, 1, Cp) accumulator block, summed in
    XLA afterwards.
    """
    c = pl.program_id(0)          # megacore slice
    i = pl.program_id(1)          # M tiles owned by this slice ("arbitrary")
    acc = jnp.dot(x_ref[...], w_ref[...], preferred_element_type=jnp.float32)
    acc = acc + b_ref[...]
    o_ref[...] = acc.astype(o_ref.dtype)

    @pl.when(i == 0)
    def _():
        sum_ref[...] = jnp.zeros_like(sum_ref)
        ssq_ref[...] = jnp.zeros_like(ssq_ref)

    def _acc_stats(vals):
        sum_ref[...] += jnp.sum(vals, axis=0, keepdims=True).reshape(sum_ref.shape)
        ssq_ref[...] += jnp.sum(vals * vals, axis=0, keepdims=True).reshape(ssq_ref.shape)

    row0 = (c * tiles_per_core + i) * tile_m
    fully_valid = row0 + tile_m <= m_valid

    @pl.when(fully_valid)          # common case: no padded rows, no masking
    def _():
        _acc_stats(acc)

    @pl.when(jnp.logical_not(fully_valid))
    def _():
        rows = row0 + jax.lax.broadcasted_iota(jnp.int32, acc.shape, 0)
        _acc_stats(jnp.where(rows < m_valid, acc, 0.0))


# ---------------------------------------------------------------------------
# Tiling / compiler-param helpers
# ---------------------------------------------------------------------------
def _pick_tile_m(m, k, cp, out_bytes, usable_vmem):
    # Budget roughly half the scoped VMEM for the double-buffered per-step
    # tiles (the rest covers resident weights/bias/accumulators and Mosaic
    # internals).  Tiles are multiples of 256 rows (MXU friendly), up to 2048
    # rows on 128 MiB parts to amortize the ~0.35 us per-step overhead.
    budget = max(usable_vmem // 2 - 2 * k * cp * 2, 4 << 20)
    per_row = 2 * (2 * k) + 2 * out_bytes * cp
    tile = budget // max(per_row, 1)
    tile = max(256, min(2048, (tile // 256) * 256))
    return min(tile, _round_up(m, 256))


def _gemm_compiler_params(tile_m, k, cp, out_bytes, n_stats, semantics, usable_vmem):
    need = (2 * tile_m * k * 2              # double-buffered bf16 patch tile
            + 2 * tile_m * cp * out_bytes   # double-buffered output tile
            + 2 * k * cp * 2                # resident bf16 weights (assume 2x)
            + 2 * cp * 4                    # resident f32 bias
            + n_stats * 2 * cp * 4          # resident f32 stat accumulators
            + (4 << 20))                    # slack for Mosaic internals
    vmem = int(min(max(need, 32 << 20), usable_vmem))
    return pltpu.CompilerParams(dimension_semantics=semantics,
                                vmem_limit_bytes=vmem)


# ---------------------------------------------------------------------------
# im2col + GEMM wrappers (activations are NHWC; patches are (M, 16*C))
# ---------------------------------------------------------------------------
def _im2col(x_nhwc, stride):
    n, h, w, c = x_nhwc.shape
    ho = (h + 2 * PAD - KSIZE) // stride + 1
    wo = (w + 2 * PAD - KSIZE) // stride + 1
    xp = jnp.pad(x_nhwc.astype(jnp.bfloat16),
                 ((0, 0), (PAD, PAD), (PAD, PAD), (0, 0)))
    cols = []
    for kh in range(KSIZE):
        for kw in range(KSIZE):
            cols.append(xp[:, kh:kh + stride * (ho - 1) + 1:stride,
                            kw:kw + stride * (wo - 1) + 1:stride, :])
    patches = jnp.stack(cols, axis=3)                   # (N, Ho, Wo, 16, C)
    return patches.reshape(n * ho * wo, KSIZE * KSIZE * c), (n, ho, wo)


def _prep_gemm(x_nhwc, w, b, stride, *, out_bytes, m_align_tiles, pad_cout_to=None):
    patches, (n, ho, wo) = _im2col(x_nhwc, stride)
    m, k = patches.shape
    cout = w.shape[0]
    # (Cout, Cin, kh, kw) -> (kh, kw, Cin, Cout) -> (K, Cout): matches the
    # (kh, kw, c) column ordering of the patches.
    wmat = jnp.transpose(w, (2, 3, 1, 0)).reshape(k, cout).astype(jnp.bfloat16)
    bias = b.astype(jnp.float32).reshape(1, cout)
    cp = cout
    if pad_cout_to is not None and cout < pad_cout_to:   # lane-dense stores
        cp = pad_cout_to
        wmat = jnp.pad(wmat, ((0, 0), (0, cp - cout)))
        bias = jnp.pad(bias, ((0, 0), (0, cp - cout)))
    usable_vmem = _usable_vmem_bytes()
    tile_m = _pick_tile_m(m, k, cp, out_bytes, usable_vmem)
    mp = _round_up(m, m_align_tiles * tile_m)
    if mp != m:
        patches = jnp.pad(patches, ((0, mp - m), (0, 0)))
    geom = dict(n=n, ho=ho, wo=wo, m=m, mp=mp, k=k, cout=cout, cp=cp,
                tile_m=tile_m, usable_vmem=usable_vmem)
    return patches, wmat, bias, geom


def conv2d_act(x_nhwc, w, b, stride, *, activation=None,
               out_dtype=jnp.bfloat16, pad_cout_to=None):
    """4x4 conv (pad=2) with fused bias + optional LeakyReLU / Sigmoid."""
    out_bytes = jnp.dtype(out_dtype).itemsize
    patches, wmat, bias, g = _prep_gemm(x_nhwc, w, b, stride, out_bytes=out_bytes,
                                        m_align_tiles=1, pad_cout_to=pad_cout_to)
    tm, k, cp, mp = g["tile_m"], g["k"], g["cp"], g["mp"]
    out2d = pl.pallas_call(
        functools.partial(_conv_gemm_kernel, activation=activation),
        out_shape=jax.ShapeDtypeStruct((mp, cp), out_dtype),
        grid=(mp // tm,),
        in_specs=[
            pl.BlockSpec((tm, k), lambda i: (i, 0)),
            pl.BlockSpec((k, cp), lambda i: (0, 0)),
            pl.BlockSpec((1, cp), lambda i: (0, 0)),
        ],
        out_specs=pl.BlockSpec((tm, cp), lambda i: (i, 0)),
        compiler_params=_gemm_compiler_params(tm, k, cp, out_bytes, 0,
                                              ("parallel",), g["usable_vmem"]),
        cost_estimate=pl.CostEstimate(
            flops=2 * mp * k * cp,
            transcendentals=mp * cp if activation == "sigmoid" else 0,
            bytes_accessed=mp * k * 2 + k * cp * 2 + mp * cp * out_bytes),
    )(patches, wmat, bias)
    out2d = out2d[:g["m"], :g["cout"]]
    return out2d.reshape(g["n"], g["ho"], g["wo"], g["cout"])


def conv2d_bn_lrelu(x_nhwc, w, b, gamma, beta, stride):
    """4x4 conv (pad=2) -> BatchNorm2d (training-mode batch stats, biased var,
    eps=1e-5, affine) -> LeakyReLU(0.2).

    The Pallas kernel produces the raw conv+bias output (f32) plus per-channel
    sum / sum-of-squares; the normalization is a (1, C) rescale done as a plain
    XLA elementwise that fuses into the next layer's pad / im2col producer.
    """
    patches, wmat, bias, g = _prep_gemm(x_nhwc, w, b, stride, out_bytes=4,
                                        m_align_tiles=2)
    tm, k, cp, mp, m = g["tile_m"], g["k"], g["cp"], g["mp"], g["m"]
    tiles_per_core = mp // (2 * tm)

    raw2d, ch_sum, ch_ssq = pl.pallas_call(
        functools.partial(_conv_gemm_stats_kernel, m_valid=m, tile_m=tm,
                          tiles_per_core=tiles_per_core),
        out_shape=(
            jax.ShapeDtypeStruct((mp, cp), jnp.float32),
            jax.ShapeDtypeStruct((2, 1, cp), jnp.float32),
            jax.ShapeDtypeStruct((2, 1, cp), jnp.float32),
        ),
        grid=(2, tiles_per_core),
        in_specs=[
            pl.BlockSpec((tm, k), lambda c, i: (c * tiles_per_core + i, 0)),
            pl.BlockSpec((k, cp), lambda c, i: (0, 0)),
            pl.BlockSpec((1, cp), lambda c, i: (0, 0)),
        ],
        out_specs=(
            pl.BlockSpec((tm, cp), lambda c, i: (c * tiles_per_core + i, 0)),
            pl.BlockSpec((1, 1, cp), lambda c, i: (c, 0, 0)),   # per-slice acc
            pl.BlockSpec((1, 1, cp), lambda c, i: (c, 0, 0)),   # per-slice acc
        ),
        compiler_params=_gemm_compiler_params(tm, k, cp, 4, 2,
                                              ("parallel", "arbitrary"),
                                              g["usable_vmem"]),
        cost_estimate=pl.CostEstimate(
            flops=2 * mp * k * cp, transcendentals=0,
            bytes_accessed=mp * k * 2 + k * cp * 2 + mp * cp * 4),
    )(patches, wmat, bias)

    # (1, C) statistics + normalize + LeakyReLU in XLA: fuses into the next
    # layer's im2col producer, so no extra HBM pass over the activation.
    count = float(m)
    tot_sum = ch_sum.sum(axis=(0, 1))
    tot_ssq = ch_ssq.sum(axis=(0, 1))
    mean = tot_sum / count
    # TODO(synk): one-pass E[x^2]-E[x]^2 can cancel for large-mean channels;
    # switch to a shifted/two-pass reduction if that ever matters in practice.
    var = jnp.maximum(tot_ssq / count - mean * mean, 0.0)
    scale = gamma.astype(jnp.float32) * jax.lax.rsqrt(var + EPS)
    shift = beta.astype(jnp.float32) - mean * scale
    raw = raw2d[:m, :g["cout"]].reshape(g["n"], g["ho"], g["wo"], g["cout"])
    y = raw * scale + shift
    return jnp.where(y >= 0, y, LRELU_SLOPE * y)


# ---------------------------------------------------------------------------
# Model: config / init / apply (mirrors the PyTorch constructor exactly)
# ---------------------------------------------------------------------------
def build_nlayer_discriminator(input_nc, ndf=64, n_layers=3, use_sigmoid=False):
    cfg = [dict(kind="conv_lrelu", cin=input_nc, cout=ndf, stride=2)]
    nf_mult = 1
    for n in range(1, n_layers):
        nf_prev, nf_mult = nf_mult, min(2 ** n, 8)
        cfg.append(dict(kind="conv_bn_lrelu",
                        cin=ndf * nf_prev, cout=ndf * nf_mult, stride=2))
    nf_prev, nf_mult = nf_mult, min(2 ** n_layers, 8)
    cfg.append(dict(kind="conv_bn_lrelu",
                    cin=ndf * nf_prev, cout=ndf * nf_mult, stride=1))
    cfg.append(dict(kind="conv_out", cin=ndf * nf_mult, cout=1, stride=1))

    def init(key):
        params = []
        keys = jax.random.split(key, len(cfg))
        for lk, layer in zip(keys, cfg):
            kw_, kb_ = jax.random.split(lk)
            fan_in = layer["cin"] * KSIZE * KSIZE
            bound = 1.0 / (fan_in ** 0.5)
            p = dict(
                w=jax.random.uniform(kw_, (layer["cout"], layer["cin"], KSIZE, KSIZE),
                                     jnp.float32, -bound, bound),
                b=jax.random.uniform(kb_, (layer["cout"],), jnp.float32, -bound, bound),
            )
            if layer["kind"] == "conv_bn_lrelu":
                p["gamma"] = jnp.ones((layer["cout"],), jnp.float32)
                p["beta"] = jnp.zeros((layer["cout"],), jnp.float32)
            params.append(p)
        return params

    def apply(params, x_nchw):
        h = jnp.transpose(x_nchw, (0, 2, 3, 1))            # NCHW -> NHWC once
        for layer, p in zip(cfg, params):
            if layer["kind"] == "conv_lrelu":
                h = conv2d_act(h, p["w"], p["b"], layer["stride"],
                               activation="leaky_relu")
            elif layer["kind"] == "conv_bn_lrelu":
                h = conv2d_bn_lrelu(h, p["w"], p["b"], p["gamma"], p["beta"],
                                    layer["stride"])
            else:   # final 1-channel conv (+ optional sigmoid), lane-padded to 128
                h = conv2d_act(h, p["w"], p["b"], layer["stride"],
                               activation="sigmoid" if use_sigmoid else None,
                               out_dtype=jnp.float32, pad_cout_to=128)
        return jnp.transpose(h, (0, 3, 1, 2))              # NHWC -> NCHW once

    return init, apply


if __name__ == "__main__":
    input_nc, ndf, n_layers = 4, 8, 3
    key = jax.random.PRNGKey(0)
    kx, kp = jax.random.split(key)
    x = jax.random.normal(kx, (2, input_nc, 16, 16), jnp.float32)      # NCHW like PyTorch

    init, apply = build_nlayer_discriminator(input_nc, ndf=ndf, n_layers=n_layers,
                                             use_sigmoid=False)
    params = init(kp)
    fwd = jax.jit(apply)
    out = fwd(params, x)
    jax.block_until_ready(out)
    # spatial: 16 -> 9 -> 5 -> 3 -> 4 -> 5  (k=4, p=2, strides 2,2,2,1,1)
    assert out.shape == (2, 1, 5, 5), out.shape
    print("KERNEL_OK")
</pallas_src>

<mosaic_0001>
module attributes {stable_mosaic.version = 11 : i64} {
  func.func @_conv_gemm_kernel(%arg0: i32, %arg1: memref<256x64xbf16, #tpu.memory_space<vmem>>, %arg2: memref<64x8xbf16, #tpu.memory_space<vmem>>, %arg3: memref<1x8xf32, #tpu.memory_space<vmem>>, %arg4: memref<256x8xbf16, #tpu.memory_space<vmem>>) attributes {dimension_semantics = [#tpu.dimension_semantics<parallel>], iteration_bounds = array<i64: 1>, scalar_prefetch = 0 : i64, scratch_operands = 0 : i64, tpu.core_type = #tpu.core_type<tc>, window_params = [{transform_indices = @transform_0, window_bounds = array<i64: 256, 64>}, {pipeline_mode = #tpu.pipeline_mode<synchronous>, transform_indices = @transform_1, window_bounds = array<i64: 64, 8>}, {pipeline_mode = #tpu.pipeline_mode<synchronous>, transform_indices = @transform_2, window_bounds = array<i64: 1, 8>}, {transform_indices = @transform_3, window_bounds = array<i64: 256, 8>}]} {
    %c0 = arith.constant 0 : index
    %c0_0 = arith.constant 0 : index
    %0 = vector.load %arg1[%c0, %c0_0] : memref<256x64xbf16, #tpu.memory_space<vmem>>, vector<256x64xbf16>
    %c0_1 = arith.constant 0 : index
    %c0_2 = arith.constant 0 : index
    %1 = vector.load %arg2[%c0_1, %c0_2] : memref<64x8xbf16, #tpu.memory_space<vmem>>, vector<64x8xbf16>
    %cst = arith.constant dense<0.000000e+00> : vector<256x8xf32>
    %2 = tpu.matmul %0, %1, %cst {dimension_numbers = #tpu.dot_dimension_numbers<[1], [0], [0], [1], [0, 0, 1, 1], [], []>} : vector<256x64xbf16>, vector<64x8xbf16>, vector<256x8xf32> -> vector<256x8xf32>
    %c0_3 = arith.constant 0 : index
    %c0_4 = arith.constant 0 : index
    %3 = vector.load %arg3[%c0_3, %c0_4] : memref<1x8xf32, #tpu.memory_space<vmem>>, vector<1x8xf32>
    %4 = vector.broadcast %3 : vector<1x8xf32> to vector<256x8xf32>
    %5 = arith.addf %2, %4 : vector<256x8xf32>
    %cst_5 = arith.constant 0.000000e+00 : f32
    %6 = vector.broadcast %cst_5 : f32 to vector<256x8xf32>
    %7 = arith.cmpf oge, %5, %6 : vector<256x8xf32>
    %cst_6 = arith.constant 2.000000e-01 : f32
    %8 = vector.broadcast %cst_6 : f32 to vector<256x8xf32>
    %9 = arith.mulf %8, %5 : vector<256x8xf32>
    %10 = arith.select %7, %5, %9 : vector<256x8xi1>, vector<256x8xf32>
    %11 = arith.truncf %10 : vector<256x8xf32> to vector<256x8xbf16>
    %c0_7 = arith.constant 0 : index
    %c0_8 = arith.constant 0 : index
    %12 = vector.load %arg4[%c0_7, %c0_8] : memref<256x8xbf16, #tpu.memory_space<vmem>>, vector<256x8xbf16>
    tpu.vector_store %arg4[%c0_7, %c0_8], %11 {strides = array<i32>} : memref<256x8xbf16, #tpu.memory_space<vmem>>, vector<256x8xbf16>,
    return
  }
  func.func @transform_0(%arg0: i32) -> (i32, i32) {
    %c0_i32 = arith.constant 0 : i32
    %c0_i32_0 = arith.constant 0 : i32
    return %arg0, %c0_i32 : i32, i32
  }
  func.func @transform_1(%arg0: i32) -> (i32, i32) {
    %c0_i32 = arith.constant 0 : i32
    %c0_i32_0 = arith.constant 0 : i32
    %c0_i32_1 = arith.constant 0 : i32
    return %c0_i32, %c0_i32_0 : i32, i32
  }
  func.func @transform_2(%arg0: i32) -> (i32, i32) {
    %c0_i32 = arith.constant 0 : i32
    %c0_i32_0 = arith.constant 0 : i32
    %c0_i32_1 = arith.constant 0 : i32
    return %c0_i32, %c0_i32_0 : i32, i32
  }
  func.func @transform_3(%arg0: i32) -> (i32, i32) {
    %c0_i32 = arith.constant 0 : i32
    %c0_i32_0 = arith.constant 0 : i32
    return %arg0, %c0_i32 : i32, i32
  }
}

module attributes {stable_mosaic.version = 11 : i64} {
  func.func @_conv_gemm_stats_kernel(%arg0: i32, %arg1: i32, %arg2: memref<256x128xbf16, #tpu.memory_space<vmem>>, %arg3: memref<128x16xbf16, #tpu.memory_space<vmem>>, %arg4: memref<1x16xf32, #tpu.memory_space<vmem>>, %arg5: memref<256x16xf32, #tpu.memory_space<vmem>>, %arg6: memref<1x1x16xf32, #tpu.memory_space<vmem>>, %arg7: memref<1x1x16xf32, #tpu.memory_space<vmem>>) attributes {dimension_semantics = [#tpu.dimension_semantics<parallel>, #tpu.dimension_semantics<arbitrary>], iteration_bounds = array<i64: 2, 1>, scalar_prefetch = 0 : i64, scratch_operands = 0 : i64, tpu.core_type = #tpu.core_type<tc>, window_params = [{transform_indices = @transform_0, window_bounds = array<i64: 256, 128>}, {pipeline_mode = #tpu.pipeline_mode<synchronous>, transform_indices = @transform_1, window_bounds = array<i64: 128, 16>}, {pipeline_mode = #tpu.pipeline_mode<synchronous>, transform_indices = @transform_2, window_bounds = array<i64: 1, 16>}, {transform_indices = @transform_3, window_bounds = array<i64: 256, 16>}, {transform_indices = @transform_4, window_bounds = array<i64: 1, 1, 16>}, {transform_indices = @transform_5, window_bounds = array<i64: 1, 1, 16>}]} {
    %c0 = arith.constant 0 : index
    %c0_0 = arith.constant 0 : index
    %0 = vector.load %arg2[%c0, %c0_0] : memref<256x128xbf16, #tpu.memory_space<vmem>>, vector<256x128xbf16>
    %c0_1 = arith.constant 0 : index
    %c0_2 = arith.constant 0 : index
    %1 = vector.load %arg3[%c0_1, %c0_2] : memref<128x16xbf16, #tpu.memory_space<vmem>>, vector<128x16xbf16>
    %cst = arith.constant dense<0.000000e+00> : vector<256x16xf32>
    %2 = tpu.matmul %0, %1, %cst {dimension_numbers = #tpu.dot_dimension_numbers<[1], [0], [0], [1], [0, 0, 1, 1], [], []>} : vector<256x128xbf16>, vector<128x16xbf16>, vector<256x16xf32> -> vector<256x16xf32>
    %c0_3 = arith.constant 0 : index
    %c0_4 = arith.constant 0 : index
    %3 = vector.load %arg4[%c0_3, %c0_4] : memref<1x16xf32, #tpu.memory_space<vmem>>, vector<1x16xf32>
    %4 = vector.broadcast %3 : vector<1x16xf32> to vector<256x16xf32>
    %5 = arith.addf %2, %4 : vector<256x16xf32>
    %c0_5 = arith.constant 0 : index
    %c0_6 = arith.constant 0 : index
    %6 = vector.load %arg5[%c0_5, %c0_6] : memref<256x16xf32, #tpu.memory_space<vmem>>, vector<256x16xf32>
    tpu.vector_store %arg5[%c0_5, %c0_6], %5 {strides = array<i32>} : memref<256x16xf32, #tpu.memory_space<vmem>>, vector<256x16xf32>,
    %c0_i32 = arith.constant 0 : i32
    %7 = arith.cmpi eq, %arg1, %c0_i32 : i32
    %8 = arith.extui %7 : i1 to i32
    %c0_i32_7 = arith.constant 0 : i32
    %9 = arith.cmpi ne, %8, %c0_i32_7 : i32
    scf.if %9 {
      %cst_11 = arith.constant 0.000000e+00 : f32
      %20 = vector.broadcast %cst_11 : f32 to vector<1x1x16xf32>
      %c0_12 = arith.constant 0 : index
      %c0_13 = arith.constant 0 : index
      %c0_14 = arith.constant 0 : index
      %21 = vector.load %arg6[%c0_12, %c0_13, %c0_14] : memref<1x1x16xf32, #tpu.memory_space<vmem>>, vector<1x1x16xf32>
      tpu.vector_store %arg6[%c0_12, %c0_13, %c0_14], %20 {strides = array<i32>} : memref<1x1x16xf32, #tpu.memory_space<vmem>>, vector<1x1x16xf32>,
      %cst_15 = arith.constant 0.000000e+00 : f32
      %22 = vector.broadcast %cst_15 : f32 to vector<1x1x16xf32>
      %c0_16 = arith.constant 0 : index
      %c0_17 = arith.constant 0 : index
      %c0_18 = arith.constant 0 : index
      %23 = vector.load %arg7[%c0_16, %c0_17, %c0_18] : memref<1x1x16xf32, #tpu.memory_space<vmem>>, vector<1x1x16xf32>
      tpu.vector_store %arg7[%c0_16, %c0_17, %c0_18], %22 {strides = array<i32>} : memref<1x1x16xf32, #tpu.memory_space<vmem>>, vector<1x1x16xf32>,
    } else {
    }
    %c1_i32 = arith.constant 1 : i32
    %10 = arith.muli %arg0, %c1_i32 : i32
    %11 = arith.addi %10, %arg1 : i32
    %c256_i32 = arith.constant 256 : i32
    %12 = arith.muli %11, %c256_i32 : i32
    %c256_i32_8 = arith.constant 256 : i32
    %13 = arith.addi %12, %c256_i32_8 : i32
    %c50_i32 = arith.constant 50 : i32
    %14 = arith.cmpi sle, %13, %c50_i32 : i32
    %15 = arith.extui %14 : i1 to i32
    %c0_i32_9 = arith.constant 0 : i32
    %16 = arith.cmpi ne, %15, %c0_i32_9 : i32
    scf.if %16 {
      %c0_11 = arith.constant 0 : index
      %c0_12 = arith.constant 0 : index
      %c0_13 = arith.constant 0 : index
      %20 = vector.load %arg6[%c0_11, %c0_12, %c0_13] : memref<1x1x16xf32, #tpu.memory_space<vmem>>, vector<1x1x16xf32>
      %cst_14 = arith.constant dense<0.000000e+00> : vector<16xf32>
      %21 = vector.multi_reduction <add>, %5, %cst_14 [0] : vector<256x16xf32> to vector<16xf32>
      %22 = vector.shape_cast %21 : vector<16xf32> to vector<1x16xf32>
      %23 = vector.shape_cast %22 : vector<1x16xf32> to vector<1x1x16xf32>
      %24 = arith.addf %20, %23 : vector<1x1x16xf32>
      %c0_15 = arith.constant 0 : index
      %c0_16 = arith.constant 0 : index
      %c0_17 = arith.constant 0 : index
      %25 = vector.load %arg6[%c0_15, %c0_16, %c0_17] : memref<1x1x16xf32, #tpu.memory_space<vmem>>, vector<1x1x16xf32>
      tpu.vector_store %arg6[%c0_15, %c0_16, %c0_17], %24 {strides = array<i32>} : memref<1x1x16xf32, #tpu.memory_space<vmem>>, vector<1x1x16xf32>,
      %c0_18 = arith.constant 0 : index
      %c0_19 = arith.constant 0 : index
      %c0_20 = arith.constant 0 : index
      %26 = vector.load %arg7[%c0_18, %c0_19, %c0_20] : memref<1x1x16xf32, #tpu.memory_space<vmem>>, vector<1x1x16xf32>
      %27 = arith.mulf %5, %5 : vector<256x16xf32>
      %cst_21 = arith.constant dense<0.000000e+00> : vector<16xf32>
      %28 = vector.multi_reduction <add>, %27, %cst_21 [0] : vector<256x16xf32> to vector<16xf32>
      %29 = vector.shape_cast %28 : vector<16xf32> to vector<1x16xf32>
      %30 = vector.shape_cast %29 : vector<1x16xf32> to vector<1x1x16xf32>
      %31 = arith.addf %26, %30 : vector<1x1x16xf32>
      %c0_22 = arith.constant 0 : index
      %c0_23 = arith.constant 0 : index
      %c0_24 = arith.constant 0 : index
      %32 = vector.load %arg7[%c0_22, %c0_23, %c0_24] : memref<1x1x16xf32, #tpu.memory_space<vmem>>, vector<1x1x16xf32>
      tpu.vector_store %arg7[%c0_22, %c0_23, %c0_24], %31 {strides = array<i32>} : memref<1x1x16xf32, #tpu.memory_space<vmem>>, vector<1x1x16xf32>,
    } else {
    }
    %true = arith.constant true
    %17 = arith.xori %14, %true : i1
    %18 = arith.extui %17 : i1 to i32
    %c0_i32_10 = arith.constant 0 : i32
    %19 = arith.cmpi ne, %18, %c0_i32_10 : i32
    scf.if %19 {
      %20 = tpu.iota {dimensions = array<i32: 0>} : vector<256x16xi32>
      %21 = vector.broadcast %12 : i32 to vector<256x16xi32>
      %22 = arith.addi %21, %20 : vector<256x16xi32>
      %c50_i32_11 = arith.constant 50 : i32
      %23 = vector.broadcast %c50_i32_11 : i32 to vector<256x16xi32>
      %24 = arith.cmpi slt, %22, %23 : vector<256x16xi32>
      %cst_12 = arith.constant 0.000000e+00 : f32
      %25 = vector.broadcast %cst_12 : f32 to vector<256x16xf32>
      %26 = arith.select %24, %5, %25 : vector<256x16xi1>, vector<256x16xf32>
      %c0_13 = arith.constant 0 : index
      %c0_14 = arith.constant 0 : index
      %c0_15 = arith.constant 0 : index
      %27 = vector.load %arg6[%c0_13, %c0_14, %c0_15] : memref<1x1x16xf32, #tpu.memory_space<vmem>>, vector<1x1x16xf32>
      %cst_16 = arith.constant dense<0.000000e+00> : vector<16xf32>
      %28 = vector.multi_reduction <add>, %26, %cst_16 [0] : vector<256x16xf32> to vector<16xf32>
      %29 = vector.shape_cast %28 : vector<16xf32> to vector<1x16xf32>
      %30 = vector.shape_cast %29 : vector<1x16xf32> to vector<1x1x16xf32>
      %31 = arith.addf %27, %30 : vector<1x1x16xf32>
      %c0_17 = arith.constant 0 : index
      %c0_18 = arith.constant 0 : index
      %c0_19 = arith.constant 0 : index
      %32 = vector.load %arg6[%c0_17, %c0_18, %c0_19] : memref<1x1x16xf32, #tpu.memory_space<vmem>>, vector<1x1x16xf32>
      tpu.vector_store %arg6[%c0_17, %c0_18, %c0_19], %31 {strides = array<i32>} : memref<1x1x16xf32, #tpu.memory_space<vmem>>, vector<1x1x16xf32>,
      %c0_20 = arith.constant 0 : index
      %c0_21 = arith.constant 0 : index
      %c0_22 = arith.constant 0 : index
      %33 = vector.load %arg7[%c0_20, %c0_21, %c0_22] : memref<1x1x16xf32, #tpu.memory_space<vmem>>, vector<1x1x16xf32>
      %34 = arith.mulf %26, %26 : vector<256x16xf32>
      %cst_23 = arith.constant dense<0.000000e+00> : vector<16xf32>
      %35 = vector.multi_reduction <add>, %34, %cst_23 [0] : vector<256x16xf32> to vector<16xf32>
      %36 = vector.shape_cast %35 : vector<16xf32> to vector<1x16xf32>
      %37 = vector.shape_cast %36 : vector<1x16xf32> to vector<1x1x16xf32>
      %38 = arith.addf %33, %37 : vector<1x1x16xf32>
      %c0_24 = arith.constant 0 : index
      %c0_25 = arith.constant 0 : index
      %c0_26 = arith.constant 0 : index
      %39 = vector.load %arg7[%c0_24, %c0_25, %c0_26] : memref<1x1x16xf32, #tpu.memory_space<vmem>>, vector<1x1x16xf32>
      tpu.vector_store %arg7[%c0_24, %c0_25, %c0_26], %38 {strides = array<i32>} : memref<1x1x16xf32, #tpu.memory_space<vmem>>, vector<1x1x16xf32>,
    } else {
    }
    return
  }
  func.func @transform_0(%arg0: i32, %arg1: i32) -> (i32, i32) {
    %c1_i32 = arith.constant 1 : i32
    %0 = arith.muli %arg0, %c1_i32 : i32
    %1 = arith.addi %0, %arg1 : i32
    %c0_i32 = arith.constant 0 : i32
    %c0_i32_0 = arith.constant 0 : i32
    return %1, %c0_i32 : i32, i32
  }
  func.func @transform_1(%arg0: i32, %arg1: i32) -> (i32, i32) {
    %c0_i32 = arith.constant 0 : i32
    %c0_i32_0 = arith.constant 0 : i32
    %c0_i32_1 = arith.constant 0 : i32
    return %c0_i32, %c0_i32_0 : i32, i32
  }
  func.func @transform_2(%arg0: i32, %arg1: i32) -> (i32, i32) {
    %c0_i32 = arith.constant 0 : i32
    %c0_i32_0 = arith.constant 0 : i32
    %c0_i32_1 = arith.constant 0 : i32
    return %c0_i32, %c0_i32_0 : i32, i32
  }
  func.func @transform_3(%arg0: i32, %arg1: i32) -> (i32, i32) {
    %c1_i32 = arith.constant 1 : i32
    %0 = arith.muli %arg0, %c1_i32 : i32
    %1 = arith.addi %0, %arg1 : i32
    %c0_i32 = arith.constant 0 : i32
    %c0_i32_0 = arith.constant 0 : i32
    return %1, %c0_i32 : i32, i32
  }
  func.func @transform_4(%arg0: i32, %arg1: i32) -> (i32, i32, i32) {
    %c0_i32 = arith.constant 0 : i32
    %c0_i32_0 = arith.constant 0 : i32
    %c0_i32_1 = arith.constant 0 : i32
    return %arg0, %c0_i32, %c0_i32_0 : i32, i32, i32
  }
  func.func @transform_5(%arg0: i32, %arg1: i32) -> (i32, i32, i32) {
    %c0_i32 = arith.constant 0 : i32
    %c0_i32_0 = arith.constant 0 : i32
    %c0_i32_1 = arith.constant 0 : i32
    return %arg0, %c0_i32, %c0_i32_0 : i32, i32, i32
  }
}

module attributes {stable_mosaic.version = 11 : i64} {
  func.func @_conv_gemm_stats_kernel(%arg0: i32, %arg1: i32, %arg2: memref<256x256xbf16, #tpu.memory_space<vmem>>, %arg3: memref<256x32xbf16, #tpu.memory_space<vmem>>, %arg4: memref<1x32xf32, #tpu.memory_space<vmem>>, %arg5: memref<256x32xf32, #tpu.memory_space<vmem>>, %arg6: memref<1x1x32xf32, #tpu.memory_space<vmem>>, %arg7: memref<1x1x32xf32, #tpu.memory_space<vmem>>) attributes {dimension_semantics = [#tpu.dimension_semantics<parallel>, #tpu.dimension_semantics<arbitrary>], iteration_bounds = array<i64: 2, 1>, scalar_prefetch = 0 : i64, scratch_operands = 0 : i64, tpu.core_type = #tpu.core_type<tc>, window_params = [{transform_indices = @transform_0, window_bounds = array<i64: 256, 256>}, {pipeline_mode = #tpu.pipeline_mode<synchronous>, transform_indices = @transform_1, window_bounds = array<i64: 256, 32>}, {pipeline_mode = #tpu.pipeline_mode<synchronous>, transform_indices = @transform_2, window_bounds = array<i64: 1, 32>}, {transform_indices = @transform_3, window_bounds = array<i64: 256, 32>}, {transform_indices = @transform_4, window_bounds = array<i64: 1, 1, 32>}, {transform_indices = @transform_5, window_bounds = array<i64: 1, 1, 32>}]} {
    %c0 = arith.constant 0 : index
    %c0_0 = arith.constant 0 : index
    %0 = vector.load %arg2[%c0, %c0_0] : memref<256x256xbf16, #tpu.memory_space<vmem>>, vector<256x256xbf16>
    %c0_1 = arith.constant 0 : index
    %c0_2 = arith.constant 0 : index
    %1 = vector.load %arg3[%c0_1, %c0_2] : memref<256x32xbf16, #tpu.memory_space<vmem>>, vector<256x32xbf16>
    %cst = arith.constant dense<0.000000e+00> : vector<256x32xf32>
    %2 = tpu.matmul %0, %1, %cst {dimension_numbers = #tpu.dot_dimension_numbers<[1], [0], [0], [1], [0, 0, 1, 1], [], []>} : vector<256x256xbf16>, vector<256x32xbf16>, vector<256x32xf32> -> vector<256x32xf32>
    %c0_3 = arith.constant 0 : index
    %c0_4 = arith.constant 0 : index
    %3 = vector.load %arg4[%c0_3, %c0_4] : memref<1x32xf32, #tpu.memory_space<vmem>>, vector<1x32xf32>
    %4 = vector.broadcast %3 : vector<1x32xf32> to vector<256x32xf32>
    %5 = arith.addf %2, %4 : vector<256x32xf32>
    %c0_5 = arith.constant 0 : index
    %c0_6 = arith.constant 0 : index
    %6 = vector.load %arg5[%c0_5, %c0_6] : memref<256x32xf32, #tpu.memory_space<vmem>>, vector<256x32xf32>
    tpu.vector_store %arg5[%c0_5, %c0_6], %5 {strides = array<i32>} : memref<256x32xf32, #tpu.memory_space<vmem>>, vector<256x32xf32>,
    %c0_i32 = arith.constant 0 : i32
    %7 = arith.cmpi eq, %arg1, %c0_i32 : i32
    %8 = arith.extui %7 : i1 to i32
    %c0_i32_7 = arith.constant 0 : i32
    %9 = arith.cmpi ne, %8, %c0_i32_7 : i32
    scf.if %9 {
      %cst_11 = arith.constant 0.000000e+00 : f32
      %20 = vector.broadcast %cst_11 : f32 to vector<1x1x32xf32>
      %c0_12 = arith.constant 0 : index
      %c0_13 = arith.constant 0 : index
      %c0_14 = arith.constant 0 : index
      %21 = vector.load %arg6[%c0_12, %c0_13, %c0_14] : memref<1x1x32xf32, #tpu.memory_space<vmem>>, vector<1x1x32xf32>
      tpu.vector_store %arg6[%c0_12, %c0_13, %c0_14], %20 {strides = array<i32>} : memref<1x1x32xf32, #tpu.memory_space<vmem>>, vector<1x1x32xf32>,
      %cst_15 = arith.constant 0.000000e+00 : f32
      %22 = vector.broadcast %cst_15 : f32 to vector<1x1x32xf32>
      %c0_16 = arith.constant 0 : index
      %c0_17 = arith.constant 0 : index
      %c0_18 = arith.constant 0 : index
      %23 = vector.load %arg7[%c0_16, %c0_17, %c0_18] : memref<1x1x32xf32, #tpu.memory_space<vmem>>, vector<1x1x32xf32>
      tpu.vector_store %arg7[%c0_16, %c0_17, %c0_18], %22 {strides = array<i32>} : memref<1x1x32xf32, #tpu.memory_space<vmem>>, vector<1x1x32xf32>,
    } else {
    }
    %c1_i32 = arith.constant 1 : i32
    %10 = arith.muli %arg0, %c1_i32 : i32
    %11 = arith.addi %10, %arg1 : i32
    %c256_i32 = arith.constant 256 : i32
    %12 = arith.muli %11, %c256_i32 : i32
    %c256_i32_8 = arith.constant 256 : i32
    %13 = arith.addi %12, %c256_i32_8 : i32
    %c18_i32 = arith.constant 18 : i32
    %14 = arith.cmpi sle, %13, %c18_i32 : i32
    %15 = arith.extui %14 : i1 to i32
    %c0_i32_9 = arith.constant 0 : i32
    %16 = arith.cmpi ne, %15, %c0_i32_9 : i32
    scf.if %16 {
      %c0_11 = arith.constant 0 : index
      %c0_12 = arith.constant 0 : index
      %c0_13 = arith.constant 0 : index
      %20 = vector.load %arg6[%c0_11, %c0_12, %c0_13] : memref<1x1x32xf32, #tpu.memory_space<vmem>>, vector<1x1x32xf32>
      %cst_14 = arith.constant dense<0.000000e+00> : vector<32xf32>
      %21 = vector.multi_reduction <add>, %5, %cst_14 [0] : vector<256x32xf32> to vector<32xf32>
      %22 = vector.shape_cast %21 : vector<32xf32> to vector<1x32xf32>
      %23 = vector.shape_cast %22 : vector<1x32xf32> to vector<1x1x32xf32>
      %24 = arith.addf %20, %23 : vector<1x1x32xf32>
      %c0_15 = arith.constant 0 : index
      %c0_16 = arith.constant 0 : index
      %c0_17 = arith.constant 0 : index
      %25 = vector.load %arg6[%c0_15, %c0_16, %c0_17] : memref<1x1x32xf32, #tpu.memory_space<vmem>>, vector<1x1x32xf32>
      tpu.vector_store %arg6[%c0_15, %c0_16, %c0_17], %24 {strides = array<i32>} : memref<1x1x32xf32, #tpu.memory_space<vmem>>, vector<1x1x32xf32>,
      %c0_18 = arith.constant 0 : index
      %c0_19 = arith.constant 0 : index
      %c0_20 = arith.constant 0 : index
      %26 = vector.load %arg7[%c0_18, %c0_19, %c0_20] : memref<1x1x32xf32, #tpu.memory_space<vmem>>, vector<1x1x32xf32>
      %27 = arith.mulf %5, %5 : vector<256x32xf32>
      %cst_21 = arith.constant dense<0.000000e+00> : vector<32xf32>
      %28 = vector.multi_reduction <add>, %27, %cst_21 [0] : vector<256x32xf32> to vector<32xf32>
      %29 = vector.shape_cast %28 : vector<32xf32> to vector<1x32xf32>
      %30 = vector.shape_cast %29 : vector<1x32xf32> to vector<1x1x32xf32>
      %31 = arith.addf %26, %30 : vector<1x1x32xf32>
      %c0_22 = arith.constant 0 : index
      %c0_23 = arith.constant 0 : index
      %c0_24 = arith.constant 0 : index
      %32 = vector.load %arg7[%c0_22, %c0_23, %c0_24] : memref<1x1x32xf32, #tpu.memory_space<vmem>>, vector<1x1x32xf32>
      tpu.vector_store %arg7[%c0_22, %c0_23, %c0_24], %31 {strides = array<i32>} : memref<1x1x32xf32, #tpu.memory_space<vmem>>, vector<1x1x32xf32>,
    } else {
    }
    %true = arith.constant true
    %17 = arith.xori %14, %true : i1
    %18 = arith.extui %17 : i1 to i32
    %c0_i32_10 = arith.constant 0 : i32
    %19 = arith.cmpi ne, %18, %c0_i32_10 : i32
    scf.if %19 {
      %20 = tpu.iota {dimensions = array<i32: 0>} : vector<256x32xi32>
      %21 = vector.broadcast %12 : i32 to vector<256x32xi32>
      %22 = arith.addi %21, %20 : vector<256x32xi32>
      %c18_i32_11 = arith.constant 18 : i32
      %23 = vector.broadcast %c18_i32_11 : i32 to vector<256x32xi32>
      %24 = arith.cmpi slt, %22, %23 : vector<256x32xi32>
      %cst_12 = arith.constant 0.000000e+00 : f32
      %25 = vector.broadcast %cst_12 : f32 to vector<256x32xf32>
      %26 = arith.select %24, %5, %25 : vector<256x32xi1>, vector<256x32xf32>
      %c0_13 = arith.constant 0 : index
      %c0_14 = arith.constant 0 : index
      %c0_15 = arith.constant 0 : index
      %27 = vector.load %arg6[%c0_13, %c0_14, %c0_15] : memref<1x1x32xf32, #tpu.memory_space<vmem>>, vector<1x1x32xf32>
      %cst_16 = arith.constant dense<0.000000e+00> : vector<32xf32>
      %28 = vector.multi_reduction <add>, %26, %cst_16 [0] : vector<256x32xf32> to vector<32xf32>
      %29 = vector.shape_cast %28 : vector<32xf32> to vector<1x32xf32>
      %30 = vector.shape_cast %29 : vector<1x32xf32> to vector<1x1x32xf32>
      %31 = arith.addf %27, %30 : vector<1x1x32xf32>
      %c0_17 = arith.constant 0 : index
      %c0_18 = arith.constant 0 : index
      %c0_19 = arith.constant 0 : index
      %32 = vector.load %arg6[%c0_17, %c0_18, %c0_19] : memref<1x1x32xf32, #tpu.memory_space<vmem>>, vector<1x1x32xf32>
      tpu.vector_store %arg6[%c0_17, %c0_18, %c0_19], %31 {strides = array<i32>} : memref<1x1x32xf32, #tpu.memory_space<vmem>>, vector<1x1x32xf32>,
      %c0_20 = arith.constant 0 : index
      %c0_21 = arith.constant 0 : index
      %c0_22 = arith.constant 0 : index
      %33 = vector.load %arg7[%c0_20, %c0_21, %c0_22] : memref<1x1x32xf32, #tpu.memory_space<vmem>>, vector<1x1x32xf32>
      %34 = arith.mulf %26, %26 : vector<256x32xf32>
      %cst_23 = arith.constant dense<0.000000e+00> : vector<32xf32>
      %35 = vector.multi_reduction <add>, %34, %cst_23 [0] : vector<256x32xf32> to vector<32xf32>
      %36 = vector.shape_cast %35 : vector<32xf32> to vector<1x32xf32>
      %37 = vector.shape_cast %36 : vector<1x32xf32> to vector<1x1x32xf32>
      %38 = arith.addf %33, %37 : vector<1x1x32xf32>
      %c0_24 = arith.constant 0 : index
      %c0_25 = arith.constant 0 : index
      %c0_26 = arith.constant 0 : index
      %39 = vector.load %arg7[%c0_24, %c0_25, %c0_26] : memref<1x1x32xf32, #tpu.memory_space<vmem>>, vector<1x1x32xf32>
      tpu.vector_store %arg7[%c0_24, %c0_25, %c0_26], %38 {strides = array<i32>} : memref<1x1x32xf32, #tpu.memory_space<vmem>>, vector<1x1x32xf32>,
    } else {
    }
    return
  }
  func.func @transform_0(%arg0: i32, %arg1: i32) -> (i32, i32) {
    %c1_i32 = arith.constant 1 : i32
    %0 = arith.muli %arg0, %c1_i32 : i32
    %1 = arith.addi %0, %arg1 : i32
    %c0_i32 = arith.constant 0 : i32
    %c0_i32_0 = arith.constant 0 : i32
    return %1, %c0_i32 : i32, i32
  }
  func.func @transform_1(%arg0: i32, %arg1: i32) -> (i32, i32) {
    %c0_i32 = arith.constant 0 : i32
    %c0_i32_0 = arith.constant 0 : i32
    %c0_i32_1 = arith.constant 0 : i32
    return %c0_i32, %c0_i32_0 : i32, i32
  }
  func.func @transform_2(%arg0: i32, %arg1: i32) -> (i32, i32) {
    %c0_i32 = arith.constant 0 : i32
    %c0_i32_0 = arith.constant 0 : i32
    %c0_i32_1 = arith.constant 0 : i32
    return %c0_i32, %c0_i32_0 : i32, i32
  }
  func.func @transform_3(%arg0: i32, %arg1: i32) -> (i32, i32) {
    %c1_i32 = arith.constant 1 : i32
    %0 = arith.muli %arg0, %c1_i32 : i32
    %1 = arith.addi %0, %arg1 : i32
    %c0_i32 = arith.constant 0 : i32
    %c0_i32_0 = arith.constant 0 : i32
    return %1, %c0_i32 : i32, i32
  }
  func.func @transform_4(%arg0: i32, %arg1: i32) -> (i32, i32, i32) {
    %c0_i32 = arith.constant 0 : i32
    %c0_i32_0 = arith.constant 0 : i32
    %c0_i32_1 = arith.constant 0 : i32
    return %arg0, %c0_i32, %c0_i32_0 : i32, i32, i32
  }
  func.func @transform_5(%arg0: i32, %arg1: i32) -> (i32, i32, i32) {
    %c0_i32 = arith.constant 0 : i32
    %c0_i32_0 = arith.constant 0 : i32
    %c0_i32_1 = arith.constant 0 : i32
    return %arg0, %c0_i32, %c0_i32_0 : i32, i32, i32
  }
}

module attributes {stable_mosaic.version = 11 : i64} {
  func.func @_conv_gemm_stats_kernel(%arg0: i32, %arg1: i32, %arg2: memref<256x512xbf16, #tpu.memory_space<vmem>>, %arg3: memref<512x64xbf16, #tpu.memory_space<vmem>>, %arg4: memref<1x64xf32, #tpu.memory_space<vmem>>, %arg5: memref<256x64xf32, #tpu.memory_space<vmem>>, %arg6: memref<1x1x64xf32, #tpu.memory_space<vmem>>, %arg7: memref<1x1x64xf32, #tpu.memory_space<vmem>>) attributes {dimension_semantics = [#tpu.dimension_semantics<parallel>, #tpu.dimension_semantics<arbitrary>], iteration_bounds = array<i64: 2, 1>, scalar_prefetch = 0 : i64, scratch_operands = 0 : i64, tpu.core_type = #tpu.core_type<tc>, window_params = [{transform_indices = @transform_0, window_bounds = array<i64: 256, 512>}, {pipeline_mode = #tpu.pipeline_mode<synchronous>, transform_indices = @transform_1, window_bounds = array<i64: 512, 64>}, {pipeline_mode = #tpu.pipeline_mode<synchronous>, transform_indices = @transform_2, window_bounds = array<i64: 1, 64>}, {transform_indices = @transform_3, window_bounds = array<i64: 256, 64>}, {transform_indices = @transform_4, window_bounds = array<i64: 1, 1, 64>}, {transform_indices = @transform_5, window_bounds = array<i64: 1, 1, 64>}]} {
    %c0 = arith.constant 0 : index
    %c0_0 = arith.constant 0 : index
    %0 = vector.load %arg2[%c0, %c0_0] : memref<256x512xbf16, #tpu.memory_space<vmem>>, vector<256x512xbf16>
    %c0_1 = arith.constant 0 : index
    %c0_2 = arith.constant 0 : index
    %1 = vector.load %arg3[%c0_1, %c0_2] : memref<512x64xbf16, #tpu.memory_space<vmem>>, vector<512x64xbf16>
    %cst = arith.constant dense<0.000000e+00> : vector<256x64xf32>
    %2 = tpu.matmul %0, %1, %cst {dimension_numbers = #tpu.dot_dimension_numbers<[1], [0], [0], [1], [0, 0, 1, 1], [], []>} : vector<256x512xbf16>, vector<512x64xbf16>, vector<256x64xf32> -> vector<256x64xf32>
    %c0_3 = arith.constant 0 : index
    %c0_4 = arith.constant 0 : index
    %3 = vector.load %arg4[%c0_3, %c0_4] : memref<1x64xf32, #tpu.memory_space<vmem>>, vector<1x64xf32>
    %4 = vector.broadcast %3 : vector<1x64xf32> to vector<256x64xf32>
    %5 = arith.addf %2, %4 : vector<256x64xf32>
    %c0_5 = arith.constant 0 : index
    %c0_6 = arith.constant 0 : index
    %6 = vector.load %arg5[%c0_5, %c0_6] : memref<256x64xf32, #tpu.memory_space<vmem>>, vector<256x64xf32>
    tpu.vector_store %arg5[%c0_5, %c0_6], %5 {strides = array<i32>} : memref<256x64xf32, #tpu.memory_space<vmem>>, vector<256x64xf32>,
    %c0_i32 = arith.constant 0 : i32
    %7 = arith.cmpi eq, %arg1, %c0_i32 : i32
    %8 = arith.extui %7 : i1 to i32
    %c0_i32_7 = arith.constant 0 : i32
    %9 = arith.cmpi ne, %8, %c0_i32_7 : i32
    scf.if %9 {
      %cst_11 = arith.constant 0.000000e+00 : f32
      %20 = vector.broadcast %cst_11 : f32 to vector<1x1x64xf32>
      %c0_12 = arith.constant 0 : index
      %c0_13 = arith.constant 0 : index
      %c0_14 = arith.constant 0 : index
      %21 = vector.load %arg6[%c0_12, %c0_13, %c0_14] : memref<1x1x64xf32, #tpu.memory_space<vmem>>, vector<1x1x64xf32>
      tpu.vector_store %arg6[%c0_12, %c0_13, %c0_14], %20 {strides = array<i32>} : memref<1x1x64xf32, #tpu.memory_space<vmem>>, vector<1x1x64xf32>,
      %cst_15 = arith.constant 0.000000e+00 : f32
      %22 = vector.broadcast %cst_15 : f32 to vector<1x1x64xf32>
      %c0_16 = arith.constant 0 : index
      %c0_17 = arith.constant 0 : index
      %c0_18 = arith.constant 0 : index
      %23 = vector.load %arg7[%c0_16, %c0_17, %c0_18] : memref<1x1x64xf32, #tpu.memory_space<vmem>>, vector<1x1x64xf32>
      tpu.vector_store %arg7[%c0_16, %c0_17, %c0_18], %22 {strides = array<i32>} : memref<1x1x64xf32, #tpu.memory_space<vmem>>, vector<1x1x64xf32>,
    } else {
    }
    %c1_i32 = arith.constant 1 : i32
    %10 = arith.muli %arg0, %c1_i32 : i32
    %11 = arith.addi %10, %arg1 : i32
    %c256_i32 = arith.constant 256 : i32
    %12 = arith.muli %11, %c256_i32 : i32
    %c256_i32_8 = arith.constant 256 : i32
    %13 = arith.addi %12, %c256_i32_8 : i32
    %c32_i32 = arith.constant 32 : i32
    %14 = arith.cmpi sle, %13, %c32_i32 : i32
    %15 = arith.extui %14 : i1 to i32
    %c0_i32_9 = arith.constant 0 : i32
    %16 = arith.cmpi ne, %15, %c0_i32_9 : i32
    scf.if %16 {
      %c0_11 = arith.constant 0 : index
      %c0_12 = arith.constant 0 : index
      %c0_13 = arith.constant 0 : index
      %20 = vector.load %arg6[%c0_11, %c0_12, %c0_13] : memref<1x1x64xf32, #tpu.memory_space<vmem>>, vector<1x1x64xf32>
      %cst_14 = arith.constant dense<0.000000e+00> : vector<64xf32>
      %21 = vector.multi_reduction <add>, %5, %cst_14 [0] : vector<256x64xf32> to vector<64xf32>
      %22 = vector.shape_cast %21 : vector<64xf32> to vector<1x64xf32>
      %23 = vector.shape_cast %22 : vector<1x64xf32> to vector<1x1x64xf32>
      %24 = arith.addf %20, %23 : vector<1x1x64xf32>
      %c0_15 = arith.constant 0 : index
      %c0_16 = arith.constant 0 : index
      %c0_17 = arith.constant 0 : index
      %25 = vector.load %arg6[%c0_15, %c0_16, %c0_17] : memref<1x1x64xf32, #tpu.memory_space<vmem>>, vector<1x1x64xf32>
      tpu.vector_store %arg6[%c0_15, %c0_16, %c0_17], %24 {strides = array<i32>} : memref<1x1x64xf32, #tpu.memory_space<vmem>>, vector<1x1x64xf32>,
      %c0_18 = arith.constant 0 : index
      %c0_19 = arith.constant 0 : index
      %c0_20 = arith.constant 0 : index
      %26 = vector.load %arg7[%c0_18, %c0_19, %c0_20] : memref<1x1x64xf32, #tpu.memory_space<vmem>>, vector<1x1x64xf32>
      %27 = arith.mulf %5, %5 : vector<256x64xf32>
      %cst_21 = arith.constant dense<0.000000e+00> : vector<64xf32>
      %28 = vector.multi_reduction <add>, %27, %cst_21 [0] : vector<256x64xf32> to vector<64xf32>
      %29 = vector.shape_cast %28 : vector<64xf32> to vector<1x64xf32>
      %30 = vector.shape_cast %29 : vector<1x64xf32> to vector<1x1x64xf32>
      %31 = arith.addf %26, %30 : vector<1x1x64xf32>
      %c0_22 = arith.constant 0 : index
      %c0_23 = arith.constant 0 : index
      %c0_24 = arith.constant 0 : index
      %32 = vector.load %arg7[%c0_22, %c0_23, %c0_24] : memref<1x1x64xf32, #tpu.memory_space<vmem>>, vector<1x1x64xf32>
      tpu.vector_store %arg7[%c0_22, %c0_23, %c0_24], %31 {strides = array<i32>} : memref<1x1x64xf32, #tpu.memory_space<vmem>>, vector<1x1x64xf32>,
    } else {
    }
    %true = arith.constant true
    %17 = arith.xori %14, %true : i1
    %18 = arith.extui %17 : i1 to i32
    %c0_i32_10 = arith.constant 0 : i32
    %19 = arith.cmpi ne, %18, %c0_i32_10 : i32
    scf.if %19 {
      %20 = tpu.iota {dimensions = array<i32: 0>} : vector<256x64xi32>
      %21 = vector.broadcast %12 : i32 to vector<256x64xi32>
      %22 = arith.addi %21, %20 : vector<256x64xi32>
      %c32_i32_11 = arith.constant 32 : i32
      %23 = vector.broadcast %c32_i32_11 : i32 to vector<256x64xi32>
      %24 = arith.cmpi slt, %22, %23 : vector<256x64xi32>
      %cst_12 = arith.constant 0.000000e+00 : f32
      %25 = vector.broadcast %cst_12 : f32 to vector<256x64xf32>
      %26 = arith.select %24, %5, %25 : vector<256x64xi1>, vector<256x64xf32>
      %c0_13 = arith.constant 0 : index
      %c0_14 = arith.constant 0 : index
      %c0_15 = arith.constant 0 : index
      %27 = vector.load %arg6[%c0_13, %c0_14, %c0_15] : memref<1x1x64xf32, #tpu.memory_space<vmem>>, vector<1x1x64xf32>
      %cst_16 = arith.constant dense<0.000000e+00> : vector<64xf32>
      %28 = vector.multi_reduction <add>, %26, %cst_16 [0] : vector<256x64xf32> to vector<64xf32>
      %29 = vector.shape_cast %28 : vector<64xf32> to vector<1x64xf32>
      %30 = vector.shape_cast %29 : vector<1x64xf32> to vector<1x1x64xf32>
      %31 = arith.addf %27, %30 : vector<1x1x64xf32>
      %c0_17 = arith.constant 0 : index
      %c0_18 = arith.constant 0 : index
      %c0_19 = arith.constant 0 : index
      %32 = vector.load %arg6[%c0_17, %c0_18, %c0_19] : memref<1x1x64xf32, #tpu.memory_space<vmem>>, vector<1x1x64xf32>
      tpu.vector_store %arg6[%c0_17, %c0_18, %c0_19], %31 {strides = array<i32>} : memref<1x1x64xf32, #tpu.memory_space<vmem>>, vector<1x1x64xf32>,
      %c0_20 = arith.constant 0 : index
      %c0_21 = arith.constant 0 : index
      %c0_22 = arith.constant 0 : index
      %33 = vector.load %arg7[%c0_20, %c0_21, %c0_22] : memref<1x1x64xf32, #tpu.memory_space<vmem>>, vector<1x1x64xf32>
      %34 = arith.mulf %26, %26 : vector<256x64xf32>
      %cst_23 = arith.constant dense<0.000000e+00> : vector<64xf32>
      %35 = vector.multi_reduction <add>, %34, %cst_23 [0] : vector<256x64xf32> to vector<64xf32>
      %36 = vector.shape_cast %35 : vector<64xf32> to vector<1x64xf32>
      %37 = vector.shape_cast %36 : vector<1x64xf32> to vector<1x1x64xf32>
      %38 = arith.addf %33, %37 : vector<1x1x64xf32>
      %c0_24 = arith.constant 0 : index
      %c0_25 = arith.constant 0 : index
      %c0_26 = arith.constant 0 : index
      %39 = vector.load %arg7[%c0_24, %c0_25, %c0_26] : memref<1x1x64xf32, #tpu.memory_space<vmem>>, vector<1x1x64xf32>
      tpu.vector_store %arg7[%c0_24, %c0_25, %c0_26], %38 {strides = array<i32>} : memref<1x1x64xf32, #tpu.memory_space<vmem>>, vector<1x1x64xf32>,
    } else {
    }
    return
  }
  func.func @transform_0(%arg0: i32, %arg1: i32) -> (i32, i32) {
    %c1_i32 = arith.constant 1 : i32
    %0 = arith.muli %arg0, %c1_i32 : i32
    %1 = arith.addi %0, %arg1 : i32
    %c0_i32 = arith.constant 0 : i32
    %c0_i32_0 = arith.constant 0 : i32
    return %1, %c0_i32 : i32, i32
  }
  func.func @transform_1(%arg0: i32, %arg1: i32) -> (i32, i32) {
    %c0_i32 = arith.constant 0 : i32
    %c0_i32_0 = arith.constant 0 : i32
    %c0_i32_1 = arith.constant 0 : i32
    return %c0_i32, %c0_i32_0 : i32, i32
  }
  func.func @transform_2(%arg0: i32, %arg1: i32) -> (i32, i32) {
    %c0_i32 = arith.constant 0 : i32
    %c0_i32_0 = arith.constant 0 : i32
    %c0_i32_1 = arith.constant 0 : i32
    return %c0_i32, %c0_i32_0 : i32, i32
  }
  func.func @transform_3(%arg0: i32, %arg1: i32) -> (i32, i32) {
    %c1_i32 = arith.constant 1 : i32
    %0 = arith.muli %arg0, %c1_i32 : i32
    %1 = arith.addi %0, %arg1 : i32
    %c0_i32 = arith.constant 0 : i32
    %c0_i32_0 = arith.constant 0 : i32
    return %1, %c0_i32 : i32, i32
  }
  func.func @transform_4(%arg0: i32, %arg1: i32) -> (i32, i32, i32) {
    %c0_i32 = arith.constant 0 : i32
    %c0_i32_0 = arith.constant 0 : i32
    %c0_i32_1 = arith.constant 0 : i32
    return %arg0, %c0_i32, %c0_i32_0 : i32, i32, i32
  }
  func.func @transform_5(%arg0: i32, %arg1: i32) -> (i32, i32, i32) {
    %c0_i32 = arith.constant 0 : i32
    %c0_i32_0 = arith.constant 0 : i32
    %c0_i32_1 = arith.constant 0 : i32
    return %arg0, %c0_i32, %c0_i32_0 : i32, i32, i32
  }
}

module attributes {stable_mosaic.version = 11 : i64} {
  func.func @_conv_gemm_kernel(%arg0: i32, %arg1: memref<256x1024xbf16, #tpu.memory_space<vmem>>, %arg2: memref<1024x128xbf16, #tpu.memory_space<vmem>>, %arg3: memref<1x128xf32, #tpu.memory_space<vmem>>, %arg4: memref<256x128xf32, #tpu.memory_space<vmem>>) attributes {dimension_semantics = [#tpu.dimension_semantics<parallel>], iteration_bounds = array<i64: 1>, scalar_prefetch = 0 : i64, scratch_operands = 0 : i64, tpu.core_type = #tpu.core_type<tc>, window_params = [{transform_indices = @transform_0, window_bounds = array<i64: 256, 1024>}, {pipeline_mode = #tpu.pipeline_mode<synchronous>, transform_indices = @transform_1, window_bounds = array<i64: 1024, 128>}, {pipeline_mode = #tpu.pipeline_mode<synchronous>, transform_indices = @transform_2, window_bounds = array<i64: 1, 128>}, {transform_indices = @transform_3, window_bounds = array<i64: 256, 128>}]} {
    %c0 = arith.constant 0 : index
    %c0_0 = arith.constant 0 : index
    %0 = vector.load %arg1[%c0, %c0_0] : memref<256x1024xbf16, #tpu.memory_space<vmem>>, vector<256x1024xbf16>
    %c0_1 = arith.constant 0 : index
    %c0_2 = arith.constant 0 : index
    %1 = vector.load %arg2[%c0_1, %c0_2] : memref<1024x128xbf16, #tpu.memory_space<vmem>>, vector<1024x128xbf16>
    %cst = arith.constant dense<0.000000e+00> : vector<256x128xf32>
    %2 = tpu.matmul %0, %1, %cst {dimension_numbers = #tpu.dot_dimension_numbers<[1], [0], [0], [1], [0, 0, 1, 1], [], []>} : vector<256x1024xbf16>, vector<1024x128xbf16>, vector<256x128xf32> -> vector<256x128xf32>
    %c0_3 = arith.constant 0 : index
    %c0_4 = arith.constant 0 : index
    %3 = vector.load %arg3[%c0_3, %c0_4] : memref<1x128xf32, #tpu.memory_space<vmem>>, vector<1x128xf32>
    %4 = vector.broadcast %3 : vector<1x128xf32> to vector<256x128xf32>
    %5 = arith.addf %2, %4 : vector<256x128xf32>
    %c0_5 = arith.constant 0 : index
    %c0_6 = arith.constant 0 : index
    %6 = vector.load %arg4[%c0_5, %c0_6] : memref<256x128xf32, #tpu.memory_space<vmem>>, vector<256x128xf32>
    tpu.vector_store %arg4[%c0_5, %c0_6], %5 {strides = array<i32>} : memref<256x128xf32, #tpu.memory_space<vmem>>, vector<256x128xf32>,
    return
  }
  func.func @transform_0(%arg0: i32) -> (i32, i32) {
    %c0_i32 = arith.constant 0 : i32
    %c0_i32_0 = arith.constant 0 : i32
    return %arg0, %c0_i32 : i32, i32
  }
  func.func @transform_1(%arg0: i32) -> (i32, i32) {
    %c0_i32 = arith.constant 0 : i32
    %c0_i32_0 = arith.constant 0 : i32
    %c0_i32_1 = arith.constant 0 : i32
    return %c0_i32, %c0_i32_0 : i32, i32
  }
  func.func @transform_2(%arg0: i32) -> (i32, i32) {
    %c0_i32 = arith.constant 0 : i32
    %c0_i32_0 = arith.constant 0 : i32
    %c0_i32_1 = arith.constant 0 : i32
    return %c0_i32, %c0_i32_0 : i32, i32
  }
  func.func @transform_3(%arg0: i32) -> (i32, i32) {
    %c0_i32 = arith.constant 0 : i32
    %c0_i32_0 = arith.constant 0 : i32
    return %arg0, %c0_i32 : i32, i32
  }
}

</mosaic_0001>

<bundles_post_ra>
// kernel: apply.5
= control target key start
LH: loop header
LB: loop body
LE: loop exit
PB: predicated region body
PF: predicated region fallthrough
CT: control target
= control target key end

     0   :  { %vm166_vm0 = vcmask 523264   ;;  %vm600_vm1 = vcmask 60416   ;;  %s1088_s1 = inlined_call_operand.vmem [shape: bf16[64,8], index: 1, kind: input, shape index: {}]   ;;  %s1089_s0 = inlined_call_operand.vmem [shape: bf16[256,64], index: 0, kind: input, shape index: {}]   ;;  %s1090_s2 = inlined_call_operand.vmem [shape: f32[1,8], index: 2, kind: input, shape index: {}]   ;;  %s1091_s3 = inlined_call_operand.vmem [shape: bf16[256,8], index: 3, kind: output, shape index: {}]  }
   0x1   :  { %v806_v0 = vld [vmem:[%s1088_s1] sm:$0xff]   ;;  %v807_v1 = vld [vmem:[%s1088_s1 + $0x8] sm:$0xff]   ;;  %v808_v2 = vld [vmem:[%s1088_s1 + $0x10] sm:$0xff]  }
   0x2   :  { %758 = vmatprep.subr.bf16.mxu0 %v806_v0  ;;  %798 = vmatprep.subr.bf16.mxu1 %v806_v0  ;;  %v810_v3 = vld [vmem:[%s1089_s0] sm:$0xff]   ;;  %v809_v5 = vld [vmem:[%s1088_s1 + $0x18] sm:$0xff]   ;;  %v812_v6 = vld [vmem:[%s1089_s0 + $0x8] sm:$0xff]  }
   0x3   :  { %759 = vmatpush3.bf16.msra.mxu0 %v806_v0  ;;  %802 = vmatpush3.bf16.msra.mxu1 %v806_v0  ;;  %v811_v4 = vld [vmem:[%s1089_s0 + $0x40] sm:$0xff]   ;;  %v813_v7 = vld [vmem:[%s1089_s0 + $0x48] sm:$0xff]   ;;  %v814_v8 = vld [vmem:[%s1089_s0 + $0x10] sm:$0xff]  }
   0x4   :  { %760 = vmatprep.subr.bf16.mxu0 %v807_v1  ;;  %799 = vmatprep.subr.bf16.mxu1 %v807_v1  ;;  %v815_v9 = vld [vmem:[%s1089_s0 + $0x50] sm:$0xff]   ;;  %v816_v10 = vld [vmem:[%s1089_s0 + $0x18] sm:$0xff]   ;;  %v818_v12 = vld [vmem:[%s1089_s0 + $0x20] sm:$0xff]  }
   0x5   :  { %766 = vmatprep.mubr.msk.bf16.mxu0 %vm166_vm0, %v810_v3  ;;  %782 = vmatprep.mubr.msk.bf16.mxu1 %vm166_vm0, %v811_v4  ;;  %v817_v11 = vld [vmem:[%s1089_s0 + $0x58] sm:$0xff]   ;;  %v819_v13 = vld [vmem:[%s1089_s0 + $0x60] sm:$0xff]   ;;  %v820_v14 = vld [vmem:[%s1089_s0 + $0x28] sm:$0xff]  }
   0x6   :  { %v821_v15 = vld [vmem:[%s1089_s0 + $0x68] sm:$0xff]   ;;  %v822_v16 = vld [vmem:[%s1089_s0 + $0x30] sm:$0xff]   ;;  %v824_v18 = vld [vmem:[%s1089_s0 + $0x38] sm:$0xff]  }
   0x7   :  { %761 = vmatpush3.bf16.msra.mxu0 %v807_v1  ;;  %803 = vmatpush3.bf16.msra.mxu1 %v807_v1  ;;  %v823_v17 = vld [vmem:[%s1089_s0 + $0x70] sm:$0xff]   ;;  %v825_v19 = vld [vmem:[%s1089_s0 + $0x78] sm:$0xff]   ;;  %v925_v20 = vld [vmem:[%s1090_s2] ss:$0 sm:$0xff] }
   0x8   :  { %762 = vmatprep.subr.bf16.mxu0 %v808_v2  ;;  %800 = vmatprep.subr.bf16.mxu1 %v808_v2 }
   0xb   :  { %763 = vmatpush3.bf16.msra.mxu0 %v808_v2  ;;  %804 = vmatpush3.bf16.msra.mxu1 %v808_v2 }
   0xc   :  { %764 = vmatprep.subr.bf16.mxu0 %v809_v5  ;;  %801 = vmatprep.subr.bf16.mxu1 %v809_v5 }
   0xf   :  { %765 = vmatpush3.bf16.msra.mxu0 %v809_v5  ;;  %805 = vmatpush3.bf16.msra.mxu1 %v809_v5 }
  0x12   :  { %767 = vmatmul.mubr.msk.bf16.vlgmr.msra.gmra.mrb[0].mxu0 %vm166_vm0, %v812_v6  ;;  %783 = vmatmul.mubr.msk.bf16.vlgmr.msra.gmra.mrb[0].mxu1 %vm166_vm0, %v813_v7 }
  0x13   :  { %770 = vmatprep.mubr.msk.bf16.mxu0 %vm166_vm0, %v814_v8  ;;  %786 = vmatprep.mubr.msk.bf16.mxu1 %vm166_vm0, %v815_v9 }
  0x1a   :  { %771 = vmatmul.mubr.msk.bf16.gmra.mrb[4].mxu0 %vm166_vm0, %v816_v10  ;;  %787 = vmatmul.mubr.msk.bf16.gmra.mrb[4].mxu1 %vm166_vm0, %v817_v11 }
  0x1b   :  { %774 = vmatprep.mubr.msk.bf16.mxu0 %vm166_vm0, %v818_v12  ;;  %790 = vmatprep.mubr.msk.bf16.mxu1 %vm166_vm0, %v819_v13 }
  0x22   :  { %775 = vmatmul.mubr.msk.bf16.gmra.mrb[8].mxu0 %vm166_vm0, %v820_v14  ;;  %791 = vmatmul.mubr.msk.bf16.gmra.mrb[8].mxu1 %vm166_vm0, %v821_v15 }
  0x23   :  { %778 = vmatprep.mubr.msk.bf16.mxu0 %vm166_vm0, %v822_v16  ;;  %794 = vmatprep.mubr.msk.bf16.mxu1 %vm166_vm0, %v823_v17 }
  0x2a   :  { %779 = vmatmul.mubr.msk.bf16.gmra.mrb[12].mxu0 %vm166_vm0, %v824_v18  ;;  %795 = vmatmul.mubr.msk.bf16.gmra.mrb[12].mxu1 %vm166_vm0, %v825_v19 }
  0xe5   :  { %v768_v21 = vpop.f32.mrb[0].mxu0  ;;  %v784_v22 = vpop.f32.mrb[0].mxu1 }
  0xe6   :  { %v258_v23 = vadd.f32 %v768_v21, %v925_v20  ;;  %v322_v24 = vadd.f32 %v784_v22, %v925_v20  ;;  %v249_v25 = vpop.f32.mrb[1].mxu0  ;;  %v313_v26 = vpop.f32.mrb[1].mxu1 }
  0xe7   :  { %v250_v27 = vadd.f32 %v925_v20, %v249_v25  ;;  %v314_v28 = vadd.f32 %v925_v20, %v313_v26  ;;  %v769_v29 = vpop.f32.mrb[2].mxu0  ;;  %v785_v30 = vpop.f32.mrb[2].mxu1 }
  0xe8   :  { %vm378_vm2 = vcmp.ge.f32.partialorder %v258_v23, 0.0  ;;  %v410_v31 = vmul.f32 0.2, %v258_v23  ;;  %vm394_vm3 = vcmp.ge.f32.partialorder %v322_v24, 0.0  ;;  %v426_v32 = vmul.f32 0.2, %v322_v24 }
  0xe9   :  { %vm376_vm4 = vcmp.ge.f32.partialorder %v250_v27, 0.0  ;;  %v408_v33 = vmul.f32 0.2, %v250_v27  ;;  %vm392_vm5 = vcmp.ge.f32.partialorder %v314_v28, 0.0  ;;  %v424_v34 = vmul.f32 0.2, %v314_v28 }
  0xea   :  { %v442_v35 = vsel %vm378_vm2, %v258_v23, %v410_v31  ;;  %v458_v36 = vsel %vm394_vm3, %v322_v24, %v426_v32  ;;  %v261_v37 = vadd.f32 %v769_v29, %v925_v20  ;;  %v325_v38 = vadd.f32 %v785_v30, %v925_v20  ;;  %v252_v39 = vpop.f32.mrb[3].mxu0  ;;  %v316_v40 = vpop.f32.mrb[3].mxu1 }
  0xeb   :  { %v708_v41 = vpack.c.bf16 %v442_v35, %v442_v35  ;;  %v724_v42 = vpack.c.bf16 %v458_v36, %v458_v36  ;;  %v440_v43 = vsel %vm376_vm4, %v250_v27, %v408_v33  ;;  %v456_v44 = vsel %vm392_vm5, %v314_v28, %v424_v34 }
  0xec   :  { %v706_v45 = vpack.c.bf16 %v440_v43, %v440_v43  ;;  %v722_v46 = vpack.c.bf16 %v456_v44, %v456_v44  ;;  %vm379_vm6 = vcmp.ge.f32.partialorder %v261_v37, 0.0  ;;  %v411_v47 = vmul.f32 0.2, %v261_v37 }
  0xed   :  { %603 = vst.msk [vmem:[%s1091_s3 + $0x8] sm:$0xf] %vm600_vm1, %v708_v41  ;;  %619 = vst.msk [vmem:[%s1091_s3 + $0x48] sm:$0xf] %vm600_vm1, %v724_v42  ;;  %vm395_vm7 = vcmp.ge.f32.partialorder %v325_v38, 0.0  ;;  %v253_v49 = vadd.f32 %v925_v20, %v252_v39  ;;  %v317_v50 = vadd.f32 %v925_v20, %v316_v40  ;;  %v772_v51 = vpop.f32.mrb[4].mxu0 }
  0xee   :  { %v427_v48 = vmul.f32 0.2, %v325_v38  ;;  %v788_v52 = vpop.f32.mrb[4].mxu1  ;;  %601 = vst.msk [vmem:[%s1091_s3] sm:$0xf] %vm600_vm1, %v706_v45  ;;  %v443_v53 = vsel %vm379_vm6, %v261_v37, %v411_v47  ;;  %v274_v54 = vadd.f32 %v772_v51, %v925_v20  ;;  %v265_v56 = vpop.f32.mrb[5].mxu0 }
  0xef   :  { %617 = vst.msk [vmem:[%s1091_s3 + $0x40] sm:$0xf] %vm600_vm1, %v722_v46  ;;  %v338_v55 = vadd.f32 %v788_v52, %v925_v20  ;;  %v329_v57 = vpop.f32.mrb[5].mxu1  ;;  %v709_v58 = vpack.c.bf16 %v443_v53, %v443_v53  ;;  %vm377_vm8 = vcmp.ge.f32.partialorder %v253_v49, 0.0  ;;  %v409_v60 = vmul.f32 0.2, %v253_v49 }
  0xf0   :  { %v459_v59 = vsel %vm395_vm7, %v325_v38, %v427_v48  ;;  %v773_v61 = vpop.f32.mrb[6].mxu0  ;;  %v789_v62 = vpop.f32.mrb[6].mxu1  ;;  %vm393_vm9 = vcmp.ge.f32.partialorder %v317_v50, 0.0  ;;  %v425_v0 = vmul.f32 0.2, %v317_v50  ;;  %vm382_vm10 = vcmp.ge.f32.partialorder %v274_v54, 0.0 }
  0xf1   :  { %v725_v63 = vpack.c.bf16 %v459_v59, %v459_v59  ;;  %v268_v1 = vpop.f32.mrb[7].mxu0  ;;  %v332_v2 = vpop.f32.mrb[7].mxu1  ;;  %604 = vst.msk [vmem:[%s1091_s3 + $0xc] sm:$0xf] %vm600_vm1, %v709_v58  ;;  %v441_v3 = vsel %vm377_vm8, %v253_v49, %v409_v60  ;;  %v414_v4 = vmul.f32 0.2, %v274_v54  ;;  %v266_v8 = vadd.f32 %v925_v20, %v265_v56 }
  0xf2   :  { %vm398_vm11 = vcmp.ge.f32.partialorder %v338_v55, 0.0  ;;  %v430_v5 = vmul.f32 0.2, %v338_v55  ;;  %v707_v6 = vpack.c.bf16 %v441_v3, %v441_v3  ;;  %v457_v7 = vsel %vm393_vm9, %v317_v50, %v425_v0 }
  0xf3   :  { %620 = vst.msk [vmem:[%s1091_s3 + $0x4c] sm:$0xf] %vm600_vm1, %v725_v63  ;;  %v330_v9 = vadd.f32 %v925_v20, %v329_v57  ;;  %v723_v10 = vpack.c.bf16 %v457_v7, %v457_v7  ;;  %v446_v11 = vsel %vm382_vm10, %v274_v54, %v414_v4  ;;  %v277_v13 = vadd.f32 %v773_v61, %v925_v20 }
  0xf4   :  { %v462_v12 = vsel %vm398_vm11, %v338_v55, %v430_v5  ;;  %602 = vst.msk [vmem:[%s1091_s3 + $0x4] sm:$0xf] %vm600_vm1, %v707_v6  ;;  %v712_v14 = vpack.c.bf16 %v446_v11, %v446_v11  ;;  %vm380_vm12 = vcmp.ge.f32.partialorder %v266_v8, 0.0  ;;  %v412_v16 = vmul.f32 0.2, %v266_v8 }
  0xf5   :  { %v728_v15 = vpack.c.bf16 %v462_v12, %v462_v12  ;;  %618 = vst.msk [vmem:[%s1091_s3 + $0x44] sm:$0xf] %vm600_vm1, %v723_v10  ;;  %vm396_vm13 = vcmp.ge.f32.partialorder %v330_v9, 0.0  ;;  %v428_v17 = vmul.f32 0.2, %v330_v9  ;;  %vm383_vm14 = vcmp.ge.f32.partialorder %v277_v13, 0.0 }
  0xf6   :  { %v415_v18 = vmul.f32 0.2, %v277_v13  ;;  %607 = vst.msk [vmem:[%s1091_s3 + $0x18] sm:$0xf] %vm600_vm1, %v712_v14  ;;  %v444_v19 = vsel %vm380_vm12, %v266_v8, %v412_v16  ;;  %v341_v21 = vadd.f32 %v789_v62, %v925_v20  ;;  %v269_v22 = vadd.f32 %v925_v20, %v268_v1  ;;  %v776_v24 = vpop.f32.mrb[8].mxu0  ;;  %v792_v25 = vpop.f32.mrb[8].mxu1 }
  0xf7   :  { %623 = vst.msk [vmem:[%s1091_s3 + $0x58] sm:$0xf] %vm600_vm1, %v728_v15  ;;  %v333_v23 = vadd.f32 %v925_v20, %v332_v2  ;;  %v710_v26 = vpack.c.bf16 %v444_v19, %v444_v19  ;;  %v460_v27 = vsel %vm396_vm13, %v330_v9, %v428_v17  ;;  %v290_v29 = vadd.f32 %v776_v24, %v925_v20  ;;  %v281_v30 = vpop.f32.mrb[9].mxu0  ;;  %v345_v31 = vpop.f32.mrb[9].mxu1 }
  0xf8   :  { %v447_v28 = vsel %vm383_vm14, %v277_v13, %v415_v18  ;;  %v726_v32 = vpack.c.bf16 %v460_v27, %v460_v27  ;;  %vm399_vm15 = vcmp.ge.f32.partialorder %v341_v21, 0.0  ;;  %v431_v34 = vmul.f32 0.2, %v341_v21  ;;  %v777_v35 = vpop.f32.mrb[10].mxu0  ;;  %v793_v36 = vpop.f32.mrb[10].mxu1 }
  0xf9   :  { %v713_v33 = vpack.c.bf16 %v447_v28, %v447_v28  ;;  %605 = vst.msk [vmem:[%s1091_s3 + $0x10] sm:$0xf] %vm600_vm1, %v710_v26  ;;  %vm381_vm0 = vcmp.ge.f32.partialorder %v269_v22, 0.0  ;;  %v413_v37 = vmul.f32 0.2, %v269_v22  ;;  %vm397_vm2 = vcmp.ge.f32.partialorder %v333_v23, 0.0 }
  0xfa   :  { %v429_v38 = vmul.f32 0.2, %v333_v23  ;;  %621 = vst.msk [vmem:[%s1091_s3 + $0x50] sm:$0xf] %vm600_vm1, %v726_v32  ;;  %v463_v39 = vsel %vm399_vm15, %v341_v21, %v431_v34  ;;  %vm386_vm3 = vcmp.ge.f32.partialorder %v290_v29, 0.0  ;;  %v354_v41 = vadd.f32 %v792_v25, %v925_v20  ;;  %v284_v42 = vpop.f32.mrb[11].mxu0 }
  0xfb   :  { %608 = vst.msk [vmem:[%s1091_s3 + $0x1c] sm:$0xf] %vm600_vm1, %v713_v33  ;;  %v418_v40 = vmul.f32 0.2, %v290_v29  ;;  %v348_v43 = vpop.f32.mrb[11].mxu1  ;;  %v729_v44 = vpack.c.bf16 %v463_v39, %v463_v39  ;;  %v445_v45 = vsel %vm381_vm0, %v269_v22, %v413_v37  ;;  %v282_v47 = vadd.f32 %v925_v20, %v281_v30 }
  0xfc   :  { %v461_v46 = vsel %vm397_vm2, %v333_v23, %v429_v38  ;;  %v711_v48 = vpack.c.bf16 %v445_v45, %v445_v45  ;;  %vm402_vm4 = vcmp.ge.f32.partialorder %v354_v41, 0.0  ;;  %v434_v52 = vmul.f32 0.2, %v354_v41 }
  0xfd   :  { %v727_v49 = vpack.c.bf16 %v461_v46, %v461_v46  ;;  %v450_v50 = vsel %vm386_vm3, %v290_v29, %v418_v40  ;;  %624 = vst.msk [vmem:[%s1091_s3 + $0x5c] sm:$0xf] %vm600_vm1, %v729_v44  ;;  %vm384_vm5 = vcmp.ge.f32.partialorder %v282_v47, 0.0  ;;  %v416_v53 = vmul.f32 0.2, %v282_v47  ;;  %v780_v54 = vpop.f32.mrb[12].mxu0 }
  0xfe   :  { %v716_v51 = vpack.c.bf16 %v450_v50, %v450_v50  ;;  %606 = vst.msk [vmem:[%s1091_s3 + $0x14] sm:$0xf] %vm600_vm1, %v711_v48  ;;  %v346_v55 = vadd.f32 %v925_v20, %v345_v31  ;;  %v293_v56 = vadd.f32 %v777_v35, %v925_v20  ;;  %v357_v57 = vadd.f32 %v793_v36, %v925_v20  ;;  %v796_v59 = vpop.f32.mrb[12].mxu1  ;;  %v297_v60 = vpop.f32.mrb[13].mxu0 }
  0xff   :  { %622 = vst.msk [vmem:[%s1091_s3 + $0x54] sm:$0xf] %vm600_vm1, %v727_v49  ;;  %v285_v58 = vadd.f32 %v925_v20, %v284_v42  ;;  %v466_v61 = vsel %vm402_vm4, %v354_v41, %v434_v52  ;;  %v448_v62 = vsel %vm384_vm5, %v282_v47, %v416_v53  ;;  %v349_v63 = vadd.f32 %v925_v20, %v348_v43  ;;  %v361_v1 = vpop.f32.mrb[13].mxu1  ;;  %v781_v2 = vpop.f32.mrb[14].mxu0 }
 0x100   :  { %611 = vst.msk [vmem:[%s1091_s3 + $0x28] sm:$0xf] %vm600_vm1, %v716_v51  ;;  %v306_v0 = vadd.f32 %v780_v54, %v925_v20  ;;  %v732_v3 = vpack.c.bf16 %v466_v61, %v466_v61  ;;  %v714_v4 = vpack.c.bf16 %v448_v62, %v448_v62  ;;  %vm400_vm6 = vcmp.ge.f32.partialorder %v346_v55, 0.0  ;;  %v797_v6 = vpop.f32.mrb[14].mxu1  ;;  %v300_v7 = vpop.f32.mrb[15].mxu0 }
 0x101   :  { %v432_v5 = vmul.f32 0.2, %v346_v55  ;;  %vm387_vm7 = vcmp.ge.f32.partialorder %v293_v56, 0.0  ;;  %v419_v8 = vmul.f32 0.2, %v293_v56  ;;  %vm403_vm8 = vcmp.ge.f32.partialorder %v357_v57, 0.0 }
 0x102   :  { %v435_v9 = vmul.f32 0.2, %v357_v57  ;;  %627 = vst.msk [vmem:[%s1091_s3 + $0x68] sm:$0xf] %vm600_vm1, %v732_v3  ;;  %609 = vst.msk [vmem:[%s1091_s3 + $0x20] sm:$0xf] %vm600_vm1, %v714_v4  ;;  %v370_v24 = vadd.f32 %v796_v59, %v925_v20  ;;  %v298_v26 = vadd.f32 %v925_v20, %v297_v60  ;;  %v362_v27 = vadd.f32 %v925_v20, %v361_v1 }
 0x103   :  { %v464_v10 = vsel %vm400_vm6, %v346_v55, %v432_v5  ;;  %vm385_vm9 = vcmp.ge.f32.partialorder %v285_v58, 0.0  ;;  %v417_v11 = vmul.f32 0.2, %v285_v58  ;;  %vm401_vm10 = vcmp.ge.f32.partialorder %v349_v63, 0.0  ;;  %v364_v12 = vpop.f32.mrb[15].mxu1 }
 0x104   :  { %v730_v13 = vpack.c.bf16 %v464_v10, %v464_v10  ;;  %v451_v14 = vsel %vm387_vm7, %v293_v56, %v419_v8  ;;  %v467_v15 = vsel %vm403_vm8, %v357_v57, %v435_v9  ;;  %v433_v16 = vmul.f32 0.2, %v349_v63 }
 0x105   :  { %v717_v17 = vpack.c.bf16 %v451_v14, %v451_v14  ;;  %v733_v18 = vpack.c.bf16 %v467_v15, %v467_v15  ;;  %v449_v19 = vsel %vm385_vm9, %v285_v58, %v417_v11  ;;  %vm390_vm11 = vcmp.ge.f32.partialorder %v306_v0, 0.0 }
 0x106   :  { %625 = vst.msk [vmem:[%s1091_s3 + $0x60] sm:$0xf] %vm600_vm1, %v730_v13  ;;  %v715_v21 = vpack.c.bf16 %v449_v19, %v449_v19  ;;  %v465_v22 = vsel %vm401_vm10, %v349_v63, %v433_v16  ;;  %v422_v23 = vmul.f32 0.2, %v306_v0  ;;  %v309_v28 = vadd.f32 %v781_v2, %v925_v20 }
 0x107   :  { %612 = vst.msk [vmem:[%s1091_s3 + $0x2c] sm:$0xf] %vm600_vm1, %v717_v17  ;;  %628 = vst.msk [vmem:[%s1091_s3 + $0x6c] sm:$0xf] %vm600_vm1, %v733_v18  ;;  %v731_v25 = vpack.c.bf16 %v465_v22, %v465_v22  ;;  %vm406_vm12 = vcmp.ge.f32.partialorder %v370_v24, 0.0  ;;  %v373_v31 = vadd.f32 %v797_v6, %v925_v20  ;;  %vm388_vm13 = vcmp.ge.f32.partialorder %v298_v26, 0.0 }
 0x108   :  { %610 = vst.msk [vmem:[%s1091_s3 + $0x24] sm:$0xf] %vm600_vm1, %v715_v21  ;;  %v454_v29 = vsel %vm390_vm11, %v306_v0, %v422_v23  ;;  %v438_v30 = vmul.f32 0.2, %v370_v24  ;;  %v420_v33 = vmul.f32 0.2, %v298_v26  ;;  %v301_v43 = vadd.f32 %v925_v20, %v300_v7 }
 0x109   :  { %626 = vst.msk [vmem:[%s1091_s3 + $0x64] sm:$0xf] %vm600_vm1, %v731_v25  ;;  %v720_v32 = vpack.c.bf16 %v454_v29, %v454_v29  ;;  %vm404_vm14 = vcmp.ge.f32.partialorder %v362_v27, 0.0  ;;  %v436_v35 = vmul.f32 0.2, %v362_v27  ;;  %vm391_vm15 = vcmp.ge.f32.partialorder %v309_v28, 0.0 }
 0x10a   :  { %v470_v34 = vsel %vm406_vm12, %v370_v24, %v438_v30  ;;  %v423_v36 = vmul.f32 0.2, %v309_v28  ;;  %v452_v38 = vsel %vm388_vm13, %v298_v26, %v420_v33  ;;  %vm407_vm0 = vcmp.ge.f32.partialorder %v373_v31, 0.0 }
 0x10b   :  { %615 = vst.msk [vmem:[%s1091_s3 + $0x38] sm:$0xf] %vm600_vm1, %v720_v32  ;;  %v736_v37 = vpack.c.bf16 %v470_v34, %v470_v34  ;;  %v439_v39 = vmul.f32 0.2, %v373_v31  ;;  %v718_v40 = vpack.c.bf16 %v452_v38, %v452_v38  ;;  %v468_v41 = vsel %vm404_vm14, %v362_v27, %v436_v35 }
 0x10c   :  { %v455_v42 = vsel %vm391_vm15, %v309_v28, %v423_v36  ;;  %v734_v44 = vpack.c.bf16 %v468_v41, %v468_v41  ;;  %v365_v47 = vadd.f32 %v925_v20, %v364_v12  ;;  %vm389_vm2 = vcmp.ge.f32.partialorder %v301_v43, 0.0 }
 0x10d   :  { %631 = vst.msk [vmem:[%s1091_s3 + $0x78] sm:$0xf] %vm600_vm1, %v736_v37  ;;  %v721_v45 = vpack.c.bf16 %v455_v42, %v455_v42  ;;  %v471_v46 = vsel %vm407_vm0, %v373_v31, %v439_v39  ;;  %613 = vst.msk [vmem:[%s1091_s3 + $0x30] sm:$0xf] %vm600_vm1, %v718_v40  ;;  %v421_v49 = vmul.f32 0.2, %v301_v43 }
 0x10e   :  { %v737_v48 = vpack.c.bf16 %v471_v46, %v471_v46  ;;  %629 = vst.msk [vmem:[%s1091_s3 + $0x70] sm:$0xf] %vm600_vm1, %v734_v44  ;;  %vm405_vm3 = vcmp.ge.f32.partialorder %v365_v47, 0.0  ;;  %v437_v20 = vmul.f32 0.2, %v365_v47 }
 0x10f   :  { %616 = vst.msk [vmem:[%s1091_s3 + $0x3c] sm:$0xf] %vm600_vm1, %v721_v45  ;;  %v453_v50 = vsel %vm389_vm2, %v301_v43, %v421_v49 }
 0x110   :  { %632 = vst.msk [vmem:[%s1091_s3 + $0x7c] sm:$0xf] %vm600_vm1, %v737_v48  ;;  %v719_v51 = vpack.c.bf16 %v453_v50, %v453_v50  ;;  %v469_v52 = vsel %vm405_vm3, %v365_v47, %v437_v20 }
 0x111   :  { %v735_v53 = vpack.c.bf16 %v469_v52, %v469_v52 }
 0x112   :  { %614 = vst.msk [vmem:[%s1091_s3 + $0x34] sm:$0xf] %vm600_vm1, %v719_v51 }
 0x113   :  { %630 = vst.msk [vmem:[%s1091_s3 + $0x74] sm:$0xf] %vm600_vm1, %v735_v53 }

// kernel: apply.6
= control target key start
LH: loop header
LB: loop body
LE: loop exit
PB: predicated region body
PF: predicated region fallthrough
CT: control target
= control target key end

     0   :  { %s1514_s18 = smov 0   ;;  %s1516_s19 = smov 0   ;;  %s2210_s0 = inlined_call_operand.vmem [shape: bf16[512,128], index: 0, kind: input, shape index: {}]   ;;  %s2211_s1 = inlined_call_operand.vmem [shape: bf16[128,16], index: 1, kind: input, shape index: {}]   ;;  %s2212_s2 = inlined_call_operand.vmem [shape: f32[1,16], index: 2, kind: input, shape index: {}]   ;;  %s2213_s3 = inlined_call_operand.vmem [shape: f32[512,16], index: 3, kind: output, shape index: {0}]   ;;  %s2214_s4 = inlined_call_operand.vmem [shape: f32[2,1,16], index: 4, kind: output, shape index: {1}]   ;;  %s2215_s5 = inlined_call_operand.vmem [shape: f32[2,1,16], index: 5, kind: output, shape index: {2}]  }
   0x1   :  { %s1518_s20 = smov 0  }
   0x2 LB: > { %s28_s21 = sadd.s32 1, %s1477_s19  ;;  %p1287_p0 = scmp.ge.s32.totalorder %s1481_s20, 1  ;;  %s1481_s20 = sphi %s1518_s20, %s16_s20   ;;  %s1477_s19 = sphi %s1516_s19, %s2229_s19   ;;  %s1473_s18 = sphi %s1514_s18, %s2228_s18  }
   0x3   : > { %p30_p1 = scmp.ge.s32.totalorder %s28_s21, 2  ;;  %p211_p2 = scmp.lt.s32.totalorder %s1481_s20, 3 }
   0x5   : > { %s2231_s21 = smov (%p30_p1, %s28_s21), 0  ;;  %p212_p3 = pnand %p1287_p0, %p211_p2 }
   0x7   : > { %215 = sbr.rel (%p212_p3) target bundleno = 480 (0x1e0), region = 32 }
   0xe   : > { %v1435_v0 = vld [vmem:[%s2211_s1] sm:$0xff]   ;;  %v1436_v1 = vld [vmem:[%s2211_s1 + $0x8] sm:$0xff]   ;;  %s1288_s26 = sshll.u32 %s1473_s18, 5  ;;  %v1437_v2 = vld [vmem:[%s2211_s1 + $0x10] sm:$0xff]   ;;  %p263_p5 = scmp.lt.s32.totalorder %s1473_s18, 1  ;;  %vm667_vm0 = vcmask 122880  }
   0xf   : > { %1346 = vmatprep.subr.bf16.mxu0 %v1435_v0  ;;  %1394 = vmatprep.subr.bf16.mxu1 %v1435_v0  ;;  %p249_p4 = scmp.lt.s32.totalorder %s1288_s26, 63  ;;  %v1438_v3 = vld [vmem:[%s2211_s1 + $0x18] sm:$0xff]   ;;  %v1439_v6 = vld [vmem:[%s2211_s1 + $0x20] sm:$0xff]   ;;  %v1440_v7 = vld [vmem:[%s2211_s1 + $0x28] sm:$0xff]   ;;  %s1317_s30 = sshll.u32 %s1473_s18, 8  ;;  %v1483_v24 = vmov 0.0  }
  0x10   : > { %1347 = vmatpush3.bf16.msra.mxu0 %v1435_v0  ;;  %1402 = vmatpush3.bf16.msra.mxu1 %v1435_v0  ;;  %v1441_v8 = vld [vmem:[%s2211_s1 + $0x30] sm:$0xff]   ;;  %v1442_v9 = vld [vmem:[%s2211_s1 + $0x38] sm:$0xff]   ;;  %s264_s22 = scalar_select %p263_p5, %s1473_s18, 1  ;;  %v1608_v25 = vld [vmem:[%s2212_s2] ss:$0 sm:$0xff]  ;;  %vm630_vm1 = vcmask 130048  }
  0x11   : > { %1348 = vmatprep.subr.bf16.mxu0 %v1436_v1  ;;  %1395 = vmatprep.subr.bf16.mxu1 %v1436_v1  ;;  %s2233_s26 = smov (!%p249_p4, %s1288_s26), 63  ;;  %s1602_s6 = sadd.s32 256, %s1317_s30 }
  0x12   : > { %s1289_s29 = sshll.u32 %s2233_s26, 2  ;;  %s1588_s25 = scalar_lea.vmem %s2214_s4, %s264_s22 }
  0x13   : > { %s1553_s9 = scalar_lea.vmem %s2210_s0, %s1289_s29  ;;  %s1593_s29 = scalar_lea.vmem %s2215_s5, %s264_s22  ;;  %668 = vst.msk [vmem:[%s1588_s25] sm:$0x1] %vm667_vm0, %v1483_v24 }
  0x14   : > { %1349 = vmatpush3.bf16.msra.mxu0 %v1436_v1  ;;  %1403 = vmatpush3.bf16.msra.mxu1 %v1436_v1  ;;  %v1443_v4 = vld [vmem:[%s1553_s9] sm:$0xff]   ;;  %v1445_v10 = vld [vmem:[%s1553_s9 + $0x8] sm:$0xff]   ;;  %v1447_v12 = vld [vmem:[%s1553_s9 + $0x10] sm:$0xff]   ;;  %669 = vst.msk [vmem:[%s1593_s29] sm:$0x1] %vm667_vm0, %v1483_v24  ;;  %s1291_s7 = sshll.u32 %s2233_s26, 3 }
  0x15   : > { %1350 = vmatprep.subr.bf16.mxu0 %v1437_v2  ;;  %1396 = vmatprep.subr.bf16.mxu1 %v1437_v2  ;;  %v1444_v5 = vld [vmem:[%s1553_s9 + $0x40] sm:$0xff]   ;;  %v1446_v11 = vld [vmem:[%s1553_s9 + $0x48] sm:$0xff]   ;;  %v1448_v13 = vld [vmem:[%s1553_s9 + $0x50] sm:$0xff]   ;;  %s1613_s12 = scalar_lea.vmem %s2213_s3, %s1291_s7  ;;  %p1318_p6 = scmp.gt.s32.totalorder %s1602_s6, 50 }
  0x16   : > { %1362 = vmatprep.mubr.bf16.mxu0 %v1443_v4  ;;  %1378 = vmatprep.mubr.bf16.mxu1 %v1444_v5  ;;  %v1449_v14 = vld [vmem:[%s1553_s9 + $0x18] sm:$0xff]   ;;  %v1451_v16 = vld [vmem:[%s1553_s9 + $0x20] sm:$0xff]   ;;  %v1453_v18 = vld [vmem:[%s1553_s9 + $0x28] sm:$0xff]  }
  0x17   : > { %v1450_v15 = vld [vmem:[%s1553_s9 + $0x58] sm:$0xff]   ;;  %v1452_v17 = vld [vmem:[%s1553_s9 + $0x60] sm:$0xff]   ;;  %v1454_v19 = vld [vmem:[%s1553_s9 + $0x68] sm:$0xff]  }
  0x18   : > { %1351 = vmatpush3.bf16.msra.mxu0 %v1437_v2  ;;  %1404 = vmatpush3.bf16.msra.mxu1 %v1437_v2  ;;  %v1455_v20 = vld [vmem:[%s1553_s9 + $0x30] sm:$0xff]   ;;  %v1457_v22 = vld [vmem:[%s1553_s9 + $0x38] sm:$0xff]  }
  0x19   : > { %1352 = vmatprep.subr.bf16.mxu0 %v1438_v3  ;;  %1397 = vmatprep.subr.bf16.mxu1 %v1438_v3  ;;  %v1456_v21 = vld [vmem:[%s1553_s9 + $0x70] sm:$0xff]   ;;  %v1458_v23 = vld [vmem:[%s1553_s9 + $0x78] sm:$0xff]  }
  0x1c   : > { %1353 = vmatpush3.bf16.msra.mxu0 %v1438_v3  ;;  %1405 = vmatpush3.bf16.msra.mxu1 %v1438_v3 }
  0x1d   : > { %1354 = vmatprep.subr.bf16.mxu0 %v1439_v6  ;;  %1398 = vmatprep.subr.bf16.mxu1 %v1439_v6 }
  0x20   : > { %1355 = vmatpush3.bf16.msra.mxu0 %v1439_v6  ;;  %1406 = vmatpush3.bf16.msra.mxu1 %v1439_v6 }
  0x21   : > { %1356 = vmatprep.subr.bf16.mxu0 %v1440_v7  ;;  %1399 = vmatprep.subr.bf16.mxu1 %v1440_v7 }
  0x24   : > { %1357 = vmatpush3.bf16.msra.mxu0 %v1440_v7  ;;  %1407 = vmatpush3.bf16.msra.mxu1 %v1440_v7 }
  0x25   : > { %1358 = vmatprep.subr.bf16.mxu0 %v1441_v8  ;;  %1400 = vmatprep.subr.bf16.mxu1 %v1441_v8 }
  0x28   : > { %1359 = vmatpush3.bf16.msra.mxu0 %v1441_v8  ;;  %1408 = vmatpush3.bf16.msra.mxu1 %v1441_v8 }
  0x29   : > { %1360 = vmatprep.subr.bf16.mxu0 %v1442_v9  ;;  %1401 = vmatprep.subr.bf16.mxu1 %v1442_v9 }
  0x2c   : > { %1361 = vmatpush3.bf16.msra.mxu0 %v1442_v9  ;;  %1409 = vmatpush3.bf16.msra.mxu1 %v1442_v9 }
  0x2f   : > { %1363 = vmatmul.mubr.bf16.vlgmr.msra.gmra.mrb[0].mxu0 %v1445_v10  ;;  %1379 = vmatmul.mubr.bf16.vlgmr.msra.gmra.mrb[0].mxu1 %v1446_v11 }
  0x30   : > { %1366 = vmatprep.mubr.bf16.mxu0 %v1447_v12  ;;  %1382 = vmatprep.mubr.bf16.mxu1 %v1448_v13 }
  0x37   : > { %1367 = vmatmul.mubr.bf16.gmra.mrb[4].mxu0 %v1449_v14  ;;  %1383 = vmatmul.mubr.bf16.gmra.mrb[4].mxu1 %v1450_v15 }
  0x38   : > { %1370 = vmatprep.mubr.bf16.mxu0 %v1451_v16  ;;  %1386 = vmatprep.mubr.bf16.mxu1 %v1452_v17 }
  0x3f   : > { %1371 = vmatmul.mubr.bf16.gmra.mrb[8].mxu0 %v1453_v18  ;;  %1387 = vmatmul.mubr.bf16.gmra.mrb[8].mxu1 %v1454_v19 }
  0x40   : > { %1374 = vmatprep.mubr.bf16.mxu0 %v1455_v20  ;;  %1390 = vmatprep.mubr.bf16.mxu1 %v1456_v21 }
  0x47   : > { %1375 = vmatmul.mubr.bf16.gmra.mrb[12].mxu0 %v1457_v22  ;;  %1391 = vmatmul.mubr.bf16.gmra.mrb[12].mxu1 %v1458_v23 }
 0x102   : > { %v1364_v26 = vpop.f32.mrb[0].mxu0  ;;  %v1380_v27 = vpop.f32.mrb[0].mxu1 }
 0x103   : > { %v1616_v28 = vadd.f32 %v1364_v26, %v1608_v25  ;;  %v1619_v29 = vadd.f32 %v1380_v27, %v1608_v25  ;;  %v503_v30 = vpop.f32.mrb[1].mxu0  ;;  %v567_v31 = vpop.f32.mrb[1].mxu1 }
 0x104   : > { %v1622_v32 = vadd.f32 %v1608_v25, %v503_v30  ;;  %v1625_v33 = vadd.f32 %v1608_v25, %v567_v31  ;;  %v1365_v34 = vpop.f32.mrb[2].mxu0  ;;  %v1381_v35 = vpop.f32.mrb[2].mxu1 }
 0x105   : > { %633 = vst.msk [vmem:[%s1613_s12 + $0x10] sm:$0xff] %vm630_vm1, %v1616_v28  ;;  %649 = vst.msk [vmem:[%s1613_s12 + $0x90] sm:$0xff] %vm630_vm1, %v1619_v29  ;;  %v1634_v36 = vadd.f32 %v1365_v34, %v1608_v25  ;;  %v1637_v37 = vadd.f32 %v1381_v35, %v1608_v25  ;;  %v506_v38 = vpop.f32.mrb[3].mxu0  ;;  %v570_v39 = vpop.f32.mrb[3].mxu1  ;;  %v681_v30 = vsel (!%p1318_p6), %vm630_vm1, %v1616_v28, 0.0 }
 0x106   : > { %631 = vst.msk [vmem:[%s1613_s12] sm:$0xff] %vm630_vm1, %v1622_v32  ;;  %647 = vst.msk [vmem:[%s1613_s12 + $0x80] sm:$0xff] %vm630_vm1, %v1625_v33  ;;  %v1646_v40 = vadd.f32 %v1608_v25, %v506_v38  ;;  %v1649_v41 = vadd.f32 %v1608_v25, %v570_v39  ;;  %v678_v27 = vsel (!%p1318_p6), %vm630_vm1, %v1622_v32, 0.0 }
 0x107   : > { %634 = vst.msk [vmem:[%s1613_s12 + $0x18] sm:$0xff] %vm630_vm1, %v1634_v36  ;;  %650 = vst.msk [vmem:[%s1613_s12 + $0x98] sm:$0xff] %vm630_vm1, %v1637_v37  ;;  %v683_v34 = vsel (!%p1318_p6), %vm630_vm1, %v1634_v36, 0.0 }
 0x108   : > { %632 = vst.msk [vmem:[%s1613_s12 + $0x8] sm:$0xff] %vm630_vm1, %v1646_v40  ;;  %648 = vst.msk [vmem:[%s1613_s12 + $0x88] sm:$0xff] %vm630_vm1, %v1649_v41 }
 0x10a   : > { %v1368_v42 = vpop.f32.mrb[4].mxu0  ;;  %v1384_v43 = vpop.f32.mrb[4].mxu1 }
 0x10b   : > { %v1664_v44 = vadd.f32 %v1368_v42, %v1608_v25  ;;  %v1667_v45 = vadd.f32 %v1384_v43, %v1608_v25  ;;  %v519_v46 = vpop.f32.mrb[5].mxu0  ;;  %v583_v47 = vpop.f32.mrb[5].mxu1 }
 0x10c   : > { %v1670_v48 = vadd.f32 %v1608_v25, %v519_v46  ;;  %v1673_v49 = vadd.f32 %v1608_v25, %v583_v47  ;;  %v1369_v50 = vpop.f32.mrb[6].mxu0  ;;  %v1385_v51 = vpop.f32.mrb[6].mxu1 }
 0x10d   : > { %637 = vst.msk [vmem:[%s1613_s12 + $0x30] sm:$0xff] %vm630_vm1, %v1664_v44  ;;  %653 = vst.msk [vmem:[%s1613_s12 + $0xb0] sm:$0xff] %vm630_vm1, %v1667_v45  ;;  %v1682_v52 = vadd.f32 %v1369_v50, %v1608_v25  ;;  %v1685_v53 = vadd.f32 %v1385_v51, %v1608_v25  ;;  %v522_v54 = vpop.f32.mrb[7].mxu0  ;;  %v586_v55 = vpop.f32.mrb[7].mxu1  ;;  %v689_v46 = vsel (!%p1318_p6), %vm630_vm1, %v1664_v44, 0.0 }
 0x10e   : > { %635 = vst.msk [vmem:[%s1613_s12 + $0x20] sm:$0xff] %vm630_vm1, %v1670_v48  ;;  %651 = vst.msk [vmem:[%s1613_s12 + $0xa0] sm:$0xff] %vm630_vm1, %v1673_v49  ;;  %v1694_v56 = vadd.f32 %v1608_v25, %v522_v54  ;;  %v1697_v57 = vadd.f32 %v1608_v25, %v586_v55  ;;  %v685_v38 = vsel (!%p1318_p6), %vm630_vm1, %v1670_v48, 0.0 }
 0x10f   : > { %638 = vst.msk [vmem:[%s1613_s12 + $0x38] sm:$0xff] %vm630_vm1, %v1682_v52  ;;  %654 = vst.msk [vmem:[%s1613_s12 + $0xb8] sm:$0xff] %vm630_vm1, %v1685_v53  ;;  %v691_v50 = vsel (!%p1318_p6), %vm630_vm1, %v1682_v52, 0.0 }
 0x110   : > { %636 = vst.msk [vmem:[%s1613_s12 + $0x28] sm:$0xff] %vm630_vm1, %v1694_v56  ;;  %652 = vst.msk [vmem:[%s1613_s12 + $0xa8] sm:$0xff] %vm630_vm1, %v1697_v57  ;;  %v687_v42 = vsel (!%p1318_p6), %vm630_vm1, %v1694_v56, 0.0 }
 0x112   : > { %v1372_v58 = vpop.f32.mrb[8].mxu0  ;;  %v1388_v59 = vpop.f32.mrb[8].mxu1 }
 0x113   : > { %v1712_v60 = vadd.f32 %v1372_v58, %v1608_v25  ;;  %v1715_v61 = vadd.f32 %v1388_v59, %v1608_v25  ;;  %v535_v62 = vpop.f32.mrb[9].mxu0  ;;  %v599_v63 = vpop.f32.mrb[9].mxu1  ;;  %v751_v59 = vmul.f32 (!%p1318_p6), %v1622_v32, %v1622_v32 }
 0x114   : > { %v1718_v0 = vadd.f32 %v1608_v25, %v535_v62  ;;  %v1721_v1 = vadd.f32 %v1608_v25, %v599_v63  ;;  %v1373_v2 = vpop.f32.mrb[10].mxu0  ;;  %v1389_v3 = vpop.f32.mrb[10].mxu1  ;;  %v752_v62 = vmul.f32 (!%p1318_p6), %v1646_v40, %v1646_v40  ;;  %v753_v63 = vmul.f32 (!%p1318_p6), %v1616_v28, %v1616_v28 }
 0x115   : > { %641 = vst.msk [vmem:[%s1613_s12 + $0x50] sm:$0xff] %vm630_vm1, %v1712_v60  ;;  %657 = vst.msk [vmem:[%s1613_s12 + $0xd0] sm:$0xff] %vm630_vm1, %v1715_v61  ;;  %v1730_v4 = vadd.f32 %v1373_v2, %v1608_v25  ;;  %v1733_v5 = vadd.f32 %v1389_v3, %v1608_v25  ;;  %v538_v6 = vpop.f32.mrb[11].mxu0  ;;  %v602_v7 = vpop.f32.mrb[11].mxu1  ;;  %v697_v3 = vsel (!%p1318_p6), %vm630_vm1, %v1712_v60, 0.0 }
 0x116   : > { %639 = vst.msk [vmem:[%s1613_s12 + $0x40] sm:$0xff] %vm630_vm1, %v1718_v0  ;;  %655 = vst.msk [vmem:[%s1613_s12 + $0xc0] sm:$0xff] %vm630_vm1, %v1721_v1  ;;  %v1742_v8 = vadd.f32 %v1608_v25, %v538_v6  ;;  %v1745_v9 = vadd.f32 %v1608_v25, %v602_v7  ;;  %v693_v54 = vsel (!%p1318_p6), %vm630_vm1, %v1718_v0, 0.0  ;;  %v754_v6 = vmul.f32 (!%p1318_p6), %v1634_v36, %v1634_v36 }
 0x117   : > { %642 = vst.msk [vmem:[%s1613_s12 + $0x58] sm:$0xff] %vm630_vm1, %v1730_v4  ;;  %658 = vst.msk [vmem:[%s1613_s12 + $0xd8] sm:$0xff] %vm630_vm1, %v1733_v5 }
 0x118   : > { %640 = vst.msk [vmem:[%s1613_s12 + $0x48] sm:$0xff] %vm630_vm1, %v1742_v8  ;;  %656 = vst.msk [vmem:[%s1613_s12 + $0xc8] sm:$0xff] %vm630_vm1, %v1745_v9  ;;  %v695_v58 = vsel (!%p1318_p6), %vm630_vm1, %v1742_v8, 0.0 }
 0x11a   : > { %v1376_v10 = vpop.f32.mrb[12].mxu0  ;;  %v1392_v11 = vpop.f32.mrb[12].mxu1 }
 0x11b   : > { %v1760_v12 = vadd.f32 %v1376_v10, %v1608_v25  ;;  %v1763_v13 = vadd.f32 %v1392_v11, %v1608_v25  ;;  %v551_v14 = vpop.f32.mrb[13].mxu0  ;;  %v615_v15 = vpop.f32.mrb[13].mxu1  ;;  %v699_v10 = vsel (!%p1318_p6), %vm630_vm1, %v1730_v4, 0.0  ;;  %v755_v11 = vmul.f32 (!%p1318_p6), %v1670_v48, %v1670_v48 }
 0x11c   : > { %v1766_v16 = vadd.f32 %v1608_v25, %v551_v14  ;;  %v1769_v17 = vadd.f32 %v1608_v25, %v615_v15  ;;  %v1377_v18 = vpop.f32.mrb[14].mxu0  ;;  %v1393_v19 = vpop.f32.mrb[14].mxu1  ;;  %676 = sbr.rel (%p1318_p6) target bundleno = 372 (0x174), region = 40  ;;  %v783_v14 = vsel (!%p1318_p6), %vm630_vm1, %v751_v59, 0.0  ;;  %v784_v15 = vsel (!%p1318_p6), %vm630_vm1, %v752_v62, 0.0 }
 0x11d   : > { %2220 = vst [vmem:[#allocation2_spill] sm:$0xff] %v1763_v13  ;;  %645 = vst.msk [vmem:[%s1613_s12 + $0x70] sm:$0xff] %vm630_vm1, %v1760_v12  ;;  %v1778_v20 = vadd.f32 %v1377_v18, %v1608_v25  ;;  %v1781_v21 = vadd.f32 %v1393_v19, %v1608_v25  ;;  %v554_v22 = vpop.f32.mrb[15].mxu0  ;;  %v618_v23 = vpop.f32.mrb[15].mxu1  ;;  %v786_v18 = vsel (!%p1318_p6), %vm630_vm1, %v753_v63, 0.0  ;;  %v709_v63 = vsel (!%p1318_p6), %vm630_vm1, %v1625_v33, 0.0 }
 0x11e   : > { %2221 = vst [vmem:[#allocation3_spill] sm:$0xff] %v1769_v17  ;;  %661 = vst.msk [vmem:[%s1613_s12 + $0xf0] sm:$0xff] %vm630_vm1, %v1763_v13  ;;  %v1790_v24 = vadd.f32 %v1608_v25, %v554_v22  ;;  %v1793_v26 = vadd.f32 %v1608_v25, %v618_v23  ;;  %v679_v25 = vsel (!%p1318_p6), %vm630_vm1, %v1646_v40, 0.0  ;;  %v785_v22 = vadd.f32 (!%p1318_p6), %v784_v15, %v783_v14 }
 0x11f   : > { %2222 = vst [vmem:[#allocation4_spill] sm:$0xff] %v1781_v21  ;;  %643 = vst.msk [vmem:[%s1613_s12 + $0x60] sm:$0xff] %vm630_vm1, %v1766_v16  ;;  %v680_v31 = vadd.f32 (!%p1318_p6), %v679_v25, %v678_v27  ;;  %v701_v23 = vsel (!%p1318_p6), %vm630_vm1, %v1766_v16, 0.0  ;;  %v756_v27 = vmul.f32 (!%p1318_p6), %v1694_v56, %v1694_v56  ;;  %v788_v25 = vsel (!%p1318_p6), %vm630_vm1, %v754_v6, 0.0 }
 0x120   : > { %659 = vst.msk [vmem:[%s1613_s12 + $0xe0] sm:$0xff] %vm630_vm1, %v1769_v17  ;;  %2223 = vst [vmem:[#allocation5_spill] sm:$0xff] %v1793_v26 }
 0x121   : > { %646 = vst.msk [vmem:[%s1613_s12 + $0x78] sm:$0xff] %vm630_vm1, %v1778_v20  ;;  %662 = vst.msk [vmem:[%s1613_s12 + $0xf8] sm:$0xff] %vm630_vm1, %v1781_v21  ;;  %v682_v35 = vadd.f32 (!%p1318_p6), %v681_v30, %v680_v31  ;;  %v787_v31 = vadd.f32 (!%p1318_p6), %v786_v18, %v785_v22  ;;  %v762_v22 = vmul.f32 (!%p1318_p6), %v1730_v4, %v1730_v4 }
 0x122   : > { %644 = vst.msk [vmem:[%s1613_s12 + $0x68] sm:$0xff] %vm630_vm1, %v1790_v24  ;;  %660 = vst.msk [vmem:[%s1613_s12 + $0xe8] sm:$0xff] %vm630_vm1, %v1793_v26 }
 0x123   : > { %v684_v39 = vadd.f32 %v683_v34, %v682_v35  ;;  %v703_v34 = vsel %vm630_vm1, %v1790_v24, 0.0  ;;  %v757_v35 = vmul.f32 %v1664_v44, %v1664_v44 }
 0x125   : > { %v686_v43 = vadd.f32 %v685_v38, %v684_v39  ;;  %v790_v38 = vsel %vm630_vm1, %v755_v11, 0.0  ;;  %v761_v11 = vmul.f32 %v1712_v60, %v1712_v60 }
 0x127   : > { %v688_v47 = vadd.f32 %v687_v42, %v686_v43  ;;  %v789_v42 = vadd.f32 %v788_v25, %v787_v31  ;;  %v705_v43 = vsel %vm630_vm1, %v1760_v12, 0.0  ;;  %v763_v31 = vmul.f32 %v1766_v16, %v1766_v16 }
 0x129   : > { %v690_v51 = vadd.f32 %v689_v46, %v688_v47  ;;  %v758_v46 = vmul.f32 %v1682_v52, %v1682_v52  ;;  %v792_v47 = vsel %vm630_vm1, %v756_v27, 0.0 }
 0x12b   : > { %v692_v55 = vadd.f32 %v691_v50, %v690_v51  ;;  %v791_v51 = vadd.f32 %v790_v38, %v789_v42  ;;  %v764_v42 = vmul.f32 %v1790_v24, %v1790_v24 }
 0x12d   : > { %v694_v2 = vadd.f32 %v693_v54, %v692_v55  ;;  %v707_v54 = vsel %vm630_vm1, %v1778_v20, 0.0  ;;  %v759_v55 = vmul.f32 %v1718_v0, %v1718_v0  ;;  %v793_v62 = vadd.f32 %v792_v47, %v791_v51 }
 0x12e   : > { %v765_v51 = vmul.f32 %v1760_v12, %v1760_v12 }
 0x12f   : > { %v696_v7 = vadd.f32 %v695_v58, %v694_v2  ;;  %v794_v58 = vsel %vm630_vm1, %v757_v35, 0.0  ;;  %v760_v2 = vmul.f32 %v1742_v8, %v1742_v8  ;;  %v798_v14 = vsel %vm630_vm1, %v759_v55, 0.0 }
 0x131   : > { %v698_v19 = vadd.f32 %v697_v3, %v696_v7  ;;  %v796_v3 = vsel %vm630_vm1, %v758_v46, 0.0  ;;  %v795_v7 = vadd.f32 %v794_v58, %v793_v62  ;;  %v766_v62 = vmul.f32 %v1778_v20, %v1778_v20 }
 0x133   : > { %v700_v30 = vadd.f32 %v699_v10, %v698_v19  ;;  %v711_v10 = vsel %vm630_vm1, %v1649_v41, 0.0  ;;  %v797_v18 = vadd.f32 %v796_v3, %v795_v7  ;;  %v713_v19 = vsel %vm630_vm1, %v1619_v29, 0.0 }
 0x134   : > { %v767_v7 = vmul.f32 %v1625_v33, %v1625_v33 }
 0x135   : > { %v702_v39 = vadd.f32 %v701_v23, %v700_v30  ;;  %v800_v23 = vsel %vm630_vm1, %v760_v2, 0.0  ;;  %v799_v25 = vadd.f32 %v798_v14, %v797_v18  ;;  %v715_v30 = vsel %vm630_vm1, %v1637_v37, 0.0 }
 0x136   : > { %v768_v18 = vmul.f32 %v1649_v41, %v1649_v41 }
 0x137   : > { %v704_v50 = vadd.f32 %v703_v34, %v702_v39  ;;  %v802_v34 = vsel %vm630_vm1, %v761_v11, 0.0  ;;  %v801_v38 = vadd.f32 %v800_v23, %v799_v25  ;;  %v717_v39 = vsel %vm630_vm1, %v1673_v49, 0.0 }
 0x138   : > { %v769_v25 = vmul.f32 %v1619_v29, %v1619_v29 }
 0x139   : > { %v706_v59 = vadd.f32 %v705_v43, %v704_v50  ;;  %v804_v43 = vsel %vm630_vm1, %v762_v22, 0.0  ;;  %v803_v47 = vadd.f32 %v802_v34, %v801_v38  ;;  %v719_v50 = vsel %vm630_vm1, %v1697_v57, 0.0 }
 0x13a   : > { %v770_v38 = vmul.f32 %v1637_v37, %v1637_v37 }
 0x13b   : > { %v708_v6 = vadd.f32 %v707_v54, %v706_v59  ;;  %v806_v54 = vsel %vm630_vm1, %v763_v31, 0.0  ;;  %v805_v58 = vadd.f32 %v804_v43, %v803_v47  ;;  %v721_v59 = vsel %vm630_vm1, %v1667_v45, 0.0 }
 0x13c   : > { %v771_v47 = vmul.f32 %v1673_v49, %v1673_v49 }
 0x13d   : > { %v710_v15 = vadd.f32 %v709_v63, %v708_v6  ;;  %v808_v63 = vsel %vm630_vm1, %v764_v42, 0.0  ;;  %v807_v3 = vadd.f32 %v806_v54, %v805_v58  ;;  %v723_v6 = vsel %vm630_vm1, %v1685_v53, 0.0 }
 0x13e   : > { %v772_v58 = vmul.f32 %v1697_v57, %v1697_v57 }
 0x13f   : > { %v712_v27 = vadd.f32 %v711_v10, %v710_v15  ;;  %v810_v10 = vsel %vm630_vm1, %v765_v51, 0.0  ;;  %v809_v14 = vadd.f32 %v808_v63, %v807_v3  ;;  %v725_v15 = vsel %vm630_vm1, %v1721_v1, 0.0 }
 0x140   : > { %v773_v3 = vmul.f32 %v1667_v45, %v1667_v45 }
 0x141   : > { %v714_v35 = vadd.f32 %v713_v19, %v712_v27  ;;  %v812_v19 = vsel %vm630_vm1, %v766_v62, 0.0  ;;  %v811_v23 = vadd.f32 %v810_v10, %v809_v14  ;;  %v727_v27 = vsel %vm630_vm1, %v1745_v9, 0.0 }
 0x142   : > { %v774_v14 = vmul.f32 %v1685_v53, %v1685_v53 }
 0x143   : > { %v716_v46 = vadd.f32 %v715_v30, %v714_v35  ;;  %v814_v30 = vsel %vm630_vm1, %v767_v7, 0.0  ;;  %v813_v34 = vadd.f32 %v812_v19, %v811_v23  ;;  %v729_v35 = vsel %vm630_vm1, %v1715_v61, 0.0 }
 0x144   : > { %v775_v23 = vmul.f32 %v1721_v1, %v1721_v1 }
 0x145   : > { %v718_v55 = vadd.f32 %v717_v39, %v716_v46  ;;  %v816_v39 = vsel %vm630_vm1, %v768_v18, 0.0  ;;  %v815_v43 = vadd.f32 %v814_v30, %v813_v34  ;;  %v731_v46 = vsel %vm630_vm1, %v1733_v5, 0.0 }
 0x146   : > { %v828_v34 = vsel %vm630_vm1, %v774_v14, 0.0 }
 0x147   : > { %v720_v2 = vadd.f32 %v719_v50, %v718_v55  ;;  %v818_v50 = vsel %vm630_vm1, %v769_v25, 0.0  ;;  %v817_v54 = vadd.f32 %v816_v39, %v815_v43  ;;  %v733_v55 = vsel %vm630_vm1, %v1769_v17, 0.0 }
 0x148   : > { %v777_v39 = vmul.f32 %v1715_v61, %v1715_v61 }
 0x149   : > { %v722_v11 = vadd.f32 %v721_v59, %v720_v2  ;;  %v820_v59 = vsel %vm630_vm1, %v770_v38, 0.0  ;;  %v819_v63 = vadd.f32 %v818_v50, %v817_v54  ;;  %v735_v2 = vsel %vm630_vm1, %v1793_v26, 0.0 }
 0x14b   : > { %v724_v22 = vadd.f32 %v723_v6, %v722_v11  ;;  %v822_v6 = vsel %vm630_vm1, %v771_v47, 0.0  ;;  %v821_v10 = vadd.f32 %v820_v59, %v819_v63  ;;  %v737_v11 = vsel %vm630_vm1, %v1763_v13, 0.0 }
 0x14c   : > { %v778_v47 = vmul.f32 %v1733_v5, %v1733_v5  ;;  %v780_v63 = vmul.f32 %v1793_v26, %v1793_v26 }
 0x14d   : > { %v726_v31 = vadd.f32 %v725_v15, %v724_v22  ;;  %v824_v15 = vsel %vm630_vm1, %v772_v58, 0.0  ;;  %v823_v19 = vadd.f32 %v822_v6, %v821_v10  ;;  %v739_v22 = vsel %vm630_vm1, %v1781_v21, 0.0 }
 0x14e   : > { %v834_v58 = vsel %vm630_vm1, %v777_v39, 0.0 }
 0x14f   : > { %v728_v42 = vadd.f32 %v727_v27, %v726_v31  ;;  %v826_v27 = vsel %vm630_vm1, %v773_v3, 0.0  ;;  %v825_v30 = vadd.f32 %v824_v15, %v823_v19  ;;  %v776_v31 = vmul.f32 %v1745_v9, %v1745_v9  ;;  %v677_v15 = vld [vmem:[%s1588_s25] sm:$0x1] }
 0x150   : > { %v840_v19 = vsel %vm630_vm1, %v780_v63, 0.0 }
 0x151   : > { %v730_v51 = vadd.f32 %v729_v35, %v728_v42  ;;  %v827_v38 = vadd.f32 %v826_v27, %v825_v30  ;;  %v830_v42 = vsel %vm630_vm1, %v775_v23, 0.0  ;;  %v832_v50 = vsel %vm630_vm1, %v776_v31, 0.0 }
 0x153   : > { %v732_v62 = vadd.f32 %v731_v46, %v730_v51  ;;  %v829_v46 = vadd.f32 %v828_v34, %v827_v38 }
 0x155   : > { %v734_v7 = vadd.f32 %v733_v55, %v732_v62  ;;  %v831_v54 = vadd.f32 %v830_v42, %v829_v46  ;;  %v779_v55 = vmul.f32 %v1769_v17, %v1769_v17 }
 0x157   : > { %v736_v18 = vadd.f32 %v735_v2, %v734_v7  ;;  %v833_v62 = vadd.f32 %v832_v50, %v831_v54  ;;  %v836_v2 = vsel %vm630_vm1, %v778_v47, 0.0  ;;  %v781_v7 = vmul.f32 %v1763_v13, %v1763_v13  ;;  %v750_v47 = vld [vmem:[%s1593_s29] sm:$0x1] }
 0x158   : > { %v838_v10 = vsel %vm630_vm1, %v779_v55, 0.0 }
 0x159   : > { %v738_v25 = vadd.f32 %v737_v11, %v736_v18  ;;  %v835_v6 = vadd.f32 %v834_v58, %v833_v62  ;;  %v782_v18 = vmul.f32 %v1781_v21, %v1781_v21  ;;  %v842_v27 = vsel %vm630_vm1, %v781_v7, 0.0 }
 0x15b   : > { %v740_v35 = vadd.f32 %v739_v22, %v738_v25  ;;  %v837_v14 = vadd.f32 %v836_v2, %v835_v6  ;;  %v844_v31 = vsel %vm630_vm1, %v782_v18, 0.0 }
 0x15d   : > { %v741_v43 = vrot.slane %v740_v35, 4  ;;  %v839_v23 = vadd.f32 %v838_v10, %v837_v14 }
 0x15f   : > { %v742_v51 = vadd.f32 %v741_v43, %v740_v35  ;;  %v841_v30 = vadd.f32 %v840_v19, %v839_v23 }
 0x161   : > { %v743_v59 = vrot.slane %v742_v51, 2  ;;  %v843_v34 = vadd.f32 %v842_v27, %v841_v30 }
 0x163   : > { %v744_v3 = vadd.f32 %v743_v59, %v742_v51  ;;  %v845_v35 = vadd.f32 %v844_v31, %v843_v34 }
 0x165   : > { %v745_v11 = vrot.slane %v744_v3, 1  ;;  %v846_v38 = vrot.slane %v845_v35, 4 }
 0x167   : > { %v746_v22 = vadd.f32 %v745_v11, %v744_v3  ;;  %v847_v39 = vadd.f32 %v846_v38, %v845_v35 }
 0x169   : > { %v747_v25 = vadd.f32 %v746_v22, %v677_v15  ;;  %v848_v42 = vrot.slane %v847_v39, 2 }
 0x16b   : > { %749 = vst.msk [vmem:[%s1588_s25] sm:$0x1] %vm667_vm0, %v747_v25  ;;  %v849_v43 = vadd.f32 %v848_v42, %v847_v39 }
 0x16d   : > { %v850_v46 = vrot.slane %v849_v43, 1 }
 0x16f   : > { %v851_v50 = vadd.f32 %v850_v46, %v849_v43 }
 0x171   : > { %v852_v51 = vadd.f32 %v851_v50, %v750_v47 }
 0x173   : > { %853 = vst.msk [vmem:[%s1593_s29] sm:$0x1] %vm667_vm0, %v852_v51 }
 0x174 PF: > { %p1319_p7 = scmp.le.s32.totalorder %s1602_s6, 50 }
 0x175   : > { %v858_v54 = vlaneseq (!%p1319_p7)  ;;  %v1981_v62 = vstv (!%p1319_p7), %s1317_s30 }
 0x176   : > { %857 = sbr.rel (%p1319_p7) target bundleno = 480 (0x1e0), region = 44 }
 0x177   : > { %v1975_v55 = vshrl.u32 (!%p1319_p7), %v858_v54, 7 }
 0x179   : > { %v860_v58 = vadd.s32 (!%p1319_p7), 8, %v1975_v55  ;;  %v861_v59 = vadd.s32 (!%p1319_p7), 16, %v1975_v55  ;;  %v862_v63 = vadd.s32 (!%p1319_p7), 24, %v1975_v55  ;;  %v892_v2 = vadd.s32 (!%p1319_p7), %v1981_v62, %v1975_v55 }
 0x17a   : > { %v863_v3 = vadd.s32 (!%p1319_p7), 32, %v1975_v55  ;;  %v864_v10 = vadd.s32 (!%p1319_p7), 40, %v1975_v55  ;;  %v865_v14 = vadd.s32 (!%p1319_p7), 48, %v1975_v55  ;;  %v866_v18 = vadd.s32 (!%p1319_p7), 56, %v1975_v55 }
 0x17b   : > { %v893_v6 = vadd.s32 (!%p1319_p7), %v1981_v62, %v860_v58  ;;  %v894_v7 = vadd.s32 (!%p1319_p7), %v1981_v62, %v861_v59  ;;  %v895_v11 = vadd.s32 (!%p1319_p7), %v1981_v62, %v862_v63  ;;  %vm924_vm2 = vcmp.lt.s32.totalorder (!%p1319_p7), %v892_v2, 50 }
 0x17c   : > { %v896_v15 = vadd.s32 (!%p1319_p7), %v1981_v62, %v863_v3  ;;  %v867_v19 = vadd.s32 (!%p1319_p7), 64, %v1975_v55  ;;  %v868_v22 = vadd.s32 (!%p1319_p7), 72, %v1975_v55  ;;  %v869_v23 = vadd.s32 (!%p1319_p7), 80, %v1975_v55 }
 0x17d   : > { %vm925_vm3 = vcmp.lt.s32.totalorder %v893_v6, 50  ;;  %vm926_vm4 = vcmp.lt.s32.totalorder %v894_v7, 50  ;;  %v870_v27 = vadd.s32 88, %v1975_v55  ;;  %v897_v25 = vadd.s32 %v1981_v62, %v864_v10 }
 0x17e   : > { %vm927_vm5 = vcmp.lt.s32.totalorder %v895_v11, 50  ;;  %v956_v30 = vsel %vm924_vm2, %v1622_v32, 0.0  ;;  %v871_v31 = vadd.s32 96, %v1975_v55  ;;  %v957_v34 = vsel %vm925_vm3, %v1646_v40, 0.0 }
 0x17f   : > { %v958_v35 = vsel %vm926_vm4, %v1616_v28, 0.0  ;;  %v989_v38 = vsel %vm630_vm1, %v956_v30, 0.0  ;;  %v898_v39 = vadd.s32 %v1981_v62, %v865_v14  ;;  %vm928_vm6 = vcmp.lt.s32.totalorder %v896_v15, 50 }
 0x180   : > { %v990_v42 = vsel %vm630_vm1, %v957_v34, 0.0  ;;  %v992_v43 = vsel %vm630_vm1, %v958_v35, 0.0  ;;  %v872_v46 = vadd.s32 104, %v1975_v55  ;;  %v873_v47 = vadd.s32 112, %v1975_v55 }
 0x181   : > { %v959_v32 = vsel %vm927_vm5, %v1634_v36, 0.0  ;;  %v991_v50 = vadd.f32 %v990_v42, %v989_v38  ;;  %v874_v40 = vadd.s32 120, %v1975_v55  ;;  %v899_v28 = vadd.s32 %v1981_v62, %v866_v18 }
 0x182   : > { %vm929_vm7 = vcmp.lt.s32.totalorder %v897_v25, 50  ;;  %v994_v51 = vsel %vm630_vm1, %v959_v32, 0.0  ;;  %v2014_v54 = vadd.s32 128, %v1975_v55  ;;  %v2017_v58 = vadd.s32 136, %v1975_v55 }
 0x183   : > { %v960_v59 = vsel %vm928_vm6, %v1670_v48, 0.0  ;;  %v993_v63 = vadd.f32 %v992_v43, %v991_v50  ;;  %v2021_v2 = vadd.s32 144, %v1975_v55  ;;  %v900_v36 = vadd.s32 %v1981_v62, %v867_v19 }
 0x184   : > { %vm930_vm8 = vcmp.lt.s32.totalorder %v898_v39, 50  ;;  %v996_v3 = vsel %vm630_vm1, %v960_v59, 0.0  ;;  %v2026_v6 = vadd.s32 152, %v1975_v55  ;;  %v2029_v7 = vadd.s32 160, %v1975_v55 }
 0x185   : > { %v961_v10 = vsel %vm929_vm7, %v1694_v56, 0.0  ;;  %v995_v11 = vadd.f32 %v994_v51, %v993_v63  ;;  %v2033_v48 = vadd.s32 168, %v1975_v55  ;;  %v901_v14 = vadd.s32 %v1981_v62, %v868_v22 }
 0x186   : > { %vm931_vm9 = vcmp.lt.s32.totalorder %v899_v28, 50  ;;  %v998_v15 = vsel %vm630_vm1, %v961_v10, 0.0  ;;  %v2038_v18 = vadd.s32 176, %v1975_v55  ;;  %v2041_v19 = vadd.s32 184, %v1975_v55 }
 0x187   : > { %v962_v25 = vsel %vm930_vm8, %v1664_v44, 0.0  ;;  %v997_v38 = vadd.f32 %v996_v3, %v995_v11  ;;  %v2045_v56 = vadd.s32 192, %v1975_v55  ;;  %v902_v39 = vadd.s32 %v1981_v62, %v869_v23 }
 0x188   : > { %vm932_vm10 = vcmp.lt.s32.totalorder %v900_v36, 50  ;;  %v1000_v22 = vsel %vm630_vm1, %v962_v25, 0.0  ;;  %v2050_v42 = vadd.s32 200, %v1975_v55  ;;  %v903_v43 = vadd.s32 %v1981_v62, %v870_v27 }
 0x189   : > { %v963_v50 = vsel %vm931_vm9, %v1682_v52, 0.0  ;;  %v999_v28 = vadd.f32 %v998_v15, %v997_v38  ;;  %v2055_v51 = vadd.s32 208, %v1975_v55  ;;  %v2058_v44 = vadd.s32 216, %v1975_v55 }
 0x18a   : > { %vm933_vm11 = vcmp.lt.s32.totalorder %v901_v14, 50  ;;  %v1002_v23 = vsel %vm630_vm1, %v963_v50, 0.0  ;;  %v2062_v63 = vadd.s32 224, %v1975_v55  ;;  %v2065_v36 = vadd.s32 232, %v1975_v55 }
 0x18b   : > { %v964_v27 = vsel %vm932_vm10, %v1718_v0, 0.0  ;;  %v1001_v3 = vadd.f32 %v1000_v22, %v999_v28  ;;  %v2069_v52 = vadd.s32 240, %v1975_v55  ;;  %v904_v11 = vadd.s32 %v1981_v62, %v871_v31 }
 0x18c   : > { %vm934_vm12 = vcmp.lt.s32.totalorder %v902_v39, 50  ;;  %v1004_v15 = vsel %vm630_vm1, %v964_v27, 0.0  ;;  %v905_v14 = vadd.s32 %v1981_v62, %v872_v46  ;;  %vm935_vm13 = vcmp.lt.s32.totalorder %v903_v43, 50 }
 0x18d   : > { %v965_v38 = vsel %vm933_vm11, %v1742_v8, 0.0  ;;  %v1003_v21 = vadd.f32 %v1002_v23, %v1001_v3  ;;  %v1062_v26 = vmul.f32 %v956_v30, %v956_v30  ;;  %v1063_v17 = vmul.f32 %v957_v34, %v957_v34 }
 0x18e   : > { %v1006_v13 = vsel %vm630_vm1, %v965_v38, 0.0  ;;  %v1064_v0 = vmul.f32 %v958_v35, %v958_v35  ;;  %v2077_v22 = vadd.s32 248, %v1975_v55  ;;  %v906_v28 = vadd.s32 %v1981_v62, %v873_v47 }
 0x18f   : > { %v966_v31 = vsel %vm934_vm12, %v1712_v60, 0.0  ;;  %v1005_v39 = vadd.f32 %v1004_v15, %v1003_v21  ;;  %vm936_vm14 = vcmp.lt.s32.totalorder %v904_v11, 50  ;;  %v2082_v46 = vsel %vm935_vm13, %v1730_v4, 0.0 }
 0x190   : > { %v1008_v8 = vsel %vm630_vm1, %v966_v31, 0.0  ;;  %v1065_v43 = vmul.f32 %v959_v32, %v959_v32  ;;  %v907_v23 = vadd.s32 %v1981_v62, %v874_v40  ;;  %vm937_vm15 = vcmp.lt.s32.totalorder %v905_v14, 50 }
 0x191   : > { %v1007_v30 = vadd.f32 %v1006_v13, %v1005_v39  ;;  %v1010_v55 = vsel %vm630_vm1, %v2082_v46, 0.0  ;;  %v1066_v34 = vmul.f32 %v960_v59, %v960_v59  ;;  %v1094_v35 = vsel %vm630_vm1, %v1062_v26, 0.0 }
 0x192   : > { %v1095_v60 = vsel %vm630_vm1, %v1063_v17, 0.0  ;;  %v1097_v21 = vsel %vm630_vm1, %v1064_v0, 0.0  ;;  %v908_v4 = vadd.s32 %v1981_v62, %v2014_v54  ;;  %v968_v47 = vsel %vm936_vm14, %v1766_v16, 0.0 }
 0x193   : > { %v1009_v32 = vadd.f32 %v1008_v8, %v1007_v30  ;;  %v1096_v3 = vadd.f32 %v1095_v60, %v1094_v35  ;;  %vm938_vm2 = vcmp.lt.s32.totalorder %v906_v28, 50  ;;  %v1012_v13 = vsel %vm630_vm1, %v968_v47, 0.0 }
 0x194   : > { %v1067_v40 = vmul.f32 %v961_v10, %v961_v10  ;;  %v1099_v11 = vsel %vm630_vm1, %v1065_v43, 0.0  ;;  %v909_v26 = vadd.s32 %v1981_v62, %v2017_v58  ;;  %v969_v17 = vsel %vm937_vm15, %v1790_v24, 0.0 }
 0x195   : > { %v1011_v59 = vadd.f32 %v1010_v55, %v1009_v32  ;;  %v1098_v15 = vadd.f32 %v1097_v21, %v1096_v3  ;;  %vm939_vm3 = vcmp.lt.s32.totalorder %v907_v23, 50  ;;  %v1014_v54 = vsel %vm630_vm1, %v969_v17, 0.0 }
 0x196   : > { %v1068_v16 = vmul.f32 %v962_v25, %v962_v25  ;;  %v1101_v0 = vsel %vm630_vm1, %v1066_v34, 0.0  ;;  %v910_v28 = vadd.s32 %v1981_v62, %v2021_v2  ;;  %v970_v10 = vsel %vm938_vm2, %v1760_v12, 0.0 }
 0x197   : > { %v1013_v39 = vadd.f32 %v1012_v13, %v1011_v59  ;;  %v1100_v8 = vadd.f32 %v1099_v11, %v1098_v15  ;;  %vm940_vm4 = vcmp.lt.s32.totalorder %v908_v4, 50  ;;  %v1016_v58 = vsel %vm630_vm1, %v970_v10, 0.0 }
 0x198   : > { %v1069_v14 = vmul.f32 %v963_v50, %v963_v50  ;;  %v1103_v24 = vsel %vm630_vm1, %v1067_v40, 0.0  ;;  %v911_v43 = vadd.s32 %v1981_v62, %v2026_v6  ;;  %v971_v25 = vsel %vm939_vm3, %v1778_v20, 0.0 }
 0x199   : > { %v1015_v23 = vadd.f32 %v1014_v54, %v1013_v39  ;;  %v1102_v30 = vadd.f32 %v1101_v0, %v1100_v8  ;;  %vm941_vm5 = vcmp.lt.s32.totalorder %v909_v26, 50  ;;  %v1018_v2 = vsel %vm630_vm1, %v971_v25, 0.0 }
 0x19a   : > { %v1070_v55 = vmul.f32 %v964_v27, %v964_v27  ;;  %v1105_v12 = vsel %vm630_vm1, %v1068_v16, 0.0  ;;  %v912_v34 = vadd.s32 %v1981_v62, %v2029_v7  ;;  %v972_v50 = vsel %vm940_vm4, %v1625_v33, 0.0 }
 0x19b   : > { %v1017_v35 = vadd.f32 %v1016_v58, %v1015_v23  ;;  %v1104_v60 = vadd.f32 %v1103_v24, %v1102_v30  ;;  %vm942_vm6 = vcmp.lt.s32.totalorder %v910_v28, 50  ;;  %v1020_v6 = vsel %vm630_vm1, %v972_v50, 0.0 }
 0x19c   : > { %v1071_v21 = vmul.f32 %v965_v38, %v965_v38  ;;  %v1107_v20 = vsel %vm630_vm1, %v1069_v14, 0.0  ;;  %v913_v4 = vadd.s32 %v1981_v62, %v2033_v48  ;;  %v973_v27 = vsel %vm941_vm5, %v1649_v41, 0.0 }
 0x19d   : > { %v1019_v32 = vadd.f32 %v1018_v2, %v1017_v35  ;;  %v1106_v3 = vadd.f32 %v1105_v12, %v1104_v60  ;;  %vm943_vm7 = vcmp.lt.s32.totalorder %v911_v43, 50  ;;  %v1022_v7 = vsel %vm630_vm1, %v973_v27, 0.0 }
 0x19e   : > { %v1072_v13 = vmul.f32 %v966_v31, %v966_v31  ;;  %v1109_v33 = vsel %vm630_vm1, %v1070_v55, 0.0  ;;  %v914_v40 = vadd.s32 %v1981_v62, %v2038_v18  ;;  %v974_v38 = vsel %vm942_vm6, %v1619_v29, 0.0 }
 0x19f   : > { %v1021_v11 = vadd.f32 %v1020_v6, %v1019_v32  ;;  %v1108_v26 = vadd.f32 %v1107_v20, %v1106_v3  ;;  %vm944_vm8 = vcmp.lt.s32.totalorder %v912_v34, 50  ;;  %v1024_v48 = vsel %vm630_vm1, %v974_v38, 0.0 }
 0x1a0   : > { %v1073_v41 = vmul.f32 %v2082_v46, %v2082_v46  ;;  %v1111_v59 = vsel %vm630_vm1, %v1071_v21, 0.0  ;;  %v915_v31 = vadd.s32 %v1981_v62, %v2041_v19  ;;  %v975_v15 = vsel %vm943_vm7, %v1637_v37, 0.0 }
 0x1a1   : > { %v1023_v54 = vadd.f32 %v1022_v7, %v1021_v11  ;;  %v1110_v16 = vadd.f32 %v1109_v33, %v1108_v26  ;;  %vm945_vm9 = vcmp.lt.s32.totalorder %v913_v4, 50  ;;  %v1026_v29 = vsel %vm630_vm1, %v975_v15, 0.0 }
 0x1a2   : > { %v1074_v18 = vmul.f32 %v968_v47, %v968_v47  ;;  %v1113_v0 = vsel %vm630_vm1, %v1072_v13, 0.0  ;;  %v916_v28 = vadd.s32 %v1981_v62, %v2045_v56  ;;  %v976_v46 = vsel %vm944_vm8, %v1673_v49, 0.0 }
 0x1a3   : > { %v1025_v39 = vadd.f32 %v1024_v48, %v1023_v54  ;;  %v1112_v8 = vadd.f32 %v1111_v59, %v1110_v16  ;;  %vm946_vm10 = vcmp.lt.s32.totalorder %v914_v40, 50  ;;  %v1028_v19 = vsel %vm630_vm1, %v976_v46, 0.0  ;;  %v2224_v16 = vld [vmem:[#allocation3_spill] sm:$0xff] }
 0x1a4   : > { %v1075_v58 = vmul.f32 %v969_v17, %v969_v17  ;;  %v1115_v37 = vsel %vm630_vm1, %v1073_v41, 0.0  ;;  %v917_v14 = vadd.s32 %v1981_v62, %v2050_v42  ;;  %v977_v47 = vsel %vm945_vm9, %v1697_v57, 0.0 }
 0x1a5   : > { %v1027_v24 = vadd.f32 %v1026_v29, %v1025_v39  ;;  %v1114_v43 = vadd.f32 %v1113_v0, %v1112_v8  ;;  %vm947_vm11 = vcmp.lt.s32.totalorder %v915_v31, 50  ;;  %v1030_v56 = vsel %vm630_vm1, %v977_v47, 0.0 }
 0x1a6   : > { %v1076_v23 = vmul.f32 %v970_v10, %v970_v10  ;;  %v1117_v49 = vsel %vm630_vm1, %v1074_v18, 0.0  ;;  %v918_v30 = vadd.s32 %v1981_v62, %v2055_v51  ;;  %v978_v17 = vsel %vm946_vm10, %v1667_v45, 0.0 }
 0x1a7   : > { %v1029_v2 = vadd.f32 %v1028_v19, %v1027_v24  ;;  %v1116_v55 = vadd.f32 %v1115_v37, %v1114_v43  ;;  %vm948_vm12 = vcmp.lt.s32.totalorder %v916_v28, 50  ;;  %v1032_v42 = vsel %vm630_vm1, %v978_v17, 0.0  ;;  %v2226_v37 = vld [vmem:[#allocation2_spill] sm:$0xff] }
 0x1a8   : > { %v1077_v12 = vmul.f32 %v971_v25, %v971_v25  ;;  %v1119_v57 = vsel %vm630_vm1, %v1075_v58, 0.0  ;;  %v919_v34 = vadd.s32 %v1981_v62, %v2058_v44  ;;  %v979_v10 = vsel %vm947_vm11, %v1685_v53, 0.0 }
 0x1a9   : > { %v1031_v35 = vadd.f32 %v1030_v56, %v1029_v2  ;;  %v1118_v60 = vadd.f32 %v1117_v49, %v1116_v55  ;;  %vm949_vm13 = vcmp.lt.s32.totalorder %v917_v14, 50  ;;  %v1034_v51 = vsel %vm630_vm1, %v979_v10, 0.0  ;;  %v2227_v49 = vld [vmem:[#allocation4_spill] sm:$0xff] }
 0x1aa   : > { %v1078_v6 = vmul.f32 %v972_v50, %v972_v50  ;;  %v1121_v45 = vsel %vm630_vm1, %v1076_v23, 0.0  ;;  %v920_v21 = vadd.s32 %v1981_v62, %v2062_v63  ;;  %v980_v25 = vsel %vm948_vm12, %v1721_v1, 0.0 }
 0x1ab   : > { %v1033_v20 = vadd.f32 %v1032_v42, %v1031_v35  ;;  %v1120_v4 = vadd.f32 %v1119_v57, %v1118_v60  ;;  %vm950_vm14 = vcmp.lt.s32.totalorder %v918_v30, 50  ;;  %v1036_v44 = vsel %vm630_vm1, %v980_v25, 0.0 }
 0x1ac   : > { %v1079_v32 = vmul.f32 %v973_v27, %v973_v27  ;;  %v1123_v53 = vsel %vm630_vm1, %v1077_v12, 0.0  ;;  %v921_v3 = vadd.s32 %v1981_v62, %v2065_v36  ;;  %v981_v50 = vsel %vm949_vm13, %v1745_v9, 0.0 }
 0x1ad   : > { %v1035_v7 = vadd.f32 %v1034_v51, %v1033_v20  ;;  %v1122_v13 = vadd.f32 %v1121_v45, %v1120_v4  ;;  %vm951_vm15 = vcmp.lt.s32.totalorder %v919_v34, 50  ;;  %v1038_v63 = vsel %vm630_vm1, %v981_v50, 0.0 }
 0x1ae   : > { %v1080_v33 = vmul.f32 %v974_v38, %v974_v38  ;;  %v1125_v1 = vsel %vm630_vm1, %v1078_v6, 0.0  ;;  %v922_v40 = vadd.s32 %v1981_v62, %v2069_v52  ;;  %v982_v27 = vsel %vm950_vm14, %v1715_v61, 0.0 }
 0x1af   : > { %v1037_v11 = vadd.f32 %v1036_v44, %v1035_v7  ;;  %v1124_v26 = vadd.f32 %v1123_v53, %v1122_v13  ;;  %vm952_vm2 = vcmp.lt.s32.totalorder %v920_v21, 50  ;;  %v1040_v36 = vsel %vm630_vm1, %v982_v27, 0.0 }
 0x1b0   : > { %v1081_v48 = vmul.f32 %v975_v15, %v975_v15  ;;  %v1127_v9 = vsel %vm630_vm1, %v1079_v32, 0.0  ;;  %v923_v41 = vadd.s32 %v1981_v62, %v2077_v22  ;;  %v983_v38 = vsel %vm951_vm15, %v1733_v5, 0.0  ;;  %v2225_v22 = vld [vmem:[#allocation5_spill] sm:$0xff] }
 0x1b1   : > { %v1039_v59 = vadd.f32 %v1038_v63, %v1037_v11  ;;  %v1126_v31 = vadd.f32 %v1125_v1, %v1124_v26  ;;  %vm953_vm3 = vcmp.lt.s32.totalorder %v921_v3, 50  ;;  %v1042_v52 = vsel %vm630_vm1, %v983_v38, 0.0 }
 0x1b2   : > { %v1082_v54 = vmul.f32 %v976_v46, %v976_v46  ;;  %v1129_v61 = vsel %vm630_vm1, %v1080_v33, 0.0  ;;  %v984_v29 = vsel %vm952_vm2, %v2224_v16, 0.0  ;;  %vm954_vm4 = vcmp.lt.s32.totalorder %v922_v40, 50 }
 0x1b3   : > { %v1041_v18 = vadd.f32 %v1040_v36, %v1039_v59  ;;  %v1128_v0 = vadd.f32 %v1127_v9, %v1126_v31  ;;  %v1044_v15 = vsel %vm630_vm1, %v984_v29, 0.0  ;;  %v1083_v28 = vmul.f32 %v977_v47, %v977_v47  ;;  %v988_v36 = vld [vmem:[%s1588_s25] sm:$0x1] }
 0x1b4   : > { %v1131_v62 = vsel %vm630_vm1, %v1081_v48, 0.0  ;;  %v985_v5 = vsel %vm953_vm3, %v2225_v22, 0.0  ;;  %vm955_vm5 = vcmp.lt.s32.totalorder %v923_v41, 50  ;;  %v1084_v46 = vmul.f32 %v978_v17, %v978_v17 }
 0x1b5   : > { %v1043_v39 = vadd.f32 %v1042_v52, %v1041_v18  ;;  %v1130_v8 = vadd.f32 %v1129_v61, %v1128_v0  ;;  %v1046_v19 = vsel %vm630_vm1, %v985_v5, 0.0  ;;  %v1133_v58 = vsel %vm630_vm1, %v1082_v54, 0.0 }
 0x1b6   : > { %v986_v14 = vsel %vm954_vm4, %v2226_v37, 0.0  ;;  %v1085_v23 = vmul.f32 %v979_v10, %v979_v10  ;;  %v1135_v47 = vsel %vm630_vm1, %v1083_v28, 0.0  ;;  %v987_v30 = vsel %vm955_vm5, %v2227_v49, 0.0 }
 0x1b7   : > { %v1045_v24 = vadd.f32 %v1044_v15, %v1043_v39  ;;  %v1132_v43 = vadd.f32 %v1131_v62, %v1130_v8  ;;  %v1048_v56 = vsel %vm630_vm1, %v986_v14, 0.0  ;;  %v1050_v42 = vsel %vm630_vm1, %v987_v30, 0.0  ;;  %v1061_v62 = vld [vmem:[%s1593_s29] sm:$0x1] }
 0x1b8   : > { %v1086_v12 = vmul.f32 %v980_v25, %v980_v25  ;;  %v1137_v17 = vsel %vm630_vm1, %v1084_v46, 0.0  ;;  %v1087_v35 = vmul.f32 %v981_v50, %v981_v50  ;;  %v1139_v60 = vsel %vm630_vm1, %v1085_v23, 0.0 }
 0x1b9   : > { %v1047_v2 = vadd.f32 %v1046_v19, %v1045_v24  ;;  %v1134_v55 = vadd.f32 %v1133_v58, %v1132_v43  ;;  %v1088_v45 = vmul.f32 %v982_v27, %v982_v27  ;;  %v1089_v4 = vmul.f32 %v983_v38, %v983_v38 }
 0x1ba   : > { %v1141_v10 = vsel %vm630_vm1, %v1086_v12, 0.0  ;;  %v1143_v44 = vsel %vm630_vm1, %v1087_v35, 0.0  ;;  %v1090_v53 = vmul.f32 %v984_v29, %v984_v29  ;;  %v1091_v13 = vmul.f32 %v985_v5, %v985_v5 }
 0x1bb   : > { %v1049_v57 = vadd.f32 %v1048_v56, %v1047_v2  ;;  %v1136_v34 = vadd.f32 %v1135_v47, %v1134_v55  ;;  %v1145_v3 = vsel %vm630_vm1, %v1088_v45, 0.0  ;;  %v1147_v63 = vsel %vm630_vm1, %v1089_v4, 0.0 }
 0x1bc   : > { %v1092_v40 = vmul.f32 %v986_v14, %v986_v14  ;;  %v1149_v27 = vsel %vm630_vm1, %v1090_v53, 0.0  ;;  %v1093_v48 = vmul.f32 %v987_v30, %v987_v30  ;;  %v1151_v9 = vsel %vm630_vm1, %v1091_v13, 0.0 }
 0x1bd   : > { %v1051_v51 = vadd.f32 %v1050_v42, %v1049_v57  ;;  %v1138_v6 = vadd.f32 %v1137_v17, %v1136_v34 }
 0x1be   : > { %v1153_v59 = vsel %vm630_vm1, %v1092_v40, 0.0  ;;  %v1155_v54 = vsel %vm630_vm1, %v1093_v48, 0.0 }
 0x1bf   : > { %v1052_v21 = vrot.slane %v1051_v51, 4  ;;  %v1140_v20 = vadd.f32 %v1139_v60, %v1138_v6 }
 0x1c1   : > { %v1053_v32 = vadd.f32 %v1052_v21, %v1051_v51  ;;  %v1142_v25 = vadd.f32 %v1141_v10, %v1140_v20 }
 0x1c3   : > { %v1054_v7 = vrot.slane %v1053_v32, 2  ;;  %v1144_v50 = vadd.f32 %v1143_v44, %v1142_v25 }
 0x1c5   : > { %v1055_v33 = vadd.f32 %v1054_v7, %v1053_v32  ;;  %v1146_v1 = vadd.f32 %v1145_v3, %v1144_v50 }
 0x1c7   : > { %v1056_v11 = vrot.slane %v1055_v33, 1  ;;  %v1148_v26 = vadd.f32 %v1147_v63, %v1146_v1 }
 0x1c9   : > { %v1057_v41 = vadd.f32 %v1056_v11, %v1055_v33  ;;  %v1150_v38 = vadd.f32 %v1149_v27, %v1148_v26 }
 0x1cb   : > { %v1058_v31 = vadd.f32 %v1057_v41, %v988_v36  ;;  %v1152_v52 = vadd.f32 %v1151_v9, %v1150_v38 }
 0x1cd   : > { %1060 = vst.msk [vmem:[%s1588_s25] sm:$0x1] %vm667_vm0, %v1058_v31  ;;  %v1154_v61 = vadd.f32 %v1153_v59, %v1152_v52 }
 0x1cf   : > { %v1156_v16 = vadd.f32 %v1155_v54, %v1154_v61 }
 0x1d1   : > { %v1157_v29 = vrot.slane %v1156_v16, 4 }
 0x1d3   : > { %v1158_v18 = vadd.f32 %v1157_v29, %v1156_v16 }
 0x1d5   : > { %v1159_v0 = vrot.slane %v1158_v18, 2 }
 0x1d7   : > { %v1160_v15 = vadd.f32 %v1159_v0, %v1158_v18 }
 0x1d9   : > { %v1161_v28 = vrot.slane %v1160_v15, 1 }
 0x1db   : > { %v1162_v22 = vadd.f32 %v1161_v28, %v1160_v15 }
 0x1dd   : > { %v1163_v5 = vadd.f32 %v1162_v22, %v1061_v62 }
 0x1df   : > { %1164 = vst.msk [vmem:[%s1593_s29] sm:$0x1] %vm667_vm0, %v1163_v5 }
 0x1e0 PF: > { %s16_s20 = sadd.s32 1, %s1481_s20   ;;  %s2228_s18 = smov %s1477_s19 }
 0x1e1   : > { %p13_p8 = scmp.ge.s32.totalorder %s16_s20, 4   ;;  %s2229_s19 = smov %s2231_s21 }
 0x1e3   :  { %15 = sbr.rel (!%p13_p8) target bundleno = 2 (0x2), region = 98 }

// kernel: apply.7
= control target key start
LH: loop header
LB: loop body
LE: loop exit
PB: predicated region body
PF: predicated region fallthrough
CT: control target
= control target key end

     0   :  { %s1751_s18 = smov 0   ;;  %s1753_s19 = smov 0   ;;  %s2490_s0 = inlined_call_operand.vmem [shape: bf16[512,256], index: 0, kind: input, shape index: {}]   ;;  %s2491_s1 = inlined_call_operand.vmem [shape: bf16[256,32], index: 1, kind: input, shape index: {}]   ;;  %s2492_s2 = inlined_call_operand.vmem [shape: f32[1,32], index: 2, kind: input, shape index: {}]   ;;  %s2493_s3 = inlined_call_operand.vmem [shape: f32[512,32], index: 3, kind: output, shape index: {0}]   ;;  %s2494_s4 = inlined_call_operand.vmem [shape: f32[2,1,32], index: 4, kind: output, shape index: {1}]   ;;  %s2495_s5 = inlined_call_operand.vmem [shape: f32[2,1,32], index: 5, kind: output, shape index: {2}]  }
   0x1   :  { %s1755_s20 = smov 0  }
   0x2 LB: > { %s28_s21 = sadd.s32 1, %s1714_s19  ;;  %p1418_p0 = scmp.ge.s32.totalorder %s1718_s20, 1  ;;  %s1718_s20 = sphi %s1755_s20, %s16_s20   ;;  %s1714_s19 = sphi %s1753_s19, %s2509_s19   ;;  %s1710_s18 = sphi %s1751_s18, %s2508_s18  }
   0x3   : > { %p30_p1 = scmp.ge.s32.totalorder %s28_s21, 2  ;;  %p212_p2 = scmp.lt.s32.totalorder %s1718_s20, 3 }
   0x5   : > { %s2511_s21 = smov (%p30_p1, %s28_s21), 0  ;;  %p213_p3 = pnand %p1418_p0, %p212_p2 }
   0x7   : > { %216 = sbr.rel (%p213_p3) target bundleno = 513 (0x201), region = 32 }
   0xe   : > { %v1632_v0 = vld [vmem:[%s2491_s1 + $0x40] sm:$0xff]   ;;  %s1419_s26 = sshll.u32 %s1710_s18, 5  ;;  %v1634_v2 = vld [vmem:[%s2491_s1 + $0x48] sm:$0xff]   ;;  %v1636_v4 = vld [vmem:[%s2491_s1 + $0x50] sm:$0xff]   ;;  %p266_p5 = scmp.lt.s32.totalorder %s1710_s18, 1  ;;  %vm798_vm0 = vcmask 253952  }
   0xf   : > { %v1633_v1 = vld [vmem:[%s2491_s1] sm:$0xff]   ;;  %1479 = vmatprep.subr.bf16.mxu0 %v1632_v0  ;;  %1591 = vmatprep.subr.bf16.mxu1 %v1632_v0  ;;  %v1635_v3 = vld [vmem:[%s2491_s1 + $0x8] sm:$0xff]   ;;  %p251_p4 = scmp.lt.s32.totalorder %s1419_s26, 63  ;;  %v1637_v5 = vld [vmem:[%s2491_s1 + $0x10] sm:$0xff]   ;;  %s1473_s28 = sshll.u32 %s1710_s18, 8  ;;  %v1720_v48 = vmov 0.0  }
  0x10   : > { %1480 = vmatpush3.bf16.msra.mxu0 %v1633_v1  ;;  %1599 = vmatpush3.bf16.msra.mxu1 %v1633_v1  ;;  %v1638_v6 = vld [vmem:[%s2491_s1 + $0x58] sm:$0xff]   ;;  %v1640_v8 = vld [vmem:[%s2491_s1 + $0x60] sm:$0xff]   ;;  %v1642_v10 = vld [vmem:[%s2491_s1 + $0x68] sm:$0xff]   ;;  %s267_s15 = scalar_select %p266_p5, %s1710_s18, 1  ;;  %vm761_vm1 = vcmask 261120  }
  0x11   : > { %1481 = vmatprep.subr.bf16.mxu0 %v1634_v2  ;;  %1592 = vmatprep.subr.bf16.mxu1 %v1634_v2  ;;  %s2513_s26 = smov (!%p251_p4, %s1419_s26), 63  ;;  %v1639_v7 = vld [vmem:[%s2491_s1 + $0x18] sm:$0xff]   ;;  %v1641_v9 = vld [vmem:[%s2491_s1 + $0x20] sm:$0xff]   ;;  %v1643_v13 = vld [vmem:[%s2491_s1 + $0x28] sm:$0xff]  }
  0x12   : > { %s1478_s14 = sshll.u32 %s2513_s26, 3  ;;  %v1644_v14 = vld [vmem:[%s2491_s1 + $0x70] sm:$0xff]   ;;  %v1646_v16 = vld [vmem:[%s2491_s1 + $0x78] sm:$0xff]   ;;  %s1867_s22 = scalar_lea.vmem %s2494_s4, %s267_s15  ;;  %v1886_v51 = vld [vmem:[%s2492_s2] ss:$0 sm:$0xff] }
  0x13   : > { %s1807_s23 = scalar_lea.vmem %s2490_s0, %s1478_s14  ;;  %v1645_v15 = vld [vmem:[%s2491_s1 + $0x30] sm:$0xff]   ;;  %v1647_v17 = vld [vmem:[%s2491_s1 + $0x38] sm:$0xff]   ;;  %s1872_s27 = scalar_lea.vmem %s2495_s5, %s267_s15  ;;  %799 = vst.msk [vmem:[%s1867_s22] sm:$0x1] %vm798_vm0, %v1720_v48 }
  0x14   : > { %1482 = vmatpush3.bf16.msra.mxu0 %v1635_v3  ;;  %1600 = vmatpush3.bf16.msra.mxu1 %v1635_v3  ;;  %v1650_v11 = vld [vmem:[%s1807_s23 + $0x4] ss:$8 sps:$4 sm:$0xff]   ;;  %v1648_v18 = vld [vmem:[%s1807_s23] ss:$8 sps:$4 sm:$0xff]   ;;  %v1654_v20 = vld [vmem:[%s1807_s23 + $0x14] ss:$8 sps:$4 sm:$0xff]   ;;  %s1893_s8 = scalar_lea.vmem %s2493_s3, %s1478_s14 }
  0x15   : > { %1483 = vmatprep.subr.bf16.mxu0 %v1636_v4  ;;  %1593 = vmatprep.subr.bf16.mxu1 %v1636_v4  ;;  %v1653_v12 = vld [vmem:[%s1807_s23 + $0x84] ss:$8 sps:$4 sm:$0xff]   ;;  %v1651_v19 = vld [vmem:[%s1807_s23 + $0x80] ss:$8 sps:$4 sm:$0xff]   ;;  %v1656_v21 = vld [vmem:[%s1807_s23 + $0x94] ss:$8 sps:$4 sm:$0xff]  }
  0x16   : > { %632 = vmatprep.mubr.bf16.mxu0 %v1650_v11  ;;  %696 = vmatprep.mubr.bf16.mxu1 %v1653_v12  ;;  %v1658_v22 = vld [vmem:[%s1807_s23 + $0x10] ss:$8 sps:$4 sm:$0xff]   ;;  %v1660_v24 = vld [vmem:[%s1807_s23 + $0x24] ss:$8 sps:$4 sm:$0xff]   ;;  %v1664_v26 = vld [vmem:[%s1807_s23 + $0x20] ss:$8 sps:$4 sm:$0xff]  }
  0x17   : > { %v1659_v23 = vld [vmem:[%s1807_s23 + $0x90] ss:$8 sps:$4 sm:$0xff]   ;;  %v1662_v25 = vld [vmem:[%s1807_s23 + $0xa4] ss:$8 sps:$4 sm:$0xff]   ;;  %v1665_v27 = vld [vmem:[%s1807_s23 + $0xa0] ss:$8 sps:$4 sm:$0xff]  }
  0x18   : > { %1484 = vmatpush3.bf16.msra.mxu0 %v1637_v5  ;;  %1601 = vmatpush3.bf16.msra.mxu1 %v1637_v5  ;;  %v1666_v28 = vld [vmem:[%s1807_s23 + $0x34] ss:$8 sps:$4 sm:$0xff]   ;;  %v1670_v30 = vld [vmem:[%s1807_s23 + $0x30] ss:$8 sps:$4 sm:$0xff]   ;;  %v1672_v32 = vld [vmem:[%s1807_s23 + $0x44] ss:$8 sps:$4 sm:$0xff]  }
  0x19   : > { %1485 = vmatprep.subr.bf16.mxu0 %v1638_v6  ;;  %1594 = vmatprep.subr.bf16.mxu1 %v1638_v6  ;;  %v1668_v29 = vld [vmem:[%s1807_s23 + $0xb4] ss:$8 sps:$4 sm:$0xff]   ;;  %v1671_v31 = vld [vmem:[%s1807_s23 + $0xb0] ss:$8 sps:$4 sm:$0xff]   ;;  %v1674_v33 = vld [vmem:[%s1807_s23 + $0xc4] ss:$8 sps:$4 sm:$0xff]  }
  0x1a   : > { %v1676_v34 = vld [vmem:[%s1807_s23 + $0x40] ss:$8 sps:$4 sm:$0xff]   ;;  %v1678_v36 = vld [vmem:[%s1807_s23 + $0x54] ss:$8 sps:$4 sm:$0xff]   ;;  %v1682_v38 = vld [vmem:[%s1807_s23 + $0x50] ss:$8 sps:$4 sm:$0xff]  }
  0x1b   : > { %v1677_v35 = vld [vmem:[%s1807_s23 + $0xc0] ss:$8 sps:$4 sm:$0xff]   ;;  %v1680_v37 = vld [vmem:[%s1807_s23 + $0xd4] ss:$8 sps:$4 sm:$0xff]   ;;  %v1683_v39 = vld [vmem:[%s1807_s23 + $0xd0] ss:$8 sps:$4 sm:$0xff]  }
  0x1c   : > { %1486 = vmatpush3.bf16.msra.mxu0 %v1639_v7  ;;  %1602 = vmatpush3.bf16.msra.mxu1 %v1639_v7  ;;  %v1684_v40 = vld [vmem:[%s1807_s23 + $0x64] ss:$8 sps:$4 sm:$0xff]   ;;  %v1688_v42 = vld [vmem:[%s1807_s23 + $0x60] ss:$8 sps:$4 sm:$0xff]   ;;  %v1690_v44 = vld [vmem:[%s1807_s23 + $0x74] ss:$8 sps:$4 sm:$0xff]  }
  0x1d   : > { %1487 = vmatprep.subr.bf16.mxu0 %v1640_v8  ;;  %1595 = vmatprep.subr.bf16.mxu1 %v1640_v8  ;;  %v1686_v41 = vld [vmem:[%s1807_s23 + $0xe4] ss:$8 sps:$4 sm:$0xff]   ;;  %v1689_v43 = vld [vmem:[%s1807_s23 + $0xe0] ss:$8 sps:$4 sm:$0xff]   ;;  %v1692_v45 = vld [vmem:[%s1807_s23 + $0xf4] ss:$8 sps:$4 sm:$0xff]  }
  0x1e   : > { %v1694_v46 = vld [vmem:[%s1807_s23 + $0x70] ss:$8 sps:$4 sm:$0xff]   ;;  %800 = vst.msk [vmem:[%s1872_s27] sm:$0x1] %vm798_vm0, %v1720_v48 }
  0x1f   : > { %v1695_v47 = vld [vmem:[%s1807_s23 + $0xf0] ss:$8 sps:$4 sm:$0xff]   ;;  %s1881_s23 = sadd.s32 256, %s1473_s28 }
  0x20   : > { %1488 = vmatpush3.bf16.msra.mxu0 %v1641_v9  ;;  %1603 = vmatpush3.bf16.msra.mxu1 %v1641_v9  ;;  %p1474_p6 = scmp.gt.s32.totalorder %s1881_s23, 18 }
  0x21   : > { %1489 = vmatprep.subr.bf16.mxu0 %v1642_v10  ;;  %1596 = vmatprep.subr.bf16.mxu1 %v1642_v10 }
  0x24   : > { %1490 = vmatpush3.bf16.msra.mxu0 %v1643_v13  ;;  %1604 = vmatpush3.bf16.msra.mxu1 %v1643_v13 }
  0x25   : > { %1491 = vmatprep.subr.bf16.mxu0 %v1644_v14  ;;  %1597 = vmatprep.subr.bf16.mxu1 %v1644_v14 }
  0x28   : > { %1492 = vmatpush3.bf16.msra.mxu0 %v1645_v15  ;;  %1605 = vmatpush3.bf16.msra.mxu1 %v1645_v15 }
  0x29   : > { %1493 = vmatprep.subr.bf16.mxu0 %v1646_v16  ;;  %1598 = vmatprep.subr.bf16.mxu1 %v1646_v16 }
  0x2c   : > { %1494 = vmatpush3.bf16.msra.mxu0 %v1647_v17  ;;  %1606 = vmatpush3.bf16.msra.mxu1 %v1647_v17 }
  0x2f   : > { %633 = vmatmul.mubr.bf16.vlgmr.msra.gmra.mrb[0].mxu0 %v1648_v18  ;;  %697 = vmatmul.mubr.bf16.vlgmr.msra.gmra.mrb[0].mxu1 %v1651_v19 }
  0x30   : > { %640 = vmatprep.mubr.bf16.mxu0 %v1654_v20  ;;  %704 = vmatprep.mubr.bf16.mxu1 %v1656_v21 }
  0x37   : > { %641 = vmatmul.mubr.bf16.gmra.mrb[4].mxu0 %v1658_v22  ;;  %705 = vmatmul.mubr.bf16.gmra.mrb[4].mxu1 %v1659_v23 }
  0x38   : > { %648 = vmatprep.mubr.bf16.mxu0 %v1660_v24  ;;  %712 = vmatprep.mubr.bf16.mxu1 %v1662_v25 }
  0x3f   : > { %649 = vmatmul.mubr.bf16.gmra.mrb[8].mxu0 %v1664_v26  ;;  %713 = vmatmul.mubr.bf16.gmra.mrb[8].mxu1 %v1665_v27 }
  0x40   : > { %656 = vmatprep.mubr.bf16.mxu0 %v1666_v28  ;;  %720 = vmatprep.mubr.bf16.mxu1 %v1668_v29 }
  0x47   : > { %657 = vmatmul.mubr.bf16.gmra.mrb[12].mxu0 %v1670_v30  ;;  %721 = vmatmul.mubr.bf16.gmra.mrb[12].mxu1 %v1671_v31 }
  0x48   : > { %664 = vmatprep.mubr.bf16.mxu0 %v1672_v32  ;;  %728 = vmatprep.mubr.bf16.mxu1 %v1674_v33 }
  0x4f   : > { %665 = vmatmul.mubr.bf16.gmra.mrb[16].mxu0 %v1676_v34  ;;  %729 = vmatmul.mubr.bf16.gmra.mrb[16].mxu1 %v1677_v35 }
  0x50   : > { %672 = vmatprep.mubr.bf16.mxu0 %v1678_v36  ;;  %736 = vmatprep.mubr.bf16.mxu1 %v1680_v37 }
  0x57   : > { %673 = vmatmul.mubr.bf16.gmra.mrb[20].mxu0 %v1682_v38  ;;  %737 = vmatmul.mubr.bf16.gmra.mrb[20].mxu1 %v1683_v39 }
  0x58   : > { %680 = vmatprep.mubr.bf16.mxu0 %v1684_v40  ;;  %744 = vmatprep.mubr.bf16.mxu1 %v1686_v41 }
  0x5f   : > { %681 = vmatmul.mubr.bf16.gmra.mrb[24].mxu0 %v1688_v42  ;;  %745 = vmatmul.mubr.bf16.gmra.mrb[24].mxu1 %v1689_v43 }
  0x60   : > { %688 = vmatprep.mubr.bf16.mxu0 %v1690_v44  ;;  %752 = vmatprep.mubr.bf16.mxu1 %v1692_v45 }
  0x67   : > { %689 = vmatmul.mubr.bf16.gmra.mrb[28].mxu0 %v1694_v46  ;;  %753 = vmatmul.mubr.bf16.gmra.mrb[28].mxu1 %v1695_v47 }
 0x102   : > { %v1495_v49 = vpop.f32.mrb[0].mxu0  ;;  %v1543_v50 = vpop.f32.mrb[0].mxu1 }
 0x103   : > { %v1496_v52 = vpop.f32.mrb[1].mxu0  ;;  %v1544_v53 = vpop.f32.mrb[1].mxu1 }
 0x104   : > { %v1497_v54 = vadd.f32 %v1496_v52, %v1495_v49  ;;  %v1545_v55 = vadd.f32 %v1544_v53, %v1543_v50  ;;  %v1498_v56 = vpop.f32.mrb[2].mxu0  ;;  %v1546_v57 = vpop.f32.mrb[2].mxu1 }
 0x105   : > { %v1499_v58 = vpop.f32.mrb[3].mxu0  ;;  %v1547_v59 = vpop.f32.mrb[3].mxu1 }
 0x106   : > { %v1896_v60 = vadd.f32 %v1497_v54, %v1886_v51  ;;  %v1899_v61 = vadd.f32 %v1545_v55, %v1886_v51  ;;  %v1500_v62 = vadd.f32 %v1499_v58, %v1498_v56  ;;  %v1548_v63 = vadd.f32 %v1547_v59, %v1546_v57 }
 0x108   : > { %762 = vst.msk [vmem:[%s1893_s8] sm:$0xff] %vm761_vm1, %v1896_v60  ;;  %778 = vst.msk [vmem:[%s1893_s8 + $0x80] sm:$0xff] %vm761_vm1, %v1899_v61  ;;  %v1908_v0 = vadd.f32 %v1500_v62, %v1886_v51  ;;  %v1911_v1 = vadd.f32 %v1548_v63, %v1886_v51 }
 0x10a   : > { %763 = vst.msk [vmem:[%s1893_s8 + $0x8] sm:$0xff] %vm761_vm1, %v1908_v0  ;;  %779 = vst.msk [vmem:[%s1893_s8 + $0x88] sm:$0xff] %vm761_vm1, %v1911_v1  ;;  %v1501_v2 = vpop.f32.mrb[4].mxu0  ;;  %v1549_v3 = vpop.f32.mrb[4].mxu1 }
 0x10b   : > { %v1502_v4 = vpop.f32.mrb[5].mxu0  ;;  %v1550_v5 = vpop.f32.mrb[5].mxu1 }
 0x10c   : > { %v1503_v6 = vadd.f32 %v1502_v4, %v1501_v2  ;;  %v1551_v7 = vadd.f32 %v1550_v5, %v1549_v3  ;;  %v1504_v8 = vpop.f32.mrb[6].mxu0  ;;  %v1552_v9 = vpop.f32.mrb[6].mxu1 }
 0x10d   : > { %v1505_v10 = vpop.f32.mrb[7].mxu0  ;;  %v1553_v11 = vpop.f32.mrb[7].mxu1 }
 0x10e   : > { %v1920_v12 = vadd.f32 %v1503_v6, %v1886_v51  ;;  %v1923_v13 = vadd.f32 %v1551_v7, %v1886_v51  ;;  %v1506_v14 = vadd.f32 %v1505_v10, %v1504_v8  ;;  %v1554_v15 = vadd.f32 %v1553_v11, %v1552_v9 }
 0x110   : > { %764 = vst.msk [vmem:[%s1893_s8 + $0x10] sm:$0xff] %vm761_vm1, %v1920_v12  ;;  %780 = vst.msk [vmem:[%s1893_s8 + $0x90] sm:$0xff] %vm761_vm1, %v1923_v13  ;;  %v1932_v16 = vadd.f32 %v1506_v14, %v1886_v51  ;;  %v1935_v17 = vadd.f32 %v1554_v15, %v1886_v51 }
 0x112   : > { %765 = vst.msk [vmem:[%s1893_s8 + $0x18] sm:$0xff] %vm761_vm1, %v1932_v16  ;;  %781 = vst.msk [vmem:[%s1893_s8 + $0x98] sm:$0xff] %vm761_vm1, %v1935_v17  ;;  %v1507_v18 = vpop.f32.mrb[8].mxu0  ;;  %v1555_v19 = vpop.f32.mrb[8].mxu1 }
 0x113   : > { %v1508_v20 = vpop.f32.mrb[9].mxu0  ;;  %v1556_v21 = vpop.f32.mrb[9].mxu1 }
 0x114   : > { %v1509_v22 = vadd.f32 %v1508_v20, %v1507_v18  ;;  %v1557_v23 = vadd.f32 %v1556_v21, %v1555_v19  ;;  %v1510_v24 = vpop.f32.mrb[10].mxu0  ;;  %v1558_v25 = vpop.f32.mrb[10].mxu1 }
 0x115   : > { %v1511_v26 = vpop.f32.mrb[11].mxu0  ;;  %v1559_v27 = vpop.f32.mrb[11].mxu1 }
 0x116   : > { %v1944_v28 = vadd.f32 %v1509_v22, %v1886_v51  ;;  %v1947_v29 = vadd.f32 %v1557_v23, %v1886_v51  ;;  %v1512_v30 = vadd.f32 %v1511_v26, %v1510_v24  ;;  %v1560_v31 = vadd.f32 %v1559_v27, %v1558_v25 }
 0x118   : > { %766 = vst.msk [vmem:[%s1893_s8 + $0x20] sm:$0xff] %vm761_vm1, %v1944_v28  ;;  %782 = vst.msk [vmem:[%s1893_s8 + $0xa0] sm:$0xff] %vm761_vm1, %v1947_v29  ;;  %v1956_v32 = vadd.f32 %v1512_v30, %v1886_v51  ;;  %v1959_v33 = vadd.f32 %v1560_v31, %v1886_v51 }
 0x11a   : > { %767 = vst.msk [vmem:[%s1893_s8 + $0x28] sm:$0xff] %vm761_vm1, %v1956_v32  ;;  %783 = vst.msk [vmem:[%s1893_s8 + $0xa8] sm:$0xff] %vm761_vm1, %v1959_v33  ;;  %v1513_v34 = vpop.f32.mrb[12].mxu0  ;;  %v1561_v35 = vpop.f32.mrb[12].mxu1 }
 0x11b   : > { %v1514_v36 = vpop.f32.mrb[13].mxu0  ;;  %v1562_v37 = vpop.f32.mrb[13].mxu1 }
 0x11c   : > { %v1515_v38 = vadd.f32 %v1514_v36, %v1513_v34  ;;  %v1563_v39 = vadd.f32 %v1562_v37, %v1561_v35  ;;  %v1516_v40 = vpop.f32.mrb[14].mxu0  ;;  %v1564_v41 = vpop.f32.mrb[14].mxu1 }
 0x11d   : > { %v1517_v42 = vpop.f32.mrb[15].mxu0  ;;  %v1565_v43 = vpop.f32.mrb[15].mxu1 }
 0x11e   : > { %v1968_v44 = vadd.f32 %v1515_v38, %v1886_v51  ;;  %v1971_v45 = vadd.f32 %v1563_v39, %v1886_v51  ;;  %v1518_v46 = vadd.f32 %v1517_v42, %v1516_v40  ;;  %v1566_v47 = vadd.f32 %v1565_v43, %v1564_v41 }
 0x120   : > { %768 = vst.msk [vmem:[%s1893_s8 + $0x30] sm:$0xff] %vm761_vm1, %v1968_v44  ;;  %784 = vst.msk [vmem:[%s1893_s8 + $0xb0] sm:$0xff] %vm761_vm1, %v1971_v45  ;;  %v1980_v48 = vadd.f32 %v1518_v46, %v1886_v51  ;;  %v1983_v49 = vadd.f32 %v1566_v47, %v1886_v51 }
 0x122   : > { %769 = vst.msk [vmem:[%s1893_s8 + $0x38] sm:$0xff] %vm761_vm1, %v1980_v48  ;;  %785 = vst.msk [vmem:[%s1893_s8 + $0xb8] sm:$0xff] %vm761_vm1, %v1983_v49  ;;  %v1519_v50 = vpop.f32.mrb[16].mxu0  ;;  %v1567_v52 = vpop.f32.mrb[16].mxu1 }
 0x123   : > { %v1520_v53 = vpop.f32.mrb[17].mxu0  ;;  %v1568_v54 = vpop.f32.mrb[17].mxu1 }
 0x124   : > { %v1521_v55 = vadd.f32 %v1520_v53, %v1519_v50  ;;  %v1569_v56 = vadd.f32 %v1568_v54, %v1567_v52  ;;  %v1522_v57 = vpop.f32.mrb[18].mxu0  ;;  %v1570_v58 = vpop.f32.mrb[18].mxu1 }
 0x125   : > { %v1523_v59 = vpop.f32.mrb[19].mxu0  ;;  %v1571_v62 = vpop.f32.mrb[19].mxu1 }
 0x126   : > { %v1992_v63 = vadd.f32 %v1521_v55, %v1886_v51  ;;  %v1995_v2 = vadd.f32 %v1569_v56, %v1886_v51  ;;  %v1524_v3 = vadd.f32 %v1523_v59, %v1522_v57  ;;  %v1572_v4 = vadd.f32 %v1571_v62, %v1570_v58 }
 0x128   : > { %770 = vst.msk [vmem:[%s1893_s8 + $0x40] sm:$0xff] %vm761_vm1, %v1992_v63  ;;  %786 = vst.msk [vmem:[%s1893_s8 + $0xc0] sm:$0xff] %vm761_vm1, %v1995_v2  ;;  %v2004_v5 = vadd.f32 %v1524_v3, %v1886_v51  ;;  %v2007_v6 = vadd.f32 %v1572_v4, %v1886_v51 }
 0x12a   : > { %771 = vst.msk [vmem:[%s1893_s8 + $0x48] sm:$0xff] %vm761_vm1, %v2004_v5  ;;  %787 = vst.msk [vmem:[%s1893_s8 + $0xc8] sm:$0xff] %vm761_vm1, %v2007_v6  ;;  %v1525_v7 = vpop.f32.mrb[20].mxu0  ;;  %v1573_v8 = vpop.f32.mrb[20].mxu1 }
 0x12b   : > { %v1526_v9 = vpop.f32.mrb[21].mxu0  ;;  %v1574_v10 = vpop.f32.mrb[21].mxu1 }
 0x12c   : > { %v1527_v11 = vadd.f32 %v1526_v9, %v1525_v7  ;;  %v1575_v14 = vadd.f32 %v1574_v10, %v1573_v8  ;;  %v1528_v15 = vpop.f32.mrb[22].mxu0  ;;  %v1576_v18 = vpop.f32.mrb[22].mxu1 }
 0x12d   : > { %v1529_v19 = vpop.f32.mrb[23].mxu0  ;;  %v1577_v20 = vpop.f32.mrb[23].mxu1 }
 0x12e   : > { %v2016_v21 = vadd.f32 %v1527_v11, %v1886_v51  ;;  %v2019_v22 = vadd.f32 %v1575_v14, %v1886_v51  ;;  %v1530_v23 = vadd.f32 %v1529_v19, %v1528_v15  ;;  %v1578_v24 = vadd.f32 %v1577_v20, %v1576_v18 }
 0x12f   : > { %v809_v14 = vsel (!%p1474_p6), %vm761_vm1, %v1896_v60, 0.0  ;;  %v810_v15 = vsel (!%p1474_p6), %vm761_vm1, %v1908_v0, 0.0  ;;  %v812_v18 = vsel (!%p1474_p6), %vm761_vm1, %v1920_v12, 0.0  ;;  %v814_v19 = vsel (!%p1474_p6), %vm761_vm1, %v1932_v16, 0.0 }
 0x130   : > { %772 = vst.msk [vmem:[%s1893_s8 + $0x50] sm:$0xff] %vm761_vm1, %v2016_v21  ;;  %788 = vst.msk [vmem:[%s1893_s8 + $0xd0] sm:$0xff] %vm761_vm1, %v2019_v22  ;;  %v2028_v25 = vadd.f32 %v1530_v23, %v1886_v51  ;;  %v2031_v26 = vadd.f32 %v1578_v24, %v1886_v51  ;;  %v816_v23 = vsel (!%p1474_p6), %vm761_vm1, %v1944_v28, 0.0 }
 0x132   : > { %773 = vst.msk [vmem:[%s1893_s8 + $0x58] sm:$0xff] %vm761_vm1, %v2028_v25  ;;  %789 = vst.msk [vmem:[%s1893_s8 + $0xd8] sm:$0xff] %vm761_vm1, %v2031_v26  ;;  %v1531_v27 = vpop.f32.mrb[24].mxu0  ;;  %v1579_v30 = vpop.f32.mrb[24].mxu1 }
 0x133   : > { %v1532_v31 = vpop.f32.mrb[25].mxu0  ;;  %v1580_v34 = vpop.f32.mrb[25].mxu1 }
 0x134   : > { %v1533_v35 = vadd.f32 %v1532_v31, %v1531_v27  ;;  %v1581_v36 = vadd.f32 %v1580_v34, %v1579_v30  ;;  %v1534_v37 = vpop.f32.mrb[26].mxu0  ;;  %v1582_v38 = vpop.f32.mrb[26].mxu1  ;;  %v818_v27 = vsel (!%p1474_p6), %vm761_vm1, %v1956_v32, 0.0  ;;  %v820_v31 = vsel (!%p1474_p6), %vm761_vm1, %v1968_v44, 0.0 }
 0x135   : > { %v1535_v39 = vpop.f32.mrb[27].mxu0  ;;  %v1583_v40 = vpop.f32.mrb[27].mxu1 }
 0x136   : > { %v2040_v41 = vadd.f32 %v1533_v35, %v1886_v51  ;;  %v2043_v42 = vadd.f32 %v1581_v36, %v1886_v51  ;;  %v1536_v43 = vadd.f32 %v1535_v39, %v1534_v37  ;;  %v1584_v46 = vadd.f32 %v1583_v40, %v1582_v38 }
 0x137   : > { %v822_v35 = vsel (!%p1474_p6), %vm761_vm1, %v1980_v48, 0.0  ;;  %v824_v37 = vsel (!%p1474_p6), %vm761_vm1, %v1992_v63, 0.0  ;;  %v826_v39 = vsel (!%p1474_p6), %vm761_vm1, %v2004_v5, 0.0  ;;  %v882_v40 = vmul.f32 (!%p1474_p6), %v1896_v60, %v1896_v60 }
 0x138   : > { %2500 = vst [vmem:[#allocation2_spill] sm:$0xff] %v2043_v42  ;;  %774 = vst.msk [vmem:[%s1893_s8 + $0x60] sm:$0xff] %vm761_vm1, %v2040_v41  ;;  %v2052_v47 = vadd.f32 %v1536_v43, %v1886_v51  ;;  %v2055_v50 = vadd.f32 %v1584_v46, %v1886_v51  ;;  %v883_v43 = vmul.f32 (!%p1474_p6), %v1908_v0, %v1908_v0 }
 0x139   : > { %790 = vst.msk [vmem:[%s1893_s8 + $0xe0] sm:$0xff] %vm761_vm1, %v2043_v42  ;;  %v884_v46 = vmul.f32 (!%p1474_p6), %v1920_v12, %v1920_v12 }
 0x13a   : > { %2501 = vst [vmem:[#allocation3_spill] sm:$0xff] %v2055_v50  ;;  %775 = vst.msk [vmem:[%s1893_s8 + $0x68] sm:$0xff] %vm761_vm1, %v2052_v47  ;;  %v1537_v52 = vpop.f32.mrb[28].mxu0  ;;  %v1585_v53 = vpop.f32.mrb[28].mxu1 }
 0x13b   : > { %791 = vst.msk [vmem:[%s1893_s8 + $0xe8] sm:$0xff] %vm761_vm1, %v2055_v50  ;;  %v1538_v54 = vpop.f32.mrb[29].mxu0  ;;  %v1586_v55 = vpop.f32.mrb[29].mxu1 }
 0x13c   : > { %v1539_v56 = vadd.f32 %v1538_v54, %v1537_v52  ;;  %v1587_v57 = vadd.f32 %v1586_v55, %v1585_v53  ;;  %v1540_v58 = vpop.f32.mrb[30].mxu0  ;;  %v1588_v59 = vpop.f32.mrb[30].mxu1  ;;  %v828_v53 = vsel (!%p1474_p6), %vm761_vm1, %v2016_v21, 0.0  ;;  %v885_v54 = vmul.f32 (!%p1474_p6), %v1932_v16, %v1932_v16 }
 0x13d   : > { %v1541_v62 = vpop.f32.mrb[31].mxu0  ;;  %v1589_v3 = vpop.f32.mrb[31].mxu1  ;;  %807 = sbr.rel (%p1474_p6) target bundleno = 405 (0x195), region = 40 }
 0x13e   : > { %v2064_v4 = vadd.f32 %v1539_v56, %v1886_v51  ;;  %v2067_v7 = vadd.f32 %v1587_v57, %v1886_v51  ;;  %v1542_v8 = vadd.f32 %v1541_v62, %v1540_v58  ;;  %v1590_v9 = vadd.f32 %v1589_v3, %v1588_v59 }
 0x13f   : > { %v830_v56 = vsel (!%p1474_p6), %vm761_vm1, %v2028_v25, 0.0  ;;  %v886_v57 = vmul.f32 (!%p1474_p6), %v1944_v28, %v1944_v28  ;;  %v914_v58 = vsel (!%p1474_p6), %vm761_vm1, %v882_v40, 0.0  ;;  %v915_v59 = vsel (!%p1474_p6), %vm761_vm1, %v883_v43, 0.0 }
 0x140   : > { %2502 = vst [vmem:[#allocation4_spill] sm:$0xff] %v2067_v7  ;;  %776 = vst.msk [vmem:[%s1893_s8 + $0x70] sm:$0xff] %vm761_vm1, %v2064_v4  ;;  %v2076_v10 = vadd.f32 %v1542_v8, %v1886_v51  ;;  %v2079_v11 = vadd.f32 %v1590_v9, %v1886_v51  ;;  %v811_v51 = vadd.f32 (!%p1474_p6), %v810_v15, %v809_v14  ;;  %v917_v62 = vsel (!%p1474_p6), %vm761_vm1, %v884_v46, 0.0 }
 0x141   : > { %792 = vst.msk [vmem:[%s1893_s8 + $0xf0] sm:$0xff] %vm761_vm1, %v2067_v7  ;;  %v916_v8 = vadd.f32 (!%p1474_p6), %v915_v59, %v914_v58  ;;  %v832_v9 = vsel (!%p1474_p6), %vm761_vm1, %v2040_v41, 0.0  ;;  %v887_v14 = vmul.f32 (!%p1474_p6), %v1956_v32, %v1956_v32  ;;  %v919_v15 = vsel (!%p1474_p6), %vm761_vm1, %v885_v54, 0.0 }
 0x142   : > { %2503 = vst [vmem:[#allocation5_spill] sm:$0xff] %v2079_v11  ;;  %777 = vst.msk [vmem:[%s1893_s8 + $0x78] sm:$0xff] %vm761_vm1, %v2076_v10  ;;  %v813_v20 = vadd.f32 (!%p1474_p6), %v812_v18, %v811_v51  ;;  %v840_v46 = vsel (!%p1474_p6), %vm761_vm1, %v1899_v61, 0.0 }
 0x143   : > { %793 = vst.msk [vmem:[%s1893_s8 + $0xf8] sm:$0xff] %vm761_vm1, %v2079_v11  ;;  %v918_v51 = vadd.f32 (!%p1474_p6), %v917_v62, %v916_v8  ;;  %v893_v8 = vmul.f32 (!%p1474_p6), %v2028_v25, %v2028_v25 }
 0x144   : > { %v815_v24 = vadd.f32 %v814_v19, %v813_v20  ;;  %v834_v19 = vsel %vm761_vm1, %v2052_v47, 0.0  ;;  %v888_v20 = vmul.f32 %v1968_v44, %v1968_v44 }
 0x146   : > { %v817_v30 = vadd.f32 %v816_v23, %v815_v24  ;;  %v921_v23 = vsel %vm761_vm1, %v886_v57, 0.0  ;;  %v892_v57 = vmul.f32 %v2016_v21, %v2016_v21 }
 0x148   : > { %v819_v34 = vadd.f32 %v818_v27, %v817_v30  ;;  %v920_v27 = vadd.f32 %v919_v15, %v918_v51  ;;  %v836_v30 = vsel %vm761_vm1, %v2064_v4, 0.0  ;;  %v894_v51 = vmul.f32 %v2040_v41, %v2040_v41 }
 0x14a   : > { %v821_v36 = vadd.f32 %v820_v31, %v819_v34  ;;  %v889_v31 = vmul.f32 %v1980_v48, %v1980_v48  ;;  %v923_v34 = vsel %vm761_vm1, %v887_v14, 0.0 }
 0x14c   : > { %v823_v38 = vadd.f32 %v822_v35, %v821_v36  ;;  %v922_v36 = vadd.f32 %v921_v23, %v920_v27  ;;  %v895_v27 = vmul.f32 %v2052_v47, %v2052_v47 }
 0x14e   : > { %v825_v52 = vadd.f32 %v824_v37, %v823_v38  ;;  %v838_v37 = vsel %vm761_vm1, %v2076_v10, 0.0  ;;  %v890_v38 = vmul.f32 %v1992_v63, %v1992_v63  ;;  %v924_v43 = vadd.f32 %v923_v34, %v922_v36 }
 0x14f   : > { %v896_v36 = vmul.f32 %v2064_v4, %v2064_v4 }
 0x150   : > { %v827_v55 = vadd.f32 %v826_v39, %v825_v52  ;;  %v925_v39 = vsel %vm761_vm1, %v888_v20, 0.0  ;;  %v891_v52 = vmul.f32 %v2004_v5, %v2004_v5  ;;  %v929_v58 = vsel %vm761_vm1, %v890_v38, 0.0 }
 0x152   : > { %v829_v3 = vadd.f32 %v828_v53, %v827_v55  ;;  %v927_v53 = vsel %vm761_vm1, %v889_v31, 0.0  ;;  %v926_v55 = vadd.f32 %v925_v39, %v924_v43  ;;  %v897_v43 = vmul.f32 %v2076_v10, %v2076_v10 }
 0x154   : > { %v831_v18 = vadd.f32 %v830_v56, %v829_v3  ;;  %v842_v56 = vsel %vm761_vm1, %v1911_v1, 0.0  ;;  %v928_v62 = vadd.f32 %v927_v53, %v926_v55  ;;  %v844_v3 = vsel %vm761_vm1, %v1923_v13, 0.0 }
 0x155   : > { %v898_v55 = vmul.f32 %v1899_v61, %v1899_v61 }
 0x156   : > { %v833_v24 = vadd.f32 %v832_v9, %v831_v18  ;;  %v931_v9 = vsel %vm761_vm1, %v891_v52, 0.0  ;;  %v930_v15 = vadd.f32 %v929_v58, %v928_v62  ;;  %v846_v18 = vsel %vm761_vm1, %v1935_v17, 0.0 }
 0x157   : > { %v899_v62 = vmul.f32 %v1911_v1, %v1911_v1 }
 0x158   : > { %v835_v35 = vadd.f32 %v834_v19, %v833_v24  ;;  %v933_v19 = vsel %vm761_vm1, %v892_v57, 0.0  ;;  %v932_v23 = vadd.f32 %v931_v9, %v930_v15  ;;  %v848_v24 = vsel %vm761_vm1, %v1947_v29, 0.0 }
 0x159   : > { %v900_v15 = vmul.f32 %v1923_v13, %v1923_v13 }
 0x15a   : > { %v837_v40 = vadd.f32 %v836_v30, %v835_v35  ;;  %v935_v30 = vsel %vm761_vm1, %v893_v8, 0.0  ;;  %v934_v34 = vadd.f32 %v933_v19, %v932_v23  ;;  %v850_v35 = vsel %vm761_vm1, %v1959_v33, 0.0 }
 0x15b   : > { %v901_v23 = vmul.f32 %v1935_v17, %v1935_v17 }
 0x15c   : > { %v839_v54 = vadd.f32 %v838_v37, %v837_v40  ;;  %v937_v37 = vsel %vm761_vm1, %v894_v51, 0.0  ;;  %v936_v39 = vadd.f32 %v935_v30, %v934_v34  ;;  %v852_v40 = vsel %vm761_vm1, %v1971_v45, 0.0 }
 0x15d   : > { %v902_v34 = vmul.f32 %v1947_v29, %v1947_v29 }
 0x15e   : > { %v841_v59 = vadd.f32 %v840_v46, %v839_v54  ;;  %v939_v46 = vsel %vm761_vm1, %v895_v27, 0.0  ;;  %v938_v53 = vadd.f32 %v937_v37, %v936_v39  ;;  %v854_v54 = vsel %vm761_vm1, %v1983_v49, 0.0 }
 0x15f   : > { %v903_v39 = vmul.f32 %v1959_v33, %v1959_v33 }
 0x160   : > { %v843_v14 = vadd.f32 %v842_v56, %v841_v59  ;;  %v941_v56 = vsel %vm761_vm1, %v896_v36, 0.0  ;;  %v940_v58 = vadd.f32 %v939_v46, %v938_v53  ;;  %v856_v59 = vsel %vm761_vm1, %v1995_v2, 0.0 }
 0x161   : > { %v904_v53 = vmul.f32 %v1971_v45, %v1971_v45 }
 0x162   : > { %v845_v20 = vadd.f32 %v844_v3, %v843_v14  ;;  %v943_v3 = vsel %vm761_vm1, %v897_v43, 0.0  ;;  %v942_v9 = vadd.f32 %v941_v56, %v940_v58  ;;  %v858_v14 = vsel %vm761_vm1, %v2007_v6, 0.0 }
 0x163   : > { %v905_v58 = vmul.f32 %v1983_v49, %v1983_v49 }
 0x164   : > { %v847_v31 = vadd.f32 %v846_v18, %v845_v20  ;;  %v945_v18 = vsel %vm761_vm1, %v898_v55, 0.0  ;;  %v944_v19 = vadd.f32 %v943_v3, %v942_v9  ;;  %v860_v20 = vsel %vm761_vm1, %v2019_v22, 0.0 }
 0x165   : > { %v906_v9 = vmul.f32 %v1995_v2, %v1995_v2 }
 0x166   : > { %v849_v38 = vadd.f32 %v848_v24, %v847_v31  ;;  %v947_v24 = vsel %vm761_vm1, %v899_v62, 0.0  ;;  %v946_v30 = vadd.f32 %v945_v18, %v944_v19  ;;  %v862_v31 = vsel %vm761_vm1, %v2031_v26, 0.0 }
 0x167   : > { %v959_v19 = vsel %vm761_vm1, %v905_v58, 0.0 }
 0x168   : > { %v851_v52 = vadd.f32 %v850_v35, %v849_v38  ;;  %v949_v35 = vsel %vm761_vm1, %v900_v15, 0.0  ;;  %v948_v37 = vadd.f32 %v947_v24, %v946_v30  ;;  %v864_v38 = vsel %vm761_vm1, %v2043_v42, 0.0 }
 0x169   : > { %v908_v24 = vmul.f32 %v2019_v22, %v2019_v22 }
 0x16a   : > { %v853_v57 = vadd.f32 %v852_v40, %v851_v52  ;;  %v951_v40 = vsel %vm761_vm1, %v901_v23, 0.0  ;;  %v950_v46 = vadd.f32 %v949_v35, %v948_v37  ;;  %v866_v52 = vsel %vm761_vm1, %v2055_v50, 0.0 }
 0x16c   : > { %v855_v8 = vadd.f32 %v854_v54, %v853_v57  ;;  %v953_v54 = vsel %vm761_vm1, %v902_v34, 0.0  ;;  %v952_v56 = vadd.f32 %v951_v40, %v950_v46  ;;  %v868_v57 = vsel %vm761_vm1, %v2067_v7, 0.0 }
 0x16d   : > { %v909_v34 = vmul.f32 %v2031_v26, %v2031_v26  ;;  %v911_v46 = vmul.f32 %v2055_v50, %v2055_v50 }
 0x16e   : > { %v857_v51 = vadd.f32 %v856_v59, %v855_v8  ;;  %v955_v59 = vsel %vm761_vm1, %v903_v39, 0.0  ;;  %v954_v3 = vadd.f32 %v953_v54, %v952_v56  ;;  %v870_v8 = vsel %vm761_vm1, %v2079_v11, 0.0 }
 0x16f   : > { %v965_v39 = vsel %vm761_vm1, %v908_v24, 0.0 }
 0x170   : > { %v859_v27 = vadd.f32 %v858_v14, %v857_v51  ;;  %v957_v14 = vsel %vm761_vm1, %v904_v53, 0.0  ;;  %v956_v18 = vadd.f32 %v955_v59, %v954_v3  ;;  %v907_v51 = vmul.f32 %v2007_v6, %v2007_v6  ;;  %v808_v59 = vld [vmem:[%s1867_s22] sm:$0x1] }
 0x171   : > { %v971_v3 = vsel %vm761_vm1, %v911_v46, 0.0 }
 0x172   : > { %v861_v36 = vadd.f32 %v860_v20, %v859_v27  ;;  %v958_v23 = vadd.f32 %v957_v14, %v956_v18  ;;  %v961_v27 = vsel %vm761_vm1, %v906_v9, 0.0  ;;  %v963_v35 = vsel %vm761_vm1, %v907_v51, 0.0 }
 0x174   : > { %v863_v43 = vadd.f32 %v862_v31, %v861_v36  ;;  %v960_v31 = vadd.f32 %v959_v19, %v958_v23 }
 0x176   : > { %v865_v55 = vadd.f32 %v864_v38, %v863_v43  ;;  %v962_v37 = vadd.f32 %v961_v27, %v960_v31  ;;  %v910_v38 = vmul.f32 %v2043_v42, %v2043_v42 }
 0x178   : > { %v867_v62 = vadd.f32 %v866_v52, %v865_v55  ;;  %v964_v43 = vadd.f32 %v963_v35, %v962_v37  ;;  %v967_v52 = vsel %vm761_vm1, %v909_v34, 0.0  ;;  %v912_v55 = vmul.f32 %v2067_v7, %v2067_v7  ;;  %v881_v34 = vld [vmem:[%s1872_s27] sm:$0x1] }
 0x179   : > { %v969_v56 = vsel %vm761_vm1, %v910_v38, 0.0 }
 0x17a   : > { %v869_v15 = vadd.f32 %v868_v57, %v867_v62  ;;  %v966_v54 = vadd.f32 %v965_v39, %v964_v43  ;;  %v913_v62 = vmul.f32 %v2079_v11, %v2079_v11  ;;  %v973_v14 = vsel %vm761_vm1, %v912_v55, 0.0 }
 0x17c   : > { %v871_v20 = vadd.f32 %v870_v8, %v869_v15  ;;  %v968_v58 = vadd.f32 %v967_v52, %v966_v54  ;;  %v975_v51 = vsel %vm761_vm1, %v913_v62, 0.0 }
 0x17e   : > { %v872_v30 = vrot.slane %v871_v20, 4  ;;  %v970_v9 = vadd.f32 %v969_v56, %v968_v58 }
 0x180   : > { %v873_v36 = vadd.f32 %v872_v30, %v871_v20  ;;  %v972_v18 = vadd.f32 %v971_v3, %v970_v9 }
 0x182   : > { %v874_v40 = vrot.slane %v873_v36, 2  ;;  %v974_v19 = vadd.f32 %v973_v14, %v972_v18 }
 0x184   : > { %v875_v53 = vadd.f32 %v874_v40, %v873_v36  ;;  %v976_v20 = vadd.f32 %v975_v51, %v974_v19 }
 0x186   : > { %v876_v57 = vrot.slane %v875_v53, 1  ;;  %v977_v23 = vrot.slane %v976_v20, 4 }
 0x188   : > { %v877_v8 = vadd.f32 %v876_v57, %v875_v53  ;;  %v978_v24 = vadd.f32 %v977_v23, %v976_v20 }
 0x18a   : > { %v878_v15 = vadd.f32 %v877_v8, %v808_v59  ;;  %v979_v27 = vrot.slane %v978_v24, 2 }
 0x18c   : > { %880 = vst.msk [vmem:[%s1867_s22] sm:$0x1] %vm798_vm0, %v878_v15  ;;  %v980_v30 = vadd.f32 %v979_v27, %v978_v24 }
 0x18e   : > { %v981_v31 = vrot.slane %v980_v30, 1 }
 0x190   : > { %v982_v35 = vadd.f32 %v981_v31, %v980_v30 }
 0x192   : > { %v983_v36 = vadd.f32 %v982_v35, %v881_v34 }
 0x194   : > { %984 = vst.msk [vmem:[%s1872_s27] sm:$0x1] %vm798_vm0, %v983_v36 }
 0x195 PF: > { %p1475_p7 = scmp.le.s32.totalorder %s1881_s23, 18 }
 0x196   : > { %v989_v37 = vlaneseq (!%p1475_p7)  ;;  %v2261_v43 = vstv (!%p1475_p7), %s1473_s28 }
 0x197   : > { %988 = sbr.rel (%p1475_p7) target bundleno = 513 (0x201), region = 44 }
 0x198   : > { %v2255_v38 = vshrl.u32 (!%p1475_p7), %v989_v37, 7 }
 0x19a   : > { %v991_v39 = vadd.s32 (!%p1475_p7), 8, %v2255_v38  ;;  %v992_v40 = vadd.s32 (!%p1475_p7), 16, %v2255_v38  ;;  %v993_v46 = vadd.s32 (!%p1475_p7), 24, %v2255_v38  ;;  %v1023_v52 = vadd.s32 (!%p1475_p7), %v2261_v43, %v2255_v38 }
 0x19b   : > { %v994_v53 = vadd.s32 (!%p1475_p7), 32, %v2255_v38  ;;  %v995_v56 = vadd.s32 (!%p1475_p7), 40, %v2255_v38  ;;  %v996_v58 = vadd.s32 (!%p1475_p7), 48, %v2255_v38  ;;  %v997_v62 = vadd.s32 (!%p1475_p7), 56, %v2255_v38 }
 0x19c   : > { %v1024_v54 = vadd.s32 (!%p1475_p7), %v2261_v43, %v991_v39  ;;  %v1025_v55 = vadd.s32 (!%p1475_p7), %v2261_v43, %v992_v40  ;;  %v1026_v57 = vadd.s32 (!%p1475_p7), %v2261_v43, %v993_v46  ;;  %vm1055_vm2 = vcmp.lt.s32.totalorder (!%p1475_p7), %v1023_v52, 18 }
 0x19d   : > { %v1027_v59 = vadd.s32 (!%p1475_p7), %v2261_v43, %v994_v53  ;;  %v998_v3 = vadd.s32 (!%p1475_p7), 64, %v2255_v38  ;;  %v999_v8 = vadd.s32 (!%p1475_p7), 72, %v2255_v38  ;;  %v1000_v9 = vadd.s32 (!%p1475_p7), 80, %v2255_v38 }
 0x19e   : > { %vm1056_vm3 = vcmp.lt.s32.totalorder %v1024_v54, 18  ;;  %vm1057_vm4 = vcmp.lt.s32.totalorder %v1025_v55, 18  ;;  %v1001_v14 = vadd.s32 88, %v2255_v38  ;;  %v1028_v15 = vadd.s32 %v2261_v43, %v995_v56 }
 0x19f   : > { %vm1058_vm5 = vcmp.lt.s32.totalorder %v1026_v57, 18  ;;  %v1087_v18 = vsel %vm1055_vm2, %v1896_v60, 0.0  ;;  %v1002_v51 = vadd.s32 96, %v2255_v38  ;;  %v1088_v19 = vsel %vm1056_vm3, %v1908_v0, 0.0 }
 0x1a0   : > { %v1089_v20 = vsel %vm1057_vm4, %v1920_v12, 0.0  ;;  %v1120_v23 = vsel %vm761_vm1, %v1087_v18, 0.0  ;;  %v1029_v24 = vadd.s32 %v2261_v43, %v996_v58  ;;  %vm1059_vm6 = vcmp.lt.s32.totalorder %v1027_v59, 18 }
 0x1a1   : > { %v1121_v27 = vsel %vm761_vm1, %v1088_v19, 0.0  ;;  %v1123_v30 = vsel %vm761_vm1, %v1089_v20, 0.0  ;;  %v1003_v31 = vadd.s32 104, %v2255_v38  ;;  %v1004_v34 = vadd.s32 112, %v2255_v38 }
 0x1a2   : > { %v1090_v60 = vsel %vm1058_vm5, %v1932_v16, 0.0  ;;  %v1122_v35 = vadd.f32 %v1121_v27, %v1120_v23  ;;  %v1005_v0 = vadd.s32 120, %v2255_v38  ;;  %v1030_v12 = vadd.s32 %v2261_v43, %v997_v62 }
 0x1a3   : > { %vm1060_vm7 = vcmp.lt.s32.totalorder %v1028_v15, 18  ;;  %v1125_v36 = vsel %vm761_vm1, %v1090_v60, 0.0  ;;  %v2294_v37 = vadd.s32 128, %v2255_v38  ;;  %v2297_v39 = vadd.s32 136, %v2255_v38 }
 0x1a4   : > { %v1091_v40 = vsel %vm1059_vm6, %v1944_v28, 0.0  ;;  %v1124_v46 = vadd.f32 %v1123_v30, %v1122_v35  ;;  %v2301_v52 = vadd.s32 144, %v2255_v38  ;;  %v1031_v16 = vadd.s32 %v2261_v43, %v998_v3 }
 0x1a5   : > { %vm1061_vm8 = vcmp.lt.s32.totalorder %v1029_v24, 18  ;;  %v1127_v53 = vsel %vm761_vm1, %v1091_v40, 0.0  ;;  %v2306_v54 = vadd.s32 152, %v2255_v38  ;;  %v2309_v55 = vadd.s32 160, %v2255_v38 }
 0x1a6   : > { %v1092_v56 = vsel %vm1060_vm7, %v1956_v32, 0.0  ;;  %v1126_v57 = vadd.f32 %v1125_v36, %v1124_v46  ;;  %v2313_v28 = vadd.s32 168, %v2255_v38  ;;  %v1032_v58 = vadd.s32 %v2261_v43, %v999_v8 }
 0x1a7   : > { %vm1062_vm9 = vcmp.lt.s32.totalorder %v1030_v12, 18  ;;  %v1129_v59 = vsel %vm761_vm1, %v1092_v56, 0.0  ;;  %v2318_v62 = vadd.s32 176, %v2255_v38  ;;  %v2321_v3 = vadd.s32 184, %v2255_v38 }
 0x1a8   : > { %v1093_v15 = vsel %vm1061_vm8, %v1968_v44, 0.0  ;;  %v1128_v23 = vadd.f32 %v1127_v53, %v1126_v57  ;;  %v2325_v32 = vadd.s32 192, %v2255_v38  ;;  %v1033_v24 = vadd.s32 %v2261_v43, %v1000_v9 }
 0x1a9   : > { %vm1063_vm10 = vcmp.lt.s32.totalorder %v1031_v16, 18  ;;  %v1131_v8 = vsel %vm761_vm1, %v1093_v15, 0.0  ;;  %v2330_v27 = vadd.s32 200, %v2255_v38  ;;  %v1034_v30 = vadd.s32 %v2261_v43, %v1001_v14 }
 0x1aa   : > { %v1094_v35 = vsel %vm1062_vm9, %v1980_v48, 0.0  ;;  %v1130_v12 = vadd.f32 %v1129_v59, %v1128_v23  ;;  %v2335_v36 = vadd.s32 208, %v2255_v38  ;;  %v2338_v44 = vadd.s32 216, %v2255_v38 }
 0x1ab   : > { %vm1064_vm11 = vcmp.lt.s32.totalorder %v1032_v58, 18  ;;  %v1133_v9 = vsel %vm761_vm1, %v1094_v35, 0.0  ;;  %v2342_v46 = vadd.s32 224, %v2255_v38  ;;  %v2345_v16 = vadd.s32 232, %v2255_v38 }
 0x1ac   : > { %v1095_v14 = vsel %vm1063_vm10, %v1992_v63, 0.0  ;;  %v1132_v53 = vadd.f32 %v1131_v8, %v1130_v12  ;;  %v2349_v48 = vadd.s32 240, %v2255_v38  ;;  %v1035_v57 = vadd.s32 %v2261_v43, %v1002_v51 }
 0x1ad   : > { %vm1065_vm12 = vcmp.lt.s32.totalorder %v1033_v24, 18  ;;  %v1135_v59 = vsel %vm761_vm1, %v1095_v14, 0.0  ;;  %v1036_v58 = vadd.s32 %v2261_v43, %v1003_v31  ;;  %vm1066_vm13 = vcmp.lt.s32.totalorder %v1034_v30, 18 }
 0x1ae   : > { %v1096_v23 = vsel %vm1064_vm11, %v2004_v5, 0.0  ;;  %v1134_v11 = vadd.f32 %v1133_v9, %v1132_v53  ;;  %v1193_v50 = vmul.f32 %v1087_v18, %v1087_v18  ;;  %v1194_v42 = vmul.f32 %v1088_v19, %v1088_v19 }
 0x1af   : > { %v1137_v7 = vsel %vm761_vm1, %v1096_v23, 0.0  ;;  %v1195_v63 = vmul.f32 %v1089_v20, %v1089_v20  ;;  %v2357_v8 = vadd.s32 248, %v2255_v38  ;;  %v1037_v12 = vadd.s32 %v2261_v43, %v1004_v34 }
 0x1b0   : > { %v1097_v51 = vsel %vm1065_vm12, %v2016_v21, 0.0  ;;  %v1136_v24 = vadd.f32 %v1135_v59, %v1134_v11  ;;  %vm1067_vm14 = vcmp.lt.s32.totalorder %v1035_v57, 18  ;;  %v2362_v31 = vsel %vm1066_vm13, %v2028_v25, 0.0 }
 0x1b1   : > { %v1139_v5 = vsel %vm761_vm1, %v1097_v51, 0.0  ;;  %v1196_v30 = vmul.f32 %v1090_v60, %v1090_v60  ;;  %v1038_v9 = vadd.s32 %v2261_v43, %v1005_v0  ;;  %vm1068_vm15 = vcmp.lt.s32.totalorder %v1036_v58, 18 }
 0x1b2   : > { %v1138_v18 = vadd.f32 %v1137_v7, %v1136_v24  ;;  %v1141_v38 = vsel %vm761_vm1, %v2362_v31, 0.0  ;;  %v1197_v19 = vmul.f32 %v1091_v40, %v1091_v40  ;;  %v1225_v20 = vsel %vm761_vm1, %v1193_v50, 0.0 }
 0x1b3   : > { %v1226_v21 = vsel %vm761_vm1, %v1194_v42, 0.0  ;;  %v1228_v11 = vsel %vm761_vm1, %v1195_v63, 0.0  ;;  %v1039_v25 = vadd.s32 %v2261_v43, %v2294_v37  ;;  %v1099_v34 = vsel %vm1067_vm14, %v2040_v41, 0.0 }
 0x1b4   : > { %v1140_v60 = vadd.f32 %v1139_v5, %v1138_v18  ;;  %v1227_v53 = vadd.f32 %v1226_v21, %v1225_v20  ;;  %vm1069_vm2 = vcmp.lt.s32.totalorder %v1037_v12, 18  ;;  %v1143_v7 = vsel %vm761_vm1, %v1099_v34, 0.0 }
 0x1b5   : > { %v1198_v0 = vmul.f32 %v1092_v56, %v1092_v56  ;;  %v1230_v57 = vsel %vm761_vm1, %v1196_v30, 0.0  ;;  %v1040_v50 = vadd.s32 %v2261_v43, %v2297_v39  ;;  %v1100_v42 = vsel %vm1068_vm15, %v2052_v47, 0.0 }
 0x1b6   : > { %v1142_v40 = vadd.f32 %v1141_v38, %v1140_v60  ;;  %v1229_v59 = vadd.f32 %v1228_v11, %v1227_v53  ;;  %vm1070_vm3 = vcmp.lt.s32.totalorder %v1038_v9, 18  ;;  %v1145_v37 = vsel %vm761_vm1, %v1100_v42, 0.0 }
 0x1b7   : > { %v1199_v41 = vmul.f32 %v1093_v15, %v1093_v15  ;;  %v1232_v63 = vsel %vm761_vm1, %v1197_v19, 0.0  ;;  %v1041_v12 = vadd.s32 %v2261_v43, %v2301_v52  ;;  %v1101_v56 = vsel %vm1069_vm2, %v2064_v4, 0.0 }
 0x1b8   : > { %v1144_v24 = vadd.f32 %v1143_v7, %v1142_v40  ;;  %v1231_v5 = vadd.f32 %v1230_v57, %v1229_v59  ;;  %vm1071_vm4 = vcmp.lt.s32.totalorder %v1039_v25, 18  ;;  %v1147_v39 = vsel %vm761_vm1, %v1101_v56, 0.0 }
 0x1b9   : > { %v1200_v58 = vmul.f32 %v1094_v35, %v1094_v35  ;;  %v1234_v47 = vsel %vm761_vm1, %v1198_v0, 0.0  ;;  %v1042_v30 = vadd.s32 %v2261_v43, %v2306_v54  ;;  %v1102_v15 = vsel %vm1070_vm3, %v2076_v10, 0.0 }
 0x1ba   : > { %v1146_v9 = vadd.f32 %v1145_v37, %v1144_v24  ;;  %v1233_v18 = vadd.f32 %v1232_v63, %v1231_v5  ;;  %vm1072_vm5 = vcmp.lt.s32.totalorder %v1040_v50, 18  ;;  %v1149_v52 = vsel %vm761_vm1, %v1102_v15, 0.0 }
 0x1bb   : > { %v1201_v38 = vmul.f32 %v1095_v14, %v1095_v14  ;;  %v1236_v4 = vsel %vm761_vm1, %v1199_v41, 0.0  ;;  %v1043_v19 = vadd.s32 %v2261_v43, %v2309_v55  ;;  %v1103_v35 = vsel %vm1071_vm4, %v1899_v61, 0.0 }
 0x1bc   : > { %v1148_v20 = vadd.f32 %v1147_v39, %v1146_v9  ;;  %v1235_v21 = vadd.f32 %v1234_v47, %v1233_v18  ;;  %vm1073_vm6 = vcmp.lt.s32.totalorder %v1041_v12, 18  ;;  %v1151_v54 = vsel %vm761_vm1, %v1103_v35, 0.0 }
 0x1bd   : > { %v1202_v11 = vmul.f32 %v1096_v23, %v1096_v23  ;;  %v1238_v10 = vsel %vm761_vm1, %v1200_v58, 0.0  ;;  %v1044_v25 = vadd.s32 %v2261_v43, %v2313_v28  ;;  %v1104_v14 = vsel %vm1072_vm5, %v1911_v1, 0.0 }
 0x1be   : > { %v1150_v60 = vadd.f32 %v1149_v52, %v1148_v20  ;;  %v1237_v53 = vadd.f32 %v1236_v4, %v1235_v21  ;;  %vm1074_vm7 = vcmp.lt.s32.totalorder %v1042_v30, 18  ;;  %v1153_v55 = vsel %vm761_vm1, %v1104_v14, 0.0 }
 0x1bf   : > { %v1203_v7 = vmul.f32 %v1097_v51, %v1097_v51  ;;  %v1240_v61 = vsel %vm761_vm1, %v1201_v38, 0.0  ;;  %v1045_v0 = vadd.s32 %v2261_v43, %v2318_v62  ;;  %v1105_v23 = vsel %vm1073_vm6, %v1923_v13, 0.0 }
 0x1c0   : > { %v1152_v57 = vadd.f32 %v1151_v54, %v1150_v60  ;;  %v1239_v50 = vadd.f32 %v1238_v10, %v1237_v53  ;;  %vm1075_vm8 = vcmp.lt.s32.totalorder %v1043_v19, 18  ;;  %v1155_v28 = vsel %vm761_vm1, %v1105_v23, 0.0 }
 0x1c1   : > { %v1204_v1 = vmul.f32 %v2362_v31, %v2362_v31  ;;  %v1242_v40 = vsel %vm761_vm1, %v1202_v11, 0.0  ;;  %v1046_v51 = vadd.s32 %v2261_v43, %v2321_v3  ;;  %v1106_v59 = vsel %vm1074_vm7, %v1935_v17, 0.0 }
 0x1c2   : > { %v1154_v37 = vadd.f32 %v1153_v55, %v1152_v57  ;;  %v1241_v41 = vadd.f32 %v1240_v61, %v1239_v50  ;;  %vm1076_vm9 = vcmp.lt.s32.totalorder %v1044_v25, 18  ;;  %v1157_v13 = vsel %vm761_vm1, %v1106_v59, 0.0 }
 0x1c3   : > { %v1205_v62 = vmul.f32 %v1099_v34, %v1099_v34  ;;  %v1244_v63 = vsel %vm761_vm1, %v1203_v7, 0.0  ;;  %v1047_v12 = vadd.s32 %v2261_v43, %v2325_v32  ;;  %v1107_v31 = vsel %vm1075_vm8, %v1947_v29, 0.0 }
 0x1c4   : > { %v1156_v24 = vadd.f32 %v1155_v28, %v1154_v37  ;;  %v1243_v5 = vadd.f32 %v1242_v40, %v1241_v41  ;;  %vm1077_vm10 = vcmp.lt.s32.totalorder %v1045_v0, 18  ;;  %v1159_v3 = vsel %vm761_vm1, %v1107_v31, 0.0  ;;  %v2504_v41 = vld [vmem:[#allocation2_spill] sm:$0xff] }
 0x1c5   : > { %v1206_v39 = vmul.f32 %v1100_v42, %v1100_v42  ;;  %v1246_v17 = vsel %vm761_vm1, %v1204_v1, 0.0  ;;  %v1048_v58 = vadd.s32 %v2261_v43, %v2330_v27  ;;  %v1108_v34 = vsel %vm1076_vm9, %v1959_v33, 0.0 }
 0x1c6   : > { %v1158_v47 = vadd.f32 %v1157_v13, %v1156_v24  ;;  %v1245_v30 = vadd.f32 %v1244_v63, %v1243_v5  ;;  %vm1078_vm11 = vcmp.lt.s32.totalorder %v1046_v51, 18  ;;  %v1161_v32 = vsel %vm761_vm1, %v1108_v34, 0.0 }
 0x1c7   : > { %v1207_v9 = vmul.f32 %v1101_v56, %v1101_v56  ;;  %v1248_v29 = vsel %vm761_vm1, %v1205_v62, 0.0  ;;  %v1049_v18 = vadd.s32 %v2261_v43, %v2335_v36  ;;  %v1109_v42 = vsel %vm1077_vm10, %v1971_v45, 0.0 }
 0x1c8   : > { %v1160_v52 = vadd.f32 %v1159_v3, %v1158_v47  ;;  %v1247_v38 = vadd.f32 %v1246_v17, %v1245_v30  ;;  %vm1079_vm12 = vcmp.lt.s32.totalorder %v1047_v12, 18  ;;  %v1163_v27 = vsel %vm761_vm1, %v1109_v42, 0.0  ;;  %v2506_v17 = vld [vmem:[#allocation4_spill] sm:$0xff] }
 0x1c9   : > { %v1208_v4 = vmul.f32 %v1102_v15, %v1102_v15  ;;  %v1250_v33 = vsel %vm761_vm1, %v1206_v39, 0.0  ;;  %v1050_v19 = vadd.s32 %v2261_v43, %v2338_v44  ;;  %v1110_v56 = vsel %vm1078_vm11, %v1983_v49, 0.0 }
 0x1ca   : > { %v1162_v20 = vadd.f32 %v1161_v32, %v1160_v52  ;;  %v1249_v21 = vadd.f32 %v1248_v29, %v1247_v38  ;;  %vm1080_vm13 = vcmp.lt.s32.totalorder %v1048_v58, 18  ;;  %v1165_v36 = vsel %vm761_vm1, %v1110_v56, 0.0  ;;  %v2507_v29 = vld [vmem:[#allocation5_spill] sm:$0xff] }
 0x1cb   : > { %v1209_v54 = vmul.f32 %v1103_v35, %v1103_v35  ;;  %v1252_v45 = vsel %vm761_vm1, %v1207_v9, 0.0  ;;  %v1051_v11 = vadd.s32 %v2261_v43, %v2342_v46  ;;  %v1111_v15 = vsel %vm1079_vm12, %v1995_v2, 0.0 }
 0x1cc   : > { %v1164_v10 = vadd.f32 %v1163_v27, %v1162_v20  ;;  %v1251_v25 = vadd.f32 %v1250_v33, %v1249_v21  ;;  %vm1081_vm14 = vcmp.lt.s32.totalorder %v1049_v18, 18  ;;  %v1167_v44 = vsel %vm761_vm1, %v1111_v15, 0.0 }
 0x1cd   : > { %v1210_v60 = vmul.f32 %v1104_v14, %v1104_v14  ;;  %v1254_v49 = vsel %vm761_vm1, %v1208_v4, 0.0  ;;  %v1052_v53 = vadd.s32 %v2261_v43, %v2345_v16  ;;  %v1112_v35 = vsel %vm1080_vm13, %v2007_v6, 0.0 }
 0x1ce   : > { %v1166_v55 = vadd.f32 %v1165_v36, %v1164_v10  ;;  %v1253_v7 = vadd.f32 %v1252_v45, %v1251_v25  ;;  %vm1082_vm15 = vcmp.lt.s32.totalorder %v1050_v19, 18  ;;  %v1169_v46 = vsel %vm761_vm1, %v1112_v35, 0.0 }
 0x1cf   : > { %v1211_v61 = vmul.f32 %v1105_v23, %v1105_v23  ;;  %v1256_v2 = vsel %vm761_vm1, %v1209_v54, 0.0  ;;  %v1053_v0 = vadd.s32 %v2261_v43, %v2349_v48  ;;  %v1113_v14 = vsel %vm1081_vm14, %v2019_v22, 0.0 }
 0x1d0   : > { %v1168_v57 = vadd.f32 %v1167_v44, %v1166_v55  ;;  %v1255_v50 = vadd.f32 %v1254_v49, %v1253_v7  ;;  %vm1083_vm2 = vcmp.lt.s32.totalorder %v1051_v11, 18  ;;  %v1171_v16 = vsel %vm761_vm1, %v1113_v14, 0.0 }
 0x1d1   : > { %v1212_v28 = vmul.f32 %v1106_v59, %v1106_v59  ;;  %v1258_v6 = vsel %vm761_vm1, %v1210_v60, 0.0  ;;  %v1054_v1 = vadd.s32 %v2261_v43, %v2357_v8  ;;  %v1114_v23 = vsel %vm1082_vm15, %v2031_v26, 0.0  ;;  %v2505_v8 = vld [vmem:[#allocation3_spill] sm:$0xff] }
 0x1d2   : > { %v1170_v40 = vadd.f32 %v1169_v46, %v1168_v57  ;;  %v1257_v51 = vadd.f32 %v1256_v2, %v1255_v50  ;;  %vm1084_vm3 = vcmp.lt.s32.totalorder %v1052_v53, 18  ;;  %v1173_v48 = vsel %vm761_vm1, %v1114_v23, 0.0 }
 0x1d3   : > { %v1213_v37 = vmul.f32 %v1107_v31, %v1107_v31  ;;  %v1260_v22 = vsel %vm761_vm1, %v1211_v61, 0.0  ;;  %v1115_v13 = vsel %vm1083_vm2, %v2504_v41, 0.0  ;;  %vm1085_vm4 = vcmp.lt.s32.totalorder %v1053_v0, 18 }
 0x1d4   : > { %v1172_v62 = vadd.f32 %v1171_v16, %v1170_v40  ;;  %v1259_v63 = vadd.f32 %v1258_v6, %v1257_v51  ;;  %v1175_v59 = vsel %vm761_vm1, %v1115_v13, 0.0  ;;  %v1214_v12 = vmul.f32 %v1108_v34, %v1108_v34  ;;  %v1119_v16 = vld [vmem:[%s1867_s22] sm:$0x1] }
 0x1d5   : > { %v1262_v43 = vsel %vm761_vm1, %v1212_v28, 0.0  ;;  %v1116_v26 = vsel %vm1084_vm3, %v2505_v8, 0.0  ;;  %vm1086_vm5 = vcmp.lt.s32.totalorder %v1054_v1, 18  ;;  %v1215_v31 = vmul.f32 %v1109_v42, %v1109_v42 }
 0x1d6   : > { %v1174_v24 = vadd.f32 %v1173_v48, %v1172_v62  ;;  %v1261_v5 = vadd.f32 %v1260_v22, %v1259_v63  ;;  %v1177_v3 = vsel %vm761_vm1, %v1116_v26, 0.0  ;;  %v1264_v39 = vsel %vm761_vm1, %v1213_v37, 0.0 }
 0x1d7   : > { %v1117_v58 = vsel %vm1085_vm4, %v2506_v17, 0.0  ;;  %v1216_v9 = vmul.f32 %v1110_v56, %v1110_v56  ;;  %v1266_v34 = vsel %vm761_vm1, %v1214_v12, 0.0  ;;  %v1118_v18 = vsel %vm1086_vm5, %v2507_v29, 0.0 }
 0x1d8   : > { %v1176_v47 = vadd.f32 %v1175_v59, %v1174_v24  ;;  %v1263_v30 = vadd.f32 %v1262_v43, %v1261_v5  ;;  %v1179_v32 = vsel %vm761_vm1, %v1117_v58, 0.0  ;;  %v1181_v27 = vsel %vm761_vm1, %v1118_v18, 0.0  ;;  %v1192_v43 = vld [vmem:[%s1872_s27] sm:$0x1] }
 0x1d9   : > { %v1217_v4 = vmul.f32 %v1111_v15, %v1111_v15  ;;  %v1268_v42 = vsel %vm761_vm1, %v1215_v31, 0.0  ;;  %v1218_v20 = vmul.f32 %v1112_v35, %v1112_v35  ;;  %v1270_v21 = vsel %vm761_vm1, %v1216_v9, 0.0 }
 0x1da   : > { %v1178_v52 = vadd.f32 %v1177_v3, %v1176_v47  ;;  %v1265_v38 = vadd.f32 %v1264_v39, %v1263_v30  ;;  %v1219_v45 = vmul.f32 %v1113_v14, %v1113_v14  ;;  %v1220_v25 = vmul.f32 %v1114_v23, %v1114_v23 }
 0x1db   : > { %v1272_v56 = vsel %vm761_vm1, %v1217_v4, 0.0  ;;  %v1274_v44 = vsel %vm761_vm1, %v1218_v20, 0.0  ;;  %v1221_v49 = vmul.f32 %v1115_v13, %v1115_v13  ;;  %v1222_v7 = vmul.f32 %v1116_v26, %v1116_v26 }
 0x1dc   : > { %v1180_v33 = vadd.f32 %v1179_v32, %v1178_v52  ;;  %v1267_v19 = vadd.f32 %v1266_v34, %v1265_v38  ;;  %v1276_v53 = vsel %vm761_vm1, %v1219_v45, 0.0  ;;  %v1278_v46 = vsel %vm761_vm1, %v1220_v25, 0.0 }
 0x1dd   : > { %v1223_v0 = vmul.f32 %v1117_v58, %v1117_v58  ;;  %v1280_v14 = vsel %vm761_vm1, %v1221_v49, 0.0  ;;  %v1224_v28 = vmul.f32 %v1118_v18, %v1118_v18  ;;  %v1282_v6 = vsel %vm761_vm1, %v1222_v7, 0.0 }
 0x1de   : > { %v1182_v36 = vadd.f32 %v1181_v27, %v1180_v33  ;;  %v1269_v54 = vadd.f32 %v1268_v42, %v1267_v19 }
 0x1df   : > { %v1284_v40 = vsel %vm761_vm1, %v1223_v0, 0.0  ;;  %v1286_v37 = vsel %vm761_vm1, %v1224_v28, 0.0 }
 0x1e0   : > { %v1183_v11 = vrot.slane %v1182_v36, 4  ;;  %v1271_v10 = vadd.f32 %v1270_v21, %v1269_v54 }
 0x1e2   : > { %v1184_v60 = vadd.f32 %v1183_v11, %v1182_v36  ;;  %v1273_v15 = vadd.f32 %v1272_v56, %v1271_v10 }
 0x1e4   : > { %v1185_v55 = vrot.slane %v1184_v60, 2  ;;  %v1275_v35 = vadd.f32 %v1274_v44, %v1273_v15 }
 0x1e6   : > { %v1186_v61 = vadd.f32 %v1185_v55, %v1184_v60  ;;  %v1277_v2 = vadd.f32 %v1276_v53, %v1275_v35 }
 0x1e8   : > { %v1187_v57 = vrot.slane %v1186_v61, 1  ;;  %v1279_v50 = vadd.f32 %v1278_v46, %v1277_v2 }
 0x1ea   : > { %v1188_v1 = vadd.f32 %v1187_v57, %v1186_v61  ;;  %v1281_v23 = vadd.f32 %v1280_v14, %v1279_v50 }
 0x1ec   : > { %v1189_v51 = vadd.f32 %v1188_v1, %v1119_v16  ;;  %v1283_v48 = vadd.f32 %v1282_v6, %v1281_v23 }
 0x1ee   : > { %1191 = vst.msk [vmem:[%s1867_s22] sm:$0x1] %vm798_vm0, %v1189_v51  ;;  %v1285_v22 = vadd.f32 %v1284_v40, %v1283_v48 }
 0x1f0   : > { %v1287_v41 = vadd.f32 %v1286_v37, %v1285_v22 }
 0x1f2   : > { %v1288_v13 = vrot.slane %v1287_v41, 4 }
 0x1f4   : > { %v1289_v62 = vadd.f32 %v1288_v13, %v1287_v41 }
 0x1f6   : > { %v1290_v63 = vrot.slane %v1289_v62, 2 }
 0x1f8   : > { %v1291_v59 = vadd.f32 %v1290_v63, %v1289_v62 }
 0x1fa   : > { %v1292_v12 = vrot.slane %v1291_v59, 1 }
 0x1fc   : > { %v1293_v8 = vadd.f32 %v1292_v12, %v1291_v59 }
 0x1fe   : > { %v1294_v26 = vadd.f32 %v1293_v8, %v1192_v43 }
 0x200   : > { %1295 = vst.msk [vmem:[%s1872_s27] sm:$0x1] %vm798_vm0, %v1294_v26 }
 0x201 PF: > { %s16_s20 = sadd.s32 1, %s1718_s20   ;;  %s2508_s18 = smov %s1714_s19 }
 0x202   : > { %p13_p8 = scmp.ge.s32.totalorder %s16_s20, 4   ;;  %s2509_s19 = smov %s2511_s21 }
 0x204   :  { %15 = sbr.rel (!%p13_p8) target bundleno = 2 (0x2), region = 98 }

// kernel: apply.8
= control target key start
LH: loop header
LB: loop body
LE: loop exit
PB: predicated region body
PF: predicated region fallthrough
CT: control target
= control target key end

     0   :  { %s2440_s18 = smov 0   ;;  %s2442_s19 = smov 0   ;;  %s3256_s0 = inlined_call_operand.vmem [shape: bf16[512,512], index: 0, kind: input, shape index: {}]   ;;  %s3257_s1 = inlined_call_operand.vmem [shape: bf16[512,64], index: 1, kind: input, shape index: {}]   ;;  %s3258_s2 = inlined_call_operand.vmem [shape: f32[1,64], index: 2, kind: input, shape index: {}]   ;;  %s3259_s3 = inlined_call_operand.vmem [shape: f32[512,64], index: 3, kind: output, shape index: {0}]   ;;  %s3260_s4 = inlined_call_operand.vmem [shape: f32[2,1,64], index: 4, kind: output, shape index: {1}]   ;;  %s3261_s5 = inlined_call_operand.vmem [shape: f32[2,1,64], index: 5, kind: output, shape index: {2}]  }
   0x1   :  { %s2444_s20 = smov 0  }
   0x2 LB: > { %s28_s21 = sadd.s32 1, %s2403_s19  ;;  %p1899_p0 = scmp.ge.s32.totalorder %s2407_s20, 1  ;;  %s2407_s20 = sphi %s2444_s20, %s16_s20   ;;  %s2403_s19 = sphi %s2442_s19, %s3275_s19   ;;  %s2399_s18 = sphi %s2440_s18, %s3274_s18  }
   0x3   : > { %p30_p1 = scmp.ge.s32.totalorder %s28_s21, 2  ;;  %p212_p2 = scmp.lt.s32.totalorder %s2407_s20, 3 }
   0x5   : > { %s3277_s21 = smov (%p30_p1, %s28_s21), 0  ;;  %p213_p3 = pnand %p1899_p0, %p212_p2 }
   0x7   : > { %216 = sbr.rel (%p213_p3) target bundleno = 577 (0x241), region = 32 }
   0xe   : > { %v2257_v0 = vld [vmem:[%s3257_s1 + $0x40] sm:$0xff]   ;;  %v2261_v4 = vld [vmem:[%s3257_s1 + $0x48] sm:$0xff]   ;;  %v2265_v8 = vld [vmem:[%s3257_s1 + $0x50] sm:$0xff]   ;;  %s1900_s8 = sshll.u32 %s2399_s18, 5  ;;  %p266_p5 = scmp.lt.s32.totalorder %s2399_s18, 1  ;;  %vm1279_vm0 = vcmask 516096  }
   0xf   : > { %v2258_v1 = vld [vmem:[%s3257_s1 + $0xc0] sm:$0xff]   ;;  %2008 = vmatprep.subr.bf16.mxu0 %v2257_v0  ;;  %v2262_v5 = vld [vmem:[%s3257_s1 + $0xc8] sm:$0xff]   ;;  %v2266_v9 = vld [vmem:[%s3257_s1 + $0xd0] sm:$0xff]   ;;  %p251_p4 = scmp.lt.s32.totalorder %s1900_s8, 63  ;;  %s2002_s15 = sshll.u32 %s2399_s18, 8  ;;  %vm1242_vm1 = vcmask 523264  }
  0x10   : > { %v2259_v2 = vld [vmem:[%s3257_s1] sm:$0xff]   ;;  %2120 = vmatprep.subr.bf16.mxu1 %v2258_v1  ;;  %v2263_v6 = vld [vmem:[%s3257_s1 + $0x8] sm:$0xff]   ;;  %v2267_v10 = vld [vmem:[%s3257_s1 + $0x10] sm:$0xff]   ;;  %s267_s29 = scalar_select %p266_p5, %s2399_s18, 1 }
  0x11   : > { %v2260_v3 = vld [vmem:[%s3257_s1 + $0x80] sm:$0xff]   ;;  %2009 = vmatpush3.bf16.msra.mxu0 %v2259_v2  ;;  %v2264_v7 = vld [vmem:[%s3257_s1 + $0x88] sm:$0xff]   ;;  %v2268_v11 = vld [vmem:[%s3257_s1 + $0x90] sm:$0xff]   ;;  %s3279_s8 = smov (!%p251_p4, %s1900_s8), 63  ;;  %s2654_s16 = sadd.s32 256, %s2002_s15 }
  0x12   : > { %2121 = vmatpush3.bf16.msra.mxu1 %v2260_v3  ;;  %2010 = vmatprep.subr.bf16.mxu0 %v2261_v4  ;;  %v2269_v12 = vld [vmem:[%s3257_s1 + $0x58] sm:$0xff]   ;;  %v2273_v16 = vld [vmem:[%s3257_s1 + $0x60] sm:$0xff]   ;;  %v2277_v20 = vld [vmem:[%s3257_s1 + $0x68] sm:$0xff]   ;;  %s2007_s11 = sshll.u32 %s3279_s8, 4  ;;  %s2634_s7 = scalar_lea.vmem %s3260_s4, %s267_s29 }
  0x13   : > { %2122 = vmatprep.subr.bf16.mxu1 %v2262_v5  ;;  %v2270_v13 = vld [vmem:[%s3257_s1 + $0xd8] sm:$0xff]   ;;  %v2274_v17 = vld [vmem:[%s3257_s1 + $0xe0] sm:$0xff]   ;;  %v2278_v21 = vld [vmem:[%s3257_s1 + $0xe8] sm:$0xff]   ;;  %s2557_s24 = scalar_lea.vmem %s3256_s0, %s2007_s11  ;;  %s2639_s11 = scalar_lea.vmem %s3261_s5, %s267_s29 }
  0x14   : > { %v2271_v14 = vld [vmem:[%s3257_s1 + $0x18] sm:$0xff]   ;;  %v2275_v18 = vld [vmem:[%s3257_s1 + $0x20] sm:$0xff]   ;;  %v2279_v22 = vld [vmem:[%s3257_s1 + $0x28] sm:$0xff]   ;;  %s1904_s14 = sshll.u32 %s3279_s8, 3  ;;  %p2003_p6 = scmp.gt.s32.totalorder %s2654_s16, 32 }
  0x15   : > { %2011 = vmatpush3.bf16.msra.mxu0 %v2263_v6  ;;  %v2272_v15 = vld [vmem:[%s3257_s1 + $0x98] sm:$0xff]   ;;  %v2276_v19 = vld [vmem:[%s3257_s1 + $0xa0] sm:$0xff]   ;;  %v2280_v23 = vld [vmem:[%s3257_s1 + $0xa8] sm:$0xff]   ;;  %s2660_s22 = scalar_lea.vmem %s3259_s3, %s1904_s14 }
  0x16   : > { %2123 = vmatpush3.bf16.msra.mxu1 %v2264_v7  ;;  %2012 = vmatprep.subr.bf16.mxu0 %v2265_v8  ;;  %v2281_v24 = vld [vmem:[%s3257_s1 + $0x70] sm:$0xff]   ;;  %v2285_v28 = vld [vmem:[%s3257_s1 + $0x78] sm:$0xff]  }
  0x17   : > { %2124 = vmatprep.subr.bf16.mxu1 %v2266_v9  ;;  %v2282_v25 = vld [vmem:[%s3257_s1 + $0xf0] sm:$0xff]   ;;  %v2286_v29 = vld [vmem:[%s3257_s1 + $0xf8] sm:$0xff]  }
  0x18   : > { %v2283_v26 = vld [vmem:[%s3257_s1 + $0x30] sm:$0xff]   ;;  %v2287_v30 = vld [vmem:[%s3257_s1 + $0x38] sm:$0xff]  }
  0x19   : > { %2013 = vmatpush3.bf16.msra.mxu0 %v2267_v10  ;;  %v2284_v27 = vld [vmem:[%s3257_s1 + $0xb0] sm:$0xff]   ;;  %v2288_v31 = vld [vmem:[%s3257_s1 + $0xb8] sm:$0xff]  }
  0x1a   : > { %2125 = vmatpush3.bf16.msra.mxu1 %v2268_v11  ;;  %2014 = vmatprep.subr.bf16.mxu0 %v2269_v12  ;;  %v2289_v32 = vld [vmem:[%s2557_s24] ss:$16 sps:$4 sm:$0xff]   ;;  %v2291_v33 = vld [vmem:[%s2557_s24 + $0x4] ss:$16 sps:$4 sm:$0xff]   ;;  %v2292_v34 = vld [vmem:[%s2557_s24 + $0x8] ss:$16 sps:$4 sm:$0xff]  }
  0x1b   : > { %2126 = vmatprep.subr.bf16.mxu1 %v2270_v13  ;;  %v2294_v35 = vld [vmem:[%s2557_s24 + $0xc] ss:$16 sps:$4 sm:$0xff]   ;;  %952 = vmatprep.mubr.bf16.mxu0 %v2291_v33  ;;  %v2295_v36 = vld [vmem:[%s2557_s24 + $0x24] ss:$16 sps:$4 sm:$0xff]   ;;  %v2299_v38 = vld [vmem:[%s2557_s24 + $0x20] ss:$16 sps:$4 sm:$0xff]  }
  0x1c   : > { %1113 = vmatprep.mubr.bf16.mxu1 %v2294_v35  ;;  %v2297_v37 = vld [vmem:[%s2557_s24 + $0x2c] ss:$16 sps:$4 sm:$0xff]   ;;  %v2300_v39 = vld [vmem:[%s2557_s24 + $0x28] ss:$16 sps:$4 sm:$0xff]   ;;  %v2301_v40 = vld [vmem:[%s2557_s24 + $0x44] ss:$16 sps:$4 sm:$0xff]  }
  0x1d   : > { %2015 = vmatpush3.bf16.msra.mxu0 %v2271_v14  ;;  %v2303_v41 = vld [vmem:[%s2557_s24 + $0x4c] ss:$16 sps:$4 sm:$0xff]   ;;  %v2305_v42 = vld [vmem:[%s2557_s24 + $0x40] ss:$16 sps:$4 sm:$0xff]   ;;  %v2306_v43 = vld [vmem:[%s2557_s24 + $0x48] ss:$16 sps:$4 sm:$0xff]  }
  0x1e   : > { %2127 = vmatpush3.bf16.msra.mxu1 %v2272_v15  ;;  %2016 = vmatprep.subr.bf16.mxu0 %v2273_v16  ;;  %v2307_v44 = vld [vmem:[%s2557_s24 + $0x64] ss:$16 sps:$4 sm:$0xff]   ;;  %v2309_v45 = vld [vmem:[%s2557_s24 + $0x6c] ss:$16 sps:$4 sm:$0xff]   ;;  %v2311_v46 = vld [vmem:[%s2557_s24 + $0x60] ss:$16 sps:$4 sm:$0xff]  }
  0x1f   : > { %2128 = vmatprep.subr.bf16.mxu1 %v2274_v17  ;;  %v2312_v47 = vld [vmem:[%s2557_s24 + $0x68] ss:$16 sps:$4 sm:$0xff]   ;;  %v2313_v48 = vld [vmem:[%s2557_s24 + $0x84] ss:$16 sps:$4 sm:$0xff]   ;;  %v2315_v49 = vld [vmem:[%s2557_s24 + $0x8c] ss:$16 sps:$4 sm:$0xff]  }
  0x20   : > { %v2317_v50 = vld [vmem:[%s2557_s24 + $0x80] ss:$16 sps:$4 sm:$0xff]   ;;  %v2318_v51 = vld [vmem:[%s2557_s24 + $0x88] ss:$16 sps:$4 sm:$0xff]   ;;  %v2319_v52 = vld [vmem:[%s2557_s24 + $0xa4] ss:$16 sps:$4 sm:$0xff]  }
  0x21   : > { %2017 = vmatpush3.bf16.msra.mxu0 %v2275_v18  ;;  %v2321_v53 = vld [vmem:[%s2557_s24 + $0xac] ss:$16 sps:$4 sm:$0xff]   ;;  %v2323_v54 = vld [vmem:[%s2557_s24 + $0xa0] ss:$16 sps:$4 sm:$0xff]   ;;  %v2324_v55 = vld [vmem:[%s2557_s24 + $0xa8] ss:$16 sps:$4 sm:$0xff]  }
  0x22   : > { %2129 = vmatpush3.bf16.msra.mxu1 %v2276_v19  ;;  %2018 = vmatprep.subr.bf16.mxu0 %v2277_v20  ;;  %v2325_v56 = vld [vmem:[%s2557_s24 + $0xc4] ss:$16 sps:$4 sm:$0xff]   ;;  %v2327_v57 = vld [vmem:[%s2557_s24 + $0xcc] ss:$16 sps:$4 sm:$0xff]   ;;  %v2329_v58 = vld [vmem:[%s2557_s24 + $0xc0] ss:$16 sps:$4 sm:$0xff]  }
  0x23   : > { %2130 = vmatprep.subr.bf16.mxu1 %v2278_v21  ;;  %v2330_v59 = vld [vmem:[%s2557_s24 + $0xc8] ss:$16 sps:$4 sm:$0xff]   ;;  %v2331_v60 = vld [vmem:[%s2557_s24 + $0xe4] ss:$16 sps:$4 sm:$0xff]   ;;  %v2333_v61 = vld [vmem:[%s2557_s24 + $0xec] ss:$16 sps:$4 sm:$0xff]  }
  0x24   : > { %v2335_v62 = vld [vmem:[%s2557_s24 + $0xe0] ss:$16 sps:$4 sm:$0xff]   ;;  %v2336_v63 = vld [vmem:[%s2557_s24 + $0xe8] ss:$16 sps:$4 sm:$0xff]   ;;  %v2337_v0 = vld [vmem:[%s2557_s24 + $0x104] ss:$16 sps:$4 sm:$0xff]  }
  0x25   : > { %2019 = vmatpush3.bf16.msra.mxu0 %v2279_v22  ;;  %v2339_v1 = vld [vmem:[%s2557_s24 + $0x10c] ss:$16 sps:$4 sm:$0xff]   ;;  %v2341_v2 = vld [vmem:[%s2557_s24 + $0x100] ss:$16 sps:$4 sm:$0xff]   ;;  %v2342_v3 = vld [vmem:[%s2557_s24 + $0x108] ss:$16 sps:$4 sm:$0xff]  }
  0x26   : > { %2131 = vmatpush3.bf16.msra.mxu1 %v2280_v23  ;;  %2020 = vmatprep.subr.bf16.mxu0 %v2281_v24  ;;  %v2343_v4 = vld [vmem:[%s2557_s24 + $0x124] ss:$16 sps:$4 sm:$0xff]   ;;  %v2345_v5 = vld [vmem:[%s2557_s24 + $0x12c] ss:$16 sps:$4 sm:$0xff]   ;;  %v2347_v6 = vld [vmem:[%s2557_s24 + $0x120] ss:$16 sps:$4 sm:$0xff]  }
  0x27   : > { %2132 = vmatprep.subr.bf16.mxu1 %v2282_v25  ;;  %v2348_v7 = vld [vmem:[%s2557_s24 + $0x128] ss:$16 sps:$4 sm:$0xff]   ;;  %v2349_v8 = vld [vmem:[%s2557_s24 + $0x144] ss:$16 sps:$4 sm:$0xff]   ;;  %v2351_v9 = vld [vmem:[%s2557_s24 + $0x14c] ss:$16 sps:$4 sm:$0xff]  }
  0x28   : > { %v2353_v10 = vld [vmem:[%s2557_s24 + $0x140] ss:$16 sps:$4 sm:$0xff]   ;;  %v2354_v11 = vld [vmem:[%s2557_s24 + $0x148] ss:$16 sps:$4 sm:$0xff]   ;;  %v2355_v12 = vld [vmem:[%s2557_s24 + $0x164] ss:$16 sps:$4 sm:$0xff]  }
  0x29   : > { %2021 = vmatpush3.bf16.msra.mxu0 %v2283_v26  ;;  %v2357_v13 = vld [vmem:[%s2557_s24 + $0x16c] ss:$16 sps:$4 sm:$0xff]   ;;  %v2359_v14 = vld [vmem:[%s2557_s24 + $0x160] ss:$16 sps:$4 sm:$0xff]   ;;  %v2360_v15 = vld [vmem:[%s2557_s24 + $0x168] ss:$16 sps:$4 sm:$0xff]  }
  0x2a   : > { %2133 = vmatpush3.bf16.msra.mxu1 %v2284_v27  ;;  %2022 = vmatprep.subr.bf16.mxu0 %v2285_v28  ;;  %v2361_v16 = vld [vmem:[%s2557_s24 + $0x184] ss:$16 sps:$4 sm:$0xff]   ;;  %v2363_v17 = vld [vmem:[%s2557_s24 + $0x18c] ss:$16 sps:$4 sm:$0xff]   ;;  %v2365_v18 = vld [vmem:[%s2557_s24 + $0x180] ss:$16 sps:$4 sm:$0xff]  }
  0x2b   : > { %2134 = vmatprep.subr.bf16.mxu1 %v2286_v29  ;;  %v2366_v19 = vld [vmem:[%s2557_s24 + $0x188] ss:$16 sps:$4 sm:$0xff]   ;;  %v2367_v20 = vld [vmem:[%s2557_s24 + $0x1a4] ss:$16 sps:$4 sm:$0xff]   ;;  %v2369_v21 = vld [vmem:[%s2557_s24 + $0x1ac] ss:$16 sps:$4 sm:$0xff]  }
  0x2c   : > { %v2371_v22 = vld [vmem:[%s2557_s24 + $0x1a0] ss:$16 sps:$4 sm:$0xff]   ;;  %v2372_v23 = vld [vmem:[%s2557_s24 + $0x1a8] ss:$16 sps:$4 sm:$0xff]   ;;  %v2373_v24 = vld [vmem:[%s2557_s24 + $0x1c4] ss:$16 sps:$4 sm:$0xff]  }
  0x2d   : > { %2023 = vmatpush3.bf16.msra.mxu0 %v2287_v30  ;;  %v2375_v25 = vld [vmem:[%s2557_s24 + $0x1cc] ss:$16 sps:$4 sm:$0xff]   ;;  %v2377_v26 = vld [vmem:[%s2557_s24 + $0x1c0] ss:$16 sps:$4 sm:$0xff]   ;;  %v2378_v27 = vld [vmem:[%s2557_s24 + $0x1c8] ss:$16 sps:$4 sm:$0xff]  }
  0x2e   : > { %2135 = vmatpush3.bf16.msra.mxu1 %v2288_v31  ;;  %v2379_v28 = vld [vmem:[%s2557_s24 + $0x1e4] ss:$16 sps:$4 sm:$0xff]   ;;  %v2381_v29 = vld [vmem:[%s2557_s24 + $0x1ec] ss:$16 sps:$4 sm:$0xff]   ;;  %v2383_v30 = vld [vmem:[%s2557_s24 + $0x1e0] ss:$16 sps:$4 sm:$0xff]  }
  0x2f   : > { %v2384_v31 = vld [vmem:[%s2557_s24 + $0x1e8] ss:$16 sps:$4 sm:$0xff]  }
  0x30   : > { %953 = vmatmul.mubr.bf16.vlgmr.msra.gmra.mrb[0].mxu0 %v2289_v32 }
  0x31   : > { %1114 = vmatmul.mubr.bf16.vlgmr.msra.gmra.mrb[0].mxu1 %v2292_v34  ;;  %960 = vmatprep.mubr.bf16.mxu0 %v2295_v36  ;;  %v2644_v34 = vld [vmem:[%s3258_s2] ss:$0 sm:$0xff] }
  0x32   : > { %1121 = vmatprep.mubr.bf16.mxu1 %v2297_v37 }
  0x38   : > { %961 = vmatmul.mubr.bf16.gmra.mrb[4].mxu0 %v2299_v38 }
  0x39   : > { %1122 = vmatmul.mubr.bf16.gmra.mrb[4].mxu1 %v2300_v39  ;;  %968 = vmatprep.mubr.bf16.mxu0 %v2301_v40 }
  0x3a   : > { %1129 = vmatprep.mubr.bf16.mxu1 %v2303_v41 }
  0x40   : > { %969 = vmatmul.mubr.bf16.gmra.mrb[8].mxu0 %v2305_v42  ;;  %v2409_v42 = vmov 0.0  }
  0x41   : > { %1130 = vmatmul.mubr.bf16.gmra.mrb[8].mxu1 %v2306_v43  ;;  %976 = vmatprep.mubr.bf16.mxu0 %v2307_v44  ;;  %1280 = vst.msk [vmem:[%s2634_s7] sm:$0x1] %vm1279_vm0, %v2409_v42  ;;  %1281 = vst.msk [vmem:[%s2639_s11] sm:$0x1] %vm1279_vm0, %v2409_v42 }
  0x42   : > { %1137 = vmatprep.mubr.bf16.mxu1 %v2309_v45 }
  0x48   : > { %977 = vmatmul.mubr.bf16.gmra.mrb[12].mxu0 %v2311_v46 }
  0x49   : > { %1138 = vmatmul.mubr.bf16.gmra.mrb[12].mxu1 %v2312_v47  ;;  %984 = vmatprep.mubr.bf16.mxu0 %v2313_v48 }
  0x4a   : > { %1145 = vmatprep.mubr.bf16.mxu1 %v2315_v49 }
  0x50   : > { %985 = vmatmul.mubr.bf16.gmra.mrb[16].mxu0 %v2317_v50 }
  0x51   : > { %1146 = vmatmul.mubr.bf16.gmra.mrb[16].mxu1 %v2318_v51  ;;  %992 = vmatprep.mubr.bf16.mxu0 %v2319_v52 }
  0x52   : > { %1153 = vmatprep.mubr.bf16.mxu1 %v2321_v53 }
  0x58   : > { %993 = vmatmul.mubr.bf16.gmra.mrb[20].mxu0 %v2323_v54 }
  0x59   : > { %1154 = vmatmul.mubr.bf16.gmra.mrb[20].mxu1 %v2324_v55  ;;  %1000 = vmatprep.mubr.bf16.mxu0 %v2325_v56 }
  0x5a   : > { %1161 = vmatprep.mubr.bf16.mxu1 %v2327_v57 }
  0x60   : > { %1001 = vmatmul.mubr.bf16.gmra.mrb[24].mxu0 %v2329_v58 }
  0x61   : > { %1162 = vmatmul.mubr.bf16.gmra.mrb[24].mxu1 %v2330_v59  ;;  %1008 = vmatprep.mubr.bf16.mxu0 %v2331_v60 }
  0x62   : > { %1169 = vmatprep.mubr.bf16.mxu1 %v2333_v61 }
  0x68   : > { %1009 = vmatmul.mubr.bf16.gmra.mrb[28].mxu0 %v2335_v62 }
  0x69   : > { %1170 = vmatmul.mubr.bf16.gmra.mrb[28].mxu1 %v2336_v63  ;;  %1016 = vmatprep.mubr.bf16.mxu0 %v2337_v0 }
  0x6a   : > { %1177 = vmatprep.mubr.bf16.mxu1 %v2339_v1 }
  0x70   : > { %1017 = vmatmul.mubr.bf16.gmra.mrb[32].mxu0 %v2341_v2 }
  0x71   : > { %1178 = vmatmul.mubr.bf16.gmra.mrb[32].mxu1 %v2342_v3  ;;  %1024 = vmatprep.mubr.bf16.mxu0 %v2343_v4 }
  0x72   : > { %1185 = vmatprep.mubr.bf16.mxu1 %v2345_v5 }
  0x78   : > { %1025 = vmatmul.mubr.bf16.gmra.mrb[36].mxu0 %v2347_v6 }
  0x79   : > { %1186 = vmatmul.mubr.bf16.gmra.mrb[36].mxu1 %v2348_v7  ;;  %1032 = vmatprep.mubr.bf16.mxu0 %v2349_v8 }
  0x7a   : > { %1193 = vmatprep.mubr.bf16.mxu1 %v2351_v9 }
  0x80   : > { %1033 = vmatmul.mubr.bf16.gmra.mrb[40].mxu0 %v2353_v10 }
  0x81   : > { %1194 = vmatmul.mubr.bf16.gmra.mrb[40].mxu1 %v2354_v11  ;;  %1040 = vmatprep.mubr.bf16.mxu0 %v2355_v12 }
  0x82   : > { %1201 = vmatprep.mubr.bf16.mxu1 %v2357_v13 }
  0x88   : > { %1041 = vmatmul.mubr.bf16.gmra.mrb[44].mxu0 %v2359_v14 }
  0x89   : > { %1202 = vmatmul.mubr.bf16.gmra.mrb[44].mxu1 %v2360_v15  ;;  %1048 = vmatprep.mubr.bf16.mxu0 %v2361_v16 }
  0x8a   : > { %1209 = vmatprep.mubr.bf16.mxu1 %v2363_v17 }
  0x90   : > { %1049 = vmatmul.mubr.bf16.gmra.mrb[48].mxu0 %v2365_v18 }
  0x91   : > { %1210 = vmatmul.mubr.bf16.gmra.mrb[48].mxu1 %v2366_v19  ;;  %1056 = vmatprep.mubr.bf16.mxu0 %v2367_v20 }
  0x92   : > { %1217 = vmatprep.mubr.bf16.mxu1 %v2369_v21 }
  0x98   : > { %1057 = vmatmul.mubr.bf16.gmra.mrb[52].mxu0 %v2371_v22 }
  0x99   : > { %1218 = vmatmul.mubr.bf16.gmra.mrb[52].mxu1 %v2372_v23  ;;  %1064 = vmatprep.mubr.bf16.mxu0 %v2373_v24 }
  0x9a   : > { %1225 = vmatprep.mubr.bf16.mxu1 %v2375_v25 }
  0xa0   : > { %1065 = vmatmul.mubr.bf16.gmra.mrb[56].mxu0 %v2377_v26 }
  0xa1   : > { %1226 = vmatmul.mubr.bf16.gmra.mrb[56].mxu1 %v2378_v27  ;;  %1072 = vmatprep.mubr.bf16.mxu0 %v2379_v28 }
  0xa2   : > { %1233 = vmatprep.mubr.bf16.mxu1 %v2381_v29 }
  0xa8   : > { %1073 = vmatmul.mubr.bf16.gmra.mrb[60].mxu0 %v2383_v30 }
  0xa9   : > { %1234 = vmatmul.mubr.bf16.gmra.mrb[60].mxu1 %v2384_v31 }
 0x103   : > { %v2024_v32 = vpop.f32.mrb[0].mxu0 }
 0x104   : > { %v2136_v33 = vpop.f32.mrb[0].mxu1  ;;  %v2025_v35 = vpop.f32.mrb[1].mxu0 }
 0x105   : > { %v2026_v36 = vadd.f32 %v2025_v35, %v2024_v32  ;;  %v2137_v37 = vpop.f32.mrb[1].mxu1  ;;  %v2027_v38 = vpop.f32.mrb[2].mxu0 }
 0x106   : > { %v2138_v39 = vadd.f32 %v2137_v37, %v2136_v33  ;;  %v2139_v40 = vpop.f32.mrb[2].mxu1  ;;  %v2028_v41 = vpop.f32.mrb[3].mxu0 }
 0x107   : > { %v955_v43 = vadd.f32 %v2026_v36, %v2644_v34  ;;  %v2029_v44 = vadd.f32 %v2028_v41, %v2027_v38  ;;  %v2140_v45 = vpop.f32.mrb[3].mxu1 }
 0x108   : > { %v2141_v46 = vadd.f32 %v2140_v45, %v2139_v40 }
 0x109   : > { %v2662_v47 = vadd.f32 %v2138_v39, %v955_v43  ;;  %v958_v48 = vadd.f32 %v2029_v44, %v2644_v34 }
 0x10b   : > { %1243 = vst.msk [vmem:[%s2660_s22] sm:$0xff] %vm1242_vm1, %v2662_v47  ;;  %v2668_v49 = vadd.f32 %v2141_v46, %v958_v48  ;;  %v2030_v50 = vpop.f32.mrb[4].mxu0 }
 0x10c   : > { %v2142_v51 = vpop.f32.mrb[4].mxu1  ;;  %v2031_v52 = vpop.f32.mrb[5].mxu0 }
 0x10d   : > { %1244 = vst.msk [vmem:[%s2660_s22 + $0x8] sm:$0xff] %vm1242_vm1, %v2668_v49  ;;  %v2032_v53 = vadd.f32 %v2031_v52, %v2030_v50  ;;  %v2143_v54 = vpop.f32.mrb[5].mxu1  ;;  %v2033_v55 = vpop.f32.mrb[6].mxu0 }
 0x10e   : > { %v2144_v56 = vadd.f32 %v2143_v54, %v2142_v51  ;;  %v2145_v57 = vpop.f32.mrb[6].mxu1  ;;  %v2034_v58 = vpop.f32.mrb[7].mxu0 }
 0x10f   : > { %v963_v59 = vadd.f32 %v2032_v53, %v2644_v34  ;;  %v2035_v60 = vadd.f32 %v2034_v58, %v2033_v55  ;;  %v2146_v61 = vpop.f32.mrb[7].mxu1 }
 0x110   : > { %v2147_v62 = vadd.f32 %v2146_v61, %v2145_v57 }
 0x111   : > { %v2674_v63 = vadd.f32 %v2144_v56, %v963_v59  ;;  %v966_v0 = vadd.f32 %v2035_v60, %v2644_v34 }
 0x113   : > { %1245 = vst.msk [vmem:[%s2660_s22 + $0x10] sm:$0xff] %vm1242_vm1, %v2674_v63  ;;  %v2680_v1 = vadd.f32 %v2147_v62, %v966_v0  ;;  %v2036_v2 = vpop.f32.mrb[8].mxu0 }
 0x114   : > { %v2148_v3 = vpop.f32.mrb[8].mxu1  ;;  %v2037_v4 = vpop.f32.mrb[9].mxu0 }
 0x115   : > { %1246 = vst.msk [vmem:[%s2660_s22 + $0x18] sm:$0xff] %vm1242_vm1, %v2680_v1  ;;  %v2038_v5 = vadd.f32 %v2037_v4, %v2036_v2  ;;  %v2149_v6 = vpop.f32.mrb[9].mxu1  ;;  %v2039_v7 = vpop.f32.mrb[10].mxu0 }
 0x116   : > { %v2150_v8 = vadd.f32 %v2149_v6, %v2148_v3  ;;  %v2151_v9 = vpop.f32.mrb[10].mxu1  ;;  %v2040_v10 = vpop.f32.mrb[11].mxu0 }
 0x117   : > { %v971_v11 = vadd.f32 %v2038_v5, %v2644_v34  ;;  %v2041_v12 = vadd.f32 %v2040_v10, %v2039_v7  ;;  %v2152_v13 = vpop.f32.mrb[11].mxu1 }
 0x118   : > { %v2153_v14 = vadd.f32 %v2152_v13, %v2151_v9 }
 0x119   : > { %v2686_v15 = vadd.f32 %v2150_v8, %v971_v11  ;;  %v974_v16 = vadd.f32 %v2041_v12, %v2644_v34 }
 0x11b   : > { %1247 = vst.msk [vmem:[%s2660_s22 + $0x20] sm:$0xff] %vm1242_vm1, %v2686_v15  ;;  %v2692_v17 = vadd.f32 %v2153_v14, %v974_v16  ;;  %v2042_v18 = vpop.f32.mrb[12].mxu0 }
 0x11c   : > { %v2154_v19 = vpop.f32.mrb[12].mxu1  ;;  %v2043_v20 = vpop.f32.mrb[13].mxu0 }
 0x11d   : > { %1248 = vst.msk [vmem:[%s2660_s22 + $0x28] sm:$0xff] %vm1242_vm1, %v2692_v17  ;;  %v2044_v21 = vadd.f32 %v2043_v20, %v2042_v18  ;;  %v2155_v22 = vpop.f32.mrb[13].mxu1  ;;  %v2045_v23 = vpop.f32.mrb[14].mxu0 }
 0x11e   : > { %v2156_v24 = vadd.f32 %v2155_v22, %v2154_v19  ;;  %v2157_v25 = vpop.f32.mrb[14].mxu1  ;;  %v2046_v26 = vpop.f32.mrb[15].mxu0 }
 0x11f   : > { %v979_v27 = vadd.f32 %v2044_v21, %v2644_v34  ;;  %v2047_v28 = vadd.f32 %v2046_v26, %v2045_v23  ;;  %v2158_v29 = vpop.f32.mrb[15].mxu1 }
 0x120   : > { %v2159_v30 = vadd.f32 %v2158_v29, %v2157_v25 }
 0x121   : > { %v2698_v31 = vadd.f32 %v2156_v24, %v979_v27  ;;  %v982_v32 = vadd.f32 %v2047_v28, %v2644_v34 }
 0x123   : > { %1249 = vst.msk [vmem:[%s2660_s22 + $0x30] sm:$0xff] %vm1242_vm1, %v2698_v31  ;;  %v2704_v33 = vadd.f32 %v2159_v30, %v982_v32  ;;  %v2048_v35 = vpop.f32.mrb[16].mxu0 }
 0x124   : > { %v2160_v36 = vpop.f32.mrb[16].mxu1  ;;  %v2049_v37 = vpop.f32.mrb[17].mxu0 }
 0x125   : > { %1250 = vst.msk [vmem:[%s2660_s22 + $0x38] sm:$0xff] %vm1242_vm1, %v2704_v33  ;;  %v2050_v38 = vadd.f32 %v2049_v37, %v2048_v35  ;;  %v2161_v39 = vpop.f32.mrb[17].mxu1  ;;  %v2051_v40 = vpop.f32.mrb[18].mxu0 }
 0x126   : > { %v2162_v41 = vadd.f32 %v2161_v39, %v2160_v36  ;;  %v2163_v42 = vpop.f32.mrb[18].mxu1  ;;  %v2052_v43 = vpop.f32.mrb[19].mxu0 }
 0x127   : > { %v987_v44 = vadd.f32 %v2050_v38, %v2644_v34  ;;  %v2053_v45 = vadd.f32 %v2052_v43, %v2051_v40  ;;  %v2164_v46 = vpop.f32.mrb[19].mxu1 }
 0x128   : > { %v2165_v48 = vadd.f32 %v2164_v46, %v2163_v42 }
 0x129   : > { %v2710_v50 = vadd.f32 %v2162_v41, %v987_v44  ;;  %v990_v51 = vadd.f32 %v2053_v45, %v2644_v34 }
 0x12b   : > { %1251 = vst.msk [vmem:[%s2660_s22 + $0x40] sm:$0xff] %vm1242_vm1, %v2710_v50  ;;  %v2716_v52 = vadd.f32 %v2165_v48, %v990_v51  ;;  %v2054_v53 = vpop.f32.mrb[20].mxu0 }
 0x12c   : > { %v2166_v54 = vpop.f32.mrb[20].mxu1  ;;  %v2055_v55 = vpop.f32.mrb[21].mxu0 }
 0x12d   : > { %1252 = vst.msk [vmem:[%s2660_s22 + $0x48] sm:$0xff] %vm1242_vm1, %v2716_v52  ;;  %v2056_v56 = vadd.f32 %v2055_v55, %v2054_v53  ;;  %v2167_v57 = vpop.f32.mrb[21].mxu1  ;;  %v2057_v58 = vpop.f32.mrb[22].mxu0 }
 0x12e   : > { %v2168_v59 = vadd.f32 %v2167_v57, %v2166_v54  ;;  %v2169_v60 = vpop.f32.mrb[22].mxu1  ;;  %v2058_v61 = vpop.f32.mrb[23].mxu0 }
 0x12f   : > { %v995_v62 = vadd.f32 %v2056_v56, %v2644_v34  ;;  %v2059_v0 = vadd.f32 %v2058_v61, %v2057_v58  ;;  %v2170_v2 = vpop.f32.mrb[23].mxu1 }
 0x130   : > { %v2171_v3 = vadd.f32 %v2170_v2, %v2169_v60 }
 0x131   : > { %v2722_v4 = vadd.f32 %v2168_v59, %v995_v62  ;;  %v998_v5 = vadd.f32 %v2059_v0, %v2644_v34 }
 0x133   : > { %1253 = vst.msk [vmem:[%s2660_s22 + $0x50] sm:$0xff] %vm1242_vm1, %v2722_v4  ;;  %v2728_v6 = vadd.f32 %v2171_v3, %v998_v5  ;;  %v2060_v7 = vpop.f32.mrb[24].mxu0 }
 0x134   : > { %v2172_v8 = vpop.f32.mrb[24].mxu1  ;;  %v2061_v9 = vpop.f32.mrb[25].mxu0 }
 0x135   : > { %1254 = vst.msk [vmem:[%s2660_s22 + $0x58] sm:$0xff] %vm1242_vm1, %v2728_v6  ;;  %v2062_v10 = vadd.f32 %v2061_v9, %v2060_v7  ;;  %v2173_v11 = vpop.f32.mrb[25].mxu1  ;;  %v2063_v12 = vpop.f32.mrb[26].mxu0 }
 0x136   : > { %v2174_v13 = vadd.f32 %v2173_v11, %v2172_v8  ;;  %v2175_v14 = vpop.f32.mrb[26].mxu1  ;;  %v2064_v16 = vpop.f32.mrb[27].mxu0 }
 0x137   : > { %v1003_v18 = vadd.f32 %v2062_v10, %v2644_v34  ;;  %v2065_v19 = vadd.f32 %v2064_v16, %v2063_v12  ;;  %v2176_v20 = vpop.f32.mrb[27].mxu1 }
 0x138   : > { %v2177_v21 = vadd.f32 %v2176_v20, %v2175_v14 }
 0x139   : > { %v2734_v22 = vadd.f32 %v2174_v13, %v1003_v18  ;;  %v1006_v23 = vadd.f32 %v2065_v19, %v2644_v34 }
 0x13b   : > { %1255 = vst.msk [vmem:[%s2660_s22 + $0x60] sm:$0xff] %vm1242_vm1, %v2734_v22  ;;  %v2740_v24 = vadd.f32 %v2177_v21, %v1006_v23  ;;  %v2066_v25 = vpop.f32.mrb[28].mxu0 }
 0x13c   : > { %v2178_v26 = vpop.f32.mrb[28].mxu1  ;;  %v2067_v27 = vpop.f32.mrb[29].mxu0 }
 0x13d   : > { %1256 = vst.msk [vmem:[%s2660_s22 + $0x68] sm:$0xff] %vm1242_vm1, %v2740_v24  ;;  %v2068_v28 = vadd.f32 %v2067_v27, %v2066_v25  ;;  %v2179_v29 = vpop.f32.mrb[29].mxu1  ;;  %v2069_v30 = vpop.f32.mrb[30].mxu0 }
 0x13e   : > { %v2180_v32 = vadd.f32 %v2179_v29, %v2178_v26  ;;  %v2181_v35 = vpop.f32.mrb[30].mxu1  ;;  %v2070_v36 = vpop.f32.mrb[31].mxu0 }
 0x13f   : > { %v1011_v37 = vadd.f32 %v2068_v28, %v2644_v34  ;;  %v2071_v38 = vadd.f32 %v2070_v36, %v2069_v30  ;;  %v2182_v39 = vpop.f32.mrb[31].mxu1 }
 0x140   : > { %v2183_v40 = vadd.f32 %v2182_v39, %v2181_v35 }
 0x141   : > { %v2746_v41 = vadd.f32 %v2180_v32, %v1011_v37  ;;  %v1014_v42 = vadd.f32 %v2071_v38, %v2644_v34 }
 0x143   : > { %1257 = vst.msk [vmem:[%s2660_s22 + $0x70] sm:$0xff] %vm1242_vm1, %v2746_v41  ;;  %v2752_v43 = vadd.f32 %v2183_v40, %v1014_v42  ;;  %v2072_v44 = vpop.f32.mrb[32].mxu0 }
 0x144   : > { %v2184_v45 = vpop.f32.mrb[32].mxu1  ;;  %v2073_v46 = vpop.f32.mrb[33].mxu0 }
 0x145   : > { %1258 = vst.msk [vmem:[%s2660_s22 + $0x78] sm:$0xff] %vm1242_vm1, %v2752_v43  ;;  %v2074_v48 = vadd.f32 %v2073_v46, %v2072_v44  ;;  %v2185_v51 = vpop.f32.mrb[33].mxu1  ;;  %v2075_v53 = vpop.f32.mrb[34].mxu0 }
 0x146   : > { %v2186_v54 = vadd.f32 %v2185_v51, %v2184_v45  ;;  %v2187_v55 = vpop.f32.mrb[34].mxu1  ;;  %v2076_v56 = vpop.f32.mrb[35].mxu0 }
 0x147   : > { %v1019_v57 = vadd.f32 %v2074_v48, %v2644_v34  ;;  %v2077_v58 = vadd.f32 %v2076_v56, %v2075_v53  ;;  %v2188_v59 = vpop.f32.mrb[35].mxu1 }
 0x148   : > { %v2189_v60 = vadd.f32 %v2188_v59, %v2187_v55 }
 0x149   : > { %v2758_v61 = vadd.f32 %v2186_v54, %v1019_v57  ;;  %v1022_v62 = vadd.f32 %v2077_v58, %v2644_v34 }
 0x14b   : > { %1259 = vst.msk [vmem:[%s2660_s22 + $0x80] sm:$0xff] %vm1242_vm1, %v2758_v61  ;;  %v2764_v0 = vadd.f32 %v2189_v60, %v1022_v62  ;;  %v2078_v2 = vpop.f32.mrb[36].mxu0 }
 0x14c   : > { %v2190_v3 = vpop.f32.mrb[36].mxu1  ;;  %v2079_v5 = vpop.f32.mrb[37].mxu0 }
 0x14d   : > { %1260 = vst.msk [vmem:[%s2660_s22 + $0x88] sm:$0xff] %vm1242_vm1, %v2764_v0  ;;  %v2080_v7 = vadd.f32 %v2079_v5, %v2078_v2  ;;  %v2191_v8 = vpop.f32.mrb[37].mxu1  ;;  %v2081_v9 = vpop.f32.mrb[38].mxu0 }
 0x14e   : > { %v2192_v10 = vadd.f32 %v2191_v8, %v2190_v3  ;;  %v2193_v11 = vpop.f32.mrb[38].mxu1  ;;  %v2082_v12 = vpop.f32.mrb[39].mxu0 }
 0x14f   : > { %v1027_v13 = vadd.f32 %v2080_v7, %v2644_v34  ;;  %v2083_v14 = vadd.f32 %v2082_v12, %v2081_v9  ;;  %v2194_v16 = vpop.f32.mrb[39].mxu1 }
 0x150   : > { %v2195_v18 = vadd.f32 %v2194_v16, %v2193_v11 }
 0x151   : > { %v2770_v19 = vadd.f32 %v2192_v10, %v1027_v13  ;;  %v1030_v20 = vadd.f32 %v2083_v14, %v2644_v34 }
 0x153   : > { %1261 = vst.msk [vmem:[%s2660_s22 + $0x90] sm:$0xff] %vm1242_vm1, %v2770_v19  ;;  %v2776_v21 = vadd.f32 %v2195_v18, %v1030_v20  ;;  %v2084_v23 = vpop.f32.mrb[40].mxu0 }
 0x154   : > { %v2196_v25 = vpop.f32.mrb[40].mxu1  ;;  %v2085_v26 = vpop.f32.mrb[41].mxu0 }
 0x155   : > { %1262 = vst.msk [vmem:[%s2660_s22 + $0x98] sm:$0xff] %vm1242_vm1, %v2776_v21  ;;  %v2086_v27 = vadd.f32 %v2085_v26, %v2084_v23  ;;  %v2197_v28 = vpop.f32.mrb[41].mxu1  ;;  %v2087_v29 = vpop.f32.mrb[42].mxu0 }
 0x156   : > { %v2198_v30 = vadd.f32 %v2197_v28, %v2196_v25  ;;  %v2199_v32 = vpop.f32.mrb[42].mxu1  ;;  %v2088_v35 = vpop.f32.mrb[43].mxu0 }
 0x157   : > { %v1035_v36 = vadd.f32 %v2086_v27, %v2644_v34  ;;  %v2089_v37 = vadd.f32 %v2088_v35, %v2087_v29  ;;  %v2200_v38 = vpop.f32.mrb[43].mxu1 }
 0x158   : > { %v2201_v39 = vadd.f32 %v2200_v38, %v2199_v32 }
 0x159   : > { %v2782_v40 = vadd.f32 %v2198_v30, %v1035_v36  ;;  %v1038_v42 = vadd.f32 %v2089_v37, %v2644_v34 }
 0x15b   : > { %1263 = vst.msk [vmem:[%s2660_s22 + $0xa0] sm:$0xff] %vm1242_vm1, %v2782_v40  ;;  %v2788_v44 = vadd.f32 %v2201_v39, %v1038_v42  ;;  %v2090_v45 = vpop.f32.mrb[44].mxu0 }
 0x15c   : > { %v2202_v46 = vpop.f32.mrb[44].mxu1  ;;  %v2091_v48 = vpop.f32.mrb[45].mxu0 }
 0x15d   : > { %1264 = vst.msk [vmem:[%s2660_s22 + $0xa8] sm:$0xff] %vm1242_vm1, %v2788_v44  ;;  %v2092_v51 = vadd.f32 %v2091_v48, %v2090_v45  ;;  %v2203_v53 = vpop.f32.mrb[45].mxu1  ;;  %v2093_v54 = vpop.f32.mrb[46].mxu0 }
 0x15e   : > { %v2204_v55 = vadd.f32 %v2203_v53, %v2202_v46  ;;  %v2205_v56 = vpop.f32.mrb[46].mxu1  ;;  %v2094_v57 = vpop.f32.mrb[47].mxu0 }
 0x15f   : > { %v1043_v58 = vadd.f32 %v2092_v51, %v2644_v34  ;;  %v2095_v59 = vadd.f32 %v2094_v57, %v2093_v54  ;;  %v2206_v60 = vpop.f32.mrb[47].mxu1 }
 0x160   : > { %v2207_v62 = vadd.f32 %v2206_v60, %v2205_v56 }
 0x161   : > { %v2794_v2 = vadd.f32 %v2204_v55, %v1043_v58  ;;  %v1046_v3 = vadd.f32 %v2095_v59, %v2644_v34 }
 0x163   : > { %1265 = vst.msk [vmem:[%s2660_s22 + $0xb0] sm:$0xff] %vm1242_vm1, %v2794_v2  ;;  %v2800_v5 = vadd.f32 %v2207_v62, %v1046_v3  ;;  %v2096_v7 = vpop.f32.mrb[48].mxu0 }
 0x164   : > { %v2208_v8 = vpop.f32.mrb[48].mxu1  ;;  %v2097_v9 = vpop.f32.mrb[49].mxu0 }
 0x165   : > { %1266 = vst.msk [vmem:[%s2660_s22 + $0xb8] sm:$0xff] %vm1242_vm1, %v2800_v5  ;;  %v2098_v10 = vadd.f32 %v2097_v9, %v2096_v7  ;;  %v2209_v11 = vpop.f32.mrb[49].mxu1  ;;  %v2099_v12 = vpop.f32.mrb[50].mxu0 }
 0x166   : > { %v2210_v13 = vadd.f32 %v2209_v11, %v2208_v8  ;;  %v2211_v14 = vpop.f32.mrb[50].mxu1  ;;  %v2100_v16 = vpop.f32.mrb[51].mxu0 }
 0x167   : > { %v1051_v18 = vadd.f32 %v2098_v10, %v2644_v34  ;;  %v2101_v20 = vadd.f32 %v2100_v16, %v2099_v12  ;;  %v2212_v23 = vpop.f32.mrb[51].mxu1 }
 0x168   : > { %v2213_v25 = vadd.f32 %v2212_v23, %v2211_v14 }
 0x169   : > { %v2806_v26 = vadd.f32 %v2210_v13, %v1051_v18  ;;  %v1054_v27 = vadd.f32 %v2101_v20, %v2644_v34 }
 0x16b   : > { %1267 = vst.msk [vmem:[%s2660_s22 + $0xc0] sm:$0xff] %vm1242_vm1, %v2806_v26  ;;  %v2812_v28 = vadd.f32 %v2213_v25, %v1054_v27  ;;  %v2102_v29 = vpop.f32.mrb[52].mxu0 }
 0x16c   : > { %v2214_v30 = vpop.f32.mrb[52].mxu1  ;;  %v2103_v32 = vpop.f32.mrb[53].mxu0 }
 0x16d   : > { %1268 = vst.msk [vmem:[%s2660_s22 + $0xc8] sm:$0xff] %vm1242_vm1, %v2812_v28  ;;  %v2104_v35 = vadd.f32 %v2103_v32, %v2102_v29  ;;  %v2215_v36 = vpop.f32.mrb[53].mxu1  ;;  %v2105_v37 = vpop.f32.mrb[54].mxu0 }
 0x16e   : > { %v2216_v38 = vadd.f32 %v2215_v36, %v2214_v30  ;;  %v2217_v39 = vpop.f32.mrb[54].mxu1  ;;  %v2106_v42 = vpop.f32.mrb[55].mxu0 }
 0x16f   : > { %v1059_v45 = vadd.f32 %v2104_v35, %v2644_v34  ;;  %v2107_v46 = vadd.f32 %v2106_v42, %v2105_v37  ;;  %v2218_v48 = vpop.f32.mrb[55].mxu1 }
 0x170   : > { %v2219_v51 = vadd.f32 %v2218_v48, %v2217_v39  ;;  %v1290_v48 = vsel (!%p2003_p6), %vm1242_vm1, %v2662_v47, 0.0 }
 0x171   : > { %v2818_v53 = vadd.f32 %v2216_v38, %v1059_v45  ;;  %v1062_v54 = vadd.f32 %v2107_v46, %v2644_v34 }
 0x173   : > { %1269 = vst.msk [vmem:[%s2660_s22 + $0xd0] sm:$0xff] %vm1242_vm1, %v2818_v53  ;;  %v2824_v55 = vadd.f32 %v2219_v51, %v1062_v54  ;;  %v2108_v56 = vpop.f32.mrb[56].mxu0  ;;  %v1291_v51 = vsel (!%p2003_p6), %vm1242_vm1, %v2668_v49, 0.0 }
 0x174   : > { %v2220_v57 = vpop.f32.mrb[56].mxu1  ;;  %v2109_v58 = vpop.f32.mrb[57].mxu0  ;;  %v1292_v54 = vadd.f32 (!%p2003_p6), %v1291_v51, %v1290_v48  ;;  %v1368_v48 = vmul.f32 (!%p2003_p6), %v2692_v17, %v2692_v17 }
 0x175   : > { %1270 = vst.msk [vmem:[%s2660_s22 + $0xd8] sm:$0xff] %vm1242_vm1, %v2824_v55  ;;  %v2110_v59 = vadd.f32 %v2109_v58, %v2108_v56  ;;  %v2221_v60 = vpop.f32.mrb[57].mxu1  ;;  %v2111_v62 = vpop.f32.mrb[58].mxu0  ;;  %v1295_v56 = vsel (!%p2003_p6), %vm1242_vm1, %v2680_v1, 0.0  ;;  %v1297_v58 = vsel (!%p2003_p6), %vm1242_vm1, %v2686_v15, 0.0 }
 0x176   : > { %v2222_v3 = vadd.f32 %v2221_v60, %v2220_v57  ;;  %v2223_v7 = vpop.f32.mrb[58].mxu1  ;;  %v2112_v8 = vpop.f32.mrb[59].mxu0  ;;  %v1299_v60 = vsel (!%p2003_p6), %vm1242_vm1, %v2692_v17, 0.0 }
 0x177   : > { %v1067_v9 = vadd.f32 %v2110_v59, %v2644_v34  ;;  %v2113_v10 = vadd.f32 %v2112_v8, %v2111_v62  ;;  %v2224_v11 = vpop.f32.mrb[59].mxu1  ;;  %v1303_v8 = vsel (!%p2003_p6), %vm1242_vm1, %v2704_v33, 0.0 }
 0x178   : > { %v2225_v12 = vadd.f32 %v2224_v11, %v2223_v7 }
 0x179   : > { %v2830_v13 = vadd.f32 %v2222_v3, %v1067_v9  ;;  %v1070_v14 = vadd.f32 %v2113_v10, %v2644_v34  ;;  %v1301_v3 = vsel (!%p2003_p6), %vm1242_vm1, %v2698_v31, 0.0  ;;  %v1305_v10 = vsel (!%p2003_p6), %vm1242_vm1, %v2710_v50, 0.0 }
 0x17b   : > { %3266 = vst [vmem:[#allocation2_spill] sm:$0xff] %v2830_v13  ;;  %1271 = vst.msk [vmem:[%s2660_s22 + $0xe0] sm:$0xff] %vm1242_vm1, %v2830_v13  ;;  %v2836_v16 = vadd.f32 %v2225_v12, %v1070_v14  ;;  %v2114_v18 = vpop.f32.mrb[60].mxu0  ;;  %v1307_v12 = vsel (!%p2003_p6), %vm1242_vm1, %v2716_v52, 0.0  ;;  %v1363_v14 = vmul.f32 (!%p2003_p6), %v2662_v47, %v2662_v47 }
 0x17c   : > { %v2226_v20 = vpop.f32.mrb[60].mxu1  ;;  %v2115_v23 = vpop.f32.mrb[61].mxu0 }
 0x17d   : > { %3267 = vst [vmem:[#allocation3_spill] sm:$0xff] %v2836_v16  ;;  %1272 = vst.msk [vmem:[%s2660_s22 + $0xe8] sm:$0xff] %vm1242_vm1, %v2836_v16  ;;  %v2116_v25 = vadd.f32 %v2115_v23, %v2114_v18  ;;  %v2227_v27 = vpop.f32.mrb[61].mxu1  ;;  %v2117_v29 = vpop.f32.mrb[62].mxu0  ;;  %v1364_v18 = vmul.f32 (!%p2003_p6), %v2668_v49, %v2668_v49 }
 0x17e   : > { %v2228_v30 = vadd.f32 %v2227_v27, %v2226_v20  ;;  %v2229_v32 = vpop.f32.mrb[62].mxu1  ;;  %v2118_v35 = vpop.f32.mrb[63].mxu0  ;;  %v1365_v20 = vmul.f32 (!%p2003_p6), %v2674_v63, %v2674_v63  ;;  %v1366_v27 = vmul.f32 (!%p2003_p6), %v2680_v1, %v2680_v1 }
 0x17f   : > { %v1075_v36 = vadd.f32 %v2116_v25, %v2644_v34  ;;  %v2119_v37 = vadd.f32 %v2118_v35, %v2117_v29  ;;  %v2230_v38 = vpop.f32.mrb[63].mxu1  ;;  %1288 = sbr.rel (%p2003_p6) target bundleno = 469 (0x1d5), region = 40  ;;  %v1309_v25 = vsel (!%p2003_p6), %vm1242_vm1, %v2722_v4, 0.0  ;;  %v1395_v35 = vsel (!%p2003_p6), %vm1242_vm1, %v1363_v14, 0.0 }
 0x180   : > { %v2231_v39 = vadd.f32 %v2230_v38, %v2229_v32  ;;  %v1367_v32 = vmul.f32 (!%p2003_p6), %v2686_v15, %v2686_v15  ;;  %v1400_v51 = vsel (!%p2003_p6), %vm1242_vm1, %v1366_v27, 0.0 }
 0x181   : > { %v2842_v42 = vadd.f32 %v2228_v30, %v1075_v36  ;;  %v1078_v45 = vadd.f32 %v2119_v37, %v2644_v34  ;;  %v1293_v34 = vsel (!%p2003_p6), %vm1242_vm1, %v2674_v63, 0.0  ;;  %v1311_v30 = vsel (!%p2003_p6), %vm1242_vm1, %v2728_v6, 0.0 }
 0x182   : > { %v1294_v57 = vadd.f32 (!%p2003_p6), %v1293_v34, %v1292_v54  ;;  %v1396_v36 = vsel (!%p2003_p6), %vm1242_vm1, %v1364_v18, 0.0  ;;  %v1398_v37 = vsel (!%p2003_p6), %vm1242_vm1, %v1365_v20, 0.0  ;;  %v1321_v20 = vsel (!%p2003_p6), %vm1242_vm1, %v2758_v61, 0.0 }
 0x183   : > { %3268 = vst [vmem:[#allocation4_spill] sm:$0xff] %v2842_v42  ;;  %1273 = vst.msk [vmem:[%s2660_s22 + $0xf0] sm:$0xff] %vm1242_vm1, %v2842_v42  ;;  %v2848_v46 = vadd.f32 %v2231_v39, %v1078_v45  ;;  %v1397_v39 = vadd.f32 (!%p2003_p6), %v1396_v36, %v1395_v35  ;;  %v1313_v45 = vsel (!%p2003_p6), %vm1242_vm1, %v2734_v22, 0.0 }
 0x184   : > { %v1296_v59 = vadd.f32 (!%p2003_p6), %v1295_v56, %v1294_v57  ;;  %v1315_v56 = vsel (!%p2003_p6), %vm1242_vm1, %v2740_v24, 0.0  ;;  %v1369_v57 = vmul.f32 (!%p2003_p6), %v2698_v31, %v2698_v31 }
 0x185   : > { %3269 = vst [vmem:[#allocation5_spill] sm:$0xff] %v2848_v46  ;;  %1274 = vst.msk [vmem:[%s2660_s22 + $0xf8] sm:$0xff] %vm1242_vm1, %v2848_v46  ;;  %v1399_v54 = vadd.f32 (!%p2003_p6), %v1398_v37, %v1397_v39  ;;  %v1374_v39 = vmul.f32 (!%p2003_p6), %v2728_v6, %v2728_v6 }
 0x186   : > { %v1298_v62 = vadd.f32 %v1297_v58, %v1296_v59  ;;  %v1402_v58 = vsel %vm1242_vm1, %v1367_v32, 0.0  ;;  %v1373_v32 = vmul.f32 %v2722_v4, %v2722_v4 }
 0x188   : > { %v1300_v7 = vadd.f32 %v1299_v60, %v1298_v62  ;;  %v1401_v60 = vadd.f32 %v1400_v51, %v1399_v54  ;;  %v1317_v62 = vsel %vm1242_vm1, %v2746_v41, 0.0  ;;  %v1375_v54 = vmul.f32 %v2734_v22, %v2734_v22 }
 0x18a   : > { %v1302_v9 = vadd.f32 %v1301_v3, %v1300_v7  ;;  %v1370_v3 = vmul.f32 %v2704_v33, %v2704_v33  ;;  %v1404_v7 = vsel %vm1242_vm1, %v1368_v48, 0.0 }
 0x18c   : > { %v1304_v11 = vadd.f32 %v1303_v8, %v1302_v9  ;;  %v1403_v9 = vadd.f32 %v1402_v58, %v1401_v60  ;;  %v1376_v60 = vmul.f32 %v2740_v24, %v2740_v24 }
 0x18e   : > { %v1306_v23 = vadd.f32 %v1305_v10, %v1304_v11  ;;  %v1319_v10 = vsel %vm1242_vm1, %v2752_v43, 0.0  ;;  %v1371_v11 = vmul.f32 %v2710_v50, %v2710_v50  ;;  %v1405_v18 = vadd.f32 %v1404_v7, %v1403_v9 }
 0x18f   : > { %v1377_v9 = vmul.f32 %v2746_v41, %v2746_v41 }
 0x190   : > { %v1308_v29 = vadd.f32 %v1307_v12, %v1306_v23  ;;  %v1406_v12 = vsel %vm1242_vm1, %v1369_v57, 0.0  ;;  %v1372_v23 = vmul.f32 %v2716_v52, %v2716_v52  ;;  %v1410_v35 = vsel %vm1242_vm1, %v1371_v11, 0.0 }
 0x192   : > { %v1310_v38 = vadd.f32 %v1309_v25, %v1308_v29  ;;  %v1408_v25 = vsel %vm1242_vm1, %v1370_v3, 0.0  ;;  %v1407_v29 = vadd.f32 %v1406_v12, %v1405_v18  ;;  %v1378_v18 = vmul.f32 %v2752_v43, %v2752_v43 }
 0x194   : > { %v1312_v34 = vadd.f32 %v1311_v30, %v1310_v38  ;;  %v1323_v30 = vsel %vm1242_vm1, %v2764_v0, 0.0  ;;  %v1409_v37 = vadd.f32 %v1408_v25, %v1407_v29  ;;  %v1325_v38 = vsel %vm1242_vm1, %v2770_v19, 0.0 }
 0x195   : > { %v1379_v29 = vmul.f32 %v2758_v61, %v2758_v61 }
 0x196   : > { %v1314_v59 = vadd.f32 %v1313_v45, %v1312_v34  ;;  %v1412_v45 = vsel %vm1242_vm1, %v1372_v23, 0.0  ;;  %v1411_v51 = vadd.f32 %v1410_v35, %v1409_v37  ;;  %v1327_v34 = vsel %vm1242_vm1, %v2776_v21, 0.0 }
 0x197   : > { %v1380_v37 = vmul.f32 %v2764_v0, %v2764_v0 }
 0x198   : > { %v1316_v8 = vadd.f32 %v1315_v56, %v1314_v59  ;;  %v1414_v56 = vsel %vm1242_vm1, %v1373_v32, 0.0  ;;  %v1413_v58 = vadd.f32 %v1412_v45, %v1411_v51  ;;  %v1329_v59 = vsel %vm1242_vm1, %v2782_v40, 0.0 }
 0x199   : > { %v1381_v51 = vmul.f32 %v2770_v19, %v2770_v19 }
 0x19a   : > { %v1318_v14 = vadd.f32 %v1317_v62, %v1316_v8  ;;  %v1416_v62 = vsel %vm1242_vm1, %v1374_v39, 0.0  ;;  %v1415_v7 = vadd.f32 %v1414_v56, %v1413_v58  ;;  %v1331_v8 = vsel %vm1242_vm1, %v2788_v44, 0.0 }
 0x19b   : > { %v1382_v58 = vmul.f32 %v2776_v21, %v2776_v21 }
 0x19c   : > { %v1320_v27 = vadd.f32 %v1319_v10, %v1318_v14  ;;  %v1418_v10 = vsel %vm1242_vm1, %v1375_v54, 0.0  ;;  %v1417_v12 = vadd.f32 %v1416_v62, %v1415_v7  ;;  %v1333_v14 = vsel %vm1242_vm1, %v2794_v2, 0.0 }
 0x19d   : > { %v1383_v7 = vmul.f32 %v2782_v40, %v2782_v40 }
 0x19e   : > { %v1322_v36 = vadd.f32 %v1321_v20, %v1320_v27  ;;  %v1420_v20 = vsel %vm1242_vm1, %v1376_v60, 0.0  ;;  %v1419_v25 = vadd.f32 %v1418_v10, %v1417_v12  ;;  %v1335_v27 = vsel %vm1242_vm1, %v2800_v5, 0.0 }
 0x19f   : > { %v1384_v12 = vmul.f32 %v2788_v44, %v2788_v44 }
 0x1a0   : > { %v1324_v48 = vadd.f32 %v1323_v30, %v1322_v36  ;;  %v1422_v30 = vsel %vm1242_vm1, %v1377_v9, 0.0  ;;  %v1421_v35 = vadd.f32 %v1420_v20, %v1419_v25  ;;  %v1337_v36 = vsel %vm1242_vm1, %v2806_v26, 0.0 }
 0x1a1   : > { %v1385_v25 = vmul.f32 %v2794_v2, %v2794_v2 }
 0x1a2   : > { %v1326_v57 = vadd.f32 %v1325_v38, %v1324_v48  ;;  %v1424_v38 = vsel %vm1242_vm1, %v1378_v18, 0.0  ;;  %v1423_v45 = vadd.f32 %v1422_v30, %v1421_v35  ;;  %v1339_v48 = vsel %vm1242_vm1, %v2812_v28, 0.0 }
 0x1a3   : > { %v1386_v35 = vmul.f32 %v2800_v5, %v2800_v5 }
 0x1a4   : > { %v1328_v3 = vadd.f32 %v1327_v34, %v1326_v57  ;;  %v1426_v34 = vsel %vm1242_vm1, %v1379_v29, 0.0  ;;  %v1425_v56 = vadd.f32 %v1424_v38, %v1423_v45  ;;  %v1341_v57 = vsel %vm1242_vm1, %v2818_v53, 0.0 }
 0x1a5   : > { %v1387_v45 = vmul.f32 %v2806_v26, %v2806_v26 }
 0x1a6   : > { %v1330_v11 = vadd.f32 %v1329_v59, %v1328_v3  ;;  %v1428_v59 = vsel %vm1242_vm1, %v1380_v37, 0.0  ;;  %v1427_v62 = vadd.f32 %v1426_v34, %v1425_v56  ;;  %v1343_v3 = vsel %vm1242_vm1, %v2824_v55, 0.0 }
 0x1a7   : > { %v1440_v56 = vsel %vm1242_vm1, %v1386_v35, 0.0 }
 0x1a8   : > { %v1332_v23 = vadd.f32 %v1331_v8, %v1330_v11  ;;  %v1430_v8 = vsel %vm1242_vm1, %v1381_v51, 0.0  ;;  %v1429_v10 = vadd.f32 %v1428_v59, %v1427_v62  ;;  %v1345_v11 = vsel %vm1242_vm1, %v2830_v13, 0.0 }
 0x1a9   : > { %v1389_v59 = vmul.f32 %v2818_v53, %v2818_v53 }
 0x1aa   : > { %v1334_v32 = vadd.f32 %v1333_v14, %v1332_v23  ;;  %v1432_v14 = vsel %vm1242_vm1, %v1382_v58, 0.0  ;;  %v1431_v20 = vadd.f32 %v1430_v8, %v1429_v10  ;;  %v1347_v23 = vsel %vm1242_vm1, %v2836_v16, 0.0 }
 0x1ac   : > { %v1336_v39 = vadd.f32 %v1335_v27, %v1334_v32  ;;  %v1434_v27 = vsel %vm1242_vm1, %v1383_v7, 0.0  ;;  %v1433_v30 = vadd.f32 %v1432_v14, %v1431_v20  ;;  %v1349_v32 = vsel %vm1242_vm1, %v2842_v42, 0.0 }
 0x1ad   : > { %v1390_v7 = vmul.f32 %v2824_v55, %v2824_v55  ;;  %v1392_v20 = vmul.f32 %v2836_v16, %v2836_v16 }
 0x1ae   : > { %v1338_v54 = vadd.f32 %v1337_v36, %v1336_v39  ;;  %v1436_v36 = vsel %vm1242_vm1, %v1384_v12, 0.0  ;;  %v1435_v38 = vadd.f32 %v1434_v27, %v1433_v30  ;;  %v1351_v39 = vsel %vm1242_vm1, %v2848_v46, 0.0 }
 0x1af   : > { %v1446_v12 = vsel %vm1242_vm1, %v1389_v59, 0.0 }
 0x1b0   : > { %v1340_v60 = vadd.f32 %v1339_v48, %v1338_v54  ;;  %v1438_v48 = vsel %vm1242_vm1, %v1385_v25, 0.0  ;;  %v1437_v34 = vadd.f32 %v1436_v36, %v1435_v38  ;;  %v1388_v54 = vmul.f32 %v2812_v28, %v2812_v28  ;;  %v1289_v36 = vld [vmem:[%s2634_s7] sm:$0x1] }
 0x1b1   : > { %v1452_v38 = vsel %vm1242_vm1, %v1392_v20, 0.0 }
 0x1b2   : > { %v1342_v9 = vadd.f32 %v1341_v57, %v1340_v60  ;;  %v1439_v58 = vadd.f32 %v1438_v48, %v1437_v34  ;;  %v1442_v60 = vsel %vm1242_vm1, %v1387_v45, 0.0  ;;  %v1444_v8 = vsel %vm1242_vm1, %v1388_v54, 0.0 }
 0x1b4   : > { %v1344_v18 = vadd.f32 %v1343_v3, %v1342_v9  ;;  %v1441_v3 = vadd.f32 %v1440_v56, %v1439_v58 }
 0x1b6   : > { %v1346_v29 = vadd.f32 %v1345_v11, %v1344_v18  ;;  %v1443_v10 = vadd.f32 %v1442_v60, %v1441_v3  ;;  %v1391_v11 = vmul.f32 %v2830_v13, %v2830_v13 }
 0x1b8   : > { %v1348_v37 = vadd.f32 %v1347_v23, %v1346_v29  ;;  %v1445_v18 = vadd.f32 %v1444_v8, %v1443_v10  ;;  %v1448_v23 = vsel %vm1242_vm1, %v1390_v7, 0.0  ;;  %v1393_v29 = vmul.f32 %v2842_v42, %v2842_v42  ;;  %v1362_v7 = vld [vmem:[%s2639_s11] sm:$0x1] }
 0x1b9   : > { %v1450_v30 = vsel %vm1242_vm1, %v1391_v11, 0.0 }
 0x1ba   : > { %v1350_v51 = vadd.f32 %v1349_v32, %v1348_v37  ;;  %v1447_v27 = vadd.f32 %v1446_v12, %v1445_v18  ;;  %v1394_v37 = vmul.f32 %v2848_v46, %v2848_v46  ;;  %v1454_v48 = vsel %vm1242_vm1, %v1393_v29, 0.0 }
 0x1bc   : > { %v1352_v57 = vadd.f32 %v1351_v39, %v1350_v51  ;;  %v1449_v35 = vadd.f32 %v1448_v23, %v1447_v27  ;;  %v1456_v54 = vsel %vm1242_vm1, %v1394_v37, 0.0 }
 0x1be   : > { %v1353_v62 = vrot.slane %v1352_v57, 4  ;;  %v1451_v45 = vadd.f32 %v1450_v30, %v1449_v35 }
 0x1c0   : > { %v1354_v9 = vadd.f32 %v1353_v62, %v1352_v57  ;;  %v1453_v34 = vadd.f32 %v1452_v38, %v1451_v45 }
 0x1c2   : > { %v1355_v14 = vrot.slane %v1354_v9, 2  ;;  %v1455_v56 = vadd.f32 %v1454_v48, %v1453_v34 }
 0x1c4   : > { %v1356_v25 = vadd.f32 %v1355_v14, %v1354_v9  ;;  %v1457_v57 = vadd.f32 %v1456_v54, %v1455_v56 }
 0x1c6   : > { %v1357_v32 = vrot.slane %v1356_v25, 1  ;;  %v1458_v58 = vrot.slane %v1457_v57, 4 }
 0x1c8   : > { %v1358_v39 = vadd.f32 %v1357_v32, %v1356_v25  ;;  %v1459_v59 = vadd.f32 %v1458_v58, %v1457_v57 }
 0x1ca   : > { %v1359_v51 = vadd.f32 %v1358_v39, %v1289_v36  ;;  %v1460_v60 = vrot.slane %v1459_v59, 2 }
 0x1cc   : > { %1361 = vst.msk [vmem:[%s2634_s7] sm:$0x1] %vm1279_vm0, %v1359_v51  ;;  %v1461_v62 = vadd.f32 %v1460_v60, %v1459_v59 }
 0x1ce   : > { %v1462_v3 = vrot.slane %v1461_v62, 1 }
 0x1d0   : > { %v1463_v8 = vadd.f32 %v1462_v3, %v1461_v62 }
 0x1d2   : > { %v1464_v9 = vadd.f32 %v1463_v8, %v1362_v7 }
 0x1d4   : > { %1465 = vst.msk [vmem:[%s2639_s11] sm:$0x1] %vm1279_vm0, %v1464_v9 }
 0x1d5 PF: > { %p2004_p7 = scmp.le.s32.totalorder %s2654_s16, 32 }
 0x1d6   : > { %v1470_v10 = vlaneseq (!%p2004_p7)  ;;  %v3027_v18 = vstv (!%p2004_p7), %s2002_s15 }
 0x1d7   : > { %1469 = sbr.rel (%p2004_p7) target bundleno = 577 (0x241), region = 44 }
 0x1d8   : > { %v3021_v11 = vshrl.u32 (!%p2004_p7), %v1470_v10, 7 }
 0x1da   : > { %v1472_v12 = vadd.s32 (!%p2004_p7), 8, %v3021_v11  ;;  %v1473_v14 = vadd.s32 (!%p2004_p7), 16, %v3021_v11  ;;  %v1474_v20 = vadd.s32 (!%p2004_p7), 24, %v3021_v11  ;;  %v1504_v23 = vadd.s32 (!%p2004_p7), %v3027_v18, %v3021_v11 }
 0x1db   : > { %v1475_v25 = vadd.s32 (!%p2004_p7), 32, %v3021_v11  ;;  %v1476_v30 = vadd.s32 (!%p2004_p7), 40, %v3021_v11  ;;  %v1477_v35 = vadd.s32 (!%p2004_p7), 48, %v3021_v11  ;;  %v1478_v37 = vadd.s32 (!%p2004_p7), 56, %v3021_v11 }
 0x1dc   : > { %v1505_v27 = vadd.s32 (!%p2004_p7), %v3027_v18, %v1472_v12  ;;  %v1506_v29 = vadd.s32 (!%p2004_p7), %v3027_v18, %v1473_v14  ;;  %v1507_v32 = vadd.s32 (!%p2004_p7), %v3027_v18, %v1474_v20  ;;  %vm1536_vm2 = vcmp.lt.s32.totalorder (!%p2004_p7), %v1504_v23, 32 }
 0x1dd   : > { %v1508_v36 = vadd.s32 (!%p2004_p7), %v3027_v18, %v1475_v25  ;;  %v1479_v38 = vadd.s32 (!%p2004_p7), 64, %v3021_v11  ;;  %v1480_v39 = vadd.s32 (!%p2004_p7), 72, %v3021_v11  ;;  %v1481_v45 = vadd.s32 (!%p2004_p7), 80, %v3021_v11 }
 0x1de   : > { %vm1537_vm3 = vcmp.lt.s32.totalorder %v1505_v27, 32  ;;  %vm1538_vm4 = vcmp.lt.s32.totalorder %v1506_v29, 32  ;;  %v1482_v48 = vadd.s32 88, %v3021_v11  ;;  %v1509_v51 = vadd.s32 %v3027_v18, %v1476_v30 }
 0x1df   : > { %vm1539_vm5 = vcmp.lt.s32.totalorder %v1507_v32, 32  ;;  %v1568_v34 = vsel %vm1536_vm2, %v2662_v47, 0.0  ;;  %v1483_v54 = vadd.s32 96, %v3021_v11  ;;  %v1569_v56 = vsel %vm1537_vm3, %v2668_v49, 0.0 }
 0x1e0   : > { %v1570_v57 = vsel %vm1538_vm4, %v2674_v63, 0.0  ;;  %v1601_v58 = vsel %vm1242_vm1, %v1568_v34, 0.0  ;;  %v1510_v59 = vadd.s32 %v3027_v18, %v1477_v35  ;;  %vm1540_vm6 = vcmp.lt.s32.totalorder %v1508_v36, 32 }
 0x1e1   : > { %v1602_v60 = vsel %vm1242_vm1, %v1569_v56, 0.0  ;;  %v1604_v62 = vsel %vm1242_vm1, %v1570_v57, 0.0  ;;  %v1484_v3 = vadd.s32 104, %v3021_v11  ;;  %v1485_v7 = vadd.s32 112, %v3021_v11 }
 0x1e2   : > { %v1571_v47 = vsel %vm1539_vm5, %v2680_v1, 0.0  ;;  %v1603_v8 = vadd.f32 %v1602_v60, %v1601_v58  ;;  %v1486_v49 = vadd.s32 120, %v3021_v11  ;;  %v1511_v63 = vadd.s32 %v3027_v18, %v1478_v37 }
 0x1e3   : > { %vm1541_vm7 = vcmp.lt.s32.totalorder %v1509_v51, 32  ;;  %v1606_v9 = vsel %vm1242_vm1, %v1571_v47, 0.0  ;;  %v3060_v10 = vadd.s32 128, %v3021_v11  ;;  %v3063_v12 = vadd.s32 136, %v3021_v11 }
 0x1e4   : > { %v1572_v14 = vsel %vm1540_vm6, %v2686_v15, 0.0  ;;  %v1605_v20 = vadd.f32 %v1604_v62, %v1603_v8  ;;  %v3067_v23 = vadd.s32 144, %v3021_v11  ;;  %v1512_v1 = vadd.s32 %v3027_v18, %v1479_v38 }
 0x1e5   : > { %vm1542_vm8 = vcmp.lt.s32.totalorder %v1510_v59, 32  ;;  %v1608_v25 = vsel %vm1242_vm1, %v1572_v14, 0.0  ;;  %v3072_v27 = vadd.s32 152, %v3021_v11  ;;  %v3075_v29 = vadd.s32 160, %v3021_v11 }
 0x1e6   : > { %v1573_v30 = vsel %vm1541_vm7, %v2692_v17, 0.0  ;;  %v1607_v32 = vadd.f32 %v1606_v9, %v1605_v20  ;;  %v3079_v15 = vadd.s32 168, %v3021_v11  ;;  %v1513_v35 = vadd.s32 %v3027_v18, %v1480_v39 }
 0x1e7   : > { %vm1543_vm9 = vcmp.lt.s32.totalorder %v1511_v63, 32  ;;  %v1610_v36 = vsel %vm1242_vm1, %v1573_v30, 0.0  ;;  %v3084_v37 = vadd.s32 176, %v3021_v11  ;;  %v3087_v38 = vadd.s32 184, %v3021_v11 }
 0x1e8   : > { %v1574_v51 = vsel %vm1542_vm8, %v2698_v31, 0.0  ;;  %v1609_v58 = vadd.f32 %v1608_v25, %v1607_v32  ;;  %v3091_v17 = vadd.s32 192, %v3021_v11  ;;  %v1514_v59 = vadd.s32 %v3027_v18, %v1481_v45 }
 0x1e9   : > { %vm1544_vm10 = vcmp.lt.s32.totalorder %v1512_v1, 32  ;;  %v1612_v39 = vsel %vm1242_vm1, %v1574_v51, 0.0  ;;  %v3096_v60 = vadd.s32 200, %v3021_v11  ;;  %v1515_v62 = vadd.s32 %v3027_v18, %v1482_v48 }
 0x1ea   : > { %v1575_v8 = vsel %vm1543_vm9, %v2704_v33, 0.0  ;;  %v1611_v63 = vadd.f32 %v1610_v36, %v1609_v58  ;;  %v3101_v9 = vadd.s32 208, %v3021_v11  ;;  %v3104_v31 = vadd.s32 216, %v3021_v11 }
 0x1eb   : > { %vm1545_vm11 = vcmp.lt.s32.totalorder %v1513_v35, 32  ;;  %v1614_v45 = vsel %vm1242_vm1, %v1575_v8, 0.0  ;;  %v3108_v20 = vadd.s32 224, %v3021_v11  ;;  %v3111_v1 = vadd.s32 232, %v3021_v11 }
 0x1ec   : > { %v1576_v48 = vsel %vm1544_vm10, %v2710_v50, 0.0  ;;  %v1613_v25 = vadd.f32 %v1612_v39, %v1611_v63  ;;  %v3115_v33 = vadd.s32 240, %v3021_v11  ;;  %v1516_v32 = vadd.s32 %v3027_v18, %v1483_v54 }
 0x1ed   : > { %vm1546_vm12 = vcmp.lt.s32.totalorder %v1514_v59, 32  ;;  %v1616_v36 = vsel %vm1242_vm1, %v1576_v48, 0.0  ;;  %v1517_v35 = vadd.s32 %v3027_v18, %v1484_v3  ;;  %vm1547_vm13 = vcmp.lt.s32.totalorder %v1515_v62, 32 }
 0x1ee   : > { %v1577_v58 = vsel %vm1545_vm11, %v2716_v52, 0.0  ;;  %v1615_v46 = vadd.f32 %v1614_v45, %v1613_v25  ;;  %v1674_v16 = vmul.f32 %v1568_v34, %v1568_v34  ;;  %v1675_v13 = vmul.f32 %v1569_v56, %v1569_v56 }
 0x1ef   : > { %v1618_v42 = vsel %vm1242_vm1, %v1577_v58, 0.0  ;;  %v1676_v50 = vmul.f32 %v1570_v57, %v1570_v57  ;;  %v3123_v39 = vadd.s32 248, %v3021_v11  ;;  %v1518_v63 = vadd.s32 %v3027_v18, %v1485_v7 }
 0x1f0   : > { %v1578_v54 = vsel %vm1546_vm12, %v2722_v4, 0.0  ;;  %v1617_v59 = vadd.f32 %v1616_v36, %v1615_v46  ;;  %vm1548_vm14 = vcmp.lt.s32.totalorder %v1516_v32, 32  ;;  %v3128_v3 = vsel %vm1547_vm13, %v2728_v6, 0.0 }
 0x1f1   : > { %v1620_v52 = vsel %vm1242_vm1, %v1578_v54, 0.0  ;;  %v1677_v62 = vmul.f32 %v1571_v47, %v1571_v47  ;;  %v1519_v45 = vadd.s32 %v3027_v18, %v1486_v49  ;;  %vm1549_vm15 = vcmp.lt.s32.totalorder %v1517_v35, 32 }
 0x1f2   : > { %v1619_v34 = vadd.f32 %v1618_v42, %v1617_v59  ;;  %v1622_v11 = vsel %vm1242_vm1, %v3128_v3, 0.0  ;;  %v1678_v56 = vmul.f32 %v1572_v14, %v1572_v14  ;;  %v1706_v57 = vsel %vm1242_vm1, %v1674_v16, 0.0 }
 0x1f3   : > { %v1707_v4 = vsel %vm1242_vm1, %v1675_v13, 0.0  ;;  %v1709_v46 = vsel %vm1242_vm1, %v1676_v50, 0.0  ;;  %v1520_v6 = vadd.s32 %v3027_v18, %v3060_v10  ;;  %v1580_v7 = vsel %vm1548_vm14, %v2734_v22, 0.0 }
 0x1f4   : > { %v1621_v47 = vadd.f32 %v1620_v52, %v1619_v34  ;;  %v1708_v25 = vadd.f32 %v1707_v4, %v1706_v57  ;;  %vm1550_vm2 = vcmp.lt.s32.totalorder %v1518_v63, 32  ;;  %v1624_v42 = vsel %vm1242_vm1, %v1580_v7, 0.0 }
 0x1f5   : > { %v1679_v49 = vmul.f32 %v1573_v30, %v1573_v30  ;;  %v1711_v32 = vsel %vm1242_vm1, %v1677_v62, 0.0  ;;  %v1521_v16 = vadd.s32 %v3027_v18, %v3063_v12  ;;  %v1581_v13 = vsel %vm1549_vm15, %v2740_v24, 0.0 }
 0x1f6   : > { %v1623_v14 = vadd.f32 %v1622_v11, %v1621_v47  ;;  %v1710_v36 = vadd.f32 %v1709_v46, %v1708_v25  ;;  %vm1551_vm3 = vcmp.lt.s32.totalorder %v1519_v45, 32  ;;  %v1626_v10 = vsel %vm1242_vm1, %v1581_v13, 0.0 }
 0x1f7   : > { %v1680_v22 = vmul.f32 %v1574_v51, %v1574_v51  ;;  %v1713_v50 = vsel %vm1242_vm1, %v1678_v56, 0.0  ;;  %v1522_v63 = vadd.s32 %v3027_v18, %v3067_v23  ;;  %v1582_v30 = vsel %vm1550_vm2, %v2746_v41, 0.0 }
 0x1f8   : > { %v1625_v59 = vadd.f32 %v1624_v42, %v1623_v14  ;;  %v1712_v52 = vadd.f32 %v1711_v32, %v1710_v36  ;;  %vm1552_vm4 = vcmp.lt.s32.totalorder %v1520_v6, 32  ;;  %v1628_v12 = vsel %vm1242_vm1, %v1582_v30, 0.0 }
 0x1f9   : > { %v1681_v35 = vmul.f32 %v1575_v8, %v1575_v8  ;;  %v1715_v24 = vsel %vm1242_vm1, %v1679_v49, 0.0  ;;  %v1523_v62 = vadd.s32 %v3027_v18, %v3072_v27  ;;  %v1583_v51 = vsel %vm1551_vm3, %v2752_v43, 0.0 }
 0x1fa   : > { %v1627_v45 = vadd.f32 %v1626_v10, %v1625_v59  ;;  %v1714_v34 = vadd.f32 %v1713_v50, %v1712_v52  ;;  %vm1553_vm5 = vcmp.lt.s32.totalorder %v1521_v16, 32  ;;  %v1630_v23 = vsel %vm1242_vm1, %v1583_v51, 0.0 }
 0x1fb   : > { %v1682_v11 = vmul.f32 %v1576_v48, %v1576_v48  ;;  %v1717_v41 = vsel %vm1242_vm1, %v1680_v22, 0.0  ;;  %v1524_v56 = vadd.s32 %v3027_v18, %v3075_v29  ;;  %v1584_v8 = vsel %vm1552_vm4, %v2758_v61, 0.0 }
 0x1fc   : > { %v1629_v57 = vadd.f32 %v1628_v12, %v1627_v45  ;;  %v1716_v4 = vadd.f32 %v1715_v24, %v1714_v34  ;;  %vm1554_vm6 = vcmp.lt.s32.totalorder %v1522_v63, 32  ;;  %v1632_v27 = vsel %vm1242_vm1, %v1584_v8, 0.0 }
 0x1fd   : > { %v1683_v46 = vmul.f32 %v1577_v58, %v1577_v58  ;;  %v1719_v43 = vsel %vm1242_vm1, %v1681_v35, 0.0  ;;  %v1525_v6 = vadd.s32 %v3027_v18, %v3079_v15  ;;  %v1585_v48 = vsel %vm1553_vm5, %v2764_v0, 0.0 }
 0x1fe   : > { %v1631_v47 = vadd.f32 %v1630_v23, %v1629_v57  ;;  %v1718_v25 = vadd.f32 %v1717_v41, %v1716_v4  ;;  %vm1555_vm7 = vcmp.lt.s32.totalorder %v1523_v62, 32  ;;  %v1634_v29 = vsel %vm1242_vm1, %v1585_v48, 0.0 }
 0x1ff   : > { %v1684_v42 = vmul.f32 %v1578_v54, %v1578_v54  ;;  %v1721_v61 = vsel %vm1242_vm1, %v1682_v11, 0.0  ;;  %v1526_v49 = vadd.s32 %v3027_v18, %v3084_v37  ;;  %v1586_v58 = vsel %vm1554_vm6, %v2770_v19, 0.0 }
 0x200   : > { %v1633_v32 = vadd.f32 %v1632_v27, %v1631_v47  ;;  %v1720_v16 = vadd.f32 %v1719_v43, %v1718_v25  ;;  %vm1556_vm8 = vcmp.lt.s32.totalorder %v1524_v56, 32  ;;  %v1636_v15 = vsel %vm1242_vm1, %v1586_v58, 0.0 }
 0x201   : > { %v1685_v0 = vmul.f32 %v3128_v3, %v3128_v3  ;;  %v1723_v14 = vsel %vm1242_vm1, %v1683_v46, 0.0  ;;  %v1527_v54 = vadd.s32 %v3027_v18, %v3087_v38  ;;  %v1587_v36 = vsel %vm1555_vm7, %v2776_v21, 0.0 }
 0x202   : > { %v1635_v10 = vadd.f32 %v1634_v29, %v1633_v32  ;;  %v1722_v22 = vadd.f32 %v1721_v61, %v1720_v16  ;;  %vm1557_vm9 = vcmp.lt.s32.totalorder %v1525_v6, 32  ;;  %v1638_v19 = vsel %vm1242_vm1, %v1587_v36, 0.0 }
 0x203   : > { %v1686_v37 = vmul.f32 %v1580_v7, %v1580_v7  ;;  %v1725_v50 = vsel %vm1242_vm1, %v1684_v42, 0.0  ;;  %v1528_v63 = vadd.s32 %v3027_v18, %v3091_v17  ;;  %v1588_v3 = vsel %vm1556_vm8, %v2782_v40, 0.0 }
 0x204   : > { %v1637_v59 = vadd.f32 %v1636_v15, %v1635_v10  ;;  %v1724_v52 = vadd.f32 %v1723_v14, %v1722_v22  ;;  %vm1558_vm10 = vcmp.lt.s32.totalorder %v1526_v49, 32  ;;  %v1640_v38 = vsel %vm1242_vm1, %v1588_v3, 0.0  ;;  %v3270_v22 = vld [vmem:[#allocation2_spill] sm:$0xff] }
 0x205   : > { %v1687_v12 = vmul.f32 %v1581_v13, %v1581_v13  ;;  %v1727_v21 = vsel %vm1242_vm1, %v1685_v0, 0.0  ;;  %v1529_v35 = vadd.s32 %v3027_v18, %v3096_v60  ;;  %v1589_v7 = vsel %vm1557_vm9, %v2788_v44, 0.0 }
 0x206   : > { %v1639_v24 = vadd.f32 %v1638_v19, %v1637_v59  ;;  %v1726_v62 = vadd.f32 %v1725_v50, %v1724_v52  ;;  %vm1559_vm11 = vcmp.lt.s32.totalorder %v1527_v54, 32  ;;  %v1642_v17 = vsel %vm1242_vm1, %v1589_v7, 0.0 }
 0x207   : > { %v1688_v45 = vmul.f32 %v1582_v30, %v1582_v30  ;;  %v1729_v40 = vsel %vm1242_vm1, %v1686_v37, 0.0  ;;  %v1530_v34 = vadd.s32 %v3027_v18, %v3101_v9  ;;  %v1590_v13 = vsel %vm1558_vm10, %v2794_v2, 0.0 }
 0x208   : > { %v1641_v23 = vadd.f32 %v1640_v38, %v1639_v24  ;;  %v1728_v11 = vadd.f32 %v1727_v21, %v1726_v62  ;;  %vm1560_vm12 = vcmp.lt.s32.totalorder %v1528_v63, 32  ;;  %v1644_v60 = vsel %vm1242_vm1, %v1590_v13, 0.0  ;;  %v3272_v21 = vld [vmem:[#allocation4_spill] sm:$0xff] }
 0x209   : > { %v1689_v41 = vmul.f32 %v1583_v51, %v1583_v51  ;;  %v1731_v44 = vsel %vm1242_vm1, %v1687_v12, 0.0  ;;  %v1531_v56 = vadd.s32 %v3027_v18, %v3104_v31  ;;  %v1591_v30 = vsel %vm1559_vm11, %v2800_v5, 0.0 }
 0x20a   : > { %v1643_v57 = vadd.f32 %v1642_v17, %v1641_v23  ;;  %v1730_v4 = vadd.f32 %v1729_v40, %v1728_v11  ;;  %vm1561_vm13 = vcmp.lt.s32.totalorder %v1529_v35, 32  ;;  %v1646_v9 = vsel %vm1242_vm1, %v1591_v30, 0.0  ;;  %v3273_v40 = vld [vmem:[#allocation5_spill] sm:$0xff] }
 0x20b   : > { %v1690_v27 = vmul.f32 %v1584_v8, %v1584_v8  ;;  %v1733_v2 = vsel %vm1242_vm1, %v1688_v45, 0.0  ;;  %v1532_v46 = vadd.s32 %v3027_v18, %v3108_v20  ;;  %v1592_v51 = vsel %vm1560_vm12, %v2806_v26, 0.0 }
 0x20c   : > { %v1645_v43 = vadd.f32 %v1644_v60, %v1643_v57  ;;  %v1732_v6 = vadd.f32 %v1731_v44, %v1730_v4  ;;  %vm1562_vm14 = vcmp.lt.s32.totalorder %v1530_v34, 32  ;;  %v1648_v31 = vsel %vm1242_vm1, %v1592_v51, 0.0 }
 0x20d   : > { %v1691_v47 = vmul.f32 %v1585_v48, %v1585_v48  ;;  %v1735_v5 = vsel %vm1242_vm1, %v1689_v41, 0.0  ;;  %v1533_v25 = vadd.s32 %v3027_v18, %v3111_v1  ;;  %v1593_v8 = vsel %vm1561_vm13, %v2812_v28, 0.0 }
 0x20e   : > { %v1647_v29 = vadd.f32 %v1646_v9, %v1645_v43  ;;  %v1734_v42 = vadd.f32 %v1733_v2, %v1732_v6  ;;  %vm1563_vm15 = vcmp.lt.s32.totalorder %v1531_v56, 32  ;;  %v1650_v20 = vsel %vm1242_vm1, %v1593_v8, 0.0 }
 0x20f   : > { %v1692_v61 = vmul.f32 %v1586_v58, %v1586_v58  ;;  %v1737_v26 = vsel %vm1242_vm1, %v1690_v27, 0.0  ;;  %v1534_v49 = vadd.s32 %v3027_v18, %v3115_v33  ;;  %v1594_v48 = vsel %vm1562_vm14, %v2818_v53, 0.0 }
 0x210   : > { %v1649_v32 = vadd.f32 %v1648_v31, %v1647_v29  ;;  %v1736_v16 = vadd.f32 %v1735_v5, %v1734_v42  ;;  %vm1564_vm2 = vcmp.lt.s32.totalorder %v1532_v46, 32  ;;  %v1652_v1 = vsel %vm1242_vm1, %v1594_v48, 0.0 }
 0x211   : > { %v1693_v15 = vmul.f32 %v1587_v36, %v1587_v36  ;;  %v1739_v28 = vsel %vm1242_vm1, %v1691_v47, 0.0  ;;  %v1535_v0 = vadd.s32 %v3027_v18, %v3123_v39  ;;  %v1595_v58 = vsel %vm1563_vm15, %v2824_v55, 0.0  ;;  %v3271_v39 = vld [vmem:[#allocation3_spill] sm:$0xff] }
 0x212   : > { %v1651_v14 = vadd.f32 %v1650_v20, %v1649_v32  ;;  %v1738_v54 = vadd.f32 %v1737_v26, %v1736_v16  ;;  %vm1565_vm3 = vcmp.lt.s32.totalorder %v1533_v25, 32  ;;  %v1654_v33 = vsel %vm1242_vm1, %v1595_v58, 0.0 }
 0x213   : > { %v1694_v10 = vmul.f32 %v1588_v3, %v1588_v3  ;;  %v1741_v53 = vsel %vm1242_vm1, %v1692_v61, 0.0  ;;  %v1596_v19 = vsel %vm1564_vm2, %v3270_v22, 0.0  ;;  %vm1566_vm4 = vcmp.lt.s32.totalorder %v1534_v49, 32 }
 0x214   : > { %v1653_v37 = vadd.f32 %v1652_v1, %v1651_v14  ;;  %v1740_v50 = vadd.f32 %v1739_v28, %v1738_v54  ;;  %v1656_v36 = vsel %vm1242_vm1, %v1596_v19, 0.0  ;;  %v1695_v63 = vmul.f32 %v1589_v7, %v1589_v7  ;;  %v1600_v1 = vld [vmem:[%s2634_s7] sm:$0x1] }
 0x215   : > { %v1743_v18 = vsel %vm1242_vm1, %v1693_v15, 0.0  ;;  %v1597_v55 = vsel %vm1565_vm3, %v3271_v39, 0.0  ;;  %vm1567_vm5 = vcmp.lt.s32.totalorder %v1535_v0, 32  ;;  %v1696_v3 = vmul.f32 %v1590_v13, %v1590_v13 }
 0x216   : > { %v1655_v59 = vadd.f32 %v1654_v33, %v1653_v37  ;;  %v1742_v52 = vadd.f32 %v1741_v53, %v1740_v50  ;;  %v1658_v38 = vsel %vm1242_vm1, %v1597_v55, 0.0  ;;  %v1745_v12 = vsel %vm1242_vm1, %v1694_v10, 0.0 }
 0x217   : > { %v1598_v35 = vsel %vm1566_vm4, %v3272_v21, 0.0  ;;  %v1697_v45 = vmul.f32 %v1591_v30, %v1591_v30  ;;  %v1747_v7 = vsel %vm1242_vm1, %v1695_v63, 0.0  ;;  %v1599_v34 = vsel %vm1567_vm5, %v3273_v40, 0.0 }
 0x218   : > { %v1657_v24 = vadd.f32 %v1656_v36, %v1655_v59  ;;  %v1744_v62 = vadd.f32 %v1743_v18, %v1742_v52  ;;  %v1660_v17 = vsel %vm1242_vm1, %v1598_v35, 0.0  ;;  %v1662_v60 = vsel %vm1242_vm1, %v1599_v34, 0.0  ;;  %v1673_v18 = vld [vmem:[%s2639_s11] sm:$0x1] }
 0x219   : > { %v1698_v41 = vmul.f32 %v1592_v51, %v1592_v51  ;;  %v1749_v13 = vsel %vm1242_vm1, %v1696_v3, 0.0  ;;  %v1699_v57 = vmul.f32 %v1593_v8, %v1593_v8  ;;  %v1751_v4 = vsel %vm1242_vm1, %v1697_v45, 0.0 }
 0x21a   : > { %v1659_v23 = vadd.f32 %v1658_v38, %v1657_v24  ;;  %v1746_v11 = vadd.f32 %v1745_v12, %v1744_v62  ;;  %v1700_v2 = vmul.f32 %v1594_v48, %v1594_v48  ;;  %v1701_v6 = vmul.f32 %v1595_v58, %v1595_v58 }
 0x21b   : > { %v1753_v30 = vsel %vm1242_vm1, %v1698_v41, 0.0  ;;  %v1755_v31 = vsel %vm1242_vm1, %v1699_v57, 0.0  ;;  %v1702_v5 = vmul.f32 %v1596_v19, %v1596_v19  ;;  %v1703_v42 = vmul.f32 %v1597_v55, %v1597_v55 }
 0x21c   : > { %v1661_v44 = vadd.f32 %v1660_v17, %v1659_v23  ;;  %v1748_v56 = vadd.f32 %v1747_v7, %v1746_v11  ;;  %v1757_v25 = vsel %vm1242_vm1, %v1700_v2, 0.0  ;;  %v1759_v20 = vsel %vm1242_vm1, %v1701_v6, 0.0 }
 0x21d   : > { %v1704_v49 = vmul.f32 %v1598_v35, %v1598_v35  ;;  %v1761_v48 = vsel %vm1242_vm1, %v1702_v5, 0.0  ;;  %v1705_v15 = vmul.f32 %v1599_v34, %v1599_v34  ;;  %v1763_v28 = vsel %vm1242_vm1, %v1703_v42, 0.0 }
 0x21e   : > { %v1663_v9 = vadd.f32 %v1662_v60, %v1661_v44  ;;  %v1750_v27 = vadd.f32 %v1749_v13, %v1748_v56 }
 0x21f   : > { %v1765_v14 = vsel %vm1242_vm1, %v1704_v49, 0.0  ;;  %v1767_v10 = vsel %vm1242_vm1, %v1705_v15, 0.0 }
 0x220   : > { %v1664_v46 = vrot.slane %v1663_v9, 4  ;;  %v1752_v43 = vadd.f32 %v1751_v4, %v1750_v27 }
 0x222   : > { %v1665_v47 = vadd.f32 %v1664_v46, %v1663_v9  ;;  %v1754_v51 = vadd.f32 %v1753_v30, %v1752_v43 }
 0x224   : > { %v1666_v29 = vrot.slane %v1665_v47, 2  ;;  %v1756_v8 = vadd.f32 %v1755_v31, %v1754_v51 }
 0x226   : > { %v1667_v61 = vadd.f32 %v1666_v29, %v1665_v47  ;;  %v1758_v26 = vadd.f32 %v1757_v25, %v1756_v8 }
 0x228   : > { %v1668_v32 = vrot.slane %v1667_v61, 1  ;;  %v1760_v16 = vadd.f32 %v1759_v20, %v1758_v26 }
 0x22a   : > { %v1669_v0 = vadd.f32 %v1668_v32, %v1667_v61  ;;  %v1762_v58 = vadd.f32 %v1761_v48, %v1760_v16 }
 0x22c   : > { %v1670_v54 = vadd.f32 %v1669_v0, %v1600_v1  ;;  %v1764_v33 = vadd.f32 %v1763_v28, %v1762_v58 }
 0x22e   : > { %1672 = vst.msk [vmem:[%s2634_s7] sm:$0x1] %vm1279_vm0, %v1670_v54  ;;  %v1766_v53 = vadd.f32 %v1765_v14, %v1764_v33 }
 0x230   : > { %v1768_v22 = vadd.f32 %v1767_v10, %v1766_v53 }
 0x232   : > { %v1769_v19 = vrot.slane %v1768_v22, 4 }
 0x234   : > { %v1770_v37 = vadd.f32 %v1769_v19, %v1768_v22 }
 0x236   : > { %v1771_v50 = vrot.slane %v1770_v37, 2 }
 0x238   : > { %v1772_v36 = vadd.f32 %v1771_v50, %v1770_v37 }
 0x23a   : > { %v1773_v63 = vrot.slane %v1772_v36, 1 }
 0x23c   : > { %v1774_v39 = vadd.f32 %v1773_v63, %v1772_v36 }
 0x23e   : > { %v1775_v55 = vadd.f32 %v1774_v39, %v1673_v18 }
 0x240   : > { %1776 = vst.msk [vmem:[%s2639_s11] sm:$0x1] %vm1279_vm0, %v1775_v55 }
 0x241 PF: > { %s16_s20 = sadd.s32 1, %s2407_s20   ;;  %s3274_s18 = smov %s2403_s19 }
 0x242   : > { %p13_p8 = scmp.ge.s32.totalorder %s16_s20, 4   ;;  %s3275_s19 = smov %s3277_s21 }
 0x244   :  { %15 = sbr.rel (!%p13_p8) target bundleno = 2 (0x2), region = 98 }

// kernel: apply.9
= control target key start
LH: loop header
LB: loop body
LE: loop exit
PB: predicated region body
PF: predicated region fallthrough
CT: control target
= control target key end

     0   :  { %s3512_s1 = inlined_call_operand.vmem [shape: bf16[1024,128], index: 1, kind: input, shape index: {}]   ;;  %s3513_s0 = inlined_call_operand.vmem [shape: bf16[256,1024], index: 0, kind: input, shape index: {}]   ;;  %s3514_s2 = inlined_call_operand.vmem [shape: f32[1,128], index: 2, kind: input, shape index: {}]   ;;  %s3515_s3 = inlined_call_operand.vmem [shape: f32[256,128], index: 3, kind: output, shape index: {}]  }
   0x1   :  { %v2623_v0 = vld [vmem:[%s3512_s1 + $0x40] sm:$0xff]   ;;  %v2627_v4 = vld [vmem:[%s3512_s1 + $0x48] sm:$0xff]   ;;  %v2631_v8 = vld [vmem:[%s3512_s1 + $0x50] sm:$0xff]  }
   0x2   :  { %v2624_v1 = vld [vmem:[%s3512_s1 + $0xc0] sm:$0xff]   ;;  %2175 = vmatprep.subr.bf16.mxu0 %v2623_v0  ;;  %v2628_v5 = vld [vmem:[%s3512_s1 + $0xc8] sm:$0xff]   ;;  %v2632_v9 = vld [vmem:[%s3512_s1 + $0xd0] sm:$0xff]  }
   0x3   :  { %v2625_v2 = vld [vmem:[%s3512_s1] sm:$0xff]   ;;  %2287 = vmatprep.subr.bf16.mxu1 %v2624_v1  ;;  %v2629_v6 = vld [vmem:[%s3512_s1 + $0x8] sm:$0xff]   ;;  %v2633_v10 = vld [vmem:[%s3512_s1 + $0x10] sm:$0xff]  }
   0x4   :  { %v2626_v3 = vld [vmem:[%s3512_s1 + $0x80] sm:$0xff]   ;;  %2176 = vmatpush3.bf16.msra.mxu0 %v2625_v2  ;;  %v2630_v7 = vld [vmem:[%s3512_s1 + $0x88] sm:$0xff]   ;;  %v2634_v11 = vld [vmem:[%s3512_s1 + $0x90] sm:$0xff]  }
   0x5   :  { %2288 = vmatpush3.bf16.msra.mxu1 %v2626_v3  ;;  %2177 = vmatprep.subr.bf16.mxu0 %v2627_v4  ;;  %v2635_v12 = vld [vmem:[%s3512_s1 + $0x58] sm:$0xff]   ;;  %v2639_v16 = vld [vmem:[%s3512_s1 + $0x60] sm:$0xff]   ;;  %v2643_v20 = vld [vmem:[%s3512_s1 + $0x68] sm:$0xff]  }
   0x6   :  { %2289 = vmatprep.subr.bf16.mxu1 %v2628_v5  ;;  %v2636_v13 = vld [vmem:[%s3512_s1 + $0xd8] sm:$0xff]   ;;  %v2640_v17 = vld [vmem:[%s3512_s1 + $0xe0] sm:$0xff]   ;;  %v2644_v21 = vld [vmem:[%s3512_s1 + $0xe8] sm:$0xff]  }
   0x7   :  { %v2637_v14 = vld [vmem:[%s3512_s1 + $0x18] sm:$0xff]   ;;  %v2641_v18 = vld [vmem:[%s3512_s1 + $0x20] sm:$0xff]   ;;  %v2645_v22 = vld [vmem:[%s3512_s1 + $0x28] sm:$0xff]  }
   0x8   :  { %2178 = vmatpush3.bf16.msra.mxu0 %v2629_v6  ;;  %v2638_v15 = vld [vmem:[%s3512_s1 + $0x98] sm:$0xff]   ;;  %v2642_v19 = vld [vmem:[%s3512_s1 + $0xa0] sm:$0xff]   ;;  %v2646_v23 = vld [vmem:[%s3512_s1 + $0xa8] sm:$0xff]  }
   0x9   :  { %2290 = vmatpush3.bf16.msra.mxu1 %v2630_v7  ;;  %2179 = vmatprep.subr.bf16.mxu0 %v2631_v8  ;;  %v2647_v24 = vld [vmem:[%s3512_s1 + $0x70] sm:$0xff]   ;;  %v2651_v28 = vld [vmem:[%s3512_s1 + $0x78] sm:$0xff]   ;;  %v15_v32 = vld [vmem:[%s3513_s0] sm:$0xff] }
   0xa   :  { %2291 = vmatprep.subr.bf16.mxu1 %v2632_v9  ;;  %v2648_v25 = vld [vmem:[%s3512_s1 + $0xf0] sm:$0xff]   ;;  %v2652_v29 = vld [vmem:[%s3512_s1 + $0xf8] sm:$0xff]   ;;  %v19_v33 = vld [vmem:[%s3513_s0 + $0x20] sm:$0xff] }
   0xb   :  { %v2649_v26 = vld [vmem:[%s3512_s1 + $0x30] sm:$0xff]   ;;  %v2653_v30 = vld [vmem:[%s3512_s1 + $0x38] sm:$0xff]   ;;  %v16_v34 = vld [vmem:[%s3513_s0 + $0x8] sm:$0xff]  ;;  %v1983_v35 = vcombine.low %v15_v32, %v19_v33  ;;  %v1984_v36 = vcombine.high %v15_v32, %v19_v33 }
   0xc   :  { %2180 = vmatpush3.bf16.msra.mxu0 %v2633_v10  ;;  %v2650_v27 = vld [vmem:[%s3512_s1 + $0xb0] sm:$0xff]   ;;  %v2654_v31 = vld [vmem:[%s3512_s1 + $0xb8] sm:$0xff]   ;;  %v20_v37 = vld [vmem:[%s3513_s0 + $0x28] sm:$0xff] }
   0xd   :  { %2292 = vmatpush3.bf16.msra.mxu1 %v2634_v11  ;;  %2181 = vmatprep.subr.bf16.mxu0 %v2635_v12  ;;  %v1985_v38 = vcombine.low %v16_v34, %v20_v37  ;;  %v1986_v39 = vcombine.high %v16_v34, %v20_v37  ;;  %v2655_v40 = vld [vmem:[%s3512_s1 + $0x140] sm:$0xff]   ;;  %v24_v47 = vld [vmem:[%s3513_s0 + $0x48] sm:$0xff]  ;;  %v2663_v2 = vld [vmem:[%s3512_s1 + $0x150] sm:$0xff]  }
   0xe   :  { %2293 = vmatprep.subr.bf16.mxu1 %v2636_v13  ;;  %1334 = vmatprep.mubr.bf16.mxu0 %v1984_v36  ;;  %v2656_v41 = vld [vmem:[%s3512_s1 + $0x100] sm:$0xff]   ;;  %v28_v48 = vld [vmem:[%s3513_s0 + $0x68] sm:$0xff]  ;;  %v2664_v4 = vld [vmem:[%s3512_s1 + $0x110] sm:$0xff]  }
   0xf   :  { %1495 = vmatprep.mubr.bf16.mxu1 %v1986_v39  ;;  %v2657_v42 = vld [vmem:[%s3512_s1 + $0x1c0] sm:$0xff]   ;;  %v1994_v50 = vcombine.high %v24_v47, %v28_v48  ;;  %v32_v52 = vld [vmem:[%s3513_s0 + $0x88] sm:$0xff]  ;;  %v1993_v56 = vcombine.low %v24_v47, %v28_v48  ;;  %v2665_v7 = vld [vmem:[%s3512_s1 + $0x1d0] sm:$0xff]  }
  0x10   :  { %2182 = vmatpush3.bf16.msra.mxu0 %v2637_v14  ;;  %v2658_v43 = vld [vmem:[%s3512_s1 + $0x180] sm:$0xff]   ;;  %v36_v53 = vld [vmem:[%s3513_s0 + $0xa8] sm:$0xff]  ;;  %v2666_v9 = vld [vmem:[%s3512_s1 + $0x190] sm:$0xff]  }
  0x11   :  { %2294 = vmatpush3.bf16.msra.mxu1 %v2638_v15  ;;  %2183 = vmatprep.subr.bf16.mxu0 %v2639_v16  ;;  %v23_v44 = vld [vmem:[%s3513_s0 + $0x40] sm:$0xff]  ;;  %v2659_v55 = vld [vmem:[%s3512_s1 + $0x148] sm:$0xff]   ;;  %v2002_v59 = vcombine.high %v32_v52, %v36_v53  ;;  %v2001_v5 = vcombine.low %v32_v52, %v36_v53  ;;  %v2667_v14 = vld [vmem:[%s3512_s1 + $0x158] sm:$0xff]  }
  0x12   :  { %2295 = vmatprep.subr.bf16.mxu1 %v2640_v17  ;;  %v27_v45 = vld [vmem:[%s3513_s0 + $0x60] sm:$0xff]  ;;  %v2660_v58 = vld [vmem:[%s3512_s1 + $0x108] sm:$0xff]   ;;  %v2668_v15 = vld [vmem:[%s3512_s1 + $0x118] sm:$0xff]  }
  0x13   :  { %v1992_v46 = vcombine.high %v23_v44, %v27_v45  ;;  %v31_v49 = vld [vmem:[%s3513_s0 + $0x80] sm:$0xff]  ;;  %v1991_v54 = vcombine.low %v23_v44, %v27_v45  ;;  %v2661_v60 = vld [vmem:[%s3512_s1 + $0x1c8] sm:$0xff]   ;;  %v2669_v17 = vld [vmem:[%s3512_s1 + $0x1d8] sm:$0xff]  }
  0x14   :  { %2184 = vmatpush3.bf16.msra.mxu0 %v2641_v18  ;;  %v35_v51 = vld [vmem:[%s3513_s0 + $0xa0] sm:$0xff]  ;;  %v2662_v61 = vld [vmem:[%s3512_s1 + $0x188] sm:$0xff]   ;;  %v2680_v47 = vld [vmem:[%s3512_s1 + $0x130] sm:$0xff]  }
  0x15   :  { %2296 = vmatpush3.bf16.msra.mxu1 %v2642_v19  ;;  %2185 = vmatprep.subr.bf16.mxu0 %v2643_v20  ;;  %v2000_v57 = vcombine.high %v31_v49, %v35_v51  ;;  %v39_v62 = vld [vmem:[%s3513_s0 + $0xc0] sm:$0xff]  ;;  %v40_v0 = vld [vmem:[%s3513_s0 + $0xc8] sm:$0xff]  ;;  %v1999_v3 = vcombine.low %v31_v49, %v35_v51  ;;  %v2670_v20 = vld [vmem:[%s3512_s1 + $0x198] sm:$0xff]  }
  0x16   :  { %2297 = vmatprep.subr.bf16.mxu1 %v2644_v21  ;;  %v43_v63 = vld [vmem:[%s3513_s0 + $0xe0] sm:$0xff]  ;;  %v44_v1 = vld [vmem:[%s3513_s0 + $0xe8] sm:$0xff]  ;;  %v2681_v48 = vld [vmem:[%s3512_s1 + $0x1f0] sm:$0xff]  }
  0x17   :  { %v2008_v6 = vcombine.high %v39_v62, %v43_v63  ;;  %v2010_v8 = vcombine.high %v40_v0, %v44_v1  ;;  %v47_v10 = vld [vmem:[%s3513_s0 + $0x100] sm:$0xff]  ;;  %v48_v12 = vld [vmem:[%s3513_s0 + $0x108] sm:$0xff]  ;;  %v2007_v16 = vcombine.low %v39_v62, %v43_v63  ;;  %v2009_v18 = vcombine.low %v40_v0, %v44_v1  ;;  %v2682_v49 = vld [vmem:[%s3512_s1 + $0x1b0] sm:$0xff]  }
  0x18   :  { %2186 = vmatpush3.bf16.msra.mxu0 %v2645_v22  ;;  %v51_v11 = vld [vmem:[%s3513_s0 + $0x120] sm:$0xff]  ;;  %v52_v13 = vld [vmem:[%s3513_s0 + $0x128] sm:$0xff] }
  0x19   :  { %2298 = vmatpush3.bf16.msra.mxu1 %v2646_v23  ;;  %2187 = vmatprep.subr.bf16.mxu0 %v2647_v24  ;;  %v2016_v19 = vcombine.high %v47_v10, %v51_v11  ;;  %v2018_v21 = vcombine.high %v48_v12, %v52_v13  ;;  %v55_v22 = vld [vmem:[%s3513_s0 + $0x140] sm:$0xff]  ;;  %v2675_v34 = vld [vmem:[%s3512_s1 + $0x168] sm:$0xff]  }
  0x1a   :  { %2299 = vmatprep.subr.bf16.mxu1 %v2648_v25  ;;  %v59_v23 = vld [vmem:[%s3513_s0 + $0x160] sm:$0xff]  ;;  %v56_v25 = vld [vmem:[%s3513_s0 + $0x148] sm:$0xff] }
  0x1b   :  { %v2671_v24 = vld [vmem:[%s3512_s1 + $0x160] sm:$0xff]   ;;  %v2024_v32 = vcombine.high %v55_v22, %v59_v23  ;;  %v2676_v36 = vld [vmem:[%s3512_s1 + $0x128] sm:$0xff]  }
  0x1c   :  { %2188 = vmatpush3.bf16.msra.mxu0 %v2649_v26  ;;  %v60_v26 = vld [vmem:[%s3513_s0 + $0x168] sm:$0xff]  ;;  %v75_v51 = vld [vmem:[%s3513_s0 + $0x1e0] sm:$0xff] }
  0x1d   :  { %2300 = vmatpush3.bf16.msra.mxu1 %v2650_v27  ;;  %2189 = vmatprep.subr.bf16.mxu0 %v2651_v28  ;;  %v2672_v27 = vld [vmem:[%s3512_s1 + $0x120] sm:$0xff]   ;;  %v2026_v33 = vcombine.high %v56_v25, %v60_v26  ;;  %v2677_v37 = vld [vmem:[%s3512_s1 + $0x1e8] sm:$0xff]  }
  0x1e   :  { %2301 = vmatprep.subr.bf16.mxu1 %v2652_v29  ;;  %v2673_v28 = vld [vmem:[%s3512_s1 + $0x1e0] sm:$0xff]   ;;  %v2678_v39 = vld [vmem:[%s3512_s1 + $0x1a8] sm:$0xff]  }
  0x1f   :  { %v2674_v29 = vld [vmem:[%s3512_s1 + $0x1a0] sm:$0xff]   ;;  %v72_v52 = vld [vmem:[%s3513_s0 + $0x1c8] sm:$0xff] }
  0x20   :  { %2190 = vmatpush3.bf16.msra.mxu0 %v2653_v30  ;;  %v2015_v30 = vcombine.low %v47_v10, %v51_v11  ;;  %v76_v53 = vld [vmem:[%s3513_s0 + $0x1e8] sm:$0xff]  ;;  %v79_v62 = vld [vmem:[%s3513_s0 + $0x200] sm:$0xff] }
  0x21   :  { %2302 = vmatpush3.bf16.msra.mxu1 %v2654_v31  ;;  %2399 = vmatprep.subr.bf16.mxu0 %v2655_v40  ;;  %v2017_v31 = vcombine.low %v48_v12, %v52_v13  ;;  %v64_v40 = vld [vmem:[%s3513_s0 + $0x188] sm:$0xff]  ;;  %v83_v63 = vld [vmem:[%s3513_s0 + $0x220] sm:$0xff] }
  0x22   :  { %2511 = vmatprep.subr.bf16.mxu1 %v2657_v42  ;;  %v2023_v42 = vcombine.low %v55_v22, %v59_v23  ;;  %v80_v0 = vld [vmem:[%s3513_s0 + $0x208] sm:$0xff]  ;;  %v2047_v10 = vcombine.low %v79_v62, %v83_v63  ;;  %v103_v22 = vld [vmem:[%s3513_s0 + $0x2c0] sm:$0xff] }
  0x23   :  { %1335 = vmatmul.mubr.bf16.vlgmr.msra.gmra.mrb[0].mxu0 %v1983_v35  ;;  %v63_v35 = vld [vmem:[%s3513_s0 + $0x180] sm:$0xff]  ;;  %v84_v1 = vld [vmem:[%s3513_s0 + $0x228] sm:$0xff] }
  0x24   :  { %1496 = vmatmul.mubr.bf16.vlgmr.msra.gmra.mrb[0].mxu1 %v1985_v38  ;;  %2400 = vmatpush3.bf16.msra.mxu0 %v2656_v41  ;;  %v67_v38 = vld [vmem:[%s3513_s0 + $0x1a0] sm:$0xff]  ;;  %v68_v41 = vld [vmem:[%s3513_s0 + $0x1a8] sm:$0xff]  ;;  %v2049_v11 = vcombine.low %v80_v0, %v84_v1 }
  0x25   :  { %2512 = vmatpush3.bf16.msra.mxu1 %v2658_v43  ;;  %1342 = vmatprep.mubr.bf16.mxu0 %v1992_v46  ;;  %v2025_v43 = vcombine.low %v56_v25, %v60_v26  ;;  %v2032_v44 = vcombine.high %v63_v35, %v67_v38  ;;  %v2034_v45 = vcombine.high %v64_v40, %v68_v41  ;;  %v2679_v46 = vld [vmem:[%s3512_s1 + $0x170] sm:$0xff]   ;;  %v107_v23 = vld [vmem:[%s3513_s0 + $0x2e0] sm:$0xff]  ;;  %v108_v25 = vld [vmem:[%s3513_s0 + $0x2e8] sm:$0xff] }
  0x26   :  { %1503 = vmatprep.mubr.bf16.mxu1 %v1994_v50  ;;  %2401 = vmatprep.subr.bf16.mxu0 %v2659_v55  ;;  %v71_v50 = vld [vmem:[%s3513_s0 + $0x1c0] sm:$0xff]  ;;  %v2683_v55 = vld [vmem:[%s3512_s1 + $0x178] sm:$0xff]  }
  0x27   :  { %2513 = vmatprep.subr.bf16.mxu1 %v2661_v60  ;;  %v2685_v60 = vld [vmem:[%s3512_s1 + $0x1f8] sm:$0xff]  }
  0x28   :  { %2402 = vmatpush3.bf16.msra.mxu0 %v2660_v58  ;;  %v2684_v58 = vld [vmem:[%s3512_s1 + $0x138] sm:$0xff]  }
  0x29   :  { %2514 = vmatpush3.bf16.msra.mxu1 %v2662_v61  ;;  %2403 = vmatprep.subr.bf16.mxu0 %v2663_v2  ;;  %v2686_v61 = vld [vmem:[%s3512_s1 + $0x1b8] sm:$0xff]   ;;  %v2039_v2 = vcombine.low %v71_v50, %v75_v51 }
  0x2a   :  { %2515 = vmatprep.subr.bf16.mxu1 %v2665_v7  ;;  %v91_v7 = vld [vmem:[%s3513_s0 + $0x260] sm:$0xff] }
  0x2b   :  { %1343 = vmatmul.mubr.bf16.gmra.mrb[4].mxu0 %v1991_v54  ;;  %v2031_v54 = vcombine.low %v63_v35, %v67_v38  ;;  %v119_v38 = vld [vmem:[%s3513_s0 + $0x340] sm:$0xff] }
  0x2c   :  { %1504 = vmatmul.mubr.bf16.gmra.mrb[4].mxu1 %v1993_v56  ;;  %1350 = vmatprep.mubr.bf16.mxu0 %v2000_v57  ;;  %v2033_v56 = vcombine.low %v64_v40, %v68_v41  ;;  %v2040_v57 = vcombine.high %v71_v50, %v75_v51  ;;  %v120_v40 = vld [vmem:[%s3513_s0 + $0x348] sm:$0xff] }
  0x2d   :  { %1511 = vmatprep.mubr.bf16.mxu1 %v2002_v59  ;;  %2404 = vmatpush3.bf16.msra.mxu0 %v2664_v4  ;;  %v2042_v59 = vcombine.high %v72_v52, %v76_v53  ;;  %v2048_v4 = vcombine.high %v79_v62, %v83_v63  ;;  %v124_v41 = vld [vmem:[%s3513_s0 + $0x368] sm:$0xff]  ;;  %v17_v62 = vld [vmem:[%s3513_s0 + $0x10] sm:$0xff] }
  0x2e   :  { %2516 = vmatpush3.bf16.msra.mxu1 %v2666_v9  ;;  %2405 = vmatprep.subr.bf16.mxu0 %v2667_v14  ;;  %v92_v9 = vld [vmem:[%s3513_s0 + $0x268] sm:$0xff]  ;;  %v95_v14 = vld [vmem:[%s3513_s0 + $0x280] sm:$0xff]  ;;  %v2089_v51 = vcombine.low %v120_v40, %v124_v41  ;;  %v21_v63 = vld [vmem:[%s3513_s0 + $0x30] sm:$0xff] }
  0x2f   :  { %2517 = vmatprep.subr.bf16.mxu1 %v2669_v17  ;;  %v100_v17 = vld [vmem:[%s3513_s0 + $0x2a8] sm:$0xff] }
  0x31   :  { %2406 = vmatpush3.bf16.msra.mxu0 %v2668_v15  ;;  %v99_v15 = vld [vmem:[%s3513_s0 + $0x2a0] sm:$0xff] }
  0x32   :  { %2518 = vmatpush3.bf16.msra.mxu1 %v2670_v20  ;;  %2407 = vmatprep.subr.bf16.mxu0 %v2671_v24  ;;  %v2064_v20 = vcombine.high %v95_v14, %v99_v15  ;;  %v104_v24 = vld [vmem:[%s3513_s0 + $0x2c8] sm:$0xff]  ;;  %v2063_v26 = vcombine.low %v95_v14, %v99_v15  ;;  %v33_v14 = vld [vmem:[%s3513_s0 + $0x90] sm:$0xff] }
  0x33   :  { %1351 = vmatmul.mubr.bf16.gmra.mrb[8].mxu0 %v1999_v3  ;;  %2519 = vmatprep.subr.bf16.mxu1 %v2673_v28  ;;  %v2041_v3 = vcombine.low %v72_v52, %v76_v53  ;;  %v2072_v28 = vcombine.high %v103_v22, %v107_v23  ;;  %v2073_v35 = vcombine.low %v104_v24, %v108_v25  ;;  %v37_v15 = vld [vmem:[%s3513_s0 + $0xb0] sm:$0xff] }
  0x34   :  { %1512 = vmatmul.mubr.bf16.gmra.mrb[8].mxu1 %v2001_v5  ;;  %1358 = vmatprep.mubr.bf16.mxu0 %v2008_v6  ;;  %v2050_v5 = vcombine.high %v80_v0, %v84_v1  ;;  %v87_v6 = vld [vmem:[%s3513_s0 + $0x240] sm:$0xff]  ;;  %v18_v0 = vld [vmem:[%s3513_s0 + $0x18] sm:$0xff] }
  0x35   :  { %1519 = vmatprep.mubr.bf16.mxu1 %v2010_v8  ;;  %2408 = vmatpush3.bf16.msra.mxu0 %v2672_v27  ;;  %v88_v8 = vld [vmem:[%s3513_s0 + $0x248] sm:$0xff]  ;;  %v2056_v12 = vcombine.high %v87_v6, %v91_v7  ;;  %v22_v1 = vld [vmem:[%s3513_s0 + $0x38] sm:$0xff] }
  0x36   :  { %2520 = vmatpush3.bf16.msra.mxu1 %v2674_v29  ;;  %2409 = vmatprep.subr.bf16.mxu0 %v2675_v34  ;;  %v2058_v13 = vcombine.high %v88_v8, %v92_v9  ;;  %v2074_v29 = vcombine.high %v104_v24, %v108_v25  ;;  %v2071_v34 = vcombine.low %v103_v22, %v107_v23  ;;  %v41_v22 = vld [vmem:[%s3513_s0 + $0xd0] sm:$0xff]  ;;  %v42_v24 = vld [vmem:[%s3513_s0 + $0xd8] sm:$0xff] }
  0x37   :  { %2521 = vmatprep.subr.bf16.mxu1 %v2677_v37  ;;  %v45_v23 = vld [vmem:[%s3513_s0 + $0xf0] sm:$0xff]  ;;  %v46_v25 = vld [vmem:[%s3513_s0 + $0xf8] sm:$0xff] }
  0x39   :  { %2410 = vmatpush3.bf16.msra.mxu0 %v2676_v36 }
  0x3a   :  { %2522 = vmatpush3.bf16.msra.mxu1 %v2678_v39  ;;  %2411 = vmatprep.subr.bf16.mxu0 %v2679_v46  ;;  %v123_v39 = vld [vmem:[%s3513_s0 + $0x360] sm:$0xff] }
  0x3b   :  { %1359 = vmatmul.mubr.bf16.gmra.mrb[12].mxu0 %v2007_v16  ;;  %2523 = vmatprep.subr.bf16.mxu1 %v2681_v48  ;;  %v96_v16 = vld [vmem:[%s3513_s0 + $0x288] sm:$0xff]  ;;  %v127_v46 = vld [vmem:[%s3513_s0 + $0x380] sm:$0xff]  ;;  %v2087_v50 = vcombine.low %v119_v38, %v123_v39 }
  0x3c   :  { %1520 = vmatmul.mubr.bf16.gmra.mrb[12].mxu1 %v2009_v18  ;;  %1366 = vmatprep.mubr.bf16.mxu0 %v2016_v19  ;;  %v2055_v18 = vcombine.low %v87_v6, %v91_v7  ;;  %v2057_v19 = vcombine.low %v88_v8, %v92_v9  ;;  %v2065_v27 = vcombine.low %v96_v16, %v100_v17  ;;  %v128_v48 = vld [vmem:[%s3513_s0 + $0x388] sm:$0xff]  ;;  %v25_v6 = vld [vmem:[%s3513_s0 + $0x50] sm:$0xff]  ;;  %v26_v8 = vld [vmem:[%s3513_s0 + $0x58] sm:$0xff] }
  0x3d   :  { %1527 = vmatprep.mubr.bf16.mxu1 %v2018_v21  ;;  %2412 = vmatpush3.bf16.msra.mxu0 %v2680_v47  ;;  %v2066_v21 = vcombine.high %v96_v16, %v100_v17  ;;  %v131_v47 = vld [vmem:[%s3513_s0 + $0x3a0] sm:$0xff]  ;;  %v29_v7 = vld [vmem:[%s3513_s0 + $0x70] sm:$0xff]  ;;  %v30_v9 = vld [vmem:[%s3513_s0 + $0x78] sm:$0xff] }
  0x3e   :  { %2524 = vmatpush3.bf16.msra.mxu1 %v2682_v49  ;;  %2413 = vmatprep.subr.bf16.mxu0 %v2683_v55  ;;  %v132_v49 = vld [vmem:[%s3513_s0 + $0x3a8] sm:$0xff]  ;;  %v2096_v52 = vcombine.high %v127_v46, %v131_v47  ;;  %v139_v55 = vld [vmem:[%s3513_s0 + $0x3e0] sm:$0xff]  ;;  %v34_v16 = vld [vmem:[%s3513_s0 + $0x98] sm:$0xff] }
  0x3f   :  { %2525 = vmatprep.subr.bf16.mxu1 %v2685_v60  ;;  %v2098_v53 = vcombine.high %v128_v48, %v132_v49  ;;  %v38_v17 = vld [vmem:[%s3513_s0 + $0xb8] sm:$0xff] }
  0x41   :  { %2414 = vmatpush3.bf16.msra.mxu0 %v2684_v58  ;;  %v2095_v58 = vcombine.low %v127_v46, %v131_v47  ;;  %v65_v46 = vld [vmem:[%s3513_s0 + $0x190] sm:$0xff] }
  0x42   :  { %2526 = vmatpush3.bf16.msra.mxu1 %v2686_v61  ;;  %v69_v47 = vld [vmem:[%s3513_s0 + $0x1b0] sm:$0xff] }
  0x43   :  { %1367 = vmatmul.mubr.bf16.gmra.mrb[16].mxu0 %v2015_v30  ;;  %v111_v30 = vld [vmem:[%s3513_s0 + $0x300] sm:$0xff] }
  0x44   :  { %1528 = vmatmul.mubr.bf16.gmra.mrb[16].mxu1 %v2017_v31  ;;  %1374 = vmatprep.mubr.bf16.mxu0 %v2024_v32  ;;  %v115_v31 = vld [vmem:[%s3513_s0 + $0x320] sm:$0xff]  ;;  %v112_v32 = vld [vmem:[%s3513_s0 + $0x308] sm:$0xff] }
  0x45   :  { %1535 = vmatprep.mubr.bf16.mxu1 %v2026_v33  ;;  %v116_v33 = vld [vmem:[%s3513_s0 + $0x328] sm:$0xff]  ;;  %v2080_v36 = vcombine.high %v111_v30, %v115_v31 }
  0x46   :  { %v2082_v37 = vcombine.high %v112_v32, %v116_v33 }
  0x4b   :  { %1375 = vmatmul.mubr.bf16.gmra.mrb[20].mxu0 %v2023_v42  ;;  %v2079_v42 = vcombine.low %v111_v30, %v115_v31  ;;  %v49_v30 = vld [vmem:[%s3513_s0 + $0x110] sm:$0xff] }
  0x4c   :  { %1536 = vmatmul.mubr.bf16.gmra.mrb[20].mxu1 %v2025_v43  ;;  %1382 = vmatprep.mubr.bf16.mxu0 %v2032_v44  ;;  %v2081_v43 = vcombine.low %v112_v32, %v116_v33  ;;  %v2088_v44 = vcombine.high %v119_v38, %v123_v39  ;;  %v53_v31 = vld [vmem:[%s3513_s0 + $0x130] sm:$0xff]  ;;  %v50_v32 = vld [vmem:[%s3513_s0 + $0x118] sm:$0xff] }
  0x4d   :  { %1543 = vmatprep.mubr.bf16.mxu1 %v2034_v45  ;;  %v2090_v45 = vcombine.high %v120_v40, %v124_v41  ;;  %v54_v33 = vld [vmem:[%s3513_s0 + $0x138] sm:$0xff]  ;;  %v57_v38 = vld [vmem:[%s3513_s0 + $0x150] sm:$0xff] }
  0x4e   :  { %v61_v39 = vld [vmem:[%s3513_s0 + $0x170] sm:$0xff]  ;;  %v58_v40 = vld [vmem:[%s3513_s0 + $0x158] sm:$0xff] }
  0x4f   :  { %v62_v41 = vld [vmem:[%s3513_s0 + $0x178] sm:$0xff] }
  0x53   :  { %1383 = vmatmul.mubr.bf16.gmra.mrb[24].mxu0 %v2031_v54  ;;  %v135_v54 = vld [vmem:[%s3513_s0 + $0x3c0] sm:$0xff] }
  0x54   :  { %1544 = vmatmul.mubr.bf16.gmra.mrb[24].mxu1 %v2033_v56  ;;  %1390 = vmatprep.mubr.bf16.mxu0 %v2040_v57  ;;  %v136_v56 = vld [vmem:[%s3513_s0 + $0x3c8] sm:$0xff]  ;;  %v2104_v60 = vcombine.high %v135_v54, %v139_v55 }
  0x55   :  { %1551 = vmatprep.mubr.bf16.mxu1 %v2042_v59  ;;  %v140_v57 = vld [vmem:[%s3513_s0 + $0x3e8] sm:$0xff]  ;;  %v2097_v59 = vcombine.low %v128_v48, %v132_v49  ;;  %v66_v48 = vld [vmem:[%s3513_s0 + $0x198] sm:$0xff] }
  0x56   :  { %v2106_v61 = vcombine.high %v136_v56, %v140_v57  ;;  %v70_v49 = vld [vmem:[%s3513_s0 + $0x1b8] sm:$0xff] }
  0x5b   :  { %1391 = vmatmul.mubr.bf16.gmra.mrb[28].mxu0 %v2039_v2  ;;  %v2103_v2 = vcombine.low %v135_v54, %v139_v55  ;;  %v73_v54 = vld [vmem:[%s3513_s0 + $0x1d0] sm:$0xff] }
  0x5c   :  { %1552 = vmatmul.mubr.bf16.gmra.mrb[28].mxu1 %v2041_v3  ;;  %1398 = vmatprep.mubr.bf16.mxu0 %v2048_v4  ;;  %v2105_v3 = vcombine.low %v136_v56, %v140_v57  ;;  %v1988_v4 = vcombine.high %v17_v62, %v21_v63  ;;  %v77_v55 = vld [vmem:[%s3513_s0 + $0x1f0] sm:$0xff]  ;;  %v74_v56 = vld [vmem:[%s3513_s0 + $0x1d8] sm:$0xff] }
  0x5d   :  { %1559 = vmatprep.mubr.bf16.mxu1 %v2050_v5  ;;  %v1990_v5 = vcombine.high %v18_v0, %v22_v1  ;;  %v78_v57 = vld [vmem:[%s3513_s0 + $0x1f8] sm:$0xff] }
  0x63   :  { %1399 = vmatmul.mubr.bf16.gmra.mrb[32].mxu0 %v2047_v10  ;;  %v1987_v10 = vcombine.low %v17_v62, %v21_v63  ;;  %v81_v62 = vld [vmem:[%s3513_s0 + $0x210] sm:$0xff] }
  0x64   :  { %1560 = vmatmul.mubr.bf16.gmra.mrb[32].mxu1 %v2049_v11  ;;  %1406 = vmatprep.mubr.bf16.mxu0 %v2056_v12  ;;  %v1989_v11 = vcombine.low %v18_v0, %v22_v1  ;;  %v1996_v12 = vcombine.high %v25_v6, %v29_v7  ;;  %v85_v63 = vld [vmem:[%s3513_s0 + $0x230] sm:$0xff]  ;;  %v82_v0 = vld [vmem:[%s3513_s0 + $0x218] sm:$0xff] }
  0x65   :  { %1567 = vmatprep.mubr.bf16.mxu1 %v2058_v13  ;;  %v1998_v13 = vcombine.high %v26_v8, %v30_v9  ;;  %v86_v1 = vld [vmem:[%s3513_s0 + $0x238] sm:$0xff] }
  0x6b   :  { %1407 = vmatmul.mubr.bf16.gmra.mrb[36].mxu0 %v2055_v18  ;;  %v1995_v18 = vcombine.low %v25_v6, %v29_v7  ;;  %v89_v6 = vld [vmem:[%s3513_s0 + $0x250] sm:$0xff] }
  0x6c   :  { %1568 = vmatmul.mubr.bf16.gmra.mrb[36].mxu1 %v2057_v19  ;;  %1414 = vmatprep.mubr.bf16.mxu0 %v2064_v20  ;;  %v1997_v19 = vcombine.low %v26_v8, %v30_v9  ;;  %v2004_v20 = vcombine.high %v33_v14, %v37_v15  ;;  %v93_v7 = vld [vmem:[%s3513_s0 + $0x270] sm:$0xff]  ;;  %v90_v8 = vld [vmem:[%s3513_s0 + $0x258] sm:$0xff] }
  0x6d   :  { %1575 = vmatprep.mubr.bf16.mxu1 %v2066_v21  ;;  %v2006_v21 = vcombine.high %v34_v16, %v38_v17  ;;  %v94_v9 = vld [vmem:[%s3513_s0 + $0x278] sm:$0xff] }
  0x73   :  { %1415 = vmatmul.mubr.bf16.gmra.mrb[40].mxu0 %v2063_v26  ;;  %v2003_v26 = vcombine.low %v33_v14, %v37_v15  ;;  %v97_v14 = vld [vmem:[%s3513_s0 + $0x290] sm:$0xff] }
  0x74   :  { %1576 = vmatmul.mubr.bf16.gmra.mrb[40].mxu1 %v2065_v27  ;;  %1422 = vmatprep.mubr.bf16.mxu0 %v2072_v28  ;;  %v2005_v27 = vcombine.low %v34_v16, %v38_v17  ;;  %v2012_v28 = vcombine.high %v41_v22, %v45_v23  ;;  %v101_v15 = vld [vmem:[%s3513_s0 + $0x2b0] sm:$0xff]  ;;  %v98_v16 = vld [vmem:[%s3513_s0 + $0x298] sm:$0xff] }
  0x75   :  { %1583 = vmatprep.mubr.bf16.mxu1 %v2074_v29  ;;  %v2014_v29 = vcombine.high %v42_v24, %v46_v25  ;;  %v102_v17 = vld [vmem:[%s3513_s0 + $0x2b8] sm:$0xff] }
  0x7b   :  { %1423 = vmatmul.mubr.bf16.gmra.mrb[44].mxu0 %v2071_v34  ;;  %v2011_v34 = vcombine.low %v41_v22, %v45_v23  ;;  %v105_v22 = vld [vmem:[%s3513_s0 + $0x2d0] sm:$0xff] }
  0x7c   :  { %1584 = vmatmul.mubr.bf16.gmra.mrb[44].mxu1 %v2073_v35  ;;  %1430 = vmatprep.mubr.bf16.mxu0 %v2080_v36  ;;  %v2013_v35 = vcombine.low %v42_v24, %v46_v25  ;;  %v2020_v36 = vcombine.high %v49_v30, %v53_v31  ;;  %v109_v23 = vld [vmem:[%s3513_s0 + $0x2f0] sm:$0xff]  ;;  %v106_v24 = vld [vmem:[%s3513_s0 + $0x2d8] sm:$0xff] }
  0x7d   :  { %1591 = vmatprep.mubr.bf16.mxu1 %v2082_v37  ;;  %v2022_v37 = vcombine.high %v50_v32, %v54_v33  ;;  %v110_v25 = vld [vmem:[%s3513_s0 + $0x2f8] sm:$0xff] }
  0x83   :  { %1431 = vmatmul.mubr.bf16.gmra.mrb[48].mxu0 %v2079_v42  ;;  %v2019_v42 = vcombine.low %v49_v30, %v53_v31  ;;  %v113_v30 = vld [vmem:[%s3513_s0 + $0x310] sm:$0xff] }
  0x84   :  { %1592 = vmatmul.mubr.bf16.gmra.mrb[48].mxu1 %v2081_v43  ;;  %1438 = vmatprep.mubr.bf16.mxu0 %v2088_v44  ;;  %v2021_v43 = vcombine.low %v50_v32, %v54_v33  ;;  %v2028_v44 = vcombine.high %v57_v38, %v61_v39  ;;  %v117_v31 = vld [vmem:[%s3513_s0 + $0x330] sm:$0xff]  ;;  %v114_v33 = vld [vmem:[%s3513_s0 + $0x318] sm:$0xff] }
  0x85   :  { %1599 = vmatprep.mubr.bf16.mxu1 %v2090_v45  ;;  %v2030_v45 = vcombine.high %v58_v40, %v62_v41 }
  0x8b   :  { %1439 = vmatmul.mubr.bf16.gmra.mrb[52].mxu0 %v2087_v50  ;;  %v2027_v50 = vcombine.low %v57_v38, %v61_v39  ;;  %v2075_v38 = vcombine.low %v105_v22, %v109_v23 }
  0x8c   :  { %1600 = vmatmul.mubr.bf16.gmra.mrb[52].mxu1 %v2089_v51  ;;  %1446 = vmatprep.mubr.bf16.mxu0 %v2096_v52  ;;  %v2029_v51 = vcombine.low %v58_v40, %v62_v41  ;;  %v2036_v52 = vcombine.high %v65_v46, %v69_v47 }
  0x8d   :  { %1607 = vmatprep.mubr.bf16.mxu1 %v2098_v53  ;;  %v2038_v53 = vcombine.high %v66_v48, %v70_v49 }
  0x93   :  { %1447 = vmatmul.mubr.bf16.gmra.mrb[56].mxu0 %v2095_v58  ;;  %v2035_v58 = vcombine.low %v65_v46, %v69_v47 }
  0x94   :  { %1608 = vmatmul.mubr.bf16.gmra.mrb[56].mxu1 %v2097_v59  ;;  %1454 = vmatprep.mubr.bf16.mxu0 %v2104_v60  ;;  %v2037_v59 = vcombine.low %v66_v48, %v70_v49  ;;  %v2044_v60 = vcombine.high %v73_v54, %v77_v55 }
  0x95   :  { %1615 = vmatprep.mubr.bf16.mxu1 %v2106_v61  ;;  %v2046_v61 = vcombine.high %v74_v56, %v78_v57 }
  0x9b   :  { %1455 = vmatmul.mubr.bf16.gmra.mrb[60].mxu0 %v2103_v2  ;;  %v2043_v2 = vcombine.low %v73_v54, %v77_v55  ;;  %v121_v54 = vld [vmem:[%s3513_s0 + $0x350] sm:$0xff] }
  0x9c   :  { %1616 = vmatmul.mubr.bf16.gmra.mrb[60].mxu1 %v2105_v3  ;;  %1656 = vmatprep.mubr.bf16.mxu0 %v1988_v4  ;;  %v2045_v3 = vcombine.low %v74_v56, %v78_v57  ;;  %v2052_v4 = vcombine.high %v81_v62, %v85_v63  ;;  %v125_v55 = vld [vmem:[%s3513_s0 + $0x370] sm:$0xff] }
  0x9d   :  { %1817 = vmatprep.mubr.bf16.mxu1 %v1990_v5  ;;  %v2054_v5 = vcombine.high %v82_v0, %v86_v1 }
  0xa3   :  { %1657 = vmatmul.mubr.bf16.vlgmr.msra.gmra.mrb[64].mxu0 %v1987_v10  ;;  %v2051_v10 = vcombine.low %v81_v62, %v85_v63  ;;  %v2083_v62 = vcombine.low %v113_v30, %v117_v31 }
  0xa4   :  { %1818 = vmatmul.mubr.bf16.vlgmr.msra.gmra.mrb[64].mxu1 %v1989_v11  ;;  %1664 = vmatprep.mubr.bf16.mxu0 %v1996_v12  ;;  %v2053_v11 = vcombine.low %v82_v0, %v86_v1  ;;  %v2060_v12 = vcombine.high %v89_v6, %v93_v7 }
  0xa5   :  { %1825 = vmatprep.mubr.bf16.mxu1 %v1998_v13  ;;  %v2062_v13 = vcombine.high %v90_v8, %v94_v9 }
  0xab   :  { %1665 = vmatmul.mubr.bf16.gmra.mrb[68].mxu0 %v1995_v18  ;;  %v2059_v18 = vcombine.low %v89_v6, %v93_v7 }
  0xac   :  { %1826 = vmatmul.mubr.bf16.gmra.mrb[68].mxu1 %v1997_v19  ;;  %1672 = vmatprep.mubr.bf16.mxu0 %v2004_v20  ;;  %v2061_v19 = vcombine.low %v90_v8, %v94_v9  ;;  %v2068_v20 = vcombine.high %v97_v14, %v101_v15 }
  0xad   :  { %1833 = vmatprep.mubr.bf16.mxu1 %v2006_v21  ;;  %v2070_v21 = vcombine.high %v98_v16, %v102_v17 }
  0xb3   :  { %1673 = vmatmul.mubr.bf16.gmra.mrb[72].mxu0 %v2003_v26  ;;  %v2067_v26 = vcombine.low %v97_v14, %v101_v15  ;;  %v129_v14 = vld [vmem:[%s3513_s0 + $0x390] sm:$0xff] }
  0xb4   :  { %1834 = vmatmul.mubr.bf16.gmra.mrb[72].mxu1 %v2005_v27  ;;  %1680 = vmatprep.mubr.bf16.mxu0 %v2012_v28  ;;  %v2069_v27 = vcombine.low %v98_v16, %v102_v17  ;;  %v2076_v28 = vcombine.high %v105_v22, %v109_v23  ;;  %v133_v15 = vld [vmem:[%s3513_s0 + $0x3b0] sm:$0xff]  ;;  %v2091_v22 = vcombine.low %v121_v54, %v125_v55 }
  0xb5   :  { %1841 = vmatprep.mubr.bf16.mxu1 %v2014_v29  ;;  %v2078_v29 = vcombine.high %v106_v24, %v110_v25 }
  0xbb   :  { %1681 = vmatmul.mubr.bf16.gmra.mrb[76].mxu0 %v2011_v34  ;;  %v118_v34 = vld [vmem:[%s3513_s0 + $0x338] sm:$0xff] }
  0xbc   :  { %1842 = vmatmul.mubr.bf16.gmra.mrb[76].mxu1 %v2013_v35  ;;  %1688 = vmatprep.mubr.bf16.mxu0 %v2020_v36  ;;  %v3250_v36 = vld [vmem:[%s3514_s2] ss:$0 sm:$0xff]  ;;  %v2086_v47 = vcombine.high %v114_v33, %v118_v34 }
  0xbd   :  { %1849 = vmatprep.mubr.bf16.mxu1 %v2022_v37 }
  0xc3   :  { %1689 = vmatmul.mubr.bf16.gmra.mrb[80].mxu0 %v2019_v42  ;;  %v2077_v42 = vcombine.low %v106_v24, %v110_v25 }
  0xc4   :  { %1850 = vmatmul.mubr.bf16.gmra.mrb[80].mxu1 %v2021_v43  ;;  %1696 = vmatprep.mubr.bf16.mxu0 %v2028_v44  ;;  %v2084_v43 = vcombine.high %v113_v30, %v117_v31 }
  0xc5   :  { %1857 = vmatprep.mubr.bf16.mxu1 %v2030_v45 }
  0xcb   :  { %1697 = vmatmul.mubr.bf16.gmra.mrb[84].mxu0 %v2027_v50 }
  0xcc   :  { %1858 = vmatmul.mubr.bf16.gmra.mrb[84].mxu1 %v2029_v51  ;;  %1704 = vmatprep.mubr.bf16.mxu0 %v2036_v52 }
  0xcd   :  { %1865 = vmatprep.mubr.bf16.mxu1 %v2038_v53 }
  0xd3   :  { %1705 = vmatmul.mubr.bf16.gmra.mrb[88].mxu0 %v2035_v58  ;;  %v122_v58 = vld [vmem:[%s3513_s0 + $0x358] sm:$0xff] }
  0xd4   :  { %1866 = vmatmul.mubr.bf16.gmra.mrb[88].mxu1 %v2037_v59  ;;  %1712 = vmatprep.mubr.bf16.mxu0 %v2044_v60  ;;  %v126_v59 = vld [vmem:[%s3513_s0 + $0x378] sm:$0xff] }
  0xd5   :  { %1873 = vmatprep.mubr.bf16.mxu1 %v2046_v61  ;;  %v2094_v7 = vcombine.high %v122_v58, %v126_v59 }
  0xdb   :  { %1713 = vmatmul.mubr.bf16.gmra.mrb[92].mxu0 %v2043_v2  ;;  %v2085_v2 = vcombine.low %v114_v33, %v118_v34 }
  0xdc   :  { %1874 = vmatmul.mubr.bf16.gmra.mrb[92].mxu1 %v2045_v3  ;;  %1720 = vmatprep.mubr.bf16.mxu0 %v2052_v4  ;;  %v2092_v3 = vcombine.high %v121_v54, %v125_v55 }
  0xdd   :  { %1881 = vmatprep.mubr.bf16.mxu1 %v2054_v5 }
  0xe3   :  { %1721 = vmatmul.mubr.bf16.gmra.mrb[96].mxu0 %v2051_v10 }
  0xe4   :  { %1882 = vmatmul.mubr.bf16.gmra.mrb[96].mxu1 %v2053_v11  ;;  %1728 = vmatprep.mubr.bf16.mxu0 %v2060_v12 }
  0xe5   :  { %1889 = vmatprep.mubr.bf16.mxu1 %v2062_v13 }
  0xeb   :  { %1729 = vmatmul.mubr.bf16.gmra.mrb[100].mxu0 %v2059_v18  ;;  %v130_v18 = vld [vmem:[%s3513_s0 + $0x398] sm:$0xff] }
  0xec   :  { %1890 = vmatmul.mubr.bf16.gmra.mrb[100].mxu1 %v2061_v19  ;;  %1736 = vmatprep.mubr.bf16.mxu0 %v2068_v20  ;;  %v134_v19 = vld [vmem:[%s3513_s0 + $0x3b8] sm:$0xff] }
  0xed   :  { %1897 = vmatprep.mubr.bf16.mxu1 %v2070_v21  ;;  %v2102_v31 = vcombine.high %v130_v18, %v134_v19 }
  0xf3   :  { %1737 = vmatmul.mubr.bf16.gmra.mrb[104].mxu0 %v2067_v26  ;;  %v2093_v26 = vcombine.low %v122_v58, %v126_v59 }
  0xf4   :  { %1898 = vmatmul.mubr.bf16.gmra.mrb[104].mxu1 %v2069_v27  ;;  %1744 = vmatprep.mubr.bf16.mxu0 %v2076_v28  ;;  %v2100_v27 = vcombine.high %v129_v14, %v133_v15 }
  0xf5   :  { %1905 = vmatprep.mubr.bf16.mxu1 %v2078_v29 }
  0xf6   :  { %v2191_v32 = vpop.f32.mrb[0].mxu0 }
  0xf7   :  { %v2303_v35 = vpop.f32.mrb[0].mxu1  ;;  %v2192_v37 = vpop.f32.mrb[1].mxu0 }
  0xf8   :  { %v2193_v39 = vadd.f32 %v2192_v37, %v2191_v32  ;;  %v2304_v40 = vpop.f32.mrb[1].mxu1  ;;  %v2194_v41 = vpop.f32.mrb[2].mxu0 }
  0xf9   :  { %v2305_v44 = vadd.f32 %v2304_v40, %v2303_v35  ;;  %v2306_v45 = vpop.f32.mrb[2].mxu1  ;;  %v2195_v46 = vpop.f32.mrb[3].mxu0  ;;  %v141_v40 = vld [vmem:[%s3513_s0 + $0x3f0] sm:$0xff] }
  0xfa   :  { %v1337_v48 = vadd.f32 %v2193_v39, %v3250_v36  ;;  %v2196_v49 = vadd.f32 %v2195_v46, %v2194_v41  ;;  %v2307_v50 = vpop.f32.mrb[3].mxu1  ;;  %v137_v39 = vld [vmem:[%s3513_s0 + $0x3d0] sm:$0xff] }
  0xfb   :  { %v2308_v51 = vadd.f32 %v2307_v50, %v2306_v45  ;;  %1745 = vmatmul.mubr.bf16.gmra.mrb[108].mxu0 %v2075_v38 }
  0xfc   :  { %v3253_v52 = vadd.f32 %v2305_v44, %v1337_v48  ;;  %v1340_v53 = vadd.f32 %v2196_v49, %v3250_v36  ;;  %1906 = vmatmul.mubr.bf16.gmra.mrb[108].mxu1 %v2077_v42  ;;  %1752 = vmatprep.mubr.bf16.mxu0 %v2084_v43  ;;  %v138_v43 = vld [vmem:[%s3513_s0 + $0x3d8] sm:$0xff] }
  0xfd   :  { %1913 = vmatprep.mubr.bf16.mxu1 %v2086_v47  ;;  %v142_v44 = vld [vmem:[%s3513_s0 + $0x3f8] sm:$0xff]  ;;  %v2099_v47 = vcombine.low %v129_v14, %v133_v15 }
  0xfe   :  { %v3262_v56 = vadd.f32 %v2308_v51, %v1340_v53  ;;  %v2197_v57 = vpop.f32.mrb[4].mxu0  ;;  %v2101_v51 = vcombine.low %v130_v18, %v134_v19  ;;  %v2108_v53 = vcombine.high %v137_v39, %v141_v40  ;;  %v2110_v58 = vcombine.high %v138_v43, %v142_v44 }
  0xff   :  { %v2309_v60 = vpop.f32.mrb[4].mxu1  ;;  %v2198_v61 = vpop.f32.mrb[5].mxu0 }
 0x100   :  { %v2199_v63 = vadd.f32 %v2198_v61, %v2197_v57  ;;  %v2310_v0 = vpop.f32.mrb[5].mxu1  ;;  %v2200_v1 = vpop.f32.mrb[6].mxu0 }
 0x101   :  { %v2311_v4 = vadd.f32 %v2310_v0, %v2309_v60  ;;  %v2312_v5 = vpop.f32.mrb[6].mxu1  ;;  %v2201_v6 = vpop.f32.mrb[7].mxu0 }
 0x102   :  { %v1345_v8 = vadd.f32 %v2199_v63, %v3250_v36  ;;  %v2202_v9 = vadd.f32 %v2201_v6, %v2200_v1  ;;  %v2313_v10 = vpop.f32.mrb[7].mxu1 }
 0x103   :  { %v2314_v11 = vadd.f32 %v2313_v10, %v2312_v5  ;;  %1753 = vmatmul.mubr.bf16.gmra.mrb[112].mxu0 %v2083_v62  ;;  %v2107_v5 = vcombine.low %v137_v39, %v141_v40 }
 0x104   :  { %v3271_v12 = vadd.f32 %v2311_v4, %v1345_v8  ;;  %v1348_v13 = vadd.f32 %v2202_v9, %v3250_v36  ;;  %1914 = vmatmul.mubr.bf16.gmra.mrb[112].mxu1 %v2085_v2  ;;  %1760 = vmatprep.mubr.bf16.mxu0 %v2092_v3  ;;  %v2109_v9 = vcombine.low %v138_v43, %v142_v44 }
 0x105   :  { %1921 = vmatprep.mubr.bf16.mxu1 %v2094_v7 }
 0x106   :  { %v3280_v16 = vadd.f32 %v2314_v11, %v1348_v13  ;;  %v2203_v17 = vpop.f32.mrb[8].mxu0 }
 0x107   :  { %v2315_v20 = vpop.f32.mrb[8].mxu1  ;;  %v2204_v21 = vpop.f32.mrb[9].mxu0 }
 0x108   :  { %v2205_v23 = vadd.f32 %v2204_v21, %v2203_v17  ;;  %v2316_v24 = vpop.f32.mrb[9].mxu1  ;;  %v2206_v25 = vpop.f32.mrb[10].mxu0 }
 0x109   :  { %v2317_v28 = vadd.f32 %v2316_v24, %v2315_v20  ;;  %v2318_v29 = vpop.f32.mrb[10].mxu1  ;;  %v2207_v30 = vpop.f32.mrb[11].mxu0 }
 0x10a   :  { %v1353_v32 = vadd.f32 %v2205_v23, %v3250_v36  ;;  %v2208_v33 = vadd.f32 %v2207_v30, %v2206_v25  ;;  %v2319_v34 = vpop.f32.mrb[11].mxu1 }
 0x10b   :  { %v2320_v35 = vadd.f32 %v2319_v34, %v2318_v29  ;;  %1761 = vmatmul.mubr.bf16.gmra.mrb[116].mxu0 %v2091_v22 }
 0x10c   :  { %v3289_v37 = vadd.f32 %v2317_v28, %v1353_v32  ;;  %v1356_v38 = vadd.f32 %v2208_v33, %v3250_v36  ;;  %1922 = vmatmul.mubr.bf16.gmra.mrb[116].mxu1 %v2093_v26  ;;  %1768 = vmatprep.mubr.bf16.mxu0 %v2100_v27 }
 0x10d   :  { %1929 = vmatprep.mubr.bf16.mxu1 %v2102_v31 }
 0x10e   :  { %v3298_v41 = vadd.f32 %v2320_v35, %v1356_v38  ;;  %v2209_v42 = vpop.f32.mrb[12].mxu0 }
 0x10f   :  { %v2321_v45 = vpop.f32.mrb[12].mxu1  ;;  %v2210_v46 = vpop.f32.mrb[13].mxu0 }
 0x110   :  { %v2211_v48 = vadd.f32 %v2210_v46, %v2209_v42  ;;  %v2322_v49 = vpop.f32.mrb[13].mxu1  ;;  %v2212_v50 = vpop.f32.mrb[14].mxu0 }
 0x111   :  { %v2323_v54 = vadd.f32 %v2322_v49, %v2321_v45  ;;  %v2324_v55 = vpop.f32.mrb[14].mxu1  ;;  %v2213_v57 = vpop.f32.mrb[15].mxu0 }
 0x112   :  { %v1361_v59 = vadd.f32 %v2211_v48, %v3250_v36  ;;  %v2214_v60 = vadd.f32 %v2213_v57, %v2212_v50  ;;  %v2325_v61 = vpop.f32.mrb[15].mxu1 }
 0x113   :  { %v2326_v62 = vadd.f32 %v2325_v61, %v2324_v55  ;;  %1769 = vmatmul.mubr.bf16.gmra.mrb[120].mxu0 %v2099_v47 }
 0x114   :  { %v3307_v63 = vadd.f32 %v2323_v54, %v1361_v59  ;;  %v1364_v0 = vadd.f32 %v2214_v60, %v3250_v36  ;;  %1930 = vmatmul.mubr.bf16.gmra.mrb[120].mxu1 %v2101_v51  ;;  %1776 = vmatprep.mubr.bf16.mxu0 %v2108_v53 }
 0x115   :  { %1937 = vmatprep.mubr.bf16.mxu1 %v2110_v58 }
 0x116   :  { %v3310_v1 = vadd.f32 %v2326_v62, %v1364_v0  ;;  %v2215_v2 = vpop.f32.mrb[16].mxu0 }
 0x117   :  { %v2327_v3 = vpop.f32.mrb[16].mxu1  ;;  %v2216_v4 = vpop.f32.mrb[17].mxu0 }
 0x118   :  { %v2217_v6 = vadd.f32 %v2216_v4, %v2215_v2  ;;  %v2328_v7 = vpop.f32.mrb[17].mxu1  ;;  %v2218_v8 = vpop.f32.mrb[18].mxu0 }
 0x119   :  { %v2329_v10 = vadd.f32 %v2328_v7, %v2327_v3  ;;  %v2330_v11 = vpop.f32.mrb[18].mxu1  ;;  %v2219_v13 = vpop.f32.mrb[19].mxu0 }
 0x11a   :  { %v1369_v14 = vadd.f32 %v2217_v6, %v3250_v36  ;;  %v2220_v15 = vadd.f32 %v2219_v13, %v2218_v8  ;;  %v2331_v17 = vpop.f32.mrb[19].mxu1 }
 0x11b   :  { %v2332_v18 = vadd.f32 %v2331_v17, %v2330_v11  ;;  %1777 = vmatmul.mubr.bf16.gmra.mrb[124].mxu0 %v2107_v5 }
 0x11c   :  { %v3313_v19 = vadd.f32 %v2329_v10, %v1369_v14  ;;  %v1372_v20 = vadd.f32 %v2220_v15, %v3250_v36  ;;  %1938 = vmatmul.mubr.bf16.gmra.mrb[124].mxu1 %v2109_v9 }
 0x11e   :  { %v3316_v21 = vadd.f32 %v2332_v18, %v1372_v20  ;;  %v2221_v22 = vpop.f32.mrb[20].mxu0 }
 0x11f   :  { %v2333_v23 = vpop.f32.mrb[20].mxu1  ;;  %v2222_v24 = vpop.f32.mrb[21].mxu0 }
 0x120   :  { %v2223_v25 = vadd.f32 %v2222_v24, %v2221_v22  ;;  %v2334_v26 = vpop.f32.mrb[21].mxu1  ;;  %v2224_v27 = vpop.f32.mrb[22].mxu0 }
 0x121   :  { %v2335_v28 = vadd.f32 %v2334_v26, %v2333_v23  ;;  %v2336_v29 = vpop.f32.mrb[22].mxu1  ;;  %v2225_v30 = vpop.f32.mrb[23].mxu0 }
 0x122   :  { %v1377_v31 = vadd.f32 %v2223_v25, %v3250_v36  ;;  %v2226_v32 = vadd.f32 %v2225_v30, %v2224_v27  ;;  %v2337_v33 = vpop.f32.mrb[23].mxu1 }
 0x123   :  { %v2338_v34 = vadd.f32 %v2337_v33, %v2336_v29 }
 0x124   :  { %v3319_v35 = vadd.f32 %v2335_v28, %v1377_v31  ;;  %v1380_v38 = vadd.f32 %v2226_v32, %v3250_v36 }
 0x126   :  { %v3322_v39 = vadd.f32 %v2338_v34, %v1380_v38  ;;  %v2227_v40 = vpop.f32.mrb[24].mxu0 }
 0x127   :  { %v2339_v42 = vpop.f32.mrb[24].mxu1  ;;  %v2228_v43 = vpop.f32.mrb[25].mxu0 }
 0x128   :  { %v2229_v44 = vadd.f32 %v2228_v43, %v2227_v40  ;;  %v2340_v45 = vpop.f32.mrb[25].mxu1  ;;  %v2230_v46 = vpop.f32.mrb[26].mxu0 }
 0x129   :  { %v2341_v47 = vadd.f32 %v2340_v45, %v2339_v42  ;;  %v2342_v48 = vpop.f32.mrb[26].mxu1  ;;  %v2231_v49 = vpop.f32.mrb[27].mxu0 }
 0x12a   :  { %v1385_v50 = vadd.f32 %v2229_v44, %v3250_v36  ;;  %v2232_v51 = vadd.f32 %v2231_v49, %v2230_v46  ;;  %v2343_v53 = vpop.f32.mrb[27].mxu1 }
 0x12b   :  { %v2344_v54 = vadd.f32 %v2343_v53, %v2342_v48 }
 0x12c   :  { %v3325_v55 = vadd.f32 %v2341_v47, %v1385_v50  ;;  %v1388_v57 = vadd.f32 %v2232_v51, %v3250_v36 }
 0x12e   :  { %v3328_v58 = vadd.f32 %v2344_v54, %v1388_v57  ;;  %v2233_v59 = vpop.f32.mrb[28].mxu0 }
 0x12f   :  { %v2345_v60 = vpop.f32.mrb[28].mxu1  ;;  %v2234_v61 = vpop.f32.mrb[29].mxu0 }
 0x130   :  { %v2235_v62 = vadd.f32 %v2234_v61, %v2233_v59  ;;  %v2346_v0 = vpop.f32.mrb[29].mxu1  ;;  %v2236_v2 = vpop.f32.mrb[30].mxu0 }
 0x131   :  { %v2347_v3 = vadd.f32 %v2346_v0, %v2345_v60  ;;  %v2348_v4 = vpop.f32.mrb[30].mxu1  ;;  %v2237_v5 = vpop.f32.mrb[31].mxu0 }
 0x132   :  { %v1393_v6 = vadd.f32 %v2235_v62, %v3250_v36  ;;  %v2238_v7 = vadd.f32 %v2237_v5, %v2236_v2  ;;  %v2349_v8 = vpop.f32.mrb[31].mxu1 }
 0x133   :  { %v2350_v9 = vadd.f32 %v2349_v8, %v2348_v4 }
 0x134   :  { %v3331_v10 = vadd.f32 %v2347_v3, %v1393_v6  ;;  %v1396_v11 = vadd.f32 %v2238_v7, %v3250_v36 }
 0x136   :  { %v3334_v13 = vadd.f32 %v2350_v9, %v1396_v11  ;;  %v2239_v14 = vpop.f32.mrb[32].mxu0 }
 0x137   :  { %v2351_v15 = vpop.f32.mrb[32].mxu1  ;;  %v2240_v17 = vpop.f32.mrb[33].mxu0 }
 0x138   :  { %v2241_v18 = vadd.f32 %v2240_v17, %v2239_v14  ;;  %v2352_v20 = vpop.f32.mrb[33].mxu1  ;;  %v2242_v22 = vpop.f32.mrb[34].mxu0 }
 0x139   :  { %v2353_v23 = vadd.f32 %v2352_v20, %v2351_v15  ;;  %v2354_v24 = vpop.f32.mrb[34].mxu1  ;;  %v2243_v25 = vpop.f32.mrb[35].mxu0 }
 0x13a   :  { %v1401_v26 = vadd.f32 %v2241_v18, %v3250_v36  ;;  %v2244_v27 = vadd.f32 %v2243_v25, %v2242_v22  ;;  %v2355_v28 = vpop.f32.mrb[35].mxu1 }
 0x13b   :  { %v2356_v29 = vadd.f32 %v2355_v28, %v2354_v24 }
 0x13c   :  { %v3337_v30 = vadd.f32 %v2353_v23, %v1401_v26  ;;  %v1404_v31 = vadd.f32 %v2244_v27, %v3250_v36 }
 0x13e   :  { %v3340_v32 = vadd.f32 %v2356_v29, %v1404_v31  ;;  %v2245_v33 = vpop.f32.mrb[36].mxu0 }
 0x13f   :  { %v2357_v34 = vpop.f32.mrb[36].mxu1  ;;  %v2246_v38 = vpop.f32.mrb[37].mxu0 }
 0x140   :  { %v2247_v40 = vadd.f32 %v2246_v38, %v2245_v33  ;;  %v2358_v42 = vpop.f32.mrb[37].mxu1  ;;  %v2248_v43 = vpop.f32.mrb[38].mxu0 }
 0x141   :  { %v2359_v44 = vadd.f32 %v2358_v42, %v2357_v34  ;;  %v2360_v45 = vpop.f32.mrb[38].mxu1  ;;  %v2249_v46 = vpop.f32.mrb[39].mxu0 }
 0x142   :  { %v1409_v47 = vadd.f32 %v2247_v40, %v3250_v36  ;;  %v2250_v48 = vadd.f32 %v2249_v46, %v2248_v43  ;;  %v2361_v49 = vpop.f32.mrb[39].mxu1 }
 0x143   :  { %v2362_v50 = vadd.f32 %v2361_v49, %v2360_v45 }
 0x144   :  { %v3343_v51 = vadd.f32 %v2359_v44, %v1409_v47  ;;  %v1412_v53 = vadd.f32 %v2250_v48, %v3250_v36 }
 0x146   :  { %v3346_v54 = vadd.f32 %v2362_v50, %v1412_v53  ;;  %v2251_v57 = vpop.f32.mrb[40].mxu0 }
 0x147   :  { %v2363_v59 = vpop.f32.mrb[40].mxu1  ;;  %v2252_v60 = vpop.f32.mrb[41].mxu0 }
 0x148   :  { %v2253_v61 = vadd.f32 %v2252_v60, %v2251_v57  ;;  %v2364_v62 = vpop.f32.mrb[41].mxu1  ;;  %v2254_v0 = vpop.f32.mrb[42].mxu0 }
 0x149   :  { %v2365_v2 = vadd.f32 %v2364_v62, %v2363_v59  ;;  %v2366_v3 = vpop.f32.mrb[42].mxu1  ;;  %v2255_v4 = vpop.f32.mrb[43].mxu0 }
 0x14a   :  { %v1417_v5 = vadd.f32 %v2253_v61, %v3250_v36  ;;  %v2256_v6 = vadd.f32 %v2255_v4, %v2254_v0  ;;  %v2367_v7 = vpop.f32.mrb[43].mxu1 }
 0x14b   :  { %v2368_v8 = vadd.f32 %v2367_v7, %v2366_v3 }
 0x14c   :  { %v3349_v9 = vadd.f32 %v2365_v2, %v1417_v5  ;;  %v1420_v11 = vadd.f32 %v2256_v6, %v3250_v36 }
 0x14e   :  { %v3352_v14 = vadd.f32 %v2368_v8, %v1420_v11  ;;  %v2257_v15 = vpop.f32.mrb[44].mxu0 }
 0x14f   :  { %v2369_v17 = vpop.f32.mrb[44].mxu1  ;;  %v2258_v18 = vpop.f32.mrb[45].mxu0 }
 0x150   :  { %v2259_v20 = vadd.f32 %v2258_v18, %v2257_v15  ;;  %v2370_v22 = vpop.f32.mrb[45].mxu1  ;;  %v2260_v23 = vpop.f32.mrb[46].mxu0 }
 0x151   :  { %v2371_v24 = vadd.f32 %v2370_v22, %v2369_v17  ;;  %v2372_v25 = vpop.f32.mrb[46].mxu1  ;;  %v2261_v26 = vpop.f32.mrb[47].mxu0 }
 0x152   :  { %v1425_v27 = vadd.f32 %v2259_v20, %v3250_v36  ;;  %v2262_v28 = vadd.f32 %v2261_v26, %v2260_v23  ;;  %v2373_v29 = vpop.f32.mrb[47].mxu1 }
 0x153   :  { %v2374_v31 = vadd.f32 %v2373_v29, %v2372_v25 }
 0x154   :  { %v3355_v33 = vadd.f32 %v2371_v24, %v1425_v27  ;;  %v1428_v34 = vadd.f32 %v2262_v28, %v3250_v36 }
 0x156   :  { %v3358_v38 = vadd.f32 %v2374_v31, %v1428_v34  ;;  %v2263_v40 = vpop.f32.mrb[48].mxu0 }
 0x157   :  { %v2375_v42 = vpop.f32.mrb[48].mxu1  ;;  %v2264_v43 = vpop.f32.mrb[49].mxu0 }
 0x158   :  { %v2265_v44 = vadd.f32 %v2264_v43, %v2263_v40  ;;  %v2376_v45 = vpop.f32.mrb[49].mxu1  ;;  %v2266_v46 = vpop.f32.mrb[50].mxu0 }
 0x159   :  { %v2377_v47 = vadd.f32 %v2376_v45, %v2375_v42  ;;  %v2378_v48 = vpop.f32.mrb[50].mxu1  ;;  %v2267_v49 = vpop.f32.mrb[51].mxu0 }
 0x15a   :  { %v1433_v50 = vadd.f32 %v2265_v44, %v3250_v36  ;;  %v2268_v53 = vadd.f32 %v2267_v49, %v2266_v46  ;;  %v2379_v57 = vpop.f32.mrb[51].mxu1 }
 0x15b   :  { %v2380_v59 = vadd.f32 %v2379_v57, %v2378_v48 }
 0x15c   :  { %v3361_v60 = vadd.f32 %v2377_v47, %v1433_v50  ;;  %v1436_v61 = vadd.f32 %v2268_v53, %v3250_v36 }
 0x15e   :  { %v3364_v62 = vadd.f32 %v2380_v59, %v1436_v61  ;;  %v2269_v0 = vpop.f32.mrb[52].mxu0 }
 0x15f   :  { %v2381_v2 = vpop.f32.mrb[52].mxu1  ;;  %v2270_v3 = vpop.f32.mrb[53].mxu0 }
 0x160   :  { %v2271_v4 = vadd.f32 %v2270_v3, %v2269_v0  ;;  %v2382_v5 = vpop.f32.mrb[53].mxu1  ;;  %v2272_v6 = vpop.f32.mrb[54].mxu0 }
 0x161   :  { %v2383_v7 = vadd.f32 %v2382_v5, %v2381_v2  ;;  %v2384_v8 = vpop.f32.mrb[54].mxu1  ;;  %v2273_v11 = vpop.f32.mrb[55].mxu0 }
 0x162   :  { %v1441_v15 = vadd.f32 %v2271_v4, %v3250_v36  ;;  %v2274_v17 = vadd.f32 %v2273_v11, %v2272_v6  ;;  %v2385_v18 = vpop.f32.mrb[55].mxu1 }
 0x163   :  { %v2386_v20 = vadd.f32 %v2385_v18, %v2384_v8 }
 0x164   :  { %v3367_v22 = vadd.f32 %v2383_v7, %v1441_v15  ;;  %v1444_v23 = vadd.f32 %v2274_v17, %v3250_v36 }
 0x166   :  { %v3370_v24 = vadd.f32 %v2386_v20, %v1444_v23  ;;  %v2275_v25 = vpop.f32.mrb[56].mxu0 }
 0x167   :  { %v2387_v26 = vpop.f32.mrb[56].mxu1  ;;  %v2276_v27 = vpop.f32.mrb[57].mxu0 }
 0x168   :  { %v2277_v28 = vadd.f32 %v2276_v27, %v2275_v25  ;;  %v2388_v29 = vpop.f32.mrb[57].mxu1  ;;  %v2278_v31 = vpop.f32.mrb[58].mxu0 }
 0x169   :  { %v2389_v34 = vadd.f32 %v2388_v29, %v2387_v26  ;;  %v2390_v40 = vpop.f32.mrb[58].mxu1  ;;  %v2279_v42 = vpop.f32.mrb[59].mxu0 }
 0x16a   :  { %v1449_v43 = vadd.f32 %v2277_v28, %v3250_v36  ;;  %v2280_v44 = vadd.f32 %v2279_v42, %v2278_v31  ;;  %v2391_v45 = vpop.f32.mrb[59].mxu1 }
 0x16b   :  { %v2392_v46 = vadd.f32 %v2391_v45, %v2390_v40 }
 0x16c   :  { %v3373_v47 = vadd.f32 %v2389_v34, %v1449_v43  ;;  %v1452_v48 = vadd.f32 %v2280_v44, %v3250_v36 }
 0x16e   :  { %v3376_v49 = vadd.f32 %v2392_v46, %v1452_v48  ;;  %v2281_v50 = vpop.f32.mrb[60].mxu0 }
 0x16f   :  { %v2393_v53 = vpop.f32.mrb[60].mxu1  ;;  %v2282_v57 = vpop.f32.mrb[61].mxu0 }
 0x170   :  { %v2283_v59 = vadd.f32 %v2282_v57, %v2281_v50  ;;  %v2394_v61 = vpop.f32.mrb[61].mxu1  ;;  %v2284_v0 = vpop.f32.mrb[62].mxu0 }
 0x171   :  { %v2395_v2 = vadd.f32 %v2394_v61, %v2393_v53  ;;  %v2396_v3 = vpop.f32.mrb[62].mxu1  ;;  %v2285_v4 = vpop.f32.mrb[63].mxu0 }
 0x172   :  { %v1457_v5 = vadd.f32 %v2283_v59, %v3250_v36  ;;  %v2286_v6 = vadd.f32 %v2285_v4, %v2284_v0  ;;  %v2397_v7 = vpop.f32.mrb[63].mxu1 }
 0x173   :  { %v2398_v8 = vadd.f32 %v2397_v7, %v2396_v3 }
 0x174   :  { %v3379_v11 = vadd.f32 %v2395_v2, %v1457_v5  ;;  %v1460_v15 = vadd.f32 %v2286_v6, %v3250_v36 }
 0x176   :  { %v3382_v17 = vadd.f32 %v2398_v8, %v1460_v15  ;;  %v2415_v18 = vpop.f32.mrb[64].mxu0 }
 0x177   :  { %v2527_v20 = vpop.f32.mrb[64].mxu1  ;;  %v2416_v23 = vpop.f32.mrb[65].mxu0 }
 0x178   :  { %v2417_v25 = vadd.f32 %v2416_v23, %v2415_v18  ;;  %v2528_v26 = vpop.f32.mrb[65].mxu1  ;;  %v2418_v27 = vpop.f32.mrb[66].mxu0 }
 0x179   :  { %v2529_v28 = vadd.f32 %v2528_v26, %v2527_v20  ;;  %v2530_v29 = vpop.f32.mrb[66].mxu1  ;;  %v2419_v31 = vpop.f32.mrb[67].mxu0 }
 0x17a   :  { %v1659_v34 = vadd.f32 %v2417_v25, %v3253_v52  ;;  %v2420_v40 = vadd.f32 %v2419_v31, %v2418_v27  ;;  %v2531_v42 = vpop.f32.mrb[67].mxu1 }
 0x17b   :  { %v2532_v43 = vadd.f32 %v2531_v42, %v2530_v29 }
 0x17c   :  { %v1820_v44 = vadd.f32 %v2529_v28, %v1659_v34  ;;  %v1662_v45 = vadd.f32 %v2420_v40, %v3262_v56 }
 0x17e   :  { %1946 = vst [vmem:[%s3515_s3] sm:$0xff] %v1820_v44  ;;  %v1823_v36 = vadd.f32 %v2532_v43, %v1662_v45  ;;  %v2421_v46 = vpop.f32.mrb[68].mxu0 }
 0x17f   :  { %v2533_v48 = vpop.f32.mrb[68].mxu1  ;;  %v2422_v50 = vpop.f32.mrb[69].mxu0 }
 0x180   :  { %1947 = vst [vmem:[%s3515_s3 + $0x8] sm:$0xff] %v1823_v36  ;;  %v2423_v53 = vadd.f32 %v2422_v50, %v2421_v46  ;;  %v2534_v52 = vpop.f32.mrb[69].mxu1  ;;  %v2424_v57 = vpop.f32.mrb[70].mxu0 }
 0x181   :  { %v2535_v59 = vadd.f32 %v2534_v52, %v2533_v48  ;;  %v2536_v61 = vpop.f32.mrb[70].mxu1  ;;  %v2425_v0 = vpop.f32.mrb[71].mxu0 }
 0x182   :  { %v1667_v56 = vadd.f32 %v2423_v53, %v3271_v12  ;;  %v2426_v2 = vadd.f32 %v2425_v0, %v2424_v57  ;;  %v2537_v3 = vpop.f32.mrb[71].mxu1 }
 0x183   :  { %v2538_v4 = vadd.f32 %v2537_v3, %v2536_v61 }
 0x184   :  { %v1828_v5 = vadd.f32 %v2535_v59, %v1667_v56  ;;  %v1670_v6 = vadd.f32 %v2426_v2, %v3280_v16 }
 0x186   :  { %1948 = vst [vmem:[%s3515_s3 + $0x10] sm:$0xff] %v1828_v5  ;;  %v1831_v7 = vadd.f32 %v2538_v4, %v1670_v6  ;;  %v2427_v8 = vpop.f32.mrb[72].mxu0 }
 0x187   :  { %v2539_v15 = vpop.f32.mrb[72].mxu1  ;;  %v2428_v18 = vpop.f32.mrb[73].mxu0 }
 0x188   :  { %1949 = vst [vmem:[%s3515_s3 + $0x18] sm:$0xff] %v1831_v7  ;;  %v2429_v20 = vadd.f32 %v2428_v18, %v2427_v8  ;;  %v2540_v12 = vpop.f32.mrb[73].mxu1  ;;  %v2430_v23 = vpop.f32.mrb[74].mxu0 }
 0x189   :  { %v2541_v25 = vadd.f32 %v2540_v12, %v2539_v15  ;;  %v2542_v26 = vpop.f32.mrb[74].mxu1  ;;  %v2431_v27 = vpop.f32.mrb[75].mxu0 }
 0x18a   :  { %v1675_v16 = vadd.f32 %v2429_v20, %v3289_v37  ;;  %v2432_v28 = vadd.f32 %v2431_v27, %v2430_v23  ;;  %v2543_v29 = vpop.f32.mrb[75].mxu1 }
 0x18b   :  { %v2544_v31 = vadd.f32 %v2543_v29, %v2542_v26 }
 0x18c   :  { %v1836_v34 = vadd.f32 %v2541_v25, %v1675_v16  ;;  %v1678_v40 = vadd.f32 %v2432_v28, %v3298_v41 }
 0x18e   :  { %1950 = vst [vmem:[%s3515_s3 + $0x20] sm:$0xff] %v1836_v34  ;;  %v1839_v42 = vadd.f32 %v2544_v31, %v1678_v40  ;;  %v2433_v43 = vpop.f32.mrb[76].mxu0 }
 0x18f   :  { %v2545_v44 = vpop.f32.mrb[76].mxu1  ;;  %v2434_v45 = vpop.f32.mrb[77].mxu0 }
 0x190   :  { %1951 = vst [vmem:[%s3515_s3 + $0x28] sm:$0xff] %v1839_v42  ;;  %v2435_v36 = vadd.f32 %v2434_v45, %v2433_v43  ;;  %v2546_v37 = vpop.f32.mrb[77].mxu1  ;;  %v2436_v46 = vpop.f32.mrb[78].mxu0 }
 0x191   :  { %v2547_v48 = vadd.f32 %v2546_v37, %v2545_v44  ;;  %v2548_v50 = vpop.f32.mrb[78].mxu1  ;;  %v2437_v53 = vpop.f32.mrb[79].mxu0 }
 0x192   :  { %v1683_v41 = vadd.f32 %v2435_v36, %v3307_v63  ;;  %v2438_v52 = vadd.f32 %v2437_v53, %v2436_v46  ;;  %v2549_v57 = vpop.f32.mrb[79].mxu1 }
 0x193   :  { %v2550_v59 = vadd.f32 %v2549_v57, %v2548_v50 }
 0x194   :  { %v1844_v61 = vadd.f32 %v2547_v48, %v1683_v41  ;;  %v1686_v0 = vadd.f32 %v2438_v52, %v3310_v1 }
 0x196   :  { %1952 = vst [vmem:[%s3515_s3 + $0x30] sm:$0xff] %v1844_v61  ;;  %v1847_v56 = vadd.f32 %v2550_v59, %v1686_v0  ;;  %v2439_v2 = vpop.f32.mrb[80].mxu0 }
 0x197   :  { %v2551_v3 = vpop.f32.mrb[80].mxu1  ;;  %v2440_v4 = vpop.f32.mrb[81].mxu0 }
 0x198   :  { %1953 = vst [vmem:[%s3515_s3 + $0x38] sm:$0xff] %v1847_v56  ;;  %v2441_v5 = vadd.f32 %v2440_v4, %v2439_v2  ;;  %v2552_v63 = vpop.f32.mrb[81].mxu1  ;;  %v2442_v6 = vpop.f32.mrb[82].mxu0 }
 0x199   :  { %v2553_v7 = vadd.f32 %v2552_v63, %v2551_v3  ;;  %v2554_v8 = vpop.f32.mrb[82].mxu1  ;;  %v2443_v15 = vpop.f32.mrb[83].mxu0 }
 0x19a   :  { %v1691_v1 = vadd.f32 %v2441_v5, %v3313_v19  ;;  %v2444_v18 = vadd.f32 %v2443_v15, %v2442_v6  ;;  %v2555_v20 = vpop.f32.mrb[83].mxu1 }
 0x19b   :  { %v2556_v12 = vadd.f32 %v2555_v20, %v2554_v8 }
 0x19c   :  { %v1852_v23 = vadd.f32 %v2553_v7, %v1691_v1  ;;  %v1694_v25 = vadd.f32 %v2444_v18, %v3316_v21 }
 0x19e   :  { %1954 = vst [vmem:[%s3515_s3 + $0x40] sm:$0xff] %v1852_v23  ;;  %v1855_v26 = vadd.f32 %v2556_v12, %v1694_v25  ;;  %v2445_v27 = vpop.f32.mrb[84].mxu0 }
 0x19f   :  { %v2557_v16 = vpop.f32.mrb[84].mxu1  ;;  %v2446_v28 = vpop.f32.mrb[85].mxu0 }
 0x1a0   :  { %1955 = vst [vmem:[%s3515_s3 + $0x48] sm:$0xff] %v1855_v26  ;;  %v2447_v29 = vadd.f32 %v2446_v28, %v2445_v27  ;;  %v2558_v19 = vpop.f32.mrb[85].mxu1  ;;  %v2448_v31 = vpop.f32.mrb[86].mxu0 }
 0x1a1   :  { %v2559_v34 = vadd.f32 %v2558_v19, %v2557_v16  ;;  %v2560_v40 = vpop.f32.mrb[86].mxu1  ;;  %v2449_v42 = vpop.f32.mrb[87].mxu0 }
 0x1a2   :  { %v1699_v21 = vadd.f32 %v2447_v29, %v3319_v35  ;;  %v2450_v43 = vadd.f32 %v2449_v42, %v2448_v31  ;;  %v2561_v44 = vpop.f32.mrb[87].mxu1 }
 0x1a3   :  { %v2562_v45 = vadd.f32 %v2561_v44, %v2560_v40 }
 0x1a4   :  { %v1860_v36 = vadd.f32 %v2559_v34, %v1699_v21  ;;  %v1702_v37 = vadd.f32 %v2450_v43, %v3322_v39 }
 0x1a6   :  { %1956 = vst [vmem:[%s3515_s3 + $0x50] sm:$0xff] %v1860_v36  ;;  %v1863_v46 = vadd.f32 %v2562_v45, %v1702_v37  ;;  %v2451_v48 = vpop.f32.mrb[88].mxu0 }
 0x1a7   :  { %v2563_v50 = vpop.f32.mrb[88].mxu1  ;;  %v2452_v53 = vpop.f32.mrb[89].mxu0 }
 0x1a8   :  { %1957 = vst [vmem:[%s3515_s3 + $0x58] sm:$0xff] %v1863_v46  ;;  %v2453_v41 = vadd.f32 %v2452_v53, %v2451_v48  ;;  %v2564_v35 = vpop.f32.mrb[89].mxu1  ;;  %v2454_v52 = vpop.f32.mrb[90].mxu0 }
 0x1a9   :  { %v2565_v57 = vadd.f32 %v2564_v35, %v2563_v50  ;;  %v2566_v59 = vpop.f32.mrb[90].mxu1  ;;  %v2455_v61 = vpop.f32.mrb[91].mxu0 }
 0x1aa   :  { %v1707_v39 = vadd.f32 %v2453_v41, %v3325_v55  ;;  %v2456_v0 = vadd.f32 %v2455_v61, %v2454_v52  ;;  %v2567_v56 = vpop.f32.mrb[91].mxu1 }
 0x1ab   :  { %v2568_v2 = vadd.f32 %v2567_v56, %v2566_v59 }
 0x1ac   :  { %v1868_v3 = vadd.f32 %v2565_v57, %v1707_v39  ;;  %v1710_v4 = vadd.f32 %v2456_v0, %v3328_v58 }
 0x1ae   :  { %1958 = vst [vmem:[%s3515_s3 + $0x60] sm:$0xff] %v1868_v3  ;;  %v1871_v5 = vadd.f32 %v2568_v2, %v1710_v4  ;;  %v2457_v63 = vpop.f32.mrb[92].mxu0 }
 0x1af   :  { %v2569_v6 = vpop.f32.mrb[92].mxu1  ;;  %v2458_v7 = vpop.f32.mrb[93].mxu0 }
 0x1b0   :  { %1959 = vst [vmem:[%s3515_s3 + $0x68] sm:$0xff] %v1871_v5  ;;  %v2459_v8 = vadd.f32 %v2458_v7, %v2457_v63  ;;  %v2570_v55 = vpop.f32.mrb[93].mxu1  ;;  %v2460_v15 = vpop.f32.mrb[94].mxu0 }
 0x1b1   :  { %v2571_v1 = vadd.f32 %v2570_v55, %v2569_v6  ;;  %v2572_v18 = vpop.f32.mrb[94].mxu1  ;;  %v2461_v20 = vpop.f32.mrb[95].mxu0 }
 0x1b2   :  { %v1715_v58 = vadd.f32 %v2459_v8, %v3331_v10  ;;  %v2462_v12 = vadd.f32 %v2461_v20, %v2460_v15  ;;  %v2573_v23 = vpop.f32.mrb[95].mxu1 }
 0x1b3   :  { %v2574_v25 = vadd.f32 %v2573_v23, %v2572_v18 }
 0x1b4   :  { %v1876_v26 = vadd.f32 %v2571_v1, %v1715_v58  ;;  %v1718_v27 = vadd.f32 %v2462_v12, %v3334_v13 }
 0x1b6   :  { %1960 = vst [vmem:[%s3515_s3 + $0x70] sm:$0xff] %v1876_v26  ;;  %v1879_v16 = vadd.f32 %v2574_v25, %v1718_v27  ;;  %v2463_v28 = vpop.f32.mrb[96].mxu0 }
 0x1b7   :  { %v2575_v29 = vpop.f32.mrb[96].mxu1  ;;  %v2464_v19 = vpop.f32.mrb[97].mxu0 }
 0x1b8   :  { %1961 = vst [vmem:[%s3515_s3 + $0x78] sm:$0xff] %v1879_v16  ;;  %v2465_v31 = vadd.f32 %v2464_v19, %v2463_v28  ;;  %v2576_v10 = vpop.f32.mrb[97].mxu1  ;;  %v2466_v34 = vpop.f32.mrb[98].mxu0 }
 0x1b9   :  { %v2577_v40 = vadd.f32 %v2576_v10, %v2575_v29  ;;  %v2578_v42 = vpop.f32.mrb[98].mxu1  ;;  %v2467_v21 = vpop.f32.mrb[99].mxu0 }
 0x1ba   :  { %v1723_v13 = vadd.f32 %v2465_v31, %v3337_v30  ;;  %v2468_v43 = vadd.f32 %v2467_v21, %v2466_v34  ;;  %v2579_v44 = vpop.f32.mrb[99].mxu1 }
 0x1bb   :  { %v2580_v45 = vadd.f32 %v2579_v44, %v2578_v42 }
 0x1bc   :  { %v1884_v36 = vadd.f32 %v2577_v40, %v1723_v13  ;;  %v1726_v37 = vadd.f32 %v2468_v43, %v3340_v32 }
 0x1be   :  { %1962 = vst [vmem:[%s3515_s3 + $0x80] sm:$0xff] %v1884_v36  ;;  %v1887_v46 = vadd.f32 %v2580_v45, %v1726_v37  ;;  %v2469_v48 = vpop.f32.mrb[100].mxu0 }
 0x1bf   :  { %v2581_v50 = vpop.f32.mrb[100].mxu1  ;;  %v2470_v53 = vpop.f32.mrb[101].mxu0 }
 0x1c0   :  { %1963 = vst [vmem:[%s3515_s3 + $0x88] sm:$0xff] %v1887_v46  ;;  %v2471_v41 = vadd.f32 %v2470_v53, %v2469_v48  ;;  %v2582_v30 = vpop.f32.mrb[101].mxu1  ;;  %v2472_v35 = vpop.f32.mrb[102].mxu0 }
 0x1c1   :  { %v2583_v52 = vadd.f32 %v2582_v30, %v2581_v50  ;;  %v2584_v57 = vpop.f32.mrb[102].mxu1  ;;  %v2473_v59 = vpop.f32.mrb[103].mxu0 }
 0x1c2   :  { %v1731_v32 = vadd.f32 %v2471_v41, %v3343_v51  ;;  %v2474_v61 = vadd.f32 %v2473_v59, %v2472_v35  ;;  %v2585_v39 = vpop.f32.mrb[103].mxu1 }
 0x1c3   :  { %v2586_v0 = vadd.f32 %v2585_v39, %v2584_v57 }
 0x1c4   :  { %v1892_v56 = vadd.f32 %v2583_v52, %v1731_v32  ;;  %v1734_v2 = vadd.f32 %v2474_v61, %v3346_v54 }
 0x1c6   :  { %1964 = vst [vmem:[%s3515_s3 + $0x90] sm:$0xff] %v1892_v56  ;;  %v1895_v3 = vadd.f32 %v2586_v0, %v1734_v2  ;;  %v2475_v4 = vpop.f32.mrb[104].mxu0 }
 0x1c7   :  { %v2587_v5 = vpop.f32.mrb[104].mxu1  ;;  %v2476_v63 = vpop.f32.mrb[105].mxu0 }
 0x1c8   :  { %1965 = vst [vmem:[%s3515_s3 + $0x98] sm:$0xff] %v1895_v3  ;;  %v2477_v6 = vadd.f32 %v2476_v63, %v2475_v4  ;;  %v2588_v51 = vpop.f32.mrb[105].mxu1  ;;  %v2478_v7 = vpop.f32.mrb[106].mxu0 }
 0x1c9   :  { %v2589_v8 = vadd.f32 %v2588_v51, %v2587_v5  ;;  %v2590_v55 = vpop.f32.mrb[106].mxu1  ;;  %v2479_v15 = vpop.f32.mrb[107].mxu0 }
 0x1ca   :  { %v1739_v54 = vadd.f32 %v2477_v6, %v3349_v9  ;;  %v2480_v1 = vadd.f32 %v2479_v15, %v2478_v7  ;;  %v2591_v18 = vpop.f32.mrb[107].mxu1 }
 0x1cb   :  { %v2592_v20 = vadd.f32 %v2591_v18, %v2590_v55 }
 0x1cc   :  { %v1900_v58 = vadd.f32 %v2589_v8, %v1739_v54  ;;  %v1742_v12 = vadd.f32 %v2480_v1, %v3352_v14 }
 0x1ce   :  { %1966 = vst [vmem:[%s3515_s3 + $0xa0] sm:$0xff] %v1900_v58  ;;  %v1903_v23 = vadd.f32 %v2592_v20, %v1742_v12  ;;  %v2481_v25 = vpop.f32.mrb[108].mxu0 }
 0x1cf   :  { %v2593_v26 = vpop.f32.mrb[108].mxu1  ;;  %v2482_v27 = vpop.f32.mrb[109].mxu0 }
 0x1d0   :  { %1967 = vst [vmem:[%s3515_s3 + $0xa8] sm:$0xff] %v1903_v23  ;;  %v2483_v16 = vadd.f32 %v2482_v27, %v2481_v25  ;;  %v2594_v9 = vpop.f32.mrb[109].mxu1  ;;  %v2484_v28 = vpop.f32.mrb[110].mxu0 }
 0x1d1   :  { %v2595_v29 = vadd.f32 %v2594_v9, %v2593_v26  ;;  %v2596_v19 = vpop.f32.mrb[110].mxu1  ;;  %v2485_v31 = vpop.f32.mrb[111].mxu0 }
 0x1d2   :  { %v1747_v14 = vadd.f32 %v2483_v16, %v3355_v33  ;;  %v2486_v10 = vadd.f32 %v2485_v31, %v2484_v28  ;;  %v2597_v34 = vpop.f32.mrb[111].mxu1 }
 0x1d3   :  { %v2598_v40 = vadd.f32 %v2597_v34, %v2596_v19 }
 0x1d4   :  { %v1908_v42 = vadd.f32 %v2595_v29, %v1747_v14  ;;  %v1750_v21 = vadd.f32 %v2486_v10, %v3358_v38 }
 0x1d6   :  { %1968 = vst [vmem:[%s3515_s3 + $0xb0] sm:$0xff] %v1908_v42  ;;  %v1911_v13 = vadd.f32 %v2598_v40, %v1750_v21  ;;  %v2487_v43 = vpop.f32.mrb[112].mxu0 }
 0x1d7   :  { %v2599_v44 = vpop.f32.mrb[112].mxu1  ;;  %v2488_v45 = vpop.f32.mrb[113].mxu0 }
 0x1d8   :  { %1969 = vst [vmem:[%s3515_s3 + $0xb8] sm:$0xff] %v1911_v13  ;;  %v2489_v36 = vadd.f32 %v2488_v45, %v2487_v43  ;;  %v2600_v33 = vpop.f32.mrb[113].mxu1  ;;  %v2490_v37 = vpop.f32.mrb[114].mxu0 }
 0x1d9   :  { %v2601_v46 = vadd.f32 %v2600_v33, %v2599_v44  ;;  %v2602_v48 = vpop.f32.mrb[114].mxu1  ;;  %v2491_v50 = vpop.f32.mrb[115].mxu0 }
 0x1da   :  { %v1755_v38 = vadd.f32 %v2489_v36, %v3361_v60  ;;  %v2492_v53 = vadd.f32 %v2491_v50, %v2490_v37  ;;  %v2603_v41 = vpop.f32.mrb[115].mxu1 }
 0x1db   :  { %v2604_v30 = vadd.f32 %v2603_v41, %v2602_v48 }
 0x1dc   :  { %v1916_v35 = vadd.f32 %v2601_v46, %v1755_v38  ;;  %v1758_v52 = vadd.f32 %v2492_v53, %v3364_v62 }
 0x1de   :  { %1970 = vst [vmem:[%s3515_s3 + $0xc0] sm:$0xff] %v1916_v35  ;;  %v1919_v57 = vadd.f32 %v2604_v30, %v1758_v52  ;;  %v2493_v59 = vpop.f32.mrb[116].mxu0 }
 0x1df   :  { %v2605_v32 = vpop.f32.mrb[116].mxu1  ;;  %v2494_v61 = vpop.f32.mrb[117].mxu0 }
 0x1e0   :  { %1971 = vst [vmem:[%s3515_s3 + $0xc8] sm:$0xff] %v1919_v57  ;;  %v2495_v39 = vadd.f32 %v2494_v61, %v2493_v59  ;;  %v2606_v60 = vpop.f32.mrb[117].mxu1  ;;  %v2496_v0 = vpop.f32.mrb[118].mxu0 }
 0x1e1   :  { %v2607_v56 = vadd.f32 %v2606_v60, %v2605_v32  ;;  %v2608_v2 = vpop.f32.mrb[118].mxu1  ;;  %v2497_v3 = vpop.f32.mrb[119].mxu0 }
 0x1e2   :  { %v1763_v62 = vadd.f32 %v2495_v39, %v3367_v22  ;;  %v2498_v4 = vadd.f32 %v2497_v3, %v2496_v0  ;;  %v2609_v5 = vpop.f32.mrb[119].mxu1 }
 0x1e3   :  { %v2610_v63 = vadd.f32 %v2609_v5, %v2608_v2 }
 0x1e4   :  { %v1924_v6 = vadd.f32 %v2607_v56, %v1763_v62  ;;  %v1766_v51 = vadd.f32 %v2498_v4, %v3370_v24 }
 0x1e6   :  { %1972 = vst [vmem:[%s3515_s3 + $0xd0] sm:$0xff] %v1924_v6  ;;  %v1927_v7 = vadd.f32 %v2610_v63, %v1766_v51  ;;  %v2499_v8 = vpop.f32.mrb[120].mxu0 }
 0x1e7   :  { %v2611_v55 = vpop.f32.mrb[120].mxu1  ;;  %v2500_v15 = vpop.f32.mrb[121].mxu0 }
 0x1e8   :  { %1973 = vst [vmem:[%s3515_s3 + $0xd8] sm:$0xff] %v1927_v7  ;;  %v2501_v54 = vadd.f32 %v2500_v15, %v2499_v8  ;;  %v2612_v22 = vpop.f32.mrb[121].mxu1  ;;  %v2502_v1 = vpop.f32.mrb[122].mxu0 }
 0x1e9   :  { %v2613_v18 = vadd.f32 %v2612_v22, %v2611_v55  ;;  %v2614_v20 = vpop.f32.mrb[122].mxu1  ;;  %v2503_v58 = vpop.f32.mrb[123].mxu0 }
 0x1ea   :  { %v1771_v24 = vadd.f32 %v2501_v54, %v3373_v47  ;;  %v2504_v12 = vadd.f32 %v2503_v58, %v2502_v1  ;;  %v2615_v23 = vpop.f32.mrb[123].mxu1 }
 0x1eb   :  { %v2616_v25 = vadd.f32 %v2615_v23, %v2614_v20 }
 0x1ec   :  { %v1932_v26 = vadd.f32 %v2613_v18, %v1771_v24  ;;  %v1774_v27 = vadd.f32 %v2504_v12, %v3376_v49 }
 0x1ee   :  { %1974 = vst [vmem:[%s3515_s3 + $0xe0] sm:$0xff] %v1932_v26  ;;  %v1935_v16 = vadd.f32 %v2616_v25, %v1774_v27  ;;  %v2505_v9 = vpop.f32.mrb[124].mxu0 }
 0x1ef   :  { %v2617_v28 = vpop.f32.mrb[124].mxu1  ;;  %v2506_v29 = vpop.f32.mrb[125].mxu0 }
 0x1f0   :  { %1975 = vst [vmem:[%s3515_s3 + $0xe8] sm:$0xff] %v1935_v16  ;;  %v2507_v19 = vadd.f32 %v2506_v29, %v2505_v9  ;;  %v2618_v47 = vpop.f32.mrb[125].mxu1  ;;  %v2508_v31 = vpop.f32.mrb[126].mxu0 }
 0x1f1   :  { %v2619_v14 = vadd.f32 %v2618_v47, %v2617_v28  ;;  %v2620_v10 = vpop.f32.mrb[126].mxu1  ;;  %v2509_v34 = vpop.f32.mrb[127].mxu0 }
 0x1f2   :  { %v1779_v49 = vadd.f32 %v2507_v19, %v3379_v11  ;;  %v2510_v40 = vadd.f32 %v2509_v34, %v2508_v31  ;;  %v2621_v42 = vpop.f32.mrb[127].mxu1 }
 0x1f3   :  { %v2622_v21 = vadd.f32 %v2621_v42, %v2620_v10 }
 0x1f4   :  { %v1940_v13 = vadd.f32 %v2619_v14, %v1779_v49  ;;  %v1782_v43 = vadd.f32 %v2510_v40, %v3382_v17 }
 0x1f6   :  { %1976 = vst [vmem:[%s3515_s3 + $0xf0] sm:$0xff] %v1940_v13  ;;  %v1943_v44 = vadd.f32 %v2622_v21, %v1782_v43 }
 0x1f8   :  { %1977 = vst [vmem:[%s3515_s3 + $0xf8] sm:$0xff] %v1943_v44 }

</bundles_post_ra>
